<compile_context>
chip_gen: v7x
topology: tpu7x:2x2x1
jax: 0.10.0
libtpu: 0.0.40
codegen_flags: <defaults>
</compile_context>

<pallas_src>
import numpy as np
import jax
import jax.numpy as jnp
from jax.experimental import pallas as pl
from jax.experimental.pallas import tpu as pltpu

EPS = 1e-5
TK_HEAD = 7168          # head K tile (multiple of 128); 14112 pads to 14336 = 2 * 7168


# --------------------------------------------------------------------------- kernels

def _conv_bn_relu_kernel(p_ref, w_ref, scale_ref, shift_ref, o_ref):
    # p_ref: (tm, K) bf16 im2col patches, w_ref: (K, Cout) bf16, scale/shift: (1, Cout) f32
    acc = jnp.dot(p_ref[...], w_ref[...], preferred_element_type=jnp.float32)
    y = jnp.maximum(acc * scale_ref[...] + shift_ref[...], 0.0)
    o_ref[...] = y.astype(o_ref.dtype)


def conv_bn_relu(patches, w_t, scale, shift, tm, out_dtype=jnp.bfloat16):
    M, K = patches.shape
    Cout = w_t.shape[1]
    grid = (pl.cdiv(M, tm),)          # ragged last block: OOB rows masked on store
    return pl.pallas_call(
        _conv_bn_relu_kernel,
        out_shape=jax.ShapeDtypeStruct((M, Cout), out_dtype),
        grid=grid,
        in_specs=[
            pl.BlockSpec((tm, K), lambda i: (i, 0)),
            pl.BlockSpec((K, Cout), lambda i: (0, 0)),
            pl.BlockSpec((1, Cout), lambda i: (0, 0)),
            pl.BlockSpec((1, Cout), lambda i: (0, 0)),
        ],
        out_specs=pl.BlockSpec((tm, Cout), lambda i: (i, 0)),
        compiler_params=pltpu.CompilerParams(
            dimension_semantics=("parallel",)),
    )(patches, w_t, scale, shift)


def _head_tail_kernel(x_ref, wh_ref, bh_ref, wt_ref, bt_ref, o_ref, acc_ref):
    k = pl.program_id(0)

    @pl.when(k == 0)
    def _():
        acc_ref[...] = jnp.zeros_like(acc_ref)

    # bf16 x bf16 -> f32 accumulate (MXU native on v5e/v6e/v7x)
    acc_ref[...] += jnp.dot(x_ref[...], wh_ref[...],
                            preferred_element_type=jnp.float32)

    @pl.when(k == pl.num_programs(0) - 1)
    def _():
        h = jnp.maximum(acc_ref[...] + bh_ref[...], 0.0)          # head + ReLU
        o_ref[...] = (jnp.dot(h, wt_ref[...],
                              preferred_element_type=jnp.float32)
                      + bt_ref[...])                              # tail


def head_tail(x_flat, wh_t, bh, wt_t, bt, tk=TK_HEAD):
    B, KP = x_flat.shape
    H = wh_t.shape[1]                 # 256
    O = wt_t.shape[1]
    assert KP == wh_t.shape[0] and KP % tk == 0
    return pl.pallas_call(
        _head_tail_kernel,
        out_shape=jax.ShapeDtypeStruct((B, O), jnp.float32),
        grid_spec=pltpu.PrefetchScalarGridSpec(
            num_scalar_prefetch=0,
            grid=(KP // tk,),
            in_specs=[
                pl.BlockSpec((B, tk), lambda k: (0, k)),
                pl.BlockSpec((tk, H), lambda k: (k, 0)),
                pl.BlockSpec((1, H), lambda k: (0, 0)),
                pl.BlockSpec((H, O), lambda k: (0, 0)),
                pl.BlockSpec((1, O), lambda k: (0, 0)),
            ],
            out_specs=pl.BlockSpec((B, O), lambda k: (0, 0)),
            scratch_shapes=[pltpu.VMEM((B, H), jnp.float32)],
        ),
        compiler_params=pltpu.CompilerParams(
            dimension_semantics=("arbitrary",)),
    )(x_flat, wh_t, bh, wt_t, bt)


# --------------------------------------------------------------------------- glue

def im2col_nchw(x, k, stride):
    """Patches from NCHW input, feature order (c, kh, kw) == torch weight.reshape(Cout,-1)."""
    B, C, H, W = x.shape
    Ho = (H - k) // stride + 1
    Wo = (W - k) // stride + 1
    slices = [
        x[:, :, kh:kh + stride * (Ho - 1) + 1:stride,
                kw:kw + stride * (Wo - 1) + 1:stride]
        for kh in range(k) for kw in range(k)
    ]
    cols = jnp.stack(slices, axis=2)                       # (B, C, k*k, Ho, Wo)
    cols = cols.reshape(B, C * k * k, Ho, Wo)
    cols = cols.transpose(0, 2, 3, 1).reshape(B * Ho * Wo, C * k * k)
    return cols, Ho, Wo


def im2col_nhwc(x, k, stride):
    """Patches from NHWC input, feature order (kh, kw, c)."""
    B, H, W, C = x.shape
    Ho = (H - k) // stride + 1
    Wo = (W - k) // stride + 1
    slices = [
        x[:, kh:kh + stride * (Ho - 1) + 1:stride,
             kw:kw + stride * (Wo - 1) + 1:stride, :]
        for kh in range(k) for kw in range(k)
    ]
    cols = jnp.stack(slices, axis=3)                       # (B, Ho, Wo, k*k, C)
    cols = cols.reshape(B * Ho * Wo, k * k * C)
    return cols, Ho, Wo


def _fold_bn(bias, gamma, beta, rmean, rvar):
    sc = gamma / jnp.sqrt(rvar + EPS)
    shift = beta - rmean * sc
    return sc.reshape(1, -1), (bias * sc + shift).reshape(1, -1)


def prepare_params(p):
    """One-off parameter preprocessing (outside the hot forward)."""
    sc1, sh1 = _fold_bn(p["b1"], p["g1"], p["be1"], p["rm1"], p["rv1"])
    sc2, sh2 = _fold_bn(p["b2"], p["g2"], p["be2"], p["rm2"], p["rv2"])

    cout1 = p["w1"].shape[0]
    cout2 = p["w2"].shape[0]
    # conv1 consumes NCHW patches with feature order (c, kh, kw)  -> torch reshape order.
    w1m = p["w1"].reshape(cout1, -1).T.astype(jnp.bfloat16)         # (Cin*36, 16)
    # conv2 consumes NHWC patches with feature order (kh, kw, c).
    w2m = (p["w2"].transpose(2, 3, 1, 0)
           .reshape(-1, cout2).astype(jnp.bfloat16))                # (576, 32)

    # Head weight: permute columns from torch's (c, h, w) flatten order to this pipeline's
    # NHWC (h, w, c) order, transpose, pad K to a multiple of TK_HEAD, cast to bf16.
    wh = p["wh"]                                                    # (256, 32*21*21)
    nh = wh.shape[0]
    wh_n = wh.reshape(nh, cout2, 21, 21).transpose(0, 2, 3, 1).reshape(nh, -1).T
    K = wh_n.shape[0]
    KP = ((K + TK_HEAD - 1) // TK_HEAD) * TK_HEAD
    wh_n = jnp.pad(wh_n, ((0, KP - K), (0, 0))).astype(jnp.bfloat16)

    return {
        "w1": w1m, "sc1": sc1, "sh1": sh1,
        "w2": w2m, "sc2": sc2, "sh2": sh2,
        "wh": wh_n, "bh": p["bh"].reshape(1, -1),
        "wt": p["wt"].T, "bt": p["bt"].reshape(1, -1),
    }


def cnn_forward(x, q):
    B = x.shape[0]
    xb = x.astype(jnp.bfloat16)                                     # bf16 conv path

    # conv1 + bn1 + relu  (patches straight from NCHW input; output is channels-last bf16)
    p1, H1, W1 = im2col_nchw(xb, 6, 2)
    y1 = conv_bn_relu(p1, q["w1"], q["sc1"], q["sh1"], tm=2176,
                      out_dtype=jnp.bfloat16)                       # 2 grid steps
    y1 = y1.reshape(B, H1, W1, q["w1"].shape[1])                    # NHWC, metadata reshape

    # conv2 + bn2 + relu  (single full-array block; emits bf16 -> feeds bf16 head matmul)
    p2, H2, W2 = im2col_nhwc(y1, 6, 2)
    y2 = conv_bn_relu(p2, q["w2"], q["sc2"], q["sh2"], tm=p2.shape[0],
                      out_dtype=jnp.bfloat16)

    # flatten in NHWC order (head weight columns were permuted to match) + zero-pad K
    flat = y2.reshape(B, H2 * W2 * q["w2"].shape[1])
    KP = q["wh"].shape[0]
    flat = jnp.pad(flat, ((0, 0), (0, KP - flat.shape[1])))
    return head_tail(flat, q["wh"], q["bh"], q["wt"], q["bt"], tk=TK_HEAD)


# --------------------------------------------------------------------------- reference

def ref_forward(x, p):
    def bn(y, g, b, rm, rv):
        sc = (g / jnp.sqrt(rv + EPS))[None, :, None, None]
        return (y - rm[None, :, None, None]) * sc + b[None, :, None, None]

    dn = ("NCHW", "OIHW", "NCHW")
    y = jax.lax.conv_general_dilated(x, p["w1"], (2, 2), "VALID",
                                     dimension_numbers=dn) + p["b1"][None, :, None, None]
    y = jnp.maximum(bn(y, p["g1"], p["be1"], p["rm1"], p["rv1"]), 0.0)
    y = jax.lax.conv_general_dilated(y, p["w2"], (2, 2), "VALID",
                                     dimension_numbers=dn) + p["b2"][None, :, None, None]
    y = jnp.maximum(bn(y, p["g2"], p["be2"], p["rm2"], p["rv2"]), 0.0)
    f = y.reshape(y.shape[0], -1)
    h = jnp.maximum(f @ p["wh"].T + p["bh"], 0.0)
    return h @ p["wt"].T + p["bt"]


# --------------------------------------------------------------------------- main

if __name__ == "__main__":
    B, CIN, HW, NOUT = 2, 3, 96, 4      # 96x96 -> 46x46 -> 21x21 (required by the head size)
    key = jax.random.PRNGKey(0)
    ks = jax.random.split(key, 17)

    def nrm(k, shape, s=0.05):
        return jax.random.normal(k, shape, jnp.float32) * s

    params = {
        "w1": nrm(ks[0], (16, CIN, 6, 6)), "b1": nrm(ks[1], (16,)),
        "g1": 1.0 + nrm(ks[2], (16,)), "be1": nrm(ks[3], (16,)),
        "rm1": nrm(ks[4], (16,)), "rv1": 1.0 + 0.5 * jax.random.uniform(ks[5], (16,)),
        "w2": nrm(ks[6], (32, 16, 6, 6)), "b2": nrm(ks[7], (32,)),
        "g2": 1.0 + nrm(ks[8], (32,)), "be2": nrm(ks[9], (32,)),
        "rm2": nrm(ks[10], (32,)), "rv2": 1.0 + 0.5 * jax.random.uniform(ks[11], (32,)),
        "wh": nrm(ks[12], (256, 21 * 21 * 32)), "bh": nrm(ks[13], (256,)),
        "wt": nrm(ks[14], (NOUT, 256)), "bt": nrm(ks[15], (NOUT,)),
    }

    x = jax.random.normal(ks[16], (B, CIN, HW, HW), jnp.float32)

    prepped = jax.block_until_ready(prepare_params(params))    # one-off weight re-layout
    fwd = jax.jit(cnn_forward)
    out = jax.block_until_ready(fwd(x, prepped))
    ref = jax.block_until_ready(ref_forward(x, params))

    assert out.shape == (B, NOUT), out.shape
    # Tolerance reflects the bf16 end-to-end conv path + bf16 head weight (f32 accumulation
    # throughout); layout/permutation bugs would show up as O(1) errors, far above this.
    np.testing.assert_allclose(np.asarray(out), np.asarray(ref), rtol=3e-2, atol=3e-2)
    print("KERNEL_OK")
</pallas_src>

<mosaic_0001>
module attributes {stable_mosaic.version = 11 : i64} {
  func.func @_conv_bn_relu_kernel(%arg0: i32, %arg1: memref<2176x108xbf16, #tpu.memory_space<vmem>>, %arg2: memref<108x16xbf16, #tpu.memory_space<vmem>>, %arg3: memref<1x16xf32, #tpu.memory_space<vmem>>, %arg4: memref<1x16xf32, #tpu.memory_space<vmem>>, %arg5: memref<2176x16xbf16, #tpu.memory_space<vmem>>) attributes {dimension_semantics = [#tpu.dimension_semantics<parallel>], iteration_bounds = array<i64: 2>, scalar_prefetch = 0 : i64, scratch_operands = 0 : i64, tpu.core_type = #tpu.core_type<tc>, window_params = [{transform_indices = @transform_0, window_bounds = array<i64: 2176, 108>}, {pipeline_mode = #tpu.pipeline_mode<synchronous>, transform_indices = @transform_1, window_bounds = array<i64: 108, 16>}, {pipeline_mode = #tpu.pipeline_mode<synchronous>, transform_indices = @transform_2, window_bounds = array<i64: 1, 16>}, {pipeline_mode = #tpu.pipeline_mode<synchronous>, transform_indices = @transform_3, window_bounds = array<i64: 1, 16>}, {transform_indices = @transform_4, window_bounds = array<i64: 2176, 16>}]} {
    %c0 = arith.constant 0 : index
    %c0_0 = arith.constant 0 : index
    %0 = vector.load %arg1[%c0, %c0_0] : memref<2176x108xbf16, #tpu.memory_space<vmem>>, vector<2176x108xbf16>
    %c0_1 = arith.constant 0 : index
    %c0_2 = arith.constant 0 : index
    %1 = vector.load %arg2[%c0_1, %c0_2] : memref<108x16xbf16, #tpu.memory_space<vmem>>, vector<108x16xbf16>
    %cst = arith.constant dense<0.000000e+00> : vector<2176x16xf32>
    %2 = tpu.matmul %0, %1, %cst {dimension_numbers = #tpu.dot_dimension_numbers<[1], [0], [0], [1], [0, 0, 1, 1], [], []>} : vector<2176x108xbf16>, vector<108x16xbf16>, vector<2176x16xf32> -> vector<2176x16xf32>
    %c0_3 = arith.constant 0 : index
    %c0_4 = arith.constant 0 : index
    %3 = vector.load %arg3[%c0_3, %c0_4] : memref<1x16xf32, #tpu.memory_space<vmem>>, vector<1x16xf32>
    %4 = vector.broadcast %3 : vector<1x16xf32> to vector<2176x16xf32>
    %5 = arith.mulf %2, %4 : vector<2176x16xf32>
    %c0_5 = arith.constant 0 : index
    %c0_6 = arith.constant 0 : index
    %6 = vector.load %arg4[%c0_5, %c0_6] : memref<1x16xf32, #tpu.memory_space<vmem>>, vector<1x16xf32>
    %7 = vector.broadcast %6 : vector<1x16xf32> to vector<2176x16xf32>
    %8 = arith.addf %5, %7 : vector<2176x16xf32>
    %cst_7 = arith.constant 0.000000e+00 : f32
    %9 = vector.broadcast %cst_7 : f32 to vector<2176x16xf32>
    %10 = arith.maximumf %8, %9 : vector<2176x16xf32>
    %11 = arith.truncf %10 : vector<2176x16xf32> to vector<2176x16xbf16>
    %c0_8 = arith.constant 0 : index
    %c0_9 = arith.constant 0 : index
    %12 = vector.load %arg5[%c0_8, %c0_9] : memref<2176x16xbf16, #tpu.memory_space<vmem>>, vector<2176x16xbf16>
    tpu.vector_store %arg5[%c0_8, %c0_9], %11 {strides = array<i32>} : memref<2176x16xbf16, #tpu.memory_space<vmem>>, vector<2176x16xbf16>,
    return
  }
  func.func @transform_0(%arg0: i32) -> (i32, i32) {
    %c0_i32 = arith.constant 0 : i32
    %c0_i32_0 = arith.constant 0 : i32
    return %arg0, %c0_i32 : i32, i32
  }
  func.func @transform_1(%arg0: i32) -> (i32, i32) {
    %c0_i32 = arith.constant 0 : i32
    %c0_i32_0 = arith.constant 0 : i32
    %c0_i32_1 = arith.constant 0 : i32
    return %c0_i32, %c0_i32_0 : i32, i32
  }
  func.func @transform_2(%arg0: i32) -> (i32, i32) {
    %c0_i32 = arith.constant 0 : i32
    %c0_i32_0 = arith.constant 0 : i32
    %c0_i32_1 = arith.constant 0 : i32
    return %c0_i32, %c0_i32_0 : i32, i32
  }
  func.func @transform_3(%arg0: i32) -> (i32, i32) {
    %c0_i32 = arith.constant 0 : i32
    %c0_i32_0 = arith.constant 0 : i32
    %c0_i32_1 = arith.constant 0 : i32
    return %c0_i32, %c0_i32_0 : i32, i32
  }
  func.func @transform_4(%arg0: i32) -> (i32, i32) {
    %c0_i32 = arith.constant 0 : i32
    %c0_i32_0 = arith.constant 0 : i32
    return %arg0, %c0_i32 : i32, i32
  }
}

module attributes {stable_mosaic.version = 11 : i64} {
  func.func @_conv_bn_relu_kernel(%arg0: i32, %arg1: memref<882x576xbf16, #tpu.memory_space<vmem>>, %arg2: memref<576x32xbf16, #tpu.memory_space<vmem>>, %arg3: memref<1x32xf32, #tpu.memory_space<vmem>>, %arg4: memref<1x32xf32, #tpu.memory_space<vmem>>, %arg5: memref<882x32xbf16, #tpu.memory_space<vmem>>) attributes {dimension_semantics = [#tpu.dimension_semantics<parallel>], iteration_bounds = array<i64: 1>, scalar_prefetch = 0 : i64, scratch_operands = 0 : i64, tpu.core_type = #tpu.core_type<tc>, window_params = [{transform_indices = @transform_0, window_bounds = array<i64: 882, 576>}, {pipeline_mode = #tpu.pipeline_mode<synchronous>, transform_indices = @transform_1, window_bounds = array<i64: 576, 32>}, {pipeline_mode = #tpu.pipeline_mode<synchronous>, transform_indices = @transform_2, window_bounds = array<i64: 1, 32>}, {pipeline_mode = #tpu.pipeline_mode<synchronous>, transform_indices = @transform_3, window_bounds = array<i64: 1, 32>}, {transform_indices = @transform_4, window_bounds = array<i64: 882, 32>}]} {
    %c0 = arith.constant 0 : index
    %c0_0 = arith.constant 0 : index
    %0 = vector.load %arg1[%c0, %c0_0] : memref<882x576xbf16, #tpu.memory_space<vmem>>, vector<882x576xbf16>
    %c0_1 = arith.constant 0 : index
    %c0_2 = arith.constant 0 : index
    %1 = vector.load %arg2[%c0_1, %c0_2] : memref<576x32xbf16, #tpu.memory_space<vmem>>, vector<576x32xbf16>
    %cst = arith.constant dense<0.000000e+00> : vector<882x32xf32>
    %2 = tpu.matmul %0, %1, %cst {dimension_numbers = #tpu.dot_dimension_numbers<[1], [0], [0], [1], [0, 0, 1, 1], [], []>} : vector<882x576xbf16>, vector<576x32xbf16>, vector<882x32xf32> -> vector<882x32xf32>
    %c0_3 = arith.constant 0 : index
    %c0_4 = arith.constant 0 : index
    %3 = vector.load %arg3[%c0_3, %c0_4] : memref<1x32xf32, #tpu.memory_space<vmem>>, vector<1x32xf32>
    %4 = vector.broadcast %3 : vector<1x32xf32> to vector<882x32xf32>
    %5 = arith.mulf %2, %4 : vector<882x32xf32>
    %c0_5 = arith.constant 0 : index
    %c0_6 = arith.constant 0 : index
    %6 = vector.load %arg4[%c0_5, %c0_6] : memref<1x32xf32, #tpu.memory_space<vmem>>, vector<1x32xf32>
    %7 = vector.broadcast %6 : vector<1x32xf32> to vector<882x32xf32>
    %8 = arith.addf %5, %7 : vector<882x32xf32>
    %cst_7 = arith.constant 0.000000e+00 : f32
    %9 = vector.broadcast %cst_7 : f32 to vector<882x32xf32>
    %10 = arith.maximumf %8, %9 : vector<882x32xf32>
    %11 = arith.truncf %10 : vector<882x32xf32> to vector<882x32xbf16>
    %c0_8 = arith.constant 0 : index
    %c0_9 = arith.constant 0 : index
    %12 = vector.load %arg5[%c0_8, %c0_9] : memref<882x32xbf16, #tpu.memory_space<vmem>>, vector<882x32xbf16>
    tpu.vector_store %arg5[%c0_8, %c0_9], %11 {strides = array<i32>} : memref<882x32xbf16, #tpu.memory_space<vmem>>, vector<882x32xbf16>,
    return
  }
  func.func @transform_0(%arg0: i32) -> (i32, i32) {
    %c0_i32 = arith.constant 0 : i32
    %c0_i32_0 = arith.constant 0 : i32
    return %arg0, %c0_i32 : i32, i32
  }
  func.func @transform_1(%arg0: i32) -> (i32, i32) {
    %c0_i32 = arith.constant 0 : i32
    %c0_i32_0 = arith.constant 0 : i32
    %c0_i32_1 = arith.constant 0 : i32
    return %c0_i32, %c0_i32_0 : i32, i32
  }
  func.func @transform_2(%arg0: i32) -> (i32, i32) {
    %c0_i32 = arith.constant 0 : i32
    %c0_i32_0 = arith.constant 0 : i32
    %c0_i32_1 = arith.constant 0 : i32
    return %c0_i32, %c0_i32_0 : i32, i32
  }
  func.func @transform_3(%arg0: i32) -> (i32, i32) {
    %c0_i32 = arith.constant 0 : i32
    %c0_i32_0 = arith.constant 0 : i32
    %c0_i32_1 = arith.constant 0 : i32
    return %c0_i32, %c0_i32_0 : i32, i32
  }
  func.func @transform_4(%arg0: i32) -> (i32, i32) {
    %c0_i32 = arith.constant 0 : i32
    %c0_i32_0 = arith.constant 0 : i32
    return %arg0, %c0_i32 : i32, i32
  }
}

module attributes {stable_mosaic.version = 11 : i64} {
  func.func @_head_tail_kernel(%arg0: i32, %arg1: memref<2x7168xbf16, #tpu.memory_space<vmem>>, %arg2: memref<7168x256xbf16, #tpu.memory_space<vmem>>, %arg3: memref<1x256xf32, #tpu.memory_space<vmem>>, %arg4: memref<256x4xf32, #tpu.memory_space<vmem>>, %arg5: memref<1x4xf32, #tpu.memory_space<vmem>>, %arg6: memref<2x4xf32, #tpu.memory_space<vmem>>, %arg7: memref<2x256xf32, #tpu.memory_space<vmem>>) attributes {dimension_semantics = [#tpu.dimension_semantics<arbitrary>], iteration_bounds = array<i64: 2>, scalar_prefetch = 0 : i64, scratch_operands = 1 : i64, tpu.core_type = #tpu.core_type<tc>, window_params = [{transform_indices = @transform_0, window_bounds = array<i64: 2, 7168>}, {transform_indices = @transform_1, window_bounds = array<i64: 7168, 256>}, {pipeline_mode = #tpu.pipeline_mode<synchronous>, transform_indices = @transform_2, window_bounds = array<i64: 1, 256>}, {pipeline_mode = #tpu.pipeline_mode<synchronous>, transform_indices = @transform_3, window_bounds = array<i64: 256, 4>}, {pipeline_mode = #tpu.pipeline_mode<synchronous>, transform_indices = @transform_4, window_bounds = array<i64: 1, 4>}, {pipeline_mode = #tpu.pipeline_mode<synchronous>, transform_indices = @transform_5, window_bounds = array<i64: 2, 4>}]} {
    %c0_i32 = arith.constant 0 : i32
    %0 = arith.cmpi eq, %arg0, %c0_i32 : i32
    %1 = arith.extui %0 : i1 to i32
    %c0_i32_0 = arith.constant 0 : i32
    %2 = arith.cmpi ne, %1, %c0_i32_0 : i32
    scf.if %2 {
      %cst_9 = arith.constant 0.000000e+00 : f32
      %12 = vector.broadcast %cst_9 : f32 to vector<2x256xf32>
      %c0_10 = arith.constant 0 : index
      %c0_11 = arith.constant 0 : index
      %13 = vector.load %arg7[%c0_10, %c0_11] : memref<2x256xf32, #tpu.memory_space<vmem>>, vector<2x256xf32>
      tpu.vector_store %arg7[%c0_10, %c0_11], %12 {strides = array<i32>} : memref<2x256xf32, #tpu.memory_space<vmem>>, vector<2x256xf32>,
    } else {
    }
    %c0 = arith.constant 0 : index
    %c0_1 = arith.constant 0 : index
    %3 = vector.load %arg7[%c0, %c0_1] : memref<2x256xf32, #tpu.memory_space<vmem>>, vector<2x256xf32>
    %c0_2 = arith.constant 0 : index
    %c0_3 = arith.constant 0 : index
    %4 = vector.load %arg1[%c0_2, %c0_3] : memref<2x7168xbf16, #tpu.memory_space<vmem>>, vector<2x7168xbf16>
    %c0_4 = arith.constant 0 : index
    %c0_5 = arith.constant 0 : index
    %5 = vector.load %arg2[%c0_4, %c0_5] : memref<7168x256xbf16, #tpu.memory_space<vmem>>, vector<7168x256xbf16>
    %cst = arith.constant dense<0.000000e+00> : vector<2x256xf32>
    %6 = tpu.matmul %4, %5, %cst {dimension_numbers = #tpu.dot_dimension_numbers<[1], [0], [0], [1], [0, 0, 1, 1], [], []>} : vector<2x7168xbf16>, vector<7168x256xbf16>, vector<2x256xf32> -> vector<2x256xf32>
    %7 = arith.addf %3, %6 : vector<2x256xf32>
    %c0_6 = arith.constant 0 : index
    %c0_7 = arith.constant 0 : index
    %8 = vector.load %arg7[%c0_6, %c0_7] : memref<2x256xf32, #tpu.memory_space<vmem>>, vector<2x256xf32>
    tpu.vector_store %arg7[%c0_6, %c0_7], %7 {strides = array<i32>} : memref<2x256xf32, #tpu.memory_space<vmem>>, vector<2x256xf32>,
    %c1_i32 = arith.constant 1 : i32
    %9 = arith.cmpi eq, %arg0, %c1_i32 : i32
    %10 = arith.extui %9 : i1 to i32
    %c0_i32_8 = arith.constant 0 : i32
    %11 = arith.cmpi ne, %10, %c0_i32_8 : i32
    scf.if %11 {
      %c0_9 = arith.constant 0 : index
      %c0_10 = arith.constant 0 : index
      %12 = vector.load %arg7[%c0_9, %c0_10] : memref<2x256xf32, #tpu.memory_space<vmem>>, vector<2x256xf32>
      %c0_11 = arith.constant 0 : index
      %c0_12 = arith.constant 0 : index
      %13 = vector.load %arg3[%c0_11, %c0_12] : memref<1x256xf32, #tpu.memory_space<vmem>>, vector<1x256xf32>
      %14 = vector.broadcast %13 : vector<1x256xf32> to vector<2x256xf32>
      %15 = arith.addf %12, %14 : vector<2x256xf32>
      %cst_13 = arith.constant 0.000000e+00 : f32
      %16 = vector.broadcast %cst_13 : f32 to vector<2x256xf32>
      %17 = arith.maximumf %15, %16 : vector<2x256xf32>
      %c0_14 = arith.constant 0 : index
      %c0_15 = arith.constant 0 : index
      %18 = vector.load %arg4[%c0_14, %c0_15] : memref<256x4xf32, #tpu.memory_space<vmem>>, vector<256x4xf32>
      %cst_16 = arith.constant dense<0.000000e+00> : vector<2x4xf32>
      %19 = tpu.matmul %17, %18, %cst_16 {dimension_numbers = #tpu.dot_dimension_numbers<[1], [0], [0], [1], [0, 0, 1, 1], [], []>} : vector<2x256xf32>, vector<256x4xf32>, vector<2x4xf32> -> vector<2x4xf32>
      %c0_17 = arith.constant 0 : index
      %c0_18 = arith.constant 0 : index
      %20 = vector.load %arg5[%c0_17, %c0_18] : memref<1x4xf32, #tpu.memory_space<vmem>>, vector<1x4xf32>
      %21 = vector.broadcast %20 : vector<1x4xf32> to vector<2x4xf32>
      %22 = arith.addf %19, %21 : vector<2x4xf32>
      %c0_19 = arith.constant 0 : index
      %c0_20 = arith.constant 0 : index
      %23 = vector.load %arg6[%c0_19, %c0_20] : memref<2x4xf32, #tpu.memory_space<vmem>>, vector<2x4xf32>
      tpu.vector_store %arg6[%c0_19, %c0_20], %22 {strides = array<i32>} : memref<2x4xf32, #tpu.memory_space<vmem>>, vector<2x4xf32>,
    } else {
    }
    return
  }
  func.func @transform_0(%arg0: i32) -> (i32, i32) {
    %c0_i32 = arith.constant 0 : i32
    %c0_i32_0 = arith.constant 0 : i32
    return %c0_i32, %arg0 : i32, i32
  }
  func.func @transform_1(%arg0: i32) -> (i32, i32) {
    %c0_i32 = arith.constant 0 : i32
    %c0_i32_0 = arith.constant 0 : i32
    return %arg0, %c0_i32 : i32, i32
  }
  func.func @transform_2(%arg0: i32) -> (i32, i32) {
    %c0_i32 = arith.constant 0 : i32
    %c0_i32_0 = arith.constant 0 : i32
    %c0_i32_1 = arith.constant 0 : i32
    return %c0_i32, %c0_i32_0 : i32, i32
  }
  func.func @transform_3(%arg0: i32) -> (i32, i32) {
    %c0_i32 = arith.constant 0 : i32
    %c0_i32_0 = arith.constant 0 : i32
    %c0_i32_1 = arith.constant 0 : i32
    return %c0_i32, %c0_i32_0 : i32, i32
  }
  func.func @transform_4(%arg0: i32) -> (i32, i32) {
    %c0_i32 = arith.constant 0 : i32
    %c0_i32_0 = arith.constant 0 : i32
    %c0_i32_1 = arith.constant 0 : i32
    return %c0_i32, %c0_i32_0 : i32, i32
  }
  func.func @transform_5(%arg0: i32) -> (i32, i32) {
    %c0_i32 = arith.constant 0 : i32
    %c0_i32_0 = arith.constant 0 : i32
    %c0_i32_1 = arith.constant 0 : i32
    return %c0_i32, %c0_i32_0 : i32, i32
  }
}

</mosaic_0001>

<bundles_post_ra>
// kernel: cnn_forward.3
= control target key start
LH: loop header
LB: loop body
LE: loop exit
PB: predicated region body
PF: predicated region fallthrough
CT: control target
= control target key end

     0   :  { %s7062_s15 = smov 0   ;;  %s7064_s16 = smov 0   ;;  %s8727_s0 = inlined_call_operand.vmem [shape: bf16[4232,108], index: 0, kind: input, shape index: {}]   ;;  %s8728_s1 = inlined_call_operand.vmem [shape: bf16[108,16], index: 1, kind: input, shape index: {}]   ;;  %s8729_s2 = inlined_call_operand.vmem [shape: f32[1,16], index: 2, kind: input, shape index: {}]   ;;  %s8730_s3 = inlined_call_operand.vmem [shape: f32[1,16], index: 3, kind: input, shape index: {}]   ;;  %s8731_s4 = inlined_call_operand.vmem [shape: bf16[4232,16], index: 4, kind: output, shape index: {}]  }
   0x1   :  { %s7066_s17 = smov 0  }
   0x2 LB: > { %s7075_s18 = sadd.s32 4294967295, %s7003_s17   ;;  %s7077_s19 = sadd.s32 1, %s7003_s17   ;;  %s7003_s17 = sphi %s7066_s17, %s8738_s17   ;;  %s6999_s16 = sphi %s7064_s16, %s8737_s16   ;;  %s6995_s15 = sphi %s7062_s15, %s8736_s15  }
   0x3   : > { %s107_s20 = ssub.s32 %s7003_s17, %s7077_s19  ;;  %s110_s21 = sadd.s32 1, %s6999_s16 }
   0x4   : > { %p108_p0 = scmp.eq.s32.totalorder %s107_s20, 0  ;;  %p120_p1 = scmp.ne.s32.totalorder %s6999_s16, %s6995_s15 }
   0x5   : > { %p121_p2 = scmp.eq.s32.totalorder %s7075_s18, 1  ;;  %p5421_p3 = scmp.ge.s32.totalorder %s7003_s17, 1 }
   0x6   : > { %s7085_s22 = scalar_select %p108_p0, %s6999_s16, %s110_s21  }
   0x7   : > { %p7087_p4 = por %p121_p2, %p120_p1  ;;  %p171_p5 = scmp.lt.s32.totalorder %s7003_s17, 3 }
   0x9   : > { %p172_p6 = pnand %p5421_p3, %p171_p5 }
   0xa   : > { %v6800_v0 = vld [vmem:[%s8728_s1] sm:$0xff] (!%p172_p6)   ;;  %v6801_v1 = vld [vmem:[%s8728_s1 + $0x8] sm:$0xff] (!%p172_p6)   ;;  %s7098_s28 = smul.u32 (!%p172_p6), 272, %s7075_s18  ;;  %v6802_v2 = vld [vmem:[%s8728_s1 + $0x10] sm:$0xff] (!%p172_p6)   ;;  %vm1227_vm0 = vcmask (!%p172_p6), 883712   ;;  %vm1636_vm1 = vcmask (!%p172_p6), 1045504  }
   0xb   : > { %175 = sbr.rel (%p172_p6) target bundleno = 636 (0x27c), region = 36  ;;  %6409 = vmatprep.subr.bf16.mxu0 (!%p172_p6), %v6800_v0  ;;  %6695 = vmatprep.subr.bf16.mxu1 (!%p172_p6), %v6800_v0  ;;  %v6803_v3 = vld [vmem:[%s8728_s1 + $0x18] sm:$0xff] (!%p172_p6)   ;;  %v6804_v6 = vld [vmem:[%s8728_s1 + $0x20] sm:$0xff] (!%p172_p6)   ;;  %v6805_v7 = vld [vmem:[%s8728_s1 + $0x28] sm:$0xff] (!%p172_p6)   ;;  %s197_s26 = sand.u32 (!%p172_p6), 1, %s6995_s15   ;;  %vm4679_vm2 = vcmask (!%p172_p6), 125952  }
   0xc   : > { %6410 = vmatpush3.bf16.msra.mxu0 (!%p172_p6), %v6800_v0  ;;  %6702 = vmatpush3.bf16.msra.mxu1 (!%p172_p6), %v6800_v0  ;;  %p205_p7 = scmp.lt.s32.totalorder (!%p172_p6), %s7098_s28, 528  ;;  %v6806_v8 = vld [vmem:[%s8728_s1 + $0x30] sm:$0x3f] (!%p172_p6)   ;;  %s7357_s30 = smul.u32 (!%p172_p6), 1088, %s197_s26 }
   0xd   : > { %6411 = vmatprep.subr.bf16.mxu0 (!%p172_p6), %v6801_v1  ;;  %6696 = vmatprep.subr.bf16.mxu1 (!%p172_p6), %v6801_v1  ;;  %v1638_v9 = vsel (!%p172_p6), %vm1636_vm1, %v6806_v8, 0 }
   0xe   : > { %s7380_s15 = scalar_lea.vmem (!%p172_p6), [#allocation2], %s7357_s30  }
  0x10   : > { %6412 = vmatpush3.bf16.msra.mxu0 (!%p172_p6), %v6801_v1  ;;  %6703 = vmatpush3.bf16.msra.mxu1 (!%p172_p6), %v6801_v1 }
  0x11   : > { %6413 = vmatprep.subr.bf16.mxu0 (!%p172_p6), %v6802_v2  ;;  %6697 = vmatprep.subr.bf16.mxu1 (!%p172_p6), %v6802_v2 }
  0x12   : > { %s206_s5 = scalar_select %p205_p7, %s7098_s28, 528 }
  0x13   : > { %s4960_s21 = ssub.s32 (%p7087_p4), 529, %s7098_s28  ;;  %s6263_s24 = smul.u32 (%p7087_p4), 1088, %s7075_s18 }
  0x14   : > { %s5422_s6 = sshll.u32 %s206_s5, 2  ;;  %6414 = vmatpush3.bf16.msra.mxu0 %v6802_v2  ;;  %6704 = vmatpush3.bf16.msra.mxu1 %v6802_v2  ;;  %p4961_p8 = scmp.lt.s32.totalorder (%p7087_p4), %s4960_s21, 272 }
  0x15   : > { %s7111_s11 = scalar_lea.vmem %s8727_s0, %s5422_s6  ;;  %6415 = vmatprep.subr.bf16.mxu0 %v6803_v3  ;;  %6698 = vmatprep.subr.bf16.mxu1 %v6803_v3  ;;  %s8535_s27 = scalar_lea.vmem (%p7087_p4), %s8731_s4, %s6263_s24  }
  0x16   : > { %v6807_v4 = vld [vmem:[%s7111_s11] sm:$0xff]   ;;  %v6809_v10 = vld [vmem:[%s7111_s11 + $0x8] sm:$0xff]   ;;  %v6811_v12 = vld [vmem:[%s7111_s11 + $0x10] sm:$0xff]  }
  0x17   : > { %v6808_v5 = vld [vmem:[%s7111_s11 + $0x220] sm:$0xff]   ;;  %6423 = vmatprep.mubr.msk.bf16.mxu0 %vm1227_vm0, %v6807_v4  ;;  %v6810_v11 = vld [vmem:[%s7111_s11 + $0x228] sm:$0xff]   ;;  %v6812_v13 = vld [vmem:[%s7111_s11 + $0x230] sm:$0xff]  }
  0x18   : > { %6559 = vmatprep.mubr.msk.bf16.mxu1 %vm1227_vm0, %v6808_v5  ;;  %6416 = vmatpush3.bf16.msra.mxu0 %v6803_v3  ;;  %v6813_v14 = vld [vmem:[%s7111_s11 + $0x18] sm:$0xff]   ;;  %v6815_v16 = vld [vmem:[%s7111_s11 + $0x20] sm:$0xff]   ;;  %v6817_v18 = vld [vmem:[%s7111_s11 + $0x28] sm:$0xff]  }
  0x19   : > { %6705 = vmatpush3.bf16.msra.mxu1 %v6803_v3  ;;  %6417 = vmatprep.subr.bf16.mxu0 %v6804_v6  ;;  %v6814_v15 = vld [vmem:[%s7111_s11 + $0x238] sm:$0xff]   ;;  %v6816_v17 = vld [vmem:[%s7111_s11 + $0x240] sm:$0xff]   ;;  %v6818_v19 = vld [vmem:[%s7111_s11 + $0x248] sm:$0xff]  }
  0x1a   : > { %6699 = vmatprep.subr.bf16.mxu1 %v6804_v6  ;;  %v6819_v20 = vld [vmem:[%s7111_s11 + $0x30] sm:$0xff]   ;;  %v6821_v22 = vld [vmem:[%s7111_s11 + $0x38] sm:$0xff]   ;;  %v6823_v24 = vld [vmem:[%s7111_s11 + $0x40] sm:$0xff]  }
  0x1b   : > { %v6820_v21 = vld [vmem:[%s7111_s11 + $0x250] sm:$0xff]   ;;  %v6822_v23 = vld [vmem:[%s7111_s11 + $0x258] sm:$0xff]   ;;  %v6824_v25 = vld [vmem:[%s7111_s11 + $0x260] sm:$0xff]  }
  0x1c   : > { %6418 = vmatpush3.bf16.msra.mxu0 %v6804_v6  ;;  %v6825_v26 = vld [vmem:[%s7111_s11 + $0x48] sm:$0xff]   ;;  %v6827_v28 = vld [vmem:[%s7111_s11 + $0x50] sm:$0xff]   ;;  %v6829_v30 = vld [vmem:[%s7111_s11 + $0x58] sm:$0xff]  }
  0x1d   : > { %6706 = vmatpush3.bf16.msra.mxu1 %v6804_v6  ;;  %6419 = vmatprep.subr.bf16.mxu0 %v6805_v7  ;;  %v6826_v27 = vld [vmem:[%s7111_s11 + $0x268] sm:$0xff]   ;;  %v6828_v29 = vld [vmem:[%s7111_s11 + $0x270] sm:$0xff]   ;;  %v6830_v31 = vld [vmem:[%s7111_s11 + $0x278] sm:$0xff]  }
  0x1e   : > { %6700 = vmatprep.subr.bf16.mxu1 %v6805_v7  ;;  %v6831_v32 = vld [vmem:[%s7111_s11 + $0x60] sm:$0xff]   ;;  %v6833_v34 = vld [vmem:[%s7111_s11 + $0x68] sm:$0xff]   ;;  %v6835_v36 = vld [vmem:[%s7111_s11 + $0x70] sm:$0xff]  }
  0x1f   : > { %v6832_v33 = vld [vmem:[%s7111_s11 + $0x280] sm:$0xff]   ;;  %v6834_v35 = vld [vmem:[%s7111_s11 + $0x288] sm:$0xff]   ;;  %v6836_v37 = vld [vmem:[%s7111_s11 + $0x290] sm:$0xff]  }
  0x20   : > { %6420 = vmatpush3.bf16.msra.mxu0 %v6805_v7  ;;  %v6837_v38 = vld [vmem:[%s7111_s11 + $0x78] sm:$0xff]   ;;  %v6839_v40 = vld [vmem:[%s7111_s11 + $0x80] sm:$0xff]   ;;  %v6841_v42 = vld [vmem:[%s7111_s11 + $0x88] sm:$0xff]  }
  0x21   : > { %6707 = vmatpush3.bf16.msra.mxu1 %v6805_v7  ;;  %6709 = vmatprep.subr.msk.bf16.mxu0 %vm1636_vm1, %v6806_v8  ;;  %v6838_v39 = vld [vmem:[%s7111_s11 + $0x298] sm:$0xff]   ;;  %v6840_v41 = vld [vmem:[%s7111_s11 + $0x2a0] sm:$0xff]   ;;  %v6842_v43 = vld [vmem:[%s7111_s11 + $0x2a8] sm:$0xff]  }
  0x22   : > { %6710 = vmatprep.subr.msk.bf16.mxu1 %vm1636_vm1, %v6806_v8  ;;  %v6843_v44 = vld [vmem:[%s7111_s11 + $0x90] sm:$0xff]   ;;  %v6845_v46 = vld [vmem:[%s7111_s11 + $0x98] sm:$0xff]   ;;  %v6847_v48 = vld [vmem:[%s7111_s11 + $0xa0] sm:$0xff]  }
  0x23   : > { %v6844_v45 = vld [vmem:[%s7111_s11 + $0x2b0] sm:$0xff]   ;;  %v6846_v47 = vld [vmem:[%s7111_s11 + $0x2b8] sm:$0xff]   ;;  %v6848_v49 = vld [vmem:[%s7111_s11 + $0x2c0] sm:$0xff]  }
  0x24   : > { %6422 = vmatpush3.bf16.msra.mxu0 %v1638_v9  ;;  %v6849_v50 = vld [vmem:[%s7111_s11 + $0xa8] sm:$0xff]   ;;  %v6851_v52 = vld [vmem:[%s7111_s11 + $0xb0] sm:$0xff]   ;;  %v6853_v54 = vld [vmem:[%s7111_s11 + $0xb8] sm:$0xff]  }
  0x25   : > { %6708 = vmatpush3.bf16.msra.mxu1 %v1638_v9  ;;  %v6850_v51 = vld [vmem:[%s7111_s11 + $0x2c8] sm:$0xff]   ;;  %v6852_v53 = vld [vmem:[%s7111_s11 + $0x2d0] sm:$0xff]   ;;  %v6854_v55 = vld [vmem:[%s7111_s11 + $0x2d8] sm:$0xff]  }
  0x26   : > { %v6855_v56 = vld [vmem:[%s7111_s11 + $0xc0] sm:$0xff]   ;;  %v6857_v58 = vld [vmem:[%s7111_s11 + $0xc8] sm:$0xff]   ;;  %v6859_v60 = vld [vmem:[%s7111_s11 + $0xd0] sm:$0xff]  }
  0x27   : > { %6424 = vmatmul.mubr.msk.bf16.vlgmr.msra.gmra.mrb[0].mxu0 %vm1227_vm0, %v6809_v10  ;;  %v6856_v57 = vld [vmem:[%s7111_s11 + $0x2e0] sm:$0xff]   ;;  %v6858_v59 = vld [vmem:[%s7111_s11 + $0x2e8] sm:$0xff]   ;;  %v6860_v61 = vld [vmem:[%s7111_s11 + $0x2f0] sm:$0xff]  }
  0x28   : > { %6560 = vmatmul.mubr.msk.bf16.vlgmr.msra.gmra.mrb[0].mxu1 %vm1227_vm0, %v6810_v11  ;;  %6427 = vmatprep.mubr.msk.bf16.mxu0 %vm1227_vm0, %v6811_v12  ;;  %v6861_v62 = vld [vmem:[%s7111_s11 + $0xd8] sm:$0xff]   ;;  %v6863_v0 = vld [vmem:[%s7111_s11 + $0xe0] sm:$0xff]   ;;  %v6865_v2 = vld [vmem:[%s7111_s11 + $0xe8] sm:$0xff]  }
  0x29   : > { %6563 = vmatprep.mubr.msk.bf16.mxu1 %vm1227_vm0, %v6812_v13  ;;  %v6862_v63 = vld [vmem:[%s7111_s11 + $0x2f8] sm:$0xff]   ;;  %v6864_v1 = vld [vmem:[%s7111_s11 + $0x300] sm:$0xff]   ;;  %v6866_v3 = vld [vmem:[%s7111_s11 + $0x308] sm:$0xff]  }
  0x2a   : > { %v6867_v4 = vld [vmem:[%s7111_s11 + $0xf0] sm:$0xff]   ;;  %v6869_v6 = vld [vmem:[%s7111_s11 + $0xf8] sm:$0xff]   ;;  %v6871_v8 = vld [vmem:[%s7111_s11 + $0x100] sm:$0xff]  }
  0x2b   : > { %v6868_v5 = vld [vmem:[%s7111_s11 + $0x310] sm:$0xff]   ;;  %v6870_v7 = vld [vmem:[%s7111_s11 + $0x318] sm:$0xff]   ;;  %v6872_v9 = vld [vmem:[%s7111_s11 + $0x320] sm:$0xff]  }
  0x2c   : > { %v6873_v10 = vld [vmem:[%s7111_s11 + $0x108] sm:$0xff]   ;;  %v6875_v12 = vld [vmem:[%s7111_s11 + $0x110] sm:$0xff]  }
  0x2d   : > { %v6874_v11 = vld [vmem:[%s7111_s11 + $0x328] sm:$0xff]   ;;  %v6876_v13 = vld [vmem:[%s7111_s11 + $0x330] sm:$0xff]  }
  0x2f   : > { %6428 = vmatmul.mubr.msk.bf16.gmra.mrb[4].mxu0 %vm1227_vm0, %v6813_v14  ;;  %v6877_v14 = vld [vmem:[%s7111_s11 + $0x118] sm:$0xff]  }
  0x30   : > { %6564 = vmatmul.mubr.msk.bf16.gmra.mrb[4].mxu1 %vm1227_vm0, %v6814_v15  ;;  %6431 = vmatprep.mubr.msk.bf16.mxu0 %vm1227_vm0, %v6815_v16  ;;  %v6878_v15 = vld [vmem:[%s7111_s11 + $0x338] sm:$0xff]   ;;  %v6879_v16 = vld [vmem:[%s7111_s11 + $0x120] sm:$0xff]  }
  0x31   : > { %6567 = vmatprep.mubr.msk.bf16.mxu1 %vm1227_vm0, %v6816_v17  ;;  %v6880_v17 = vld [vmem:[%s7111_s11 + $0x340] sm:$0xff]  }
  0x37   : > { %6432 = vmatmul.mubr.msk.bf16.gmra.mrb[8].mxu0 %vm1227_vm0, %v6817_v18  ;;  %v6881_v18 = vld [vmem:[%s7111_s11 + $0x128] sm:$0xff]  }
  0x38   : > { %6568 = vmatmul.mubr.msk.bf16.gmra.mrb[8].mxu1 %vm1227_vm0, %v6818_v19  ;;  %6435 = vmatprep.mubr.msk.bf16.mxu0 %vm1227_vm0, %v6819_v20  ;;  %v6882_v19 = vld [vmem:[%s7111_s11 + $0x348] sm:$0xff]   ;;  %v6883_v20 = vld [vmem:[%s7111_s11 + $0x130] sm:$0xff]  }
  0x39   : > { %6571 = vmatprep.mubr.msk.bf16.mxu1 %vm1227_vm0, %v6820_v21  ;;  %v6884_v21 = vld [vmem:[%s7111_s11 + $0x350] sm:$0xff]  }
  0x3f   : > { %6436 = vmatmul.mubr.msk.bf16.gmra.mrb[12].mxu0 %vm1227_vm0, %v6821_v22  ;;  %v6885_v22 = vld [vmem:[%s7111_s11 + $0x138] sm:$0xff]  }
  0x40   : > { %6572 = vmatmul.mubr.msk.bf16.gmra.mrb[12].mxu1 %vm1227_vm0, %v6822_v23  ;;  %6439 = vmatprep.mubr.msk.bf16.mxu0 %vm1227_vm0, %v6823_v24  ;;  %v6886_v23 = vld [vmem:[%s7111_s11 + $0x358] sm:$0xff]   ;;  %v6887_v24 = vld [vmem:[%s7111_s11 + $0x140] sm:$0xff]  }
  0x41   : > { %6575 = vmatprep.mubr.msk.bf16.mxu1 %vm1227_vm0, %v6824_v25  ;;  %v6888_v25 = vld [vmem:[%s7111_s11 + $0x360] sm:$0xff]  }
  0x47   : > { %6440 = vmatmul.mubr.msk.bf16.gmra.mrb[16].mxu0 %vm1227_vm0, %v6825_v26  ;;  %v6889_v26 = vld [vmem:[%s7111_s11 + $0x148] sm:$0xff]  }
  0x48   : > { %6576 = vmatmul.mubr.msk.bf16.gmra.mrb[16].mxu1 %vm1227_vm0, %v6826_v27  ;;  %6443 = vmatprep.mubr.msk.bf16.mxu0 %vm1227_vm0, %v6827_v28  ;;  %v6890_v27 = vld [vmem:[%s7111_s11 + $0x368] sm:$0xff]   ;;  %v6891_v28 = vld [vmem:[%s7111_s11 + $0x150] sm:$0xff]  }
  0x49   : > { %6579 = vmatprep.mubr.msk.bf16.mxu1 %vm1227_vm0, %v6828_v29  ;;  %v6892_v29 = vld [vmem:[%s7111_s11 + $0x370] sm:$0xff]  }
  0x4f   : > { %6444 = vmatmul.mubr.msk.bf16.gmra.mrb[20].mxu0 %vm1227_vm0, %v6829_v30  ;;  %v6893_v30 = vld [vmem:[%s7111_s11 + $0x158] sm:$0xff]  }
  0x50   : > { %6580 = vmatmul.mubr.msk.bf16.gmra.mrb[20].mxu1 %vm1227_vm0, %v6830_v31  ;;  %6447 = vmatprep.mubr.msk.bf16.mxu0 %vm1227_vm0, %v6831_v32  ;;  %v6894_v31 = vld [vmem:[%s7111_s11 + $0x378] sm:$0xff]   ;;  %v6895_v32 = vld [vmem:[%s7111_s11 + $0x160] sm:$0xff]  }
  0x51   : > { %6583 = vmatprep.mubr.msk.bf16.mxu1 %vm1227_vm0, %v6832_v33  ;;  %v6896_v33 = vld [vmem:[%s7111_s11 + $0x380] sm:$0xff]  }
  0x57   : > { %6448 = vmatmul.mubr.msk.bf16.gmra.mrb[24].mxu0 %vm1227_vm0, %v6833_v34  ;;  %v6897_v34 = vld [vmem:[%s7111_s11 + $0x168] sm:$0xff]  }
  0x58   : > { %6584 = vmatmul.mubr.msk.bf16.gmra.mrb[24].mxu1 %vm1227_vm0, %v6834_v35  ;;  %6451 = vmatprep.mubr.msk.bf16.mxu0 %vm1227_vm0, %v6835_v36  ;;  %v6898_v35 = vld [vmem:[%s7111_s11 + $0x388] sm:$0xff]   ;;  %v6899_v36 = vld [vmem:[%s7111_s11 + $0x170] sm:$0xff]  }
  0x59   : > { %6587 = vmatprep.mubr.msk.bf16.mxu1 %vm1227_vm0, %v6836_v37  ;;  %v6900_v37 = vld [vmem:[%s7111_s11 + $0x390] sm:$0xff]  }
  0x5f   : > { %6452 = vmatmul.mubr.msk.bf16.gmra.mrb[28].mxu0 %vm1227_vm0, %v6837_v38  ;;  %v6901_v38 = vld [vmem:[%s7111_s11 + $0x178] sm:$0xff]  }
  0x60   : > { %6588 = vmatmul.mubr.msk.bf16.gmra.mrb[28].mxu1 %vm1227_vm0, %v6838_v39  ;;  %6455 = vmatprep.mubr.msk.bf16.mxu0 %vm1227_vm0, %v6839_v40  ;;  %v6902_v39 = vld [vmem:[%s7111_s11 + $0x398] sm:$0xff]   ;;  %v6903_v40 = vld [vmem:[%s7111_s11 + $0x180] sm:$0xff]  }
  0x61   : > { %6591 = vmatprep.mubr.msk.bf16.mxu1 %vm1227_vm0, %v6840_v41  ;;  %v6904_v41 = vld [vmem:[%s7111_s11 + $0x3a0] sm:$0xff]  }
  0x67   : > { %6456 = vmatmul.mubr.msk.bf16.gmra.mrb[32].mxu0 %vm1227_vm0, %v6841_v42  ;;  %v6905_v42 = vld [vmem:[%s7111_s11 + $0x188] sm:$0xff]  }
  0x68   : > { %6592 = vmatmul.mubr.msk.bf16.gmra.mrb[32].mxu1 %vm1227_vm0, %v6842_v43  ;;  %6459 = vmatprep.mubr.msk.bf16.mxu0 %vm1227_vm0, %v6843_v44  ;;  %v6906_v43 = vld [vmem:[%s7111_s11 + $0x3a8] sm:$0xff]   ;;  %v6907_v44 = vld [vmem:[%s7111_s11 + $0x190] sm:$0xff]  }
  0x69   : > { %6595 = vmatprep.mubr.msk.bf16.mxu1 %vm1227_vm0, %v6844_v45  ;;  %v6908_v45 = vld [vmem:[%s7111_s11 + $0x3b0] sm:$0xff]  }
  0x6f   : > { %6460 = vmatmul.mubr.msk.bf16.gmra.mrb[36].mxu0 %vm1227_vm0, %v6845_v46  ;;  %v6909_v46 = vld [vmem:[%s7111_s11 + $0x198] sm:$0xff]  }
  0x70   : > { %6596 = vmatmul.mubr.msk.bf16.gmra.mrb[36].mxu1 %vm1227_vm0, %v6846_v47  ;;  %6463 = vmatprep.mubr.msk.bf16.mxu0 %vm1227_vm0, %v6847_v48  ;;  %v6910_v47 = vld [vmem:[%s7111_s11 + $0x3b8] sm:$0xff]   ;;  %v6911_v48 = vld [vmem:[%s7111_s11 + $0x1a0] sm:$0xff]  }
  0x71   : > { %6599 = vmatprep.mubr.msk.bf16.mxu1 %vm1227_vm0, %v6848_v49  ;;  %v6912_v49 = vld [vmem:[%s7111_s11 + $0x3c0] sm:$0xff]  }
  0x77   : > { %6464 = vmatmul.mubr.msk.bf16.gmra.mrb[40].mxu0 %vm1227_vm0, %v6849_v50  ;;  %v6913_v50 = vld [vmem:[%s7111_s11 + $0x1a8] sm:$0xff]  }
  0x78   : > { %6600 = vmatmul.mubr.msk.bf16.gmra.mrb[40].mxu1 %vm1227_vm0, %v6850_v51  ;;  %6467 = vmatprep.mubr.msk.bf16.mxu0 %vm1227_vm0, %v6851_v52  ;;  %v6914_v51 = vld [vmem:[%s7111_s11 + $0x3c8] sm:$0xff]   ;;  %v6915_v52 = vld [vmem:[%s7111_s11 + $0x1b0] sm:$0xff]  }
  0x79   : > { %6603 = vmatprep.mubr.msk.bf16.mxu1 %vm1227_vm0, %v6852_v53  ;;  %v6916_v53 = vld [vmem:[%s7111_s11 + $0x3d0] sm:$0xff]  }
  0x7f   : > { %6468 = vmatmul.mubr.msk.bf16.gmra.mrb[44].mxu0 %vm1227_vm0, %v6853_v54  ;;  %v7343_v54 = vld [vmem:[%s8729_s2] ss:$0 sm:$0xff] }
  0x80   : > { %6604 = vmatmul.mubr.msk.bf16.gmra.mrb[44].mxu1 %vm1227_vm0, %v6854_v55  ;;  %6471 = vmatprep.mubr.msk.bf16.mxu0 %vm1227_vm0, %v6855_v56  ;;  %v7351_v56 = vld [vmem:[%s8730_s3] ss:$0 sm:$0xff] }
  0x81   : > { %6607 = vmatprep.mubr.msk.bf16.mxu1 %vm1227_vm0, %v6856_v57 }
  0x87   : > { %6472 = vmatmul.mubr.msk.bf16.gmra.mrb[48].mxu0 %vm1227_vm0, %v6857_v58 }
  0x88   : > { %6608 = vmatmul.mubr.msk.bf16.gmra.mrb[48].mxu1 %vm1227_vm0, %v6858_v59  ;;  %6475 = vmatprep.mubr.msk.bf16.mxu0 %vm1227_vm0, %v6859_v60 }
  0x89   : > { %6611 = vmatprep.mubr.msk.bf16.mxu1 %vm1227_vm0, %v6860_v61 }
  0x8f   : > { %6476 = vmatmul.mubr.msk.bf16.gmra.mrb[52].mxu0 %vm1227_vm0, %v6861_v62  ;;  %v6917_v62 = vld [vmem:[%s7111_s11 + $0x1b8] sm:$0xff]  }
  0x90   : > { %6612 = vmatmul.mubr.msk.bf16.gmra.mrb[52].mxu1 %vm1227_vm0, %v6862_v63  ;;  %6479 = vmatprep.mubr.msk.bf16.mxu0 %vm1227_vm0, %v6863_v0  ;;  %v6918_v63 = vld [vmem:[%s7111_s11 + $0x3d8] sm:$0xff]  }
  0x91   : > { %6615 = vmatprep.mubr.msk.bf16.mxu1 %vm1227_vm0, %v6864_v1 }
  0x97   : > { %6480 = vmatmul.mubr.msk.bf16.gmra.mrb[56].mxu0 %vm1227_vm0, %v6865_v2 }
  0x98   : > { %6616 = vmatmul.mubr.msk.bf16.gmra.mrb[56].mxu1 %vm1227_vm0, %v6866_v3  ;;  %6483 = vmatprep.mubr.msk.bf16.mxu0 %vm1227_vm0, %v6867_v4  ;;  %v6919_v4 = vld [vmem:[%s7111_s11 + $0x1c0] sm:$0xff]  }
  0x99   : > { %6619 = vmatprep.mubr.msk.bf16.mxu1 %vm1227_vm0, %v6868_v5  ;;  %v6920_v5 = vld [vmem:[%s7111_s11 + $0x3e0] sm:$0xff]  }
  0x9f   : > { %6484 = vmatmul.mubr.msk.bf16.gmra.mrb[60].mxu0 %vm1227_vm0, %v6869_v6 }
  0xa0   : > { %6620 = vmatmul.mubr.msk.bf16.gmra.mrb[60].mxu1 %vm1227_vm0, %v6870_v7  ;;  %6487 = vmatprep.mubr.msk.bf16.mxu0 %vm1227_vm0, %v6871_v8 }
  0xa1   : > { %6623 = vmatprep.mubr.msk.bf16.mxu1 %vm1227_vm0, %v6872_v9 }
  0xa7   : > { %6488 = vmatmul.mubr.msk.bf16.gmra.mrb[64].mxu0 %vm1227_vm0, %v6873_v10 }
  0xa8   : > { %6624 = vmatmul.mubr.msk.bf16.gmra.mrb[64].mxu1 %vm1227_vm0, %v6874_v11  ;;  %6491 = vmatprep.mubr.msk.bf16.mxu0 %vm1227_vm0, %v6875_v12 }
  0xa9   : > { %6627 = vmatprep.mubr.msk.bf16.mxu1 %vm1227_vm0, %v6876_v13 }
  0xaf   : > { %6492 = vmatmul.mubr.msk.bf16.gmra.mrb[68].mxu0 %vm1227_vm0, %v6877_v14 }
  0xb0   : > { %6628 = vmatmul.mubr.msk.bf16.gmra.mrb[68].mxu1 %vm1227_vm0, %v6878_v15  ;;  %6495 = vmatprep.mubr.msk.bf16.mxu0 %vm1227_vm0, %v6879_v16 }
  0xb1   : > { %6631 = vmatprep.mubr.msk.bf16.mxu1 %vm1227_vm0, %v6880_v17 }
  0xb7   : > { %6496 = vmatmul.mubr.msk.bf16.gmra.mrb[72].mxu0 %vm1227_vm0, %v6881_v18 }
  0xb8   : > { %6632 = vmatmul.mubr.msk.bf16.gmra.mrb[72].mxu1 %vm1227_vm0, %v6882_v19  ;;  %6499 = vmatprep.mubr.msk.bf16.mxu0 %vm1227_vm0, %v6883_v20 }
  0xb9   : > { %6635 = vmatprep.mubr.msk.bf16.mxu1 %vm1227_vm0, %v6884_v21 }
  0xbf   : > { %6500 = vmatmul.mubr.msk.bf16.gmra.mrb[76].mxu0 %vm1227_vm0, %v6885_v22 }
  0xc0   : > { %6636 = vmatmul.mubr.msk.bf16.gmra.mrb[76].mxu1 %vm1227_vm0, %v6886_v23  ;;  %6503 = vmatprep.mubr.msk.bf16.mxu0 %vm1227_vm0, %v6887_v24 }
  0xc1   : > { %6639 = vmatprep.mubr.msk.bf16.mxu1 %vm1227_vm0, %v6888_v25 }
  0xc7   : > { %6504 = vmatmul.mubr.msk.bf16.gmra.mrb[80].mxu0 %vm1227_vm0, %v6889_v26 }
  0xc8   : > { %6640 = vmatmul.mubr.msk.bf16.gmra.mrb[80].mxu1 %vm1227_vm0, %v6890_v27  ;;  %6507 = vmatprep.mubr.msk.bf16.mxu0 %vm1227_vm0, %v6891_v28 }
  0xc9   : > { %6643 = vmatprep.mubr.msk.bf16.mxu1 %vm1227_vm0, %v6892_v29 }
  0xcf   : > { %6508 = vmatmul.mubr.msk.bf16.gmra.mrb[84].mxu0 %vm1227_vm0, %v6893_v30 }
  0xd0   : > { %6644 = vmatmul.mubr.msk.bf16.gmra.mrb[84].mxu1 %vm1227_vm0, %v6894_v31  ;;  %6511 = vmatprep.mubr.msk.bf16.mxu0 %vm1227_vm0, %v6895_v32 }
  0xd1   : > { %6647 = vmatprep.mubr.msk.bf16.mxu1 %vm1227_vm0, %v6896_v33 }
  0xd7   : > { %6512 = vmatmul.mubr.msk.bf16.gmra.mrb[88].mxu0 %vm1227_vm0, %v6897_v34 }
  0xd8   : > { %6648 = vmatmul.mubr.msk.bf16.gmra.mrb[88].mxu1 %vm1227_vm0, %v6898_v35  ;;  %6515 = vmatprep.mubr.msk.bf16.mxu0 %vm1227_vm0, %v6899_v36 }
  0xd9   : > { %6651 = vmatprep.mubr.msk.bf16.mxu1 %vm1227_vm0, %v6900_v37 }
  0xdf   : > { %6516 = vmatmul.mubr.msk.bf16.gmra.mrb[92].mxu0 %vm1227_vm0, %v6901_v38 }
  0xe0   : > { %6652 = vmatmul.mubr.msk.bf16.gmra.mrb[92].mxu1 %vm1227_vm0, %v6902_v39  ;;  %6519 = vmatprep.mubr.msk.bf16.mxu0 %vm1227_vm0, %v6903_v40  ;;  %v6921_v40 = vld [vmem:[%s7111_s11 + $0x1c8] sm:$0xff]  }
  0xe1   : > { %6655 = vmatprep.mubr.msk.bf16.mxu1 %vm1227_vm0, %v6904_v41  ;;  %v6922_v41 = vld [vmem:[%s7111_s11 + $0x3e8] sm:$0xff]  }
  0xe7   : > { %6520 = vmatmul.mubr.msk.bf16.gmra.mrb[96].mxu0 %vm1227_vm0, %v6905_v42 }
  0xe8   : > { %6656 = vmatmul.mubr.msk.bf16.gmra.mrb[96].mxu1 %vm1227_vm0, %v6906_v43  ;;  %6523 = vmatprep.mubr.msk.bf16.mxu0 %vm1227_vm0, %v6907_v44 }
  0xe9   : > { %6659 = vmatprep.mubr.msk.bf16.mxu1 %vm1227_vm0, %v6908_v45 }
  0xef   : > { %6524 = vmatmul.mubr.msk.bf16.gmra.mrb[100].mxu0 %vm1227_vm0, %v6909_v46 }
  0xf0   : > { %6660 = vmatmul.mubr.msk.bf16.gmra.mrb[100].mxu1 %vm1227_vm0, %v6910_v47  ;;  %6527 = vmatprep.mubr.msk.bf16.mxu0 %vm1227_vm0, %v6911_v48  ;;  %v6923_v48 = vld [vmem:[%s7111_s11 + $0x1d0] sm:$0xff]  }
  0xf1   : > { %6663 = vmatprep.mubr.msk.bf16.mxu1 %vm1227_vm0, %v6912_v49  ;;  %v6924_v49 = vld [vmem:[%s7111_s11 + $0x3f0] sm:$0xff]  }
  0xf7   : > { %6528 = vmatmul.mubr.msk.bf16.gmra.mrb[104].mxu0 %vm1227_vm0, %v6913_v50 }
  0xf8   : > { %6664 = vmatmul.mubr.msk.bf16.gmra.mrb[104].mxu1 %vm1227_vm0, %v6914_v51  ;;  %6531 = vmatprep.mubr.msk.bf16.mxu0 %vm1227_vm0, %v6915_v52 }
  0xf9   : > { %6667 = vmatprep.mubr.msk.bf16.mxu1 %vm1227_vm0, %v6916_v53 }
  0xfa   : > { %v6425_v55 = vpop.f32.mrb[0].mxu0 }
  0xfb   : > { %v6561_v57 = vpop.f32.mrb[0].mxu1  ;;  %v2770_v58 = vmul.f32 %v6425_v55, %v7343_v54  ;;  %v1674_v60 = vpop.f32.mrb[1].mxu0 }
  0xfc   : > { %v2906_v59 = vmul.f32 %v6561_v57, %v7343_v54  ;;  %v2218_v61 = vpop.f32.mrb[1].mxu1  ;;  %v2768_v0 = vmul.f32 %v7343_v54, %v1674_v60  ;;  %v6426_v2 = vpop.f32.mrb[2].mxu0 }
  0xfd   : > { %v2904_v1 = vmul.f32 %v7343_v54, %v2218_v61  ;;  %v6562_v3 = vpop.f32.mrb[2].mxu1  ;;  %v3049_v6 = vadd.f32 %v7351_v56, %v2770_v58  ;;  %v2771_v8 = vmul.f32 %v6426_v2, %v7343_v54  ;;  %v1677_v10 = vpop.f32.mrb[3].mxu0 }
  0xfe   : > { %v3185_v7 = vadd.f32 %v7351_v56, %v2906_v59  ;;  %v2907_v9 = vmul.f32 %v6562_v3, %v7343_v54  ;;  %v2221_v11 = vpop.f32.mrb[3].mxu1  ;;  %v3047_v12 = vadd.f32 %v7351_v56, %v2768_v0  ;;  %v2769_v14 = vmul.f32 %v7343_v54, %v1677_v10 }
  0xff   : > { %v3183_v13 = vadd.f32 %v7351_v56, %v2904_v1  ;;  %v2905_v15 = vmul.f32 %v7343_v54, %v2221_v11  ;;  %v3321_v16 = vmax.f32 %v3049_v6, 0.0  ;;  %v3050_v18 = vadd.f32 %v7351_v56, %v2771_v8  ;;  %6532 = vmatmul.mubr.msk.bf16.gmra.mrb[108].mxu0 %vm1227_vm0, %v6917_v62 }
 0x100   : > { %v3457_v17 = vmax.f32 %v3185_v7, 0.0  ;;  %v3186_v19 = vadd.f32 %v7351_v56, %v2907_v9  ;;  %6668 = vmatmul.mubr.msk.bf16.gmra.mrb[108].mxu1 %vm1227_vm0, %v6918_v63  ;;  %v3319_v20 = vmax.f32 %v3047_v12, 0.0  ;;  %v3048_v22 = vadd.f32 %v7351_v56, %v2769_v14  ;;  %6535 = vmatprep.mubr.msk.bf16.mxu0 %vm1227_vm0, %v6919_v4 }
 0x101   : > { %v3455_v21 = vmax.f32 %v3183_v13, 0.0  ;;  %v3184_v23 = vadd.f32 %v7351_v56, %v2905_v15  ;;  %6671 = vmatprep.mubr.msk.bf16.mxu1 %vm1227_vm0, %v6920_v5  ;;  %v5993_v24 = vpack.c.bf16 %v3321_v16, %v3321_v16  ;;  %v3322_v26 = vmax.f32 %v3050_v18, 0.0 }
 0x102   : > { %v6129_v25 = vpack.c.bf16 %v3457_v17, %v3457_v17  ;;  %v3458_v27 = vmax.f32 %v3186_v19, 0.0  ;;  %v5991_v28 = vpack.c.bf16 %v3319_v20, %v3319_v20  ;;  %v3320_v30 = vmax.f32 %v3048_v22, 0.0  ;;  %v6429_v32 = vpop.f32.mrb[4].mxu0  ;;  %v6925_v22 = vld [vmem:[%s7111_s11 + $0x1d8] sm:$0xff]  }
 0x103   : > { %v6127_v29 = vpack.c.bf16 %v3455_v21, %v3455_v21  ;;  %v3456_v31 = vmax.f32 %v3184_v23, 0.0  ;;  %v6565_v33 = vpop.f32.mrb[4].mxu1  ;;  %4682 = vst.msk [vmem:[%s7380_s15 + $0x8] sm:$0xf] %vm4679_vm2, %v5993_v24  ;;  %v5994_v34 = vpack.c.bf16 %v3322_v26, %v3322_v26  ;;  %v2774_v36 = vmul.f32 %v6429_v32, %v7343_v54  ;;  %v1690_v38 = vpop.f32.mrb[5].mxu0  ;;  %v6926_v23 = vld [vmem:[%s7111_s11 + $0x3f8] sm:$0xff]  }
 0x104   : > { %4818 = vst.msk [vmem:[%s7380_s15 + $0x228] sm:$0xf] %vm4679_vm2, %v6129_v25  ;;  %v6130_v35 = vpack.c.bf16 %v3458_v27, %v3458_v27  ;;  %v2910_v37 = vmul.f32 %v6565_v33, %v7343_v54  ;;  %v2234_v39 = vpop.f32.mrb[5].mxu1  ;;  %4680 = vst.msk [vmem:[%s7380_s15] sm:$0xf] %vm4679_vm2, %v5991_v28  ;;  %v5992_v42 = vpack.c.bf16 %v3320_v30, %v3320_v30  ;;  %v6430_v46 = vpop.f32.mrb[6].mxu0 }
 0x105   : > { %4816 = vst.msk [vmem:[%s7380_s15 + $0x220] sm:$0xf] %vm4679_vm2, %v6127_v29  ;;  %v6128_v43 = vpack.c.bf16 %v3456_v31, %v3456_v31  ;;  %v2772_v44 = vmul.f32 %v7343_v54, %v1690_v38  ;;  %v2908_v45 = vmul.f32 %v7343_v54, %v2234_v39  ;;  %v6566_v47 = vpop.f32.mrb[6].mxu1  ;;  %4683 = vst.msk [vmem:[%s7380_s15 + $0xc] sm:$0xf] %vm4679_vm2, %v5994_v34  ;;  %v1693_v55 = vpop.f32.mrb[7].mxu0 }
 0x106   : > { %4819 = vst.msk [vmem:[%s7380_s15 + $0x22c] sm:$0xf] %vm4679_vm2, %v6130_v35  ;;  %v3053_v50 = vadd.f32 %v7351_v56, %v2774_v36  ;;  %v3189_v51 = vadd.f32 %v7351_v56, %v2910_v37  ;;  %v2775_v52 = vmul.f32 %v6430_v46, %v7343_v54  ;;  %v2911_v53 = vmul.f32 %v6566_v47, %v7343_v54  ;;  %v2237_v57 = vpop.f32.mrb[7].mxu1  ;;  %v6927_v30 = vld [vmem:[%s7111_s11 + $0x1e0] sm:$0xff]  }
 0x107   : > { %4681 = vst.msk [vmem:[%s7380_s15 + $0x4] sm:$0xf] %vm4679_vm2, %v5992_v42  ;;  %4817 = vst.msk [vmem:[%s7380_s15 + $0x224] sm:$0xf] %vm4679_vm2, %v6128_v43  ;;  %v3051_v58 = vadd.f32 %v7351_v56, %v2772_v44  ;;  %v3187_v59 = vadd.f32 %v7351_v56, %v2908_v45  ;;  %v2773_v60 = vmul.f32 %v7343_v54, %v1693_v55  ;;  %6536 = vmatmul.mubr.msk.bf16.gmra.mrb[112].mxu0 %vm1227_vm0, %v6921_v40  ;;  %v6928_v31 = vld [vmem:[%s7111_s11 + $0x400] sm:$0xff]  }
 0x108   : > { %v2909_v61 = vmul.f32 %v7343_v54, %v2237_v57  ;;  %v3325_v62 = vmax.f32 %v3053_v50, 0.0  ;;  %v3461_v63 = vmax.f32 %v3189_v51, 0.0  ;;  %v3054_v0 = vadd.f32 %v7351_v56, %v2775_v52  ;;  %6672 = vmatmul.mubr.msk.bf16.gmra.mrb[112].mxu1 %vm1227_vm0, %v6922_v41  ;;  %6539 = vmatprep.mubr.msk.bf16.mxu0 %vm1227_vm0, %v6923_v48 }
 0x109   : > { %v3190_v1 = vadd.f32 %v7351_v56, %v2911_v53  ;;  %v3323_v2 = vmax.f32 %v3051_v58, 0.0  ;;  %v3459_v3 = vmax.f32 %v3187_v59, 0.0  ;;  %v3052_v4 = vadd.f32 %v7351_v56, %v2773_v60  ;;  %6675 = vmatprep.mubr.msk.bf16.mxu1 %vm1227_vm0, %v6924_v49 }
 0x10a   : > { %v3188_v5 = vadd.f32 %v7351_v56, %v2909_v61  ;;  %v5997_v6 = vpack.c.bf16 %v3325_v62, %v3325_v62  ;;  %v6133_v7 = vpack.c.bf16 %v3461_v63, %v3461_v63  ;;  %v3326_v8 = vmax.f32 %v3054_v0, 0.0  ;;  %v6433_v14 = vpop.f32.mrb[8].mxu0 }
 0x10b   : > { %v3462_v9 = vmax.f32 %v3190_v1, 0.0  ;;  %v5995_v10 = vpack.c.bf16 %v3323_v2, %v3323_v2  ;;  %v6131_v11 = vpack.c.bf16 %v3459_v3, %v3459_v3  ;;  %v3324_v12 = vmax.f32 %v3052_v4, 0.0  ;;  %v6569_v15 = vpop.f32.mrb[8].mxu1  ;;  %v1706_v20 = vpop.f32.mrb[9].mxu0  ;;  %v6929_v4 = vld [vmem:[%s7111_s11 + $0x1e8] sm:$0xff]  }
 0x10c   : > { %v3460_v13 = vmax.f32 %v3188_v5, 0.0  ;;  %4686 = vst.msk [vmem:[%s7380_s15 + $0x18] sm:$0xf] %vm4679_vm2, %v5997_v6  ;;  %4822 = vst.msk [vmem:[%s7380_s15 + $0x238] sm:$0xf] %vm4679_vm2, %v6133_v7  ;;  %v5998_v16 = vpack.c.bf16 %v3326_v8, %v3326_v8  ;;  %v2778_v18 = vmul.f32 %v6433_v14, %v7343_v54  ;;  %v2914_v19 = vmul.f32 %v6569_v15, %v7343_v54  ;;  %v2250_v21 = vpop.f32.mrb[9].mxu1 }
 0x10d   : > { %v6134_v17 = vpack.c.bf16 %v3462_v9, %v3462_v9  ;;  %4684 = vst.msk [vmem:[%s7380_s15 + $0x10] sm:$0xf] %vm4679_vm2, %v5995_v10  ;;  %4820 = vst.msk [vmem:[%s7380_s15 + $0x230] sm:$0xf] %vm4679_vm2, %v6131_v11  ;;  %v5996_v24 = vpack.c.bf16 %v3324_v12, %v3324_v12  ;;  %v2776_v26 = vmul.f32 %v7343_v54, %v1706_v20  ;;  %v6434_v28 = vpop.f32.mrb[10].mxu0  ;;  %v6570_v29 = vpop.f32.mrb[10].mxu1 }
 0x10e   : > { %v6132_v25 = vpack.c.bf16 %v3460_v13, %v3460_v13  ;;  %v2912_v27 = vmul.f32 %v7343_v54, %v2250_v21  ;;  %4687 = vst.msk [vmem:[%s7380_s15 + $0x1c] sm:$0xf] %vm4679_vm2, %v5998_v16  ;;  %v3057_v32 = vadd.f32 %v7351_v56, %v2778_v18  ;;  %v3193_v33 = vadd.f32 %v7351_v56, %v2914_v19  ;;  %v1709_v36 = vpop.f32.mrb[11].mxu0  ;;  %v2253_v37 = vpop.f32.mrb[11].mxu1  ;;  %v6930_v5 = vld [vmem:[%s7111_s11 + $0x408] sm:$0xff]   ;;  %v6931_v12 = vld [vmem:[%s7111_s11 + $0x1f0] sm:$0xff]  }
 0x10f   : > { %4823 = vst.msk [vmem:[%s7380_s15 + $0x23c] sm:$0xf] %vm4679_vm2, %v6134_v17  ;;  %v2779_v34 = vmul.f32 %v6434_v28, %v7343_v54  ;;  %v2915_v35 = vmul.f32 %v6570_v29, %v7343_v54  ;;  %4685 = vst.msk [vmem:[%s7380_s15 + $0x14] sm:$0xf] %vm4679_vm2, %v5996_v24  ;;  %v3055_v38 = vadd.f32 %v7351_v56, %v2776_v26  ;;  %6540 = vmatmul.mubr.msk.bf16.gmra.mrb[116].mxu0 %vm1227_vm0, %v6925_v22  ;;  %v6932_v13 = vld [vmem:[%s7111_s11 + $0x410] sm:$0xff]  }
 0x110   : > { %4821 = vst.msk [vmem:[%s7380_s15 + $0x234] sm:$0xf] %vm4679_vm2, %v6132_v25  ;;  %v3191_v39 = vadd.f32 %v7351_v56, %v2912_v27  ;;  %v2777_v40 = vmul.f32 %v7343_v54, %v1709_v36  ;;  %v2913_v41 = vmul.f32 %v7343_v54, %v2253_v37  ;;  %v3329_v42 = vmax.f32 %v3057_v32, 0.0  ;;  %6676 = vmatmul.mubr.msk.bf16.gmra.mrb[116].mxu1 %vm1227_vm0, %v6926_v23 }
 0x111   : > { %v3465_v43 = vmax.f32 %v3193_v33, 0.0  ;;  %v3058_v44 = vadd.f32 %v7351_v56, %v2779_v34  ;;  %v3194_v45 = vadd.f32 %v7351_v56, %v2915_v35  ;;  %v3327_v46 = vmax.f32 %v3055_v38, 0.0  ;;  %6543 = vmatprep.mubr.msk.bf16.mxu0 %vm1227_vm0, %v6927_v30  ;;  %6679 = vmatprep.mubr.msk.bf16.mxu1 %vm1227_vm0, %v6928_v31 }
 0x112   : > { %v3463_v47 = vmax.f32 %v3191_v39, 0.0  ;;  %v3056_v48 = vadd.f32 %v7351_v56, %v2777_v40  ;;  %v3192_v49 = vadd.f32 %v7351_v56, %v2913_v41  ;;  %v6001_v50 = vpack.c.bf16 %v3329_v42, %v3329_v42  ;;  %v6437_v60 = vpop.f32.mrb[12].mxu0 }
 0x113   : > { %v6137_v51 = vpack.c.bf16 %v3465_v43, %v3465_v43  ;;  %v3330_v52 = vmax.f32 %v3058_v44, 0.0  ;;  %v3466_v53 = vmax.f32 %v3194_v45, 0.0  ;;  %v5999_v55 = vpack.c.bf16 %v3327_v46, %v3327_v46  ;;  %v6573_v61 = vpop.f32.mrb[12].mxu1  ;;  %v1722_v2 = vpop.f32.mrb[13].mxu0 }
 0x114   : > { %v6135_v57 = vpack.c.bf16 %v3463_v47, %v3463_v47  ;;  %v3328_v58 = vmax.f32 %v3056_v48, 0.0  ;;  %v3464_v59 = vmax.f32 %v3192_v49, 0.0  ;;  %4690 = vst.msk [vmem:[%s7380_s15 + $0x28] sm:$0xf] %vm4679_vm2, %v6001_v50  ;;  %v2782_v0 = vmul.f32 %v6437_v60, %v7343_v54  ;;  %v2266_v3 = vpop.f32.mrb[13].mxu1  ;;  %v6438_v10 = vpop.f32.mrb[14].mxu0 }
 0x115   : > { %4826 = vst.msk [vmem:[%s7380_s15 + $0x248] sm:$0xf] %vm4679_vm2, %v6137_v51  ;;  %v6002_v62 = vpack.c.bf16 %v3330_v52, %v3330_v52  ;;  %v6138_v63 = vpack.c.bf16 %v3466_v53, %v3466_v53  ;;  %v2918_v1 = vmul.f32 %v6573_v61, %v7343_v54  ;;  %4688 = vst.msk [vmem:[%s7380_s15 + $0x20] sm:$0xf] %vm4679_vm2, %v5999_v55  ;;  %v6574_v11 = vpop.f32.mrb[14].mxu1  ;;  %v1725_v18 = vpop.f32.mrb[15].mxu0 }
 0x116   : > { %4824 = vst.msk [vmem:[%s7380_s15 + $0x240] sm:$0xf] %vm4679_vm2, %v6135_v57  ;;  %v6000_v6 = vpack.c.bf16 %v3328_v58, %v3328_v58  ;;  %v6136_v7 = vpack.c.bf16 %v3464_v59, %v3464_v59  ;;  %v2780_v8 = vmul.f32 %v7343_v54, %v1722_v2  ;;  %v2916_v9 = vmul.f32 %v7343_v54, %v2266_v3  ;;  %v2269_v19 = vpop.f32.mrb[15].mxu1  ;;  %v6933_v48 = vld [vmem:[%s7111_s11 + $0x1f8] sm:$0xff]   ;;  %v6935_v58 = vld [vmem:[%s7111_s11 + $0x200] sm:$0xff]  }
 0x117   : > { %4691 = vst.msk [vmem:[%s7380_s15 + $0x2c] sm:$0xf] %vm4679_vm2, %v6002_v62  ;;  %4827 = vst.msk [vmem:[%s7380_s15 + $0x24c] sm:$0xf] %vm4679_vm2, %v6138_v63  ;;  %v3061_v14 = vadd.f32 %v7351_v56, %v2782_v0  ;;  %v3197_v15 = vadd.f32 %v7351_v56, %v2918_v1  ;;  %v2783_v16 = vmul.f32 %v6438_v10, %v7343_v54  ;;  %6544 = vmatmul.mubr.msk.bf16.gmra.mrb[120].mxu0 %vm1227_vm0, %v6929_v4  ;;  %v6934_v49 = vld [vmem:[%s7111_s11 + $0x418] sm:$0xff]   ;;  %v6936_v59 = vld [vmem:[%s7111_s11 + $0x420] sm:$0xff]  }
 0x118   : > { %v2919_v17 = vmul.f32 %v6574_v11, %v7343_v54  ;;  %4689 = vst.msk [vmem:[%s7380_s15 + $0x24] sm:$0xf] %vm4679_vm2, %v6000_v6  ;;  %4825 = vst.msk [vmem:[%s7380_s15 + $0x244] sm:$0xf] %vm4679_vm2, %v6136_v7  ;;  %v3059_v20 = vadd.f32 %v7351_v56, %v2780_v8  ;;  %v3195_v21 = vadd.f32 %v7351_v56, %v2916_v9  ;;  %6680 = vmatmul.mubr.msk.bf16.gmra.mrb[120].mxu1 %vm1227_vm0, %v6930_v5 }
 0x119   : > { %v2781_v22 = vmul.f32 %v7343_v54, %v1725_v18  ;;  %v2917_v23 = vmul.f32 %v7343_v54, %v2269_v19  ;;  %v3333_v24 = vmax.f32 %v3061_v14, 0.0  ;;  %v3469_v25 = vmax.f32 %v3197_v15, 0.0  ;;  %6547 = vmatprep.mubr.msk.bf16.mxu0 %vm1227_vm0, %v6931_v12  ;;  %6683 = vmatprep.mubr.msk.bf16.mxu1 %vm1227_vm0, %v6932_v13 }
 0x11a   : > { %v3062_v26 = vadd.f32 %v7351_v56, %v2783_v16  ;;  %v3198_v27 = vadd.f32 %v7351_v56, %v2919_v17  ;;  %v3331_v28 = vmax.f32 %v3059_v20, 0.0  ;;  %v3467_v29 = vmax.f32 %v3195_v21, 0.0  ;;  %v6441_v40 = vpop.f32.mrb[16].mxu0 }
 0x11b   : > { %v3060_v30 = vadd.f32 %v7351_v56, %v2781_v22  ;;  %v3196_v31 = vadd.f32 %v7351_v56, %v2917_v23  ;;  %v6005_v32 = vpack.c.bf16 %v3333_v24, %v3333_v24  ;;  %v6141_v33 = vpack.c.bf16 %v3469_v25, %v3469_v25  ;;  %v6577_v41 = vpop.f32.mrb[16].mxu1  ;;  %v1738_v46 = vpop.f32.mrb[17].mxu0 }
 0x11c   : > { %v3334_v34 = vmax.f32 %v3062_v26, 0.0  ;;  %v3470_v35 = vmax.f32 %v3198_v27, 0.0  ;;  %v6003_v36 = vpack.c.bf16 %v3331_v28, %v3331_v28  ;;  %v6139_v37 = vpack.c.bf16 %v3467_v29, %v3467_v29  ;;  %v2282_v47 = vpop.f32.mrb[17].mxu1  ;;  %v6442_v55 = vpop.f32.mrb[18].mxu0 }
 0x11d   : > { %v3332_v38 = vmax.f32 %v3060_v30, 0.0  ;;  %v3468_v39 = vmax.f32 %v3196_v31, 0.0  ;;  %4694 = vst.msk [vmem:[%s7380_s15 + $0x38] sm:$0xf] %vm4679_vm2, %v6005_v32  ;;  %4830 = vst.msk [vmem:[%s7380_s15 + $0x258] sm:$0xf] %vm4679_vm2, %v6141_v33  ;;  %v2786_v44 = vmul.f32 %v6441_v40, %v7343_v54  ;;  %v2922_v45 = vmul.f32 %v6577_v41, %v7343_v54 }
 0x11e   : > { %v6006_v42 = vpack.c.bf16 %v3334_v34, %v3334_v34  ;;  %v6142_v43 = vpack.c.bf16 %v3470_v35, %v3470_v35  ;;  %4692 = vst.msk [vmem:[%s7380_s15 + $0x30] sm:$0xf] %vm4679_vm2, %v6003_v36  ;;  %4828 = vst.msk [vmem:[%s7380_s15 + $0x250] sm:$0xf] %vm4679_vm2, %v6139_v37  ;;  %v2784_v52 = vmul.f32 %v7343_v54, %v1738_v46  ;;  %v6578_v57 = vpop.f32.mrb[18].mxu1  ;;  %v1741_v0 = vpop.f32.mrb[19].mxu0 }
 0x11f   : > { %v6004_v50 = vpack.c.bf16 %v3332_v38, %v3332_v38  ;;  %v6140_v51 = vpack.c.bf16 %v3468_v39, %v3468_v39  ;;  %v2920_v53 = vmul.f32 %v7343_v54, %v2282_v47  ;;  %v3065_v60 = vadd.f32 %v7351_v56, %v2786_v44  ;;  %v2285_v1 = vpop.f32.mrb[19].mxu1  ;;  %6548 = vmatmul.mubr.msk.bf16.gmra.mrb[124].mxu0 %vm1227_vm0, %v6933_v48  ;;  %v6937_v30 = vld [vmem:[%s7111_s11 + $0x208] sm:$0xff]   ;;  %v6939_v38 = vld [vmem:[%s7111_s11 + $0x210] sm:$0xff]  }
 0x120   : > { %4695 = vst.msk [vmem:[%s7380_s15 + $0x3c] sm:$0xf] %vm4679_vm2, %v6006_v42  ;;  %4831 = vst.msk [vmem:[%s7380_s15 + $0x25c] sm:$0xf] %vm4679_vm2, %v6142_v43  ;;  %v3201_v61 = vadd.f32 %v7351_v56, %v2922_v45  ;;  %v2787_v62 = vmul.f32 %v6442_v55, %v7343_v54  ;;  %v2923_v63 = vmul.f32 %v6578_v57, %v7343_v54  ;;  %6684 = vmatmul.mubr.msk.bf16.gmra.mrb[124].mxu1 %vm1227_vm0, %v6934_v49  ;;  %v6938_v31 = vld [vmem:[%s7111_s11 + $0x428] sm:$0xff]   ;;  %v6940_v39 = vld [vmem:[%s7111_s11 + $0x430] sm:$0xff]  }
 0x121   : > { %4693 = vst.msk [vmem:[%s7380_s15 + $0x34] sm:$0xf] %vm4679_vm2, %v6004_v50  ;;  %4829 = vst.msk [vmem:[%s7380_s15 + $0x254] sm:$0xf] %vm4679_vm2, %v6140_v51  ;;  %v3063_v2 = vadd.f32 %v7351_v56, %v2784_v52  ;;  %v3199_v3 = vadd.f32 %v7351_v56, %v2920_v53  ;;  %v2785_v4 = vmul.f32 %v7343_v54, %v1741_v0  ;;  %v3337_v6 = vmax.f32 %v3065_v60, 0.0 }
 0x122   : > { %v2921_v5 = vmul.f32 %v7343_v54, %v2285_v1  ;;  %v3473_v7 = vmax.f32 %v3201_v61, 0.0  ;;  %v3066_v8 = vadd.f32 %v7351_v56, %v2787_v62  ;;  %v3202_v9 = vadd.f32 %v7351_v56, %v2923_v63  ;;  %6551 = vmatprep.mubr.msk.bf16.mxu0 %vm1227_vm0, %v6935_v58  ;;  %6687 = vmatprep.mubr.msk.bf16.mxu1 %vm1227_vm0, %v6936_v59  ;;  %v6445_v22 = vpop.f32.mrb[20].mxu0 }
 0x123   : > { %v3335_v10 = vmax.f32 %v3063_v2, 0.0  ;;  %v3471_v11 = vmax.f32 %v3199_v3, 0.0  ;;  %v3064_v12 = vadd.f32 %v7351_v56, %v2785_v4  ;;  %v6009_v14 = vpack.c.bf16 %v3337_v6, %v3337_v6  ;;  %v6581_v23 = vpop.f32.mrb[20].mxu1  ;;  %v1754_v28 = vpop.f32.mrb[21].mxu0 }
 0x124   : > { %v3200_v13 = vadd.f32 %v7351_v56, %v2921_v5  ;;  %v6145_v15 = vpack.c.bf16 %v3473_v7, %v3473_v7  ;;  %v3338_v16 = vmax.f32 %v3066_v8, 0.0  ;;  %v3474_v17 = vmax.f32 %v3202_v9, 0.0  ;;  %v2298_v29 = vpop.f32.mrb[21].mxu1  ;;  %v6446_v36 = vpop.f32.mrb[22].mxu0 }
 0x125   : > { %v6007_v18 = vpack.c.bf16 %v3335_v10, %v3335_v10  ;;  %v6143_v19 = vpack.c.bf16 %v3471_v11, %v3471_v11  ;;  %v3336_v20 = vmax.f32 %v3064_v12, 0.0  ;;  %4698 = vst.msk [vmem:[%s7380_s15 + $0x48] sm:$0xf] %vm4679_vm2, %v6009_v14  ;;  %v2790_v26 = vmul.f32 %v6445_v22, %v7343_v54  ;;  %v6582_v37 = vpop.f32.mrb[22].mxu1  ;;  %v1757_v44 = vpop.f32.mrb[23].mxu0  ;;  %v6941_v12 = vld [vmem:[%s7111_s11 + $0x218] sm:$0xff]  }
 0x126   : > { %v3472_v21 = vmax.f32 %v3200_v13, 0.0  ;;  %4834 = vst.msk [vmem:[%s7380_s15 + $0x268] sm:$0xf] %vm4679_vm2, %v6145_v15  ;;  %v6010_v24 = vpack.c.bf16 %v3338_v16, %v3338_v16  ;;  %v6146_v25 = vpack.c.bf16 %v3474_v17, %v3474_v17  ;;  %v2926_v27 = vmul.f32 %v6581_v23, %v7343_v54  ;;  %v2301_v45 = vpop.f32.mrb[23].mxu1  ;;  %v6942_v13 = vld [vmem:[%s7111_s11 + $0x438] sm:$0xff]  }
 0x127   : > { %4696 = vst.msk [vmem:[%s7380_s15 + $0x40] sm:$0xf] %vm4679_vm2, %v6007_v18  ;;  %4832 = vst.msk [vmem:[%s7380_s15 + $0x260] sm:$0xf] %vm4679_vm2, %v6143_v19  ;;  %v6008_v32 = vpack.c.bf16 %v3336_v20, %v3336_v20  ;;  %v2788_v34 = vmul.f32 %v7343_v54, %v1754_v28  ;;  %v2924_v35 = vmul.f32 %v7343_v54, %v2298_v29  ;;  %6552 = vmatmul.mubr.msk.bf16.gmra.mrb[128].mxu0 %vm1227_vm0, %v6937_v30 }
 0x128   : > { %v6144_v33 = vpack.c.bf16 %v3472_v21, %v3472_v21  ;;  %4699 = vst.msk [vmem:[%s7380_s15 + $0x4c] sm:$0xf] %vm4679_vm2, %v6010_v24  ;;  %4835 = vst.msk [vmem:[%s7380_s15 + $0x26c] sm:$0xf] %vm4679_vm2, %v6146_v25  ;;  %v3069_v40 = vadd.f32 %v7351_v56, %v2790_v26  ;;  %v3205_v41 = vadd.f32 %v7351_v56, %v2926_v27  ;;  %6688 = vmatmul.mubr.msk.bf16.gmra.mrb[128].mxu1 %vm1227_vm0, %v6938_v31 }
 0x129   : > { %v2791_v42 = vmul.f32 %v6446_v36, %v7343_v54  ;;  %v2927_v43 = vmul.f32 %v6582_v37, %v7343_v54  ;;  %4697 = vst.msk [vmem:[%s7380_s15 + $0x44] sm:$0xf] %vm4679_vm2, %v6008_v32  ;;  %v3067_v46 = vadd.f32 %v7351_v56, %v2788_v34  ;;  %v3203_v47 = vadd.f32 %v7351_v56, %v2924_v35 }
 0x12a   : > { %4833 = vst.msk [vmem:[%s7380_s15 + $0x264] sm:$0xf] %vm4679_vm2, %v6144_v33  ;;  %v2789_v48 = vmul.f32 %v7343_v54, %v1757_v44  ;;  %v2925_v49 = vmul.f32 %v7343_v54, %v2301_v45  ;;  %v3341_v50 = vmax.f32 %v3069_v40, 0.0  ;;  %v3477_v51 = vmax.f32 %v3205_v41, 0.0  ;;  %6555 = vmatprep.mubr.msk.bf16.mxu0 %vm1227_vm0, %v6939_v38  ;;  %6691 = vmatprep.mubr.msk.bf16.mxu1 %vm1227_vm0, %v6940_v39  ;;  %v6449_v4 = vpop.f32.mrb[24].mxu0 }
 0x12b   : > { %v3070_v52 = vadd.f32 %v7351_v56, %v2791_v42  ;;  %v3206_v53 = vadd.f32 %v7351_v56, %v2927_v43  ;;  %v3339_v55 = vmax.f32 %v3067_v46, 0.0  ;;  %v3475_v57 = vmax.f32 %v3203_v47, 0.0  ;;  %v6585_v5 = vpop.f32.mrb[24].mxu1  ;;  %v1770_v10 = vpop.f32.mrb[25].mxu0 }
 0x12c   : > { %v3068_v58 = vadd.f32 %v7351_v56, %v2789_v48  ;;  %v3204_v59 = vadd.f32 %v7351_v56, %v2925_v49  ;;  %v6013_v60 = vpack.c.bf16 %v3341_v50, %v3341_v50  ;;  %v6149_v61 = vpack.c.bf16 %v3477_v51, %v3477_v51  ;;  %v2314_v11 = vpop.f32.mrb[25].mxu1  ;;  %v6450_v18 = vpop.f32.mrb[26].mxu0 }
 0x12d   : > { %v3342_v62 = vmax.f32 %v3070_v52, 0.0  ;;  %v3478_v63 = vmax.f32 %v3206_v53, 0.0  ;;  %v6011_v0 = vpack.c.bf16 %v3339_v55, %v3339_v55  ;;  %v6147_v1 = vpack.c.bf16 %v3475_v57, %v3475_v57  ;;  %v6586_v19 = vpop.f32.mrb[26].mxu1  ;;  %v1773_v24 = vpop.f32.mrb[27].mxu0 }
 0x12e   : > { %v3340_v2 = vmax.f32 %v3068_v58, 0.0  ;;  %v3476_v3 = vmax.f32 %v3204_v59, 0.0  ;;  %4702 = vst.msk [vmem:[%s7380_s15 + $0x58] sm:$0xf] %vm4679_vm2, %v6013_v60  ;;  %4838 = vst.msk [vmem:[%s7380_s15 + $0x278] sm:$0xf] %vm4679_vm2, %v6149_v61  ;;  %v2794_v8 = vmul.f32 %v6449_v4, %v7343_v54  ;;  %v2930_v9 = vmul.f32 %v6585_v5, %v7343_v54 }
 0x12f   : > { %v6014_v6 = vpack.c.bf16 %v3342_v62, %v3342_v62  ;;  %v6150_v7 = vpack.c.bf16 %v3478_v63, %v3478_v63  ;;  %4700 = vst.msk [vmem:[%s7380_s15 + $0x50] sm:$0xf] %vm4679_vm2, %v6011_v0  ;;  %4836 = vst.msk [vmem:[%s7380_s15 + $0x270] sm:$0xf] %vm4679_vm2, %v6147_v1  ;;  %v2792_v16 = vmul.f32 %v7343_v54, %v1770_v10  ;;  %v2317_v25 = vpop.f32.mrb[27].mxu1  ;;  %6556 = vmatmul.mubr.msk.bf16.gmra.mrb[132].mxu0 %vm1227_vm0, %v6941_v12 }
 0x130   : > { %v6012_v14 = vpack.c.bf16 %v3340_v2, %v3340_v2  ;;  %v6148_v15 = vpack.c.bf16 %v3476_v3, %v3476_v3  ;;  %v2928_v17 = vmul.f32 %v7343_v54, %v2314_v11  ;;  %v3073_v20 = vadd.f32 %v7351_v56, %v2794_v8  ;;  %6692 = vmatmul.mubr.msk.bf16.gmra.mrb[132].mxu1 %vm1227_vm0, %v6942_v13 }
 0x131   : > { %4703 = vst.msk [vmem:[%s7380_s15 + $0x5c] sm:$0xf] %vm4679_vm2, %v6014_v6  ;;  %4839 = vst.msk [vmem:[%s7380_s15 + $0x27c] sm:$0xf] %vm4679_vm2, %v6150_v7  ;;  %v3209_v21 = vadd.f32 %v7351_v56, %v2930_v9  ;;  %v2795_v22 = vmul.f32 %v6450_v18, %v7343_v54  ;;  %v2931_v23 = vmul.f32 %v6586_v19, %v7343_v54 }
 0x132   : > { %4701 = vst.msk [vmem:[%s7380_s15 + $0x54] sm:$0xf] %vm4679_vm2, %v6012_v14  ;;  %4837 = vst.msk [vmem:[%s7380_s15 + $0x274] sm:$0xf] %vm4679_vm2, %v6148_v15  ;;  %v3071_v26 = vadd.f32 %v7351_v56, %v2792_v16  ;;  %v3207_v27 = vadd.f32 %v7351_v56, %v2928_v17  ;;  %v2793_v28 = vmul.f32 %v7343_v54, %v1773_v24  ;;  %v3345_v30 = vmax.f32 %v3073_v20, 0.0  ;;  %v6453_v46 = vpop.f32.mrb[28].mxu0 }
 0x133   : > { %v2929_v29 = vmul.f32 %v7343_v54, %v2317_v25  ;;  %v3481_v31 = vmax.f32 %v3209_v21, 0.0  ;;  %v3074_v32 = vadd.f32 %v7351_v56, %v2795_v22  ;;  %v3210_v33 = vadd.f32 %v7351_v56, %v2931_v23  ;;  %v6589_v47 = vpop.f32.mrb[28].mxu1  ;;  %v1786_v52 = vpop.f32.mrb[29].mxu0 }
 0x134   : > { %v3343_v34 = vmax.f32 %v3071_v26, 0.0  ;;  %v3479_v35 = vmax.f32 %v3207_v27, 0.0  ;;  %v3072_v36 = vadd.f32 %v7351_v56, %v2793_v28  ;;  %v6017_v38 = vpack.c.bf16 %v3345_v30, %v3345_v30  ;;  %v2330_v53 = vpop.f32.mrb[29].mxu1  ;;  %v6454_v60 = vpop.f32.mrb[30].mxu0 }
 0x135   : > { %v3208_v37 = vadd.f32 %v7351_v56, %v2929_v29  ;;  %v6153_v39 = vpack.c.bf16 %v3481_v31, %v3481_v31  ;;  %v3346_v40 = vmax.f32 %v3074_v32, 0.0  ;;  %v3482_v41 = vmax.f32 %v3210_v33, 0.0  ;;  %v6590_v61 = vpop.f32.mrb[30].mxu1  ;;  %v1789_v2 = vpop.f32.mrb[31].mxu0 }
 0x136   : > { %v6015_v42 = vpack.c.bf16 %v3343_v34, %v3343_v34  ;;  %v6151_v43 = vpack.c.bf16 %v3479_v35, %v3479_v35  ;;  %v3344_v44 = vmax.f32 %v3072_v36, 0.0  ;;  %4706 = vst.msk [vmem:[%s7380_s15 + $0x68] sm:$0xf] %vm4679_vm2, %v6017_v38  ;;  %v2798_v50 = vmul.f32 %v6453_v46, %v7343_v54  ;;  %v2333_v3 = vpop.f32.mrb[31].mxu1 }
 0x137   : > { %v3480_v45 = vmax.f32 %v3208_v37, 0.0  ;;  %4842 = vst.msk [vmem:[%s7380_s15 + $0x288] sm:$0xf] %vm4679_vm2, %v6153_v39  ;;  %v6018_v48 = vpack.c.bf16 %v3346_v40, %v3346_v40  ;;  %v6154_v49 = vpack.c.bf16 %v3482_v41, %v3482_v41  ;;  %v2934_v51 = vmul.f32 %v6589_v47, %v7343_v54 }
 0x138   : > { %4704 = vst.msk [vmem:[%s7380_s15 + $0x60] sm:$0xf] %vm4679_vm2, %v6015_v42  ;;  %4840 = vst.msk [vmem:[%s7380_s15 + $0x280] sm:$0xf] %vm4679_vm2, %v6151_v43  ;;  %v6016_v55 = vpack.c.bf16 %v3344_v44, %v3344_v44  ;;  %v2796_v58 = vmul.f32 %v7343_v54, %v1786_v52  ;;  %v2932_v59 = vmul.f32 %v7343_v54, %v2330_v53 }
 0x139   : > { %v6152_v57 = vpack.c.bf16 %v3480_v45, %v3480_v45  ;;  %4707 = vst.msk [vmem:[%s7380_s15 + $0x6c] sm:$0xf] %vm4679_vm2, %v6018_v48  ;;  %4843 = vst.msk [vmem:[%s7380_s15 + $0x28c] sm:$0xf] %vm4679_vm2, %v6154_v49  ;;  %v3077_v62 = vadd.f32 %v7351_v56, %v2798_v50  ;;  %v3213_v63 = vadd.f32 %v7351_v56, %v2934_v51 }
 0x13a   : > { %v2799_v0 = vmul.f32 %v6454_v60, %v7343_v54  ;;  %v2935_v1 = vmul.f32 %v6590_v61, %v7343_v54  ;;  %4705 = vst.msk [vmem:[%s7380_s15 + $0x64] sm:$0xf] %vm4679_vm2, %v6016_v55  ;;  %v3075_v4 = vadd.f32 %v7351_v56, %v2796_v58  ;;  %v3211_v5 = vadd.f32 %v7351_v56, %v2932_v59  ;;  %v6457_v24 = vpop.f32.mrb[32].mxu0 }
 0x13b   : > { %4841 = vst.msk [vmem:[%s7380_s15 + $0x284] sm:$0xf] %vm4679_vm2, %v6152_v57  ;;  %v2797_v6 = vmul.f32 %v7343_v54, %v1789_v2  ;;  %v2933_v7 = vmul.f32 %v7343_v54, %v2333_v3  ;;  %v3349_v8 = vmax.f32 %v3077_v62, 0.0  ;;  %v3485_v9 = vmax.f32 %v3213_v63, 0.0  ;;  %v6593_v25 = vpop.f32.mrb[32].mxu1  ;;  %v1802_v30 = vpop.f32.mrb[33].mxu0 }
 0x13c   : > { %v3078_v10 = vadd.f32 %v7351_v56, %v2799_v0  ;;  %v3214_v11 = vadd.f32 %v7351_v56, %v2935_v1  ;;  %v3347_v12 = vmax.f32 %v3075_v4, 0.0  ;;  %v3483_v13 = vmax.f32 %v3211_v5, 0.0  ;;  %v2346_v31 = vpop.f32.mrb[33].mxu1  ;;  %v6458_v36 = vpop.f32.mrb[34].mxu0 }
 0x13d   : > { %v3076_v14 = vadd.f32 %v7351_v56, %v2797_v6  ;;  %v3212_v15 = vadd.f32 %v7351_v56, %v2933_v7  ;;  %v6021_v16 = vpack.c.bf16 %v3349_v8, %v3349_v8  ;;  %v6157_v17 = vpack.c.bf16 %v3485_v9, %v3485_v9  ;;  %v6594_v37 = vpop.f32.mrb[34].mxu1  ;;  %v1805_v42 = vpop.f32.mrb[35].mxu0 }
 0x13e   : > { %v3350_v18 = vmax.f32 %v3078_v10, 0.0  ;;  %v3486_v19 = vmax.f32 %v3214_v11, 0.0  ;;  %v6019_v20 = vpack.c.bf16 %v3347_v12, %v3347_v12  ;;  %v6155_v21 = vpack.c.bf16 %v3483_v13, %v3483_v13  ;;  %v2349_v43 = vpop.f32.mrb[35].mxu1 }
 0x13f   : > { %v3348_v22 = vmax.f32 %v3076_v14, 0.0  ;;  %v3484_v23 = vmax.f32 %v3212_v15, 0.0  ;;  %4710 = vst.msk [vmem:[%s7380_s15 + $0x78] sm:$0xf] %vm4679_vm2, %v6021_v16  ;;  %4846 = vst.msk [vmem:[%s7380_s15 + $0x298] sm:$0xf] %vm4679_vm2, %v6157_v17  ;;  %v2802_v28 = vmul.f32 %v6457_v24, %v7343_v54  ;;  %v2938_v29 = vmul.f32 %v6593_v25, %v7343_v54 }
 0x140   : > { %v6022_v26 = vpack.c.bf16 %v3350_v18, %v3350_v18  ;;  %v6158_v27 = vpack.c.bf16 %v3486_v19, %v3486_v19  ;;  %4708 = vst.msk [vmem:[%s7380_s15 + $0x70] sm:$0xf] %vm4679_vm2, %v6019_v20  ;;  %4844 = vst.msk [vmem:[%s7380_s15 + $0x290] sm:$0xf] %vm4679_vm2, %v6155_v21  ;;  %v2800_v34 = vmul.f32 %v7343_v54, %v1802_v30 }
 0x141   : > { %v6020_v32 = vpack.c.bf16 %v3348_v22, %v3348_v22  ;;  %v6156_v33 = vpack.c.bf16 %v3484_v23, %v3484_v23  ;;  %v2936_v35 = vmul.f32 %v7343_v54, %v2346_v31  ;;  %v3081_v38 = vadd.f32 %v7351_v56, %v2802_v28 }
 0x142   : > { %4711 = vst.msk [vmem:[%s7380_s15 + $0x7c] sm:$0xf] %vm4679_vm2, %v6022_v26  ;;  %4847 = vst.msk [vmem:[%s7380_s15 + $0x29c] sm:$0xf] %vm4679_vm2, %v6158_v27  ;;  %v3217_v39 = vadd.f32 %v7351_v56, %v2938_v29  ;;  %v2803_v40 = vmul.f32 %v6458_v36, %v7343_v54  ;;  %v2939_v41 = vmul.f32 %v6594_v37, %v7343_v54  ;;  %v6461_v2 = vpop.f32.mrb[36].mxu0 }
 0x143   : > { %4709 = vst.msk [vmem:[%s7380_s15 + $0x74] sm:$0xf] %vm4679_vm2, %v6020_v32  ;;  %4845 = vst.msk [vmem:[%s7380_s15 + $0x294] sm:$0xf] %vm4679_vm2, %v6156_v33  ;;  %v3079_v44 = vadd.f32 %v7351_v56, %v2800_v34  ;;  %v3215_v45 = vadd.f32 %v7351_v56, %v2936_v35  ;;  %v2801_v46 = vmul.f32 %v7343_v54, %v1805_v42  ;;  %v3353_v48 = vmax.f32 %v3081_v38, 0.0  ;;  %v6597_v3 = vpop.f32.mrb[36].mxu1 }
 0x144   : > { %v2937_v47 = vmul.f32 %v7343_v54, %v2349_v43  ;;  %v3489_v49 = vmax.f32 %v3217_v39, 0.0  ;;  %v3082_v50 = vadd.f32 %v7351_v56, %v2803_v40  ;;  %v3218_v51 = vadd.f32 %v7351_v56, %v2939_v41  ;;  %v1818_v8 = vpop.f32.mrb[37].mxu0  ;;  %v2362_v9 = vpop.f32.mrb[37].mxu1  ;;  %v7715_v32 = vld [vmem:[%s8730_s3] ss:$0 sm:$0xff] }
 0x145   : > { %v3351_v52 = vmax.f32 %v3079_v44, 0.0  ;;  %v3487_v53 = vmax.f32 %v3215_v45, 0.0  ;;  %v3080_v55 = vadd.f32 %v7351_v56, %v2801_v46  ;;  %v6025_v58 = vpack.c.bf16 %v3353_v48, %v3353_v48  ;;  %v6462_v14 = vpop.f32.mrb[38].mxu0  ;;  %v6598_v15 = vpop.f32.mrb[38].mxu1  ;;  %v7726_v45 = vld [vmem:[%s8729_s2] ss:$0 sm:$0xff] }
 0x146   : > { %v3216_v57 = vadd.f32 %v7351_v56, %v2937_v47  ;;  %v6161_v59 = vpack.c.bf16 %v3489_v49, %v3489_v49  ;;  %v3354_v60 = vmax.f32 %v3082_v50, 0.0  ;;  %v3490_v61 = vmax.f32 %v3218_v51, 0.0  ;;  %v1821_v20 = vpop.f32.mrb[39].mxu0  ;;  %v2365_v21 = vpop.f32.mrb[39].mxu1 }
 0x147   : > { %v6023_v62 = vpack.c.bf16 %v3351_v52, %v3351_v52  ;;  %v6159_v63 = vpack.c.bf16 %v3487_v53, %v3487_v53  ;;  %v3352_v0 = vmax.f32 %v3080_v55, 0.0  ;;  %4714 = vst.msk [vmem:[%s7380_s15 + $0x88] sm:$0xf] %vm4679_vm2, %v6025_v58  ;;  %v2806_v6 = vmul.f32 %v6461_v2, %v7343_v54 }
 0x148   : > { %v3488_v1 = vmax.f32 %v3216_v57, 0.0  ;;  %4850 = vst.msk [vmem:[%s7380_s15 + $0x2a8] sm:$0xf] %vm4679_vm2, %v6161_v59  ;;  %v6026_v4 = vpack.c.bf16 %v3354_v60, %v3354_v60  ;;  %v6162_v5 = vpack.c.bf16 %v3490_v61, %v3490_v61  ;;  %v2942_v7 = vmul.f32 %v6597_v3, %v7343_v54 }
 0x149   : > { %4712 = vst.msk [vmem:[%s7380_s15 + $0x80] sm:$0xf] %vm4679_vm2, %v6023_v62  ;;  %4848 = vst.msk [vmem:[%s7380_s15 + $0x2a0] sm:$0xf] %vm4679_vm2, %v6159_v63  ;;  %v6024_v10 = vpack.c.bf16 %v3352_v0, %v3352_v0  ;;  %v2804_v12 = vmul.f32 %v7343_v54, %v1818_v8  ;;  %v2940_v13 = vmul.f32 %v7343_v54, %v2362_v9 }
 0x14a   : > { %v6160_v11 = vpack.c.bf16 %v3488_v1, %v3488_v1  ;;  %4715 = vst.msk [vmem:[%s7380_s15 + $0x8c] sm:$0xf] %vm4679_vm2, %v6026_v4  ;;  %4851 = vst.msk [vmem:[%s7380_s15 + $0x2ac] sm:$0xf] %vm4679_vm2, %v6162_v5  ;;  %v3085_v16 = vadd.f32 %v7351_v56, %v2806_v6  ;;  %v3221_v17 = vadd.f32 %v7351_v56, %v2942_v7  ;;  %v6465_v41 = vpop.f32.mrb[40].mxu0 }
 0x14b   : > { %v2807_v18 = vmul.f32 %v6462_v14, %v7343_v54  ;;  %v2943_v19 = vmul.f32 %v6598_v15, %v7343_v54  ;;  %4713 = vst.msk [vmem:[%s7380_s15 + $0x84] sm:$0xf] %vm4679_vm2, %v6024_v10  ;;  %v3083_v22 = vadd.f32 %v7351_v56, %v2804_v12  ;;  %v3219_v23 = vadd.f32 %v7351_v56, %v2940_v13  ;;  %v6601_v42 = vpop.f32.mrb[40].mxu1  ;;  %v1834_v48 = vpop.f32.mrb[41].mxu0 }
 0x14c   : > { %4849 = vst.msk [vmem:[%s7380_s15 + $0x2a4] sm:$0xf] %vm4679_vm2, %v6160_v11  ;;  %v2805_v24 = vmul.f32 %v7343_v54, %v1821_v20  ;;  %v2941_v25 = vmul.f32 %v7343_v54, %v2365_v21  ;;  %v3357_v26 = vmax.f32 %v3085_v16, 0.0  ;;  %v3493_v27 = vmax.f32 %v3221_v17, 0.0  ;;  %v2378_v49 = vpop.f32.mrb[41].mxu1  ;;  %v6466_v55 = vpop.f32.mrb[42].mxu0 }
 0x14d   : > { %v3086_v28 = vadd.f32 %v7351_v56, %v2807_v18  ;;  %v3222_v29 = vadd.f32 %v7351_v56, %v2943_v19  ;;  %v3355_v30 = vmax.f32 %v3083_v22, 0.0  ;;  %v3491_v31 = vmax.f32 %v3219_v23, 0.0  ;;  %v6602_v57 = vpop.f32.mrb[42].mxu1  ;;  %v1837_v62 = vpop.f32.mrb[43].mxu0 }
 0x14e   : > { %v3084_v33 = vadd.f32 %v7715_v32, %v2805_v24  ;;  %v3220_v34 = vadd.f32 %v7715_v32, %v2941_v25  ;;  %v6029_v54 = vpack.c.bf16 %v3357_v26, %v3357_v26  ;;  %v6165_v35 = vpack.c.bf16 %v3493_v27, %v3493_v27  ;;  %v2381_v63 = vpop.f32.mrb[43].mxu1 }
 0x14f   : > { %v3358_v36 = vmax.f32 %v3086_v28, 0.0  ;;  %v3494_v37 = vmax.f32 %v3222_v29, 0.0  ;;  %v6027_v38 = vpack.c.bf16 %v3355_v30, %v3355_v30  ;;  %v6163_v56 = vpack.c.bf16 %v3491_v31, %v3491_v31 }
 0x150   : > { %v3356_v39 = vmax.f32 %v3084_v33, 0.0  ;;  %v3492_v40 = vmax.f32 %v3220_v34, 0.0  ;;  %4718 = vst.msk [vmem:[%s7380_s15 + $0x98] sm:$0xf] %vm4679_vm2, %v6029_v54  ;;  %4854 = vst.msk [vmem:[%s7380_s15 + $0x2b8] sm:$0xf] %vm4679_vm2, %v6165_v35  ;;  %v2810_v46 = vmul.f32 %v7726_v45, %v6465_v41  ;;  %v2946_v47 = vmul.f32 %v7726_v45, %v6601_v42 }
 0x151   : > { %v6030_v43 = vpack.c.bf16 %v3358_v36, %v3358_v36  ;;  %v6166_v44 = vpack.c.bf16 %v3494_v37, %v3494_v37  ;;  %4716 = vst.msk [vmem:[%s7380_s15 + $0x90] sm:$0xf] %vm4679_vm2, %v6027_v38  ;;  %4852 = vst.msk [vmem:[%s7380_s15 + $0x2b0] sm:$0xf] %vm4679_vm2, %v6163_v56  ;;  %v2808_v52 = vmul.f32 %v7726_v45, %v1834_v48 }
 0x152   : > { %v6028_v50 = vpack.c.bf16 %v3356_v39, %v3356_v39  ;;  %v6164_v51 = vpack.c.bf16 %v3492_v40, %v3492_v40  ;;  %v2944_v53 = vmul.f32 %v7726_v45, %v2378_v49  ;;  %v3089_v58 = vadd.f32 %v7715_v32, %v2810_v46  ;;  %v6469_v20 = vpop.f32.mrb[44].mxu0 }
 0x153   : > { %4719 = vst.msk [vmem:[%s7380_s15 + $0x9c] sm:$0xf] %vm4679_vm2, %v6030_v43  ;;  %4855 = vst.msk [vmem:[%s7380_s15 + $0x2bc] sm:$0xf] %vm4679_vm2, %v6166_v44  ;;  %v3225_v59 = vadd.f32 %v7715_v32, %v2946_v47  ;;  %v2811_v60 = vmul.f32 %v7726_v45, %v6466_v55  ;;  %v2947_v61 = vmul.f32 %v7726_v45, %v6602_v57  ;;  %v6605_v21 = vpop.f32.mrb[44].mxu1  ;;  %v1850_v26 = vpop.f32.mrb[45].mxu0 }
 0x154   : > { %4717 = vst.msk [vmem:[%s7380_s15 + $0x94] sm:$0xf] %vm4679_vm2, %v6028_v50  ;;  %4853 = vst.msk [vmem:[%s7380_s15 + $0x2b4] sm:$0xf] %vm4679_vm2, %v6164_v51  ;;  %v3087_v0 = vadd.f32 %v7715_v32, %v2808_v52  ;;  %v3223_v1 = vadd.f32 %v7715_v32, %v2944_v53  ;;  %v2809_v2 = vmul.f32 %v7726_v45, %v1837_v62  ;;  %v3361_v4 = vmax.f32 %v3089_v58, 0.0  ;;  %v2394_v27 = vpop.f32.mrb[45].mxu1 }
 0x155   : > { %v2945_v3 = vmul.f32 %v7726_v45, %v2381_v63  ;;  %v3497_v5 = vmax.f32 %v3225_v59, 0.0  ;;  %v3090_v6 = vadd.f32 %v7715_v32, %v2811_v60  ;;  %v3226_v7 = vadd.f32 %v7715_v32, %v2947_v61  ;;  %v6470_v33 = vpop.f32.mrb[46].mxu0  ;;  %v6606_v34 = vpop.f32.mrb[46].mxu1 }
 0x156   : > { %v3359_v8 = vmax.f32 %v3087_v0, 0.0  ;;  %v3495_v9 = vmax.f32 %v3223_v1, 0.0  ;;  %v3088_v10 = vadd.f32 %v7715_v32, %v2809_v2  ;;  %v6033_v12 = vpack.c.bf16 %v3361_v4, %v3361_v4  ;;  %v1853_v38 = vpop.f32.mrb[47].mxu0  ;;  %v2397_v56 = vpop.f32.mrb[47].mxu1 }
 0x157   : > { %v3224_v11 = vadd.f32 %v7715_v32, %v2945_v3  ;;  %v6169_v13 = vpack.c.bf16 %v3497_v5, %v3497_v5  ;;  %v3362_v14 = vmax.f32 %v3090_v6, 0.0  ;;  %v3498_v15 = vmax.f32 %v3226_v7, 0.0 }
 0x158   : > { %v6031_v16 = vpack.c.bf16 %v3359_v8, %v3359_v8  ;;  %v6167_v17 = vpack.c.bf16 %v3495_v9, %v3495_v9  ;;  %v3360_v18 = vmax.f32 %v3088_v10, 0.0  ;;  %4722 = vst.msk [vmem:[%s7380_s15 + $0xa8] sm:$0xf] %vm4679_vm2, %v6033_v12  ;;  %v2814_v24 = vmul.f32 %v7726_v45, %v6469_v20 }
 0x159   : > { %v3496_v19 = vmax.f32 %v3224_v11, 0.0  ;;  %4858 = vst.msk [vmem:[%s7380_s15 + $0x2c8] sm:$0xf] %vm4679_vm2, %v6169_v13  ;;  %v6034_v22 = vpack.c.bf16 %v3362_v14, %v3362_v14  ;;  %v6170_v23 = vpack.c.bf16 %v3498_v15, %v3498_v15  ;;  %v2950_v25 = vmul.f32 %v7726_v45, %v6605_v21 }
 0x15a   : > { %4720 = vst.msk [vmem:[%s7380_s15 + $0xa0] sm:$0xf] %vm4679_vm2, %v6031_v16  ;;  %4856 = vst.msk [vmem:[%s7380_s15 + $0x2c0] sm:$0xf] %vm4679_vm2, %v6167_v17  ;;  %v6032_v28 = vpack.c.bf16 %v3360_v18, %v3360_v18  ;;  %v2812_v30 = vmul.f32 %v7726_v45, %v1850_v26  ;;  %v2948_v31 = vmul.f32 %v7726_v45, %v2394_v27  ;;  %v6473_v62 = vpop.f32.mrb[48].mxu0 }
 0x15b   : > { %v6168_v29 = vpack.c.bf16 %v3496_v19, %v3496_v19  ;;  %4723 = vst.msk [vmem:[%s7380_s15 + $0xac] sm:$0xf] %vm4679_vm2, %v6034_v22  ;;  %4859 = vst.msk [vmem:[%s7380_s15 + $0x2cc] sm:$0xf] %vm4679_vm2, %v6170_v23  ;;  %v3093_v54 = vadd.f32 %v7715_v32, %v2814_v24  ;;  %v3229_v35 = vadd.f32 %v7715_v32, %v2950_v25  ;;  %v6609_v63 = vpop.f32.mrb[48].mxu1  ;;  %v1866_v4 = vpop.f32.mrb[49].mxu0 }
 0x15c   : > { %v2815_v36 = vmul.f32 %v7726_v45, %v6470_v33  ;;  %v2951_v37 = vmul.f32 %v7726_v45, %v6606_v34  ;;  %4721 = vst.msk [vmem:[%s7380_s15 + $0xa4] sm:$0xf] %vm4679_vm2, %v6032_v28  ;;  %v3091_v39 = vadd.f32 %v7715_v32, %v2812_v30  ;;  %v3227_v40 = vadd.f32 %v7715_v32, %v2948_v31  ;;  %v2410_v5 = vpop.f32.mrb[49].mxu1  ;;  %v6474_v10 = vpop.f32.mrb[50].mxu0 }
 0x15d   : > { %4857 = vst.msk [vmem:[%s7380_s15 + $0x2c4] sm:$0xf] %vm4679_vm2, %v6168_v29  ;;  %v2813_v41 = vmul.f32 %v7726_v45, %v1853_v38  ;;  %v2949_v42 = vmul.f32 %v7726_v45, %v2397_v56  ;;  %v3365_v43 = vmax.f32 %v3093_v54, 0.0  ;;  %v3501_v44 = vmax.f32 %v3229_v35, 0.0  ;;  %v6610_v11 = vpop.f32.mrb[50].mxu1  ;;  %v1869_v16 = vpop.f32.mrb[51].mxu0 }
 0x15e   : > { %v3094_v46 = vadd.f32 %v7715_v32, %v2815_v36  ;;  %v3230_v47 = vadd.f32 %v7715_v32, %v2951_v37  ;;  %v3363_v48 = vmax.f32 %v3091_v39, 0.0  ;;  %v3499_v49 = vmax.f32 %v3227_v40, 0.0  ;;  %v2413_v17 = vpop.f32.mrb[51].mxu1 }
 0x15f   : > { %v3092_v50 = vadd.f32 %v7715_v32, %v2813_v41  ;;  %v3228_v51 = vadd.f32 %v7715_v32, %v2949_v42  ;;  %v6037_v52 = vpack.c.bf16 %v3365_v43, %v3365_v43  ;;  %v6173_v53 = vpack.c.bf16 %v3501_v44, %v3501_v44 }
 0x160   : > { %v3366_v55 = vmax.f32 %v3094_v46, 0.0  ;;  %v3502_v57 = vmax.f32 %v3230_v47, 0.0  ;;  %v6035_v58 = vpack.c.bf16 %v3363_v48, %v3363_v48  ;;  %v6171_v59 = vpack.c.bf16 %v3499_v49, %v3499_v49 }
 0x161   : > { %v3364_v60 = vmax.f32 %v3092_v50, 0.0  ;;  %v3500_v61 = vmax.f32 %v3228_v51, 0.0  ;;  %4726 = vst.msk [vmem:[%s7380_s15 + $0xb8] sm:$0xf] %vm4679_vm2, %v6037_v52  ;;  %4862 = vst.msk [vmem:[%s7380_s15 + $0x2d8] sm:$0xf] %vm4679_vm2, %v6173_v53  ;;  %v2818_v2 = vmul.f32 %v7726_v45, %v6473_v62  ;;  %v2954_v3 = vmul.f32 %v7726_v45, %v6609_v63 }
 0x162   : > { %v6038_v0 = vpack.c.bf16 %v3366_v55, %v3366_v55  ;;  %v6174_v1 = vpack.c.bf16 %v3502_v57, %v3502_v57  ;;  %4724 = vst.msk [vmem:[%s7380_s15 + $0xb0] sm:$0xf] %vm4679_vm2, %v6035_v58  ;;  %4860 = vst.msk [vmem:[%s7380_s15 + $0x2d0] sm:$0xf] %vm4679_vm2, %v6171_v59  ;;  %v2816_v8 = vmul.f32 %v7726_v45, %v1866_v4  ;;  %v6477_v38 = vpop.f32.mrb[52].mxu0 }
 0x163   : > { %v6036_v6 = vpack.c.bf16 %v3364_v60, %v3364_v60  ;;  %v6172_v7 = vpack.c.bf16 %v3500_v61, %v3500_v61  ;;  %v2952_v9 = vmul.f32 %v7726_v45, %v2410_v5  ;;  %v3097_v12 = vadd.f32 %v7715_v32, %v2818_v2  ;;  %v6613_v56 = vpop.f32.mrb[52].mxu1  ;;  %v1882_v43 = vpop.f32.mrb[53].mxu0 }
 0x164   : > { %4727 = vst.msk [vmem:[%s7380_s15 + $0xbc] sm:$0xf] %vm4679_vm2, %v6038_v0  ;;  %4863 = vst.msk [vmem:[%s7380_s15 + $0x2dc] sm:$0xf] %vm4679_vm2, %v6174_v1  ;;  %v3233_v13 = vadd.f32 %v7715_v32, %v2954_v3  ;;  %v2819_v14 = vmul.f32 %v7726_v45, %v6474_v10  ;;  %v2955_v15 = vmul.f32 %v7726_v45, %v6610_v11  ;;  %v2426_v44 = vpop.f32.mrb[53].mxu1  ;;  %v6478_v50 = vpop.f32.mrb[54].mxu0 }
 0x165   : > { %4725 = vst.msk [vmem:[%s7380_s15 + $0xb4] sm:$0xf] %vm4679_vm2, %v6036_v6  ;;  %4861 = vst.msk [vmem:[%s7380_s15 + $0x2d4] sm:$0xf] %vm4679_vm2, %v6172_v7  ;;  %v3095_v18 = vadd.f32 %v7715_v32, %v2816_v8  ;;  %v3231_v19 = vadd.f32 %v7715_v32, %v2952_v9  ;;  %v2817_v20 = vmul.f32 %v7726_v45, %v1869_v16  ;;  %v3369_v22 = vmax.f32 %v3097_v12, 0.0  ;;  %v6614_v51 = vpop.f32.mrb[54].mxu1 }
 0x166   : > { %v2953_v21 = vmul.f32 %v7726_v45, %v2413_v17  ;;  %v3505_v23 = vmax.f32 %v3233_v13, 0.0  ;;  %v3098_v24 = vadd.f32 %v7715_v32, %v2819_v14  ;;  %v3234_v25 = vadd.f32 %v7715_v32, %v2955_v15  ;;  %v1885_v58 = vpop.f32.mrb[55].mxu0  ;;  %v2429_v59 = vpop.f32.mrb[55].mxu1 }
 0x167   : > { %v3367_v26 = vmax.f32 %v3095_v18, 0.0  ;;  %v3503_v27 = vmax.f32 %v3231_v19, 0.0  ;;  %v3096_v28 = vadd.f32 %v7715_v32, %v2817_v20  ;;  %v6041_v30 = vpack.c.bf16 %v3369_v22, %v3369_v22 }
 0x168   : > { %v3232_v29 = vadd.f32 %v7715_v32, %v2953_v21  ;;  %v6177_v31 = vpack.c.bf16 %v3505_v23, %v3505_v23  ;;  %v3370_v33 = vmax.f32 %v3098_v24, 0.0  ;;  %v3506_v34 = vmax.f32 %v3234_v25, 0.0 }
 0x169   : > { %v6039_v54 = vpack.c.bf16 %v3367_v26, %v3367_v26  ;;  %v6175_v35 = vpack.c.bf16 %v3503_v27, %v3503_v27  ;;  %v3368_v36 = vmax.f32 %v3096_v28, 0.0  ;;  %4730 = vst.msk [vmem:[%s7380_s15 + $0xc8] sm:$0xf] %vm4679_vm2, %v6041_v30  ;;  %v2822_v41 = vmul.f32 %v7726_v45, %v6477_v38 }
 0x16a   : > { %v3504_v37 = vmax.f32 %v3232_v29, 0.0  ;;  %4866 = vst.msk [vmem:[%s7380_s15 + $0x2e8] sm:$0xf] %vm4679_vm2, %v6177_v31  ;;  %v6042_v39 = vpack.c.bf16 %v3370_v33, %v3370_v33  ;;  %v6178_v40 = vpack.c.bf16 %v3506_v34, %v3506_v34  ;;  %v2958_v42 = vmul.f32 %v7726_v45, %v6613_v56  ;;  %v6481_v16 = vpop.f32.mrb[56].mxu0 }
 0x16b   : > { %4728 = vst.msk [vmem:[%s7380_s15 + $0xc0] sm:$0xf] %vm4679_vm2, %v6039_v54  ;;  %4864 = vst.msk [vmem:[%s7380_s15 + $0x2e0] sm:$0xf] %vm4679_vm2, %v6175_v35  ;;  %v6040_v46 = vpack.c.bf16 %v3368_v36, %v3368_v36  ;;  %v2820_v48 = vmul.f32 %v7726_v45, %v1882_v43  ;;  %v2956_v49 = vmul.f32 %v7726_v45, %v2426_v44  ;;  %v6617_v17 = vpop.f32.mrb[56].mxu1  ;;  %v1898_v22 = vpop.f32.mrb[57].mxu0 }
 0x16c   : > { %v6176_v47 = vpack.c.bf16 %v3504_v37, %v3504_v37  ;;  %4731 = vst.msk [vmem:[%s7380_s15 + $0xcc] sm:$0xf] %vm4679_vm2, %v6042_v39  ;;  %4867 = vst.msk [vmem:[%s7380_s15 + $0x2ec] sm:$0xf] %vm4679_vm2, %v6178_v40  ;;  %v3101_v52 = vadd.f32 %v7715_v32, %v2822_v41  ;;  %v3237_v53 = vadd.f32 %v7715_v32, %v2958_v42  ;;  %v2442_v23 = vpop.f32.mrb[57].mxu1  ;;  %v6482_v28 = vpop.f32.mrb[58].mxu0 }
 0x16d   : > { %v2823_v55 = vmul.f32 %v7726_v45, %v6478_v50  ;;  %v2959_v57 = vmul.f32 %v7726_v45, %v6614_v51  ;;  %4729 = vst.msk [vmem:[%s7380_s15 + $0xc4] sm:$0xf] %vm4679_vm2, %v6040_v46  ;;  %v3099_v60 = vadd.f32 %v7715_v32, %v2820_v48  ;;  %v3235_v61 = vadd.f32 %v7715_v32, %v2956_v49  ;;  %v6618_v29 = vpop.f32.mrb[58].mxu1  ;;  %v1901_v54 = vpop.f32.mrb[59].mxu0 }
 0x16e   : > { %4865 = vst.msk [vmem:[%s7380_s15 + $0x2e4] sm:$0xf] %vm4679_vm2, %v6176_v47  ;;  %v2821_v62 = vmul.f32 %v7726_v45, %v1885_v58  ;;  %v2957_v63 = vmul.f32 %v7726_v45, %v2429_v59  ;;  %v3373_v0 = vmax.f32 %v3101_v52, 0.0  ;;  %v3509_v1 = vmax.f32 %v3237_v53, 0.0  ;;  %v2445_v35 = vpop.f32.mrb[59].mxu1 }
 0x16f   : > { %v3102_v2 = vadd.f32 %v7715_v32, %v2823_v55  ;;  %v3238_v3 = vadd.f32 %v7715_v32, %v2959_v57  ;;  %v3371_v4 = vmax.f32 %v3099_v60, 0.0  ;;  %v3507_v5 = vmax.f32 %v3235_v61, 0.0 }
 0x170   : > { %v3100_v6 = vadd.f32 %v7715_v32, %v2821_v62  ;;  %v3236_v7 = vadd.f32 %v7715_v32, %v2957_v63  ;;  %v6045_v8 = vpack.c.bf16 %v3373_v0, %v3373_v0  ;;  %v6181_v9 = vpack.c.bf16 %v3509_v1, %v3509_v1 }
 0x171   : > { %v3374_v10 = vmax.f32 %v3102_v2, 0.0  ;;  %v3510_v11 = vmax.f32 %v3238_v3, 0.0  ;;  %v6043_v12 = vpack.c.bf16 %v3371_v4, %v3371_v4  ;;  %v6179_v13 = vpack.c.bf16 %v3507_v5, %v3507_v5 }
 0x172   : > { %v3372_v14 = vmax.f32 %v3100_v6, 0.0  ;;  %v3508_v15 = vmax.f32 %v3236_v7, 0.0  ;;  %4734 = vst.msk [vmem:[%s7380_s15 + $0xd8] sm:$0xf] %vm4679_vm2, %v6045_v8  ;;  %4870 = vst.msk [vmem:[%s7380_s15 + $0x2f8] sm:$0xf] %vm4679_vm2, %v6181_v9  ;;  %v2826_v20 = vmul.f32 %v7726_v45, %v6481_v16  ;;  %v2962_v21 = vmul.f32 %v7726_v45, %v6617_v17 }
 0x173   : > { %v6046_v18 = vpack.c.bf16 %v3374_v10, %v3374_v10  ;;  %v6182_v19 = vpack.c.bf16 %v3510_v11, %v3510_v11  ;;  %4732 = vst.msk [vmem:[%s7380_s15 + $0xd0] sm:$0xf] %vm4679_vm2, %v6043_v12  ;;  %4868 = vst.msk [vmem:[%s7380_s15 + $0x2f0] sm:$0xf] %vm4679_vm2, %v6179_v13  ;;  %v2824_v26 = vmul.f32 %v7726_v45, %v1898_v22  ;;  %v6485_v58 = vpop.f32.mrb[60].mxu0  ;;  %v6621_v59 = vpop.f32.mrb[60].mxu1 }
 0x174   : > { %v6044_v24 = vpack.c.bf16 %v3372_v14, %v3372_v14  ;;  %v6180_v25 = vpack.c.bf16 %v3508_v15, %v3508_v15  ;;  %v2960_v27 = vmul.f32 %v7726_v45, %v2442_v23  ;;  %v3105_v30 = vadd.f32 %v7715_v32, %v2826_v20  ;;  %v1914_v0 = vpop.f32.mrb[61].mxu0  ;;  %v2458_v1 = vpop.f32.mrb[61].mxu1 }
 0x175   : > { %4735 = vst.msk [vmem:[%s7380_s15 + $0xdc] sm:$0xf] %vm4679_vm2, %v6046_v18  ;;  %4871 = vst.msk [vmem:[%s7380_s15 + $0x2fc] sm:$0xf] %vm4679_vm2, %v6182_v19  ;;  %v3241_v31 = vadd.f32 %v7715_v32, %v2962_v21  ;;  %v2827_v33 = vmul.f32 %v7726_v45, %v6482_v28  ;;  %v2963_v34 = vmul.f32 %v7726_v45, %v6618_v29  ;;  %v6486_v6 = vpop.f32.mrb[62].mxu0  ;;  %v6622_v7 = vpop.f32.mrb[62].mxu1 }
 0x176   : > { %4733 = vst.msk [vmem:[%s7380_s15 + $0xd4] sm:$0xf] %vm4679_vm2, %v6044_v24  ;;  %4869 = vst.msk [vmem:[%s7380_s15 + $0x2f4] sm:$0xf] %vm4679_vm2, %v6180_v25  ;;  %v3103_v36 = vadd.f32 %v7715_v32, %v2824_v26  ;;  %v3239_v37 = vadd.f32 %v7715_v32, %v2960_v27  ;;  %v2825_v38 = vmul.f32 %v7726_v45, %v1901_v54  ;;  %v3377_v39 = vmax.f32 %v3105_v30, 0.0  ;;  %v1917_v12 = vpop.f32.mrb[63].mxu0 }
 0x177   : > { %v2961_v56 = vmul.f32 %v7726_v45, %v2445_v35  ;;  %v3513_v40 = vmax.f32 %v3241_v31, 0.0  ;;  %v3106_v41 = vadd.f32 %v7715_v32, %v2827_v33  ;;  %v3242_v42 = vadd.f32 %v7715_v32, %v2963_v34  ;;  %v2461_v13 = vpop.f32.mrb[63].mxu1 }
 0x178   : > { %v3375_v43 = vmax.f32 %v3103_v36, 0.0  ;;  %v3511_v44 = vmax.f32 %v3239_v37, 0.0  ;;  %v3104_v46 = vadd.f32 %v7715_v32, %v2825_v38  ;;  %v6049_v48 = vpack.c.bf16 %v3377_v39, %v3377_v39 }
 0x179   : > { %v3240_v47 = vadd.f32 %v7715_v32, %v2961_v56  ;;  %v6185_v49 = vpack.c.bf16 %v3513_v40, %v3513_v40  ;;  %v3378_v50 = vmax.f32 %v3106_v41, 0.0  ;;  %v3514_v51 = vmax.f32 %v3242_v42, 0.0 }
 0x17a   : > { %v6047_v52 = vpack.c.bf16 %v3375_v43, %v3375_v43  ;;  %v6183_v53 = vpack.c.bf16 %v3511_v44, %v3511_v44  ;;  %v3376_v55 = vmax.f32 %v3104_v46, 0.0  ;;  %4738 = vst.msk [vmem:[%s7380_s15 + $0xe8] sm:$0xf] %vm4679_vm2, %v6049_v48  ;;  %v2830_v62 = vmul.f32 %v7726_v45, %v6485_v58  ;;  %v6489_v54 = vpop.f32.mrb[64].mxu0 }
 0x17b   : > { %v3512_v57 = vmax.f32 %v3240_v47, 0.0  ;;  %4874 = vst.msk [vmem:[%s7380_s15 + $0x308] sm:$0xf] %vm4679_vm2, %v6185_v49  ;;  %v6050_v60 = vpack.c.bf16 %v3378_v50, %v3378_v50  ;;  %v6186_v61 = vpack.c.bf16 %v3514_v51, %v3514_v51  ;;  %v2966_v63 = vmul.f32 %v7726_v45, %v6621_v59  ;;  %v6625_v35 = vpop.f32.mrb[64].mxu1  ;;  %v1930_v39 = vpop.f32.mrb[65].mxu0 }
 0x17c   : > { %4736 = vst.msk [vmem:[%s7380_s15 + $0xe0] sm:$0xf] %vm4679_vm2, %v6047_v52  ;;  %4872 = vst.msk [vmem:[%s7380_s15 + $0x300] sm:$0xf] %vm4679_vm2, %v6183_v53  ;;  %v6048_v2 = vpack.c.bf16 %v3376_v55, %v3376_v55  ;;  %v2828_v4 = vmul.f32 %v7726_v45, %v1914_v0  ;;  %v2964_v5 = vmul.f32 %v7726_v45, %v2458_v1  ;;  %v2474_v40 = vpop.f32.mrb[65].mxu1  ;;  %v6490_v46 = vpop.f32.mrb[66].mxu0 }
 0x17d   : > { %v6184_v3 = vpack.c.bf16 %v3512_v57, %v3512_v57  ;;  %4739 = vst.msk [vmem:[%s7380_s15 + $0xec] sm:$0xf] %vm4679_vm2, %v6050_v60  ;;  %4875 = vst.msk [vmem:[%s7380_s15 + $0x30c] sm:$0xf] %vm4679_vm2, %v6186_v61  ;;  %v3109_v8 = vadd.f32 %v7715_v32, %v2830_v62  ;;  %v3245_v9 = vadd.f32 %v7715_v32, %v2966_v63  ;;  %v6626_v47 = vpop.f32.mrb[66].mxu1  ;;  %v1933_v52 = vpop.f32.mrb[67].mxu0 }
 0x17e   : > { %v2831_v10 = vmul.f32 %v7726_v45, %v6486_v6  ;;  %v2967_v11 = vmul.f32 %v7726_v45, %v6622_v7  ;;  %4737 = vst.msk [vmem:[%s7380_s15 + $0xe4] sm:$0xf] %vm4679_vm2, %v6048_v2  ;;  %v3107_v14 = vadd.f32 %v7715_v32, %v2828_v4  ;;  %v3243_v15 = vadd.f32 %v7715_v32, %v2964_v5  ;;  %v2477_v53 = vpop.f32.mrb[67].mxu1 }
 0x17f   : > { %4873 = vst.msk [vmem:[%s7380_s15 + $0x304] sm:$0xf] %vm4679_vm2, %v6184_v3  ;;  %v2829_v16 = vmul.f32 %v7726_v45, %v1917_v12  ;;  %v2965_v17 = vmul.f32 %v7726_v45, %v2461_v13  ;;  %v3381_v18 = vmax.f32 %v3109_v8, 0.0  ;;  %v3517_v19 = vmax.f32 %v3245_v9, 0.0 }
 0x180   : > { %v3110_v20 = vadd.f32 %v7715_v32, %v2831_v10  ;;  %v3246_v21 = vadd.f32 %v7715_v32, %v2967_v11  ;;  %v3379_v22 = vmax.f32 %v3107_v14, 0.0  ;;  %v3515_v23 = vmax.f32 %v3243_v15, 0.0 }
 0x181   : > { %v3108_v24 = vadd.f32 %v7715_v32, %v2829_v16  ;;  %v3244_v25 = vadd.f32 %v7715_v32, %v2965_v17  ;;  %v6053_v26 = vpack.c.bf16 %v3381_v18, %v3381_v18  ;;  %v6189_v27 = vpack.c.bf16 %v3517_v19, %v3517_v19 }
 0x182   : > { %v3382_v28 = vmax.f32 %v3110_v20, 0.0  ;;  %v3518_v29 = vmax.f32 %v3246_v21, 0.0  ;;  %v6051_v30 = vpack.c.bf16 %v3379_v22, %v3379_v22  ;;  %v6187_v31 = vpack.c.bf16 %v3515_v23, %v3515_v23  ;;  %v6493_v12 = vpop.f32.mrb[68].mxu0 }
 0x183   : > { %v3380_v33 = vmax.f32 %v3108_v24, 0.0  ;;  %v3516_v34 = vmax.f32 %v3244_v25, 0.0  ;;  %4742 = vst.msk [vmem:[%s7380_s15 + $0xf8] sm:$0xf] %vm4679_vm2, %v6053_v26  ;;  %4878 = vst.msk [vmem:[%s7380_s15 + $0x318] sm:$0xf] %vm4679_vm2, %v6189_v27  ;;  %v2834_v38 = vmul.f32 %v7726_v45, %v6489_v54  ;;  %v2970_v56 = vmul.f32 %v7726_v45, %v6625_v35 }
 0x184   : > { %v6054_v36 = vpack.c.bf16 %v3382_v28, %v3382_v28  ;;  %v6190_v37 = vpack.c.bf16 %v3518_v29, %v3518_v29  ;;  %4740 = vst.msk [vmem:[%s7380_s15 + $0xf0] sm:$0xf] %vm4679_vm2, %v6051_v30  ;;  %4876 = vst.msk [vmem:[%s7380_s15 + $0x310] sm:$0xf] %vm4679_vm2, %v6187_v31  ;;  %v2832_v43 = vmul.f32 %v7726_v45, %v1930_v39  ;;  %v6629_v13 = vpop.f32.mrb[68].mxu1  ;;  %v1946_v18 = vpop.f32.mrb[69].mxu0 }
 0x185   : > { %v6052_v41 = vpack.c.bf16 %v3380_v33, %v3380_v33  ;;  %v6188_v42 = vpack.c.bf16 %v3516_v34, %v3516_v34  ;;  %v2968_v44 = vmul.f32 %v7726_v45, %v2474_v40  ;;  %v3113_v48 = vadd.f32 %v7715_v32, %v2834_v38  ;;  %v2490_v19 = vpop.f32.mrb[69].mxu1  ;;  %v6494_v24 = vpop.f32.mrb[70].mxu0 }
 0x186   : > { %4743 = vst.msk [vmem:[%s7380_s15 + $0xfc] sm:$0xf] %vm4679_vm2, %v6054_v36  ;;  %4879 = vst.msk [vmem:[%s7380_s15 + $0x31c] sm:$0xf] %vm4679_vm2, %v6190_v37  ;;  %v3249_v49 = vadd.f32 %v7715_v32, %v2970_v56  ;;  %v2835_v50 = vmul.f32 %v7726_v45, %v6490_v46  ;;  %v2971_v51 = vmul.f32 %v7726_v45, %v6626_v47  ;;  %v6630_v25 = vpop.f32.mrb[70].mxu1  ;;  %v1949_v30 = vpop.f32.mrb[71].mxu0 }
 0x187   : > { %4741 = vst.msk [vmem:[%s7380_s15 + $0xf4] sm:$0xf] %vm4679_vm2, %v6052_v41  ;;  %4877 = vst.msk [vmem:[%s7380_s15 + $0x314] sm:$0xf] %vm4679_vm2, %v6188_v42  ;;  %v3111_v55 = vadd.f32 %v7715_v32, %v2832_v43  ;;  %v3247_v57 = vadd.f32 %v7715_v32, %v2968_v44  ;;  %v2833_v58 = vmul.f32 %v7726_v45, %v1933_v52  ;;  %v3385_v60 = vmax.f32 %v3113_v48, 0.0  ;;  %v2493_v31 = vpop.f32.mrb[71].mxu1 }
 0x188   : > { %v2969_v59 = vmul.f32 %v7726_v45, %v2477_v53  ;;  %v3521_v61 = vmax.f32 %v3249_v49, 0.0  ;;  %v3114_v62 = vadd.f32 %v7715_v32, %v2835_v50  ;;  %v3250_v63 = vadd.f32 %v7715_v32, %v2971_v51 }
 0x189   : > { %v3383_v0 = vmax.f32 %v3111_v55, 0.0  ;;  %v3519_v1 = vmax.f32 %v3247_v57, 0.0  ;;  %v3112_v2 = vadd.f32 %v7715_v32, %v2833_v58  ;;  %v6057_v4 = vpack.c.bf16 %v3385_v60, %v3385_v60 }
 0x18a   : > { %v3248_v3 = vadd.f32 %v7715_v32, %v2969_v59  ;;  %v6193_v5 = vpack.c.bf16 %v3521_v61, %v3521_v61  ;;  %v3386_v6 = vmax.f32 %v3114_v62, 0.0  ;;  %v3522_v7 = vmax.f32 %v3250_v63, 0.0  ;;  %v6497_v52 = vpop.f32.mrb[72].mxu0 }
 0x18b   : > { %v6055_v8 = vpack.c.bf16 %v3383_v0, %v3383_v0  ;;  %v6191_v9 = vpack.c.bf16 %v3519_v1, %v3519_v1  ;;  %v3384_v10 = vmax.f32 %v3112_v2, 0.0  ;;  %4746 = vst.msk [vmem:[%s7380_s15 + $0x108] sm:$0xf] %vm4679_vm2, %v6057_v4  ;;  %v2838_v16 = vmul.f32 %v7726_v45, %v6493_v12  ;;  %v6633_v53 = vpop.f32.mrb[72].mxu1  ;;  %v1962_v60 = vpop.f32.mrb[73].mxu0 }
 0x18c   : > { %v3520_v11 = vmax.f32 %v3248_v3, 0.0  ;;  %4882 = vst.msk [vmem:[%s7380_s15 + $0x328] sm:$0xf] %vm4679_vm2, %v6193_v5  ;;  %v6058_v14 = vpack.c.bf16 %v3386_v6, %v3386_v6  ;;  %v6194_v15 = vpack.c.bf16 %v3522_v7, %v3522_v7  ;;  %v2974_v17 = vmul.f32 %v7726_v45, %v6629_v13  ;;  %v2506_v61 = vpop.f32.mrb[73].mxu1  ;;  %v6498_v2 = vpop.f32.mrb[74].mxu0 }
 0x18d   : > { %4744 = vst.msk [vmem:[%s7380_s15 + $0x100] sm:$0xf] %vm4679_vm2, %v6055_v8  ;;  %4880 = vst.msk [vmem:[%s7380_s15 + $0x320] sm:$0xf] %vm4679_vm2, %v6191_v9  ;;  %v6056_v20 = vpack.c.bf16 %v3384_v10, %v3384_v10  ;;  %v2836_v22 = vmul.f32 %v7726_v45, %v1946_v18  ;;  %v2972_v23 = vmul.f32 %v7726_v45, %v2490_v19  ;;  %v6634_v3 = vpop.f32.mrb[74].mxu1  ;;  %v1965_v8 = vpop.f32.mrb[75].mxu0 }
 0x18e   : > { %v6192_v21 = vpack.c.bf16 %v3520_v11, %v3520_v11  ;;  %4747 = vst.msk [vmem:[%s7380_s15 + $0x10c] sm:$0xf] %vm4679_vm2, %v6058_v14  ;;  %4883 = vst.msk [vmem:[%s7380_s15 + $0x32c] sm:$0xf] %vm4679_vm2, %v6194_v15  ;;  %v3117_v26 = vadd.f32 %v7715_v32, %v2838_v16  ;;  %v3253_v27 = vadd.f32 %v7715_v32, %v2974_v17  ;;  %v2509_v9 = vpop.f32.mrb[75].mxu1 }
 0x18f   : > { %v2839_v28 = vmul.f32 %v7726_v45, %v6494_v24  ;;  %v2975_v29 = vmul.f32 %v7726_v45, %v6630_v25  ;;  %4745 = vst.msk [vmem:[%s7380_s15 + $0x104] sm:$0xf] %vm4679_vm2, %v6056_v20  ;;  %v3115_v33 = vadd.f32 %v7715_v32, %v2836_v22  ;;  %v3251_v34 = vadd.f32 %v7715_v32, %v2972_v23 }
 0x190   : > { %4881 = vst.msk [vmem:[%s7380_s15 + $0x324] sm:$0xf] %vm4679_vm2, %v6192_v21  ;;  %v2837_v54 = vmul.f32 %v7726_v45, %v1949_v30  ;;  %v2973_v35 = vmul.f32 %v7726_v45, %v2493_v31  ;;  %v3389_v36 = vmax.f32 %v3117_v26, 0.0  ;;  %v3525_v37 = vmax.f32 %v3253_v27, 0.0 }
 0x191   : > { %v3118_v38 = vadd.f32 %v7715_v32, %v2839_v28  ;;  %v3254_v56 = vadd.f32 %v7715_v32, %v2975_v29  ;;  %v3387_v39 = vmax.f32 %v3115_v33, 0.0  ;;  %v3523_v40 = vmax.f32 %v3251_v34, 0.0 }
 0x192   : > { %v3116_v41 = vadd.f32 %v7715_v32, %v2837_v54  ;;  %v3252_v42 = vadd.f32 %v7715_v32, %v2973_v35  ;;  %v6061_v43 = vpack.c.bf16 %v3389_v36, %v3389_v36  ;;  %v6197_v44 = vpack.c.bf16 %v3525_v37, %v3525_v37  ;;  %v6501_v30 = vpop.f32.mrb[76].mxu0 }
 0x193   : > { %v3390_v46 = vmax.f32 %v3118_v38, 0.0  ;;  %v3526_v47 = vmax.f32 %v3254_v56, 0.0  ;;  %v6059_v48 = vpack.c.bf16 %v3387_v39, %v3387_v39  ;;  %v6195_v49 = vpack.c.bf16 %v3523_v40, %v3523_v40  ;;  %v6637_v31 = vpop.f32.mrb[76].mxu1  ;;  %v1978_v36 = vpop.f32.mrb[77].mxu0 }
 0x194   : > { %v3388_v50 = vmax.f32 %v3116_v41, 0.0  ;;  %v3524_v51 = vmax.f32 %v3252_v42, 0.0  ;;  %4750 = vst.msk [vmem:[%s7380_s15 + $0x118] sm:$0xf] %vm4679_vm2, %v6061_v43  ;;  %4886 = vst.msk [vmem:[%s7380_s15 + $0x338] sm:$0xf] %vm4679_vm2, %v6197_v44  ;;  %v2842_v58 = vmul.f32 %v7726_v45, %v6497_v52  ;;  %v2978_v59 = vmul.f32 %v7726_v45, %v6633_v53 }
 0x195   : > { %v6062_v55 = vpack.c.bf16 %v3390_v46, %v3390_v46  ;;  %v6198_v57 = vpack.c.bf16 %v3526_v47, %v3526_v47  ;;  %4748 = vst.msk [vmem:[%s7380_s15 + $0x110] sm:$0xf] %vm4679_vm2, %v6059_v48  ;;  %4884 = vst.msk [vmem:[%s7380_s15 + $0x330] sm:$0xf] %vm4679_vm2, %v6195_v49  ;;  %v2840_v0 = vmul.f32 %v7726_v45, %v1962_v60  ;;  %v2522_v37 = vpop.f32.mrb[77].mxu1  ;;  %v6502_v41 = vpop.f32.mrb[78].mxu0 }
 0x196   : > { %v6060_v62 = vpack.c.bf16 %v3388_v50, %v3388_v50  ;;  %v6196_v63 = vpack.c.bf16 %v3524_v51, %v3524_v51  ;;  %v2976_v1 = vmul.f32 %v7726_v45, %v2506_v61  ;;  %v3121_v4 = vadd.f32 %v7715_v32, %v2842_v58  ;;  %v6638_v42 = vpop.f32.mrb[78].mxu1  ;;  %v1981_v48 = vpop.f32.mrb[79].mxu0 }
 0x197   : > { %4751 = vst.msk [vmem:[%s7380_s15 + $0x11c] sm:$0xf] %vm4679_vm2, %v6062_v55  ;;  %4887 = vst.msk [vmem:[%s7380_s15 + $0x33c] sm:$0xf] %vm4679_vm2, %v6198_v57  ;;  %v3257_v5 = vadd.f32 %v7715_v32, %v2978_v59  ;;  %v2843_v6 = vmul.f32 %v7726_v45, %v6498_v2  ;;  %v2979_v7 = vmul.f32 %v7726_v45, %v6634_v3  ;;  %v2525_v49 = vpop.f32.mrb[79].mxu1 }
 0x198   : > { %4749 = vst.msk [vmem:[%s7380_s15 + $0x114] sm:$0xf] %vm4679_vm2, %v6060_v62  ;;  %4885 = vst.msk [vmem:[%s7380_s15 + $0x334] sm:$0xf] %vm4679_vm2, %v6196_v63  ;;  %v3119_v10 = vadd.f32 %v7715_v32, %v2840_v0  ;;  %v3255_v11 = vadd.f32 %v7715_v32, %v2976_v1  ;;  %v2841_v12 = vmul.f32 %v7726_v45, %v1965_v8  ;;  %v3393_v14 = vmax.f32 %v3121_v4, 0.0 }
 0x199   : > { %v2977_v13 = vmul.f32 %v7726_v45, %v2509_v9  ;;  %v3529_v15 = vmax.f32 %v3257_v5, 0.0  ;;  %v3122_v16 = vadd.f32 %v7715_v32, %v2843_v6  ;;  %v3258_v17 = vadd.f32 %v7715_v32, %v2979_v7 }
 0x19a   : > { %v3391_v18 = vmax.f32 %v3119_v10, 0.0  ;;  %v3527_v19 = vmax.f32 %v3255_v11, 0.0  ;;  %v3120_v20 = vadd.f32 %v7715_v32, %v2841_v12  ;;  %v6065_v22 = vpack.c.bf16 %v3393_v14, %v3393_v14  ;;  %v6505_v8 = vpop.f32.mrb[80].mxu0 }
 0x19b   : > { %v3256_v21 = vadd.f32 %v7715_v32, %v2977_v13  ;;  %v6201_v23 = vpack.c.bf16 %v3529_v15, %v3529_v15  ;;  %v3394_v24 = vmax.f32 %v3122_v16, 0.0  ;;  %v3530_v25 = vmax.f32 %v3258_v17, 0.0  ;;  %v6641_v9 = vpop.f32.mrb[80].mxu1  ;;  %v1994_v14 = vpop.f32.mrb[81].mxu0 }
 0x19c   : > { %v6063_v26 = vpack.c.bf16 %v3391_v18, %v3391_v18  ;;  %v6199_v27 = vpack.c.bf16 %v3527_v19, %v3527_v19  ;;  %v3392_v28 = vmax.f32 %v3120_v20, 0.0  ;;  %4754 = vst.msk [vmem:[%s7380_s15 + $0x128] sm:$0xf] %vm4679_vm2, %v6065_v22  ;;  %v2846_v54 = vmul.f32 %v7726_v45, %v6501_v30  ;;  %v2538_v15 = vpop.f32.mrb[81].mxu1  ;;  %v6506_v20 = vpop.f32.mrb[82].mxu0 }
 0x19d   : > { %v3528_v29 = vmax.f32 %v3256_v21, 0.0  ;;  %4890 = vst.msk [vmem:[%s7380_s15 + $0x348] sm:$0xf] %vm4679_vm2, %v6201_v23  ;;  %v6066_v33 = vpack.c.bf16 %v3394_v24, %v3394_v24  ;;  %v6202_v34 = vpack.c.bf16 %v3530_v25, %v3530_v25  ;;  %v2982_v35 = vmul.f32 %v7726_v45, %v6637_v31  ;;  %v6642_v21 = vpop.f32.mrb[82].mxu1 }
 0x19e   : > { %4752 = vst.msk [vmem:[%s7380_s15 + $0x120] sm:$0xf] %vm4679_vm2, %v6063_v26  ;;  %4888 = vst.msk [vmem:[%s7380_s15 + $0x340] sm:$0xf] %vm4679_vm2, %v6199_v27  ;;  %v6064_v38 = vpack.c.bf16 %v3392_v28, %v3392_v28  ;;  %v2844_v39 = vmul.f32 %v7726_v45, %v1978_v36  ;;  %v2980_v40 = vmul.f32 %v7726_v45, %v2522_v37  ;;  %v1997_v26 = vpop.f32.mrb[83].mxu0  ;;  %v2541_v27 = vpop.f32.mrb[83].mxu1 }
 0x19f   : > { %v6200_v56 = vpack.c.bf16 %v3528_v29, %v3528_v29  ;;  %4755 = vst.msk [vmem:[%s7380_s15 + $0x12c] sm:$0xf] %vm4679_vm2, %v6066_v33  ;;  %4891 = vst.msk [vmem:[%s7380_s15 + $0x34c] sm:$0xf] %vm4679_vm2, %v6202_v34  ;;  %v3125_v43 = vadd.f32 %v7715_v32, %v2846_v54  ;;  %v3261_v44 = vadd.f32 %v7715_v32, %v2982_v35  ;;  %v8071_v28 = vld [vmem:[%s8730_s3] ss:$0 sm:$0xff] }
 0x1a0   : > { %v2847_v46 = vmul.f32 %v7726_v45, %v6502_v41  ;;  %v2983_v47 = vmul.f32 %v7726_v45, %v6638_v42  ;;  %4753 = vst.msk [vmem:[%s7380_s15 + $0x124] sm:$0xf] %vm4679_vm2, %v6064_v38  ;;  %v3123_v50 = vadd.f32 %v7715_v32, %v2844_v39  ;;  %v3259_v51 = vadd.f32 %v7715_v32, %v2980_v40 }
 0x1a1   : > { %4889 = vst.msk [vmem:[%s7380_s15 + $0x344] sm:$0xf] %vm4679_vm2, %v6200_v56  ;;  %v2845_v52 = vmul.f32 %v7726_v45, %v1981_v48  ;;  %v2981_v53 = vmul.f32 %v7726_v45, %v2525_v49  ;;  %v3397_v55 = vmax.f32 %v3125_v43, 0.0  ;;  %v3533_v57 = vmax.f32 %v3261_v44, 0.0 }
 0x1a2   : > { %v3126_v58 = vadd.f32 %v7715_v32, %v2847_v46  ;;  %v3262_v59 = vadd.f32 %v7715_v32, %v2983_v47  ;;  %v3395_v60 = vmax.f32 %v3123_v50, 0.0  ;;  %v3531_v61 = vmax.f32 %v3259_v51, 0.0  ;;  %v6509_v47 = vpop.f32.mrb[84].mxu0  ;;  %v8088_v51 = vld [vmem:[%s8729_s2] ss:$0 sm:$0xff] }
 0x1a3   : > { %v3124_v62 = vadd.f32 %v7715_v32, %v2845_v52  ;;  %v3260_v63 = vadd.f32 %v7715_v32, %v2981_v53  ;;  %v6069_v0 = vpack.c.bf16 %v3397_v55, %v3397_v55  ;;  %v6205_v1 = vpack.c.bf16 %v3533_v57, %v3533_v57  ;;  %v6645_v48 = vpop.f32.mrb[84].mxu1  ;;  %v2010_v55 = vpop.f32.mrb[85].mxu0 }
 0x1a4   : > { %v3398_v2 = vmax.f32 %v3126_v58, 0.0  ;;  %v3534_v3 = vmax.f32 %v3262_v59, 0.0  ;;  %v6067_v4 = vpack.c.bf16 %v3395_v60, %v3395_v60  ;;  %v6203_v5 = vpack.c.bf16 %v3531_v61, %v3531_v61  ;;  %v2554_v57 = vpop.f32.mrb[85].mxu1 }
 0x1a5   : > { %v3396_v6 = vmax.f32 %v3124_v62, 0.0  ;;  %v3532_v7 = vmax.f32 %v3260_v63, 0.0  ;;  %4758 = vst.msk [vmem:[%s7380_s15 + $0x138] sm:$0xf] %vm4679_vm2, %v6069_v0  ;;  %4894 = vst.msk [vmem:[%s7380_s15 + $0x358] sm:$0xf] %vm4679_vm2, %v6205_v1  ;;  %v2850_v12 = vmul.f32 %v7726_v45, %v6505_v8  ;;  %v2986_v13 = vmul.f32 %v7726_v45, %v6641_v9 }
 0x1a6   : > { %v6070_v10 = vpack.c.bf16 %v3398_v2, %v3398_v2  ;;  %v6206_v11 = vpack.c.bf16 %v3534_v3, %v3534_v3  ;;  %4756 = vst.msk [vmem:[%s7380_s15 + $0x130] sm:$0xf] %vm4679_vm2, %v6067_v4  ;;  %4892 = vst.msk [vmem:[%s7380_s15 + $0x350] sm:$0xf] %vm4679_vm2, %v6203_v5  ;;  %v2848_v18 = vmul.f32 %v7726_v45, %v1994_v14  ;;  %v6510_v62 = vpop.f32.mrb[86].mxu0  ;;  %v6646_v63 = vpop.f32.mrb[86].mxu1 }
 0x1a7   : > { %v6068_v16 = vpack.c.bf16 %v3396_v6, %v3396_v6  ;;  %v6204_v17 = vpack.c.bf16 %v3532_v7, %v3532_v7  ;;  %v2984_v19 = vmul.f32 %v7726_v45, %v2538_v15  ;;  %v3129_v22 = vadd.f32 %v7715_v32, %v2850_v12  ;;  %v2013_v4 = vpop.f32.mrb[87].mxu0  ;;  %v2557_v5 = vpop.f32.mrb[87].mxu1 }
 0x1a8   : > { %4759 = vst.msk [vmem:[%s7380_s15 + $0x13c] sm:$0xf] %vm4679_vm2, %v6070_v10  ;;  %4895 = vst.msk [vmem:[%s7380_s15 + $0x35c] sm:$0xf] %vm4679_vm2, %v6206_v11  ;;  %v3265_v23 = vadd.f32 %v7715_v32, %v2986_v13  ;;  %v2851_v24 = vmul.f32 %v7726_v45, %v6506_v20  ;;  %v2987_v25 = vmul.f32 %v7726_v45, %v6642_v21 }
 0x1a9   : > { %4757 = vst.msk [vmem:[%s7380_s15 + $0x134] sm:$0xf] %vm4679_vm2, %v6068_v16  ;;  %4893 = vst.msk [vmem:[%s7380_s15 + $0x354] sm:$0xf] %vm4679_vm2, %v6204_v17  ;;  %v3127_v29 = vadd.f32 %v8071_v28, %v2848_v18  ;;  %v3263_v30 = vadd.f32 %v8071_v28, %v2984_v19  ;;  %v2849_v32 = vmul.f32 %v7726_v45, %v1997_v26  ;;  %v3401_v33 = vmax.f32 %v3129_v22, 0.0 }
 0x1aa   : > { %v2985_v31 = vmul.f32 %v7726_v45, %v2541_v27  ;;  %v3537_v34 = vmax.f32 %v3265_v23, 0.0  ;;  %v3130_v54 = vadd.f32 %v8071_v28, %v2851_v24  ;;  %v3266_v35 = vadd.f32 %v8071_v28, %v2987_v25  ;;  %v6513_v26 = vpop.f32.mrb[88].mxu0 }
 0x1ab   : > { %v3399_v36 = vmax.f32 %v3127_v29, 0.0  ;;  %v3535_v37 = vmax.f32 %v3263_v30, 0.0  ;;  %v3128_v38 = vadd.f32 %v8071_v28, %v2849_v32  ;;  %v6073_v39 = vpack.c.bf16 %v3401_v33, %v3401_v33  ;;  %v6649_v27 = vpop.f32.mrb[88].mxu1  ;;  %v2026_v33 = vpop.f32.mrb[89].mxu0 }
 0x1ac   : > { %v3264_v56 = vadd.f32 %v8071_v28, %v2985_v31  ;;  %v6209_v40 = vpack.c.bf16 %v3537_v34, %v3537_v34  ;;  %v3402_v41 = vmax.f32 %v3130_v54, 0.0  ;;  %v3538_v42 = vmax.f32 %v3266_v35, 0.0  ;;  %v2570_v34 = vpop.f32.mrb[89].mxu1 }
 0x1ad   : > { %v6071_v45 = vpack.c.bf16 %v3399_v36, %v3399_v36  ;;  %v6207_v43 = vpack.c.bf16 %v3535_v37, %v3535_v37  ;;  %v3400_v44 = vmax.f32 %v3128_v38, 0.0  ;;  %4762 = vst.msk [vmem:[%s7380_s15 + $0x148] sm:$0xf] %vm4679_vm2, %v6073_v39  ;;  %v2854_v52 = vmul.f32 %v8088_v51, %v6509_v47  ;;  %v6514_v38 = vpop.f32.mrb[90].mxu0 }
 0x1ae   : > { %v3536_v46 = vmax.f32 %v3264_v56, 0.0  ;;  %4898 = vst.msk [vmem:[%s7380_s15 + $0x368] sm:$0xf] %vm4679_vm2, %v6209_v40  ;;  %v6074_v49 = vpack.c.bf16 %v3402_v41, %v3402_v41  ;;  %v6210_v50 = vpack.c.bf16 %v3538_v42, %v3538_v42  ;;  %v2990_v53 = vmul.f32 %v8088_v51, %v6645_v48  ;;  %v6650_v56 = vpop.f32.mrb[90].mxu1 }
 0x1af   : > { %4760 = vst.msk [vmem:[%s7380_s15 + $0x140] sm:$0xf] %vm4679_vm2, %v6071_v45  ;;  %4896 = vst.msk [vmem:[%s7380_s15 + $0x360] sm:$0xf] %vm4679_vm2, %v6207_v43  ;;  %v6072_v58 = vpack.c.bf16 %v3400_v44, %v3400_v44  ;;  %v2852_v60 = vmul.f32 %v8088_v51, %v2010_v55  ;;  %v2988_v61 = vmul.f32 %v8088_v51, %v2554_v57  ;;  %v2029_v45 = vpop.f32.mrb[91].mxu0  ;;  %v2573_v43 = vpop.f32.mrb[91].mxu1 }
 0x1b0   : > { %v6208_v59 = vpack.c.bf16 %v3536_v46, %v3536_v46  ;;  %4763 = vst.msk [vmem:[%s7380_s15 + $0x14c] sm:$0xf] %vm4679_vm2, %v6074_v49  ;;  %4899 = vst.msk [vmem:[%s7380_s15 + $0x36c] sm:$0xf] %vm4679_vm2, %v6210_v50  ;;  %v3133_v0 = vadd.f32 %v8071_v28, %v2854_v52  ;;  %v3269_v1 = vadd.f32 %v8071_v28, %v2990_v53 }
 0x1b1   : > { %v2855_v2 = vmul.f32 %v8088_v51, %v6510_v62  ;;  %v2991_v3 = vmul.f32 %v8088_v51, %v6646_v63  ;;  %4761 = vst.msk [vmem:[%s7380_s15 + $0x144] sm:$0xf] %vm4679_vm2, %v6072_v58  ;;  %v3131_v6 = vadd.f32 %v8071_v28, %v2852_v60  ;;  %v3267_v7 = vadd.f32 %v8071_v28, %v2988_v61 }
 0x1b2   : > { %4897 = vst.msk [vmem:[%s7380_s15 + $0x364] sm:$0xf] %vm4679_vm2, %v6208_v59  ;;  %v2853_v8 = vmul.f32 %v8088_v51, %v2013_v4  ;;  %v2989_v9 = vmul.f32 %v8088_v51, %v2557_v5  ;;  %v3405_v10 = vmax.f32 %v3133_v0, 0.0  ;;  %v3541_v11 = vmax.f32 %v3269_v1, 0.0  ;;  %v6517_v4 = vpop.f32.mrb[92].mxu0 }
 0x1b3   : > { %v3134_v12 = vadd.f32 %v8071_v28, %v2855_v2  ;;  %v3270_v13 = vadd.f32 %v8071_v28, %v2991_v3  ;;  %v3403_v14 = vmax.f32 %v3131_v6, 0.0  ;;  %v3539_v15 = vmax.f32 %v3267_v7, 0.0  ;;  %v6653_v5 = vpop.f32.mrb[92].mxu1 }
 0x1b4   : > { %v3132_v16 = vadd.f32 %v8071_v28, %v2853_v8  ;;  %v3268_v17 = vadd.f32 %v8071_v28, %v2989_v9  ;;  %v6077_v18 = vpack.c.bf16 %v3405_v10, %v3405_v10  ;;  %v6213_v19 = vpack.c.bf16 %v3541_v11, %v3541_v11  ;;  %v2042_v10 = vpop.f32.mrb[93].mxu0  ;;  %v2586_v11 = vpop.f32.mrb[93].mxu1 }
 0x1b5   : > { %v3406_v20 = vmax.f32 %v3134_v12, 0.0  ;;  %v3542_v21 = vmax.f32 %v3270_v13, 0.0  ;;  %v6075_v22 = vpack.c.bf16 %v3403_v14, %v3403_v14  ;;  %v6211_v23 = vpack.c.bf16 %v3539_v15, %v3539_v15 }
 0x1b6   : > { %v3404_v24 = vmax.f32 %v3132_v16, 0.0  ;;  %v3540_v25 = vmax.f32 %v3268_v17, 0.0  ;;  %4766 = vst.msk [vmem:[%s7380_s15 + $0x158] sm:$0xf] %vm4679_vm2, %v6077_v18  ;;  %4902 = vst.msk [vmem:[%s7380_s15 + $0x378] sm:$0xf] %vm4679_vm2, %v6213_v19  ;;  %v2858_v32 = vmul.f32 %v8088_v51, %v6513_v26  ;;  %v2994_v31 = vmul.f32 %v8088_v51, %v6649_v27 }
 0x1b7   : > { %v6078_v29 = vpack.c.bf16 %v3406_v20, %v3406_v20  ;;  %v6214_v30 = vpack.c.bf16 %v3542_v21, %v3542_v21  ;;  %4764 = vst.msk [vmem:[%s7380_s15 + $0x150] sm:$0xf] %vm4679_vm2, %v6075_v22  ;;  %4900 = vst.msk [vmem:[%s7380_s15 + $0x370] sm:$0xf] %vm4679_vm2, %v6211_v23  ;;  %v2856_v36 = vmul.f32 %v8088_v51, %v2026_v33  ;;  %v6518_v16 = vpop.f32.mrb[94].mxu0  ;;  %v6654_v17 = vpop.f32.mrb[94].mxu1 }
 0x1b8   : > { %v6076_v54 = vpack.c.bf16 %v3404_v24, %v3404_v24  ;;  %v6212_v35 = vpack.c.bf16 %v3540_v25, %v3540_v25  ;;  %v2992_v37 = vmul.f32 %v8088_v51, %v2570_v34  ;;  %v3137_v39 = vadd.f32 %v8071_v28, %v2858_v32  ;;  %v2045_v22 = vpop.f32.mrb[95].mxu0  ;;  %v2589_v23 = vpop.f32.mrb[95].mxu1 }
 0x1b9   : > { %4767 = vst.msk [vmem:[%s7380_s15 + $0x15c] sm:$0xf] %vm4679_vm2, %v6078_v29  ;;  %4903 = vst.msk [vmem:[%s7380_s15 + $0x37c] sm:$0xf] %vm4679_vm2, %v6214_v30  ;;  %v3273_v40 = vadd.f32 %v8071_v28, %v2994_v31  ;;  %v2859_v41 = vmul.f32 %v8088_v51, %v6514_v38  ;;  %v2995_v42 = vmul.f32 %v8088_v51, %v6650_v56 }
 0x1ba   : > { %4765 = vst.msk [vmem:[%s7380_s15 + $0x154] sm:$0xf] %vm4679_vm2, %v6076_v54  ;;  %4901 = vst.msk [vmem:[%s7380_s15 + $0x374] sm:$0xf] %vm4679_vm2, %v6212_v35  ;;  %v3135_v44 = vadd.f32 %v8071_v28, %v2856_v36  ;;  %v3271_v46 = vadd.f32 %v8071_v28, %v2992_v37  ;;  %v2857_v47 = vmul.f32 %v8088_v51, %v2029_v45  ;;  %v3409_v49 = vmax.f32 %v3137_v39, 0.0  ;;  %v6521_v45 = vpop.f32.mrb[96].mxu0 }
 0x1bb   : > { %v2993_v48 = vmul.f32 %v8088_v51, %v2573_v43  ;;  %v3545_v50 = vmax.f32 %v3273_v40, 0.0  ;;  %v3138_v52 = vadd.f32 %v8071_v28, %v2859_v41  ;;  %v3274_v53 = vadd.f32 %v8071_v28, %v2995_v42  ;;  %v6657_v43 = vpop.f32.mrb[96].mxu1 }
 0x1bc   : > { %v3407_v55 = vmax.f32 %v3135_v44, 0.0  ;;  %v3543_v57 = vmax.f32 %v3271_v46, 0.0  ;;  %v3136_v58 = vadd.f32 %v8071_v28, %v2857_v47  ;;  %v6081_v60 = vpack.c.bf16 %v3409_v49, %v3409_v49  ;;  %v2058_v49 = vpop.f32.mrb[97].mxu0 }
 0x1bd   : > { %v3272_v59 = vadd.f32 %v8071_v28, %v2993_v48  ;;  %v6217_v61 = vpack.c.bf16 %v3545_v50, %v3545_v50  ;;  %v3410_v62 = vmax.f32 %v3138_v52, 0.0  ;;  %v3546_v63 = vmax.f32 %v3274_v53, 0.0  ;;  %v2602_v50 = vpop.f32.mrb[97].mxu1 }
 0x1be   : > { %v6079_v0 = vpack.c.bf16 %v3407_v55, %v3407_v55  ;;  %v6215_v1 = vpack.c.bf16 %v3543_v57, %v3543_v57  ;;  %v3408_v2 = vmax.f32 %v3136_v58, 0.0  ;;  %4770 = vst.msk [vmem:[%s7380_s15 + $0x168] sm:$0xf] %vm4679_vm2, %v6081_v60  ;;  %v2862_v8 = vmul.f32 %v8088_v51, %v6517_v4  ;;  %v6522_v58 = vpop.f32.mrb[98].mxu0 }
 0x1bf   : > { %v3544_v3 = vmax.f32 %v3272_v59, 0.0  ;;  %4906 = vst.msk [vmem:[%s7380_s15 + $0x388] sm:$0xf] %vm4679_vm2, %v6217_v61  ;;  %v6082_v6 = vpack.c.bf16 %v3410_v62, %v3410_v62  ;;  %v6218_v7 = vpack.c.bf16 %v3546_v63, %v3546_v63  ;;  %v2998_v9 = vmul.f32 %v8088_v51, %v6653_v5  ;;  %v6658_v59 = vpop.f32.mrb[98].mxu1 }
 0x1c0   : > { %4768 = vst.msk [vmem:[%s7380_s15 + $0x160] sm:$0xf] %vm4679_vm2, %v6079_v0  ;;  %4904 = vst.msk [vmem:[%s7380_s15 + $0x380] sm:$0xf] %vm4679_vm2, %v6215_v1  ;;  %v6080_v12 = vpack.c.bf16 %v3408_v2, %v3408_v2  ;;  %v2860_v14 = vmul.f32 %v8088_v51, %v2042_v10  ;;  %v2996_v15 = vmul.f32 %v8088_v51, %v2586_v11  ;;  %v2061_v0 = vpop.f32.mrb[99].mxu0  ;;  %v2605_v1 = vpop.f32.mrb[99].mxu1 }
 0x1c1   : > { %v6216_v13 = vpack.c.bf16 %v3544_v3, %v3544_v3  ;;  %4771 = vst.msk [vmem:[%s7380_s15 + $0x16c] sm:$0xf] %vm4679_vm2, %v6082_v6  ;;  %4907 = vst.msk [vmem:[%s7380_s15 + $0x38c] sm:$0xf] %vm4679_vm2, %v6218_v7  ;;  %v3141_v18 = vadd.f32 %v8071_v28, %v2862_v8  ;;  %v3277_v19 = vadd.f32 %v8071_v28, %v2998_v9 }
 0x1c2   : > { %v2863_v20 = vmul.f32 %v8088_v51, %v6518_v16  ;;  %v2999_v21 = vmul.f32 %v8088_v51, %v6654_v17  ;;  %4769 = vst.msk [vmem:[%s7380_s15 + $0x164] sm:$0xf] %vm4679_vm2, %v6080_v12  ;;  %v3139_v24 = vadd.f32 %v8071_v28, %v2860_v14  ;;  %v3275_v25 = vadd.f32 %v8071_v28, %v2996_v15 }
 0x1c3   : > { %4905 = vst.msk [vmem:[%s7380_s15 + $0x384] sm:$0xf] %vm4679_vm2, %v6216_v13  ;;  %v2861_v26 = vmul.f32 %v8088_v51, %v2045_v22  ;;  %v2997_v27 = vmul.f32 %v8088_v51, %v2589_v23  ;;  %v3413_v29 = vmax.f32 %v3141_v18, 0.0  ;;  %v3549_v30 = vmax.f32 %v3277_v19, 0.0  ;;  %v6525_v22 = vpop.f32.mrb[100].mxu0  ;;  %v6661_v23 = vpop.f32.mrb[100].mxu1 }
 0x1c4   : > { %v3142_v32 = vadd.f32 %v8071_v28, %v2863_v20  ;;  %v3278_v31 = vadd.f32 %v8071_v28, %v2999_v21  ;;  %v3411_v33 = vmax.f32 %v3139_v24, 0.0  ;;  %v3547_v34 = vmax.f32 %v3275_v25, 0.0 }
 0x1c5   : > { %v3140_v54 = vadd.f32 %v8071_v28, %v2861_v26  ;;  %v3276_v35 = vadd.f32 %v8071_v28, %v2997_v27  ;;  %v6085_v36 = vpack.c.bf16 %v3413_v29, %v3413_v29  ;;  %v6221_v37 = vpack.c.bf16 %v3549_v30, %v3549_v30  ;;  %v2074_v29 = vpop.f32.mrb[101].mxu0  ;;  %v2618_v30 = vpop.f32.mrb[101].mxu1 }
 0x1c6   : > { %v3414_v38 = vmax.f32 %v3142_v32, 0.0  ;;  %v3550_v56 = vmax.f32 %v3278_v31, 0.0  ;;  %v6083_v39 = vpack.c.bf16 %v3411_v33, %v3411_v33  ;;  %v6219_v40 = vpack.c.bf16 %v3547_v34, %v3547_v34 }
 0x1c7   : > { %v3412_v41 = vmax.f32 %v3140_v54, 0.0  ;;  %v3548_v42 = vmax.f32 %v3276_v35, 0.0  ;;  %4774 = vst.msk [vmem:[%s7380_s15 + $0x178] sm:$0xf] %vm4679_vm2, %v6085_v36  ;;  %4910 = vst.msk [vmem:[%s7380_s15 + $0x398] sm:$0xf] %vm4679_vm2, %v6221_v37  ;;  %v2866_v47 = vmul.f32 %v8088_v51, %v6521_v45  ;;  %v3002_v48 = vmul.f32 %v8088_v51, %v6657_v43 }
 0x1c8   : > { %v6086_v44 = vpack.c.bf16 %v3414_v38, %v3414_v38  ;;  %v6222_v46 = vpack.c.bf16 %v3550_v56, %v3550_v56  ;;  %4772 = vst.msk [vmem:[%s7380_s15 + $0x170] sm:$0xf] %vm4679_vm2, %v6083_v39  ;;  %4908 = vst.msk [vmem:[%s7380_s15 + $0x390] sm:$0xf] %vm4679_vm2, %v6219_v40  ;;  %v2864_v55 = vmul.f32 %v8088_v51, %v2058_v49  ;;  %v6526_v54 = vpop.f32.mrb[102].mxu0  ;;  %v6662_v35 = vpop.f32.mrb[102].mxu1 }
 0x1c9   : > { %v6084_v52 = vpack.c.bf16 %v3412_v41, %v3412_v41  ;;  %v6220_v53 = vpack.c.bf16 %v3548_v42, %v3548_v42  ;;  %v3000_v57 = vmul.f32 %v8088_v51, %v2602_v50  ;;  %v3145_v60 = vadd.f32 %v8071_v28, %v2866_v47  ;;  %v2077_v39 = vpop.f32.mrb[103].mxu0  ;;  %v2621_v40 = vpop.f32.mrb[103].mxu1 }
 0x1ca   : > { %4775 = vst.msk [vmem:[%s7380_s15 + $0x17c] sm:$0xf] %vm4679_vm2, %v6086_v44  ;;  %4911 = vst.msk [vmem:[%s7380_s15 + $0x39c] sm:$0xf] %vm4679_vm2, %v6222_v46  ;;  %v3281_v61 = vadd.f32 %v8071_v28, %v3002_v48  ;;  %v2867_v62 = vmul.f32 %v8088_v51, %v6522_v58  ;;  %v3003_v63 = vmul.f32 %v8088_v51, %v6658_v59 }
 0x1cb   : > { %4773 = vst.msk [vmem:[%s7380_s15 + $0x174] sm:$0xf] %vm4679_vm2, %v6084_v52  ;;  %4909 = vst.msk [vmem:[%s7380_s15 + $0x394] sm:$0xf] %vm4679_vm2, %v6220_v53  ;;  %v3143_v2 = vadd.f32 %v8071_v28, %v2864_v55  ;;  %v3279_v3 = vadd.f32 %v8071_v28, %v3000_v57  ;;  %v2865_v4 = vmul.f32 %v8088_v51, %v2061_v0  ;;  %v3417_v6 = vmax.f32 %v3145_v60, 0.0  ;;  %v6529_v0 = vpop.f32.mrb[104].mxu0 }
 0x1cc   : > { %v3001_v5 = vmul.f32 %v8088_v51, %v2605_v1  ;;  %v3553_v7 = vmax.f32 %v3281_v61, 0.0  ;;  %v3146_v8 = vadd.f32 %v8071_v28, %v2867_v62  ;;  %v3282_v9 = vadd.f32 %v8071_v28, %v3003_v63  ;;  %v6665_v1 = vpop.f32.mrb[104].mxu1 }
 0x1cd   : > { %v3415_v10 = vmax.f32 %v3143_v2, 0.0  ;;  %v3551_v11 = vmax.f32 %v3279_v3, 0.0  ;;  %v3144_v12 = vadd.f32 %v8071_v28, %v2865_v4  ;;  %v6089_v14 = vpack.c.bf16 %v3417_v6, %v3417_v6  ;;  %v2090_v6 = vpop.f32.mrb[105].mxu0 }
 0x1ce   : > { %v3280_v13 = vadd.f32 %v8071_v28, %v3001_v5  ;;  %v6225_v15 = vpack.c.bf16 %v3553_v7, %v3553_v7  ;;  %v3418_v16 = vmax.f32 %v3146_v8, 0.0  ;;  %v3554_v17 = vmax.f32 %v3282_v9, 0.0  ;;  %v2634_v7 = vpop.f32.mrb[105].mxu1 }
 0x1cf   : > { %v6087_v18 = vpack.c.bf16 %v3415_v10, %v3415_v10  ;;  %v6223_v19 = vpack.c.bf16 %v3551_v11, %v3551_v11  ;;  %v3416_v20 = vmax.f32 %v3144_v12, 0.0  ;;  %4778 = vst.msk [vmem:[%s7380_s15 + $0x188] sm:$0xf] %vm4679_vm2, %v6089_v14  ;;  %v2870_v26 = vmul.f32 %v8088_v51, %v6525_v22  ;;  %v6530_v12 = vpop.f32.mrb[106].mxu0 }
 0x1d0   : > { %v3552_v21 = vmax.f32 %v3280_v13, 0.0  ;;  %4914 = vst.msk [vmem:[%s7380_s15 + $0x3a8] sm:$0xf] %vm4679_vm2, %v6225_v15  ;;  %v6090_v24 = vpack.c.bf16 %v3418_v16, %v3418_v16  ;;  %v6226_v25 = vpack.c.bf16 %v3554_v17, %v3554_v17  ;;  %v3006_v27 = vmul.f32 %v8088_v51, %v6661_v23  ;;  %v6666_v13 = vpop.f32.mrb[106].mxu1 }
 0x1d1   : > { %4776 = vst.msk [vmem:[%s7380_s15 + $0x180] sm:$0xf] %vm4679_vm2, %v6087_v18  ;;  %4912 = vst.msk [vmem:[%s7380_s15 + $0x3a0] sm:$0xf] %vm4679_vm2, %v6223_v19  ;;  %v6088_v32 = vpack.c.bf16 %v3416_v20, %v3416_v20  ;;  %v2868_v33 = vmul.f32 %v8088_v51, %v2074_v29  ;;  %v3004_v34 = vmul.f32 %v8088_v51, %v2618_v30  ;;  %v2093_v18 = vpop.f32.mrb[107].mxu0  ;;  %v2637_v19 = vpop.f32.mrb[107].mxu1 }
 0x1d2   : > { %v6224_v31 = vpack.c.bf16 %v3552_v21, %v3552_v21  ;;  %4779 = vst.msk [vmem:[%s7380_s15 + $0x18c] sm:$0xf] %vm4679_vm2, %v6090_v24  ;;  %4915 = vst.msk [vmem:[%s7380_s15 + $0x3ac] sm:$0xf] %vm4679_vm2, %v6226_v25  ;;  %v3149_v36 = vadd.f32 %v8071_v28, %v2870_v26  ;;  %v3285_v37 = vadd.f32 %v8071_v28, %v3006_v27 }
 0x1d3   : > { %v2871_v38 = vmul.f32 %v8088_v51, %v6526_v54  ;;  %v3007_v56 = vmul.f32 %v8088_v51, %v6662_v35  ;;  %4777 = vst.msk [vmem:[%s7380_s15 + $0x184] sm:$0xf] %vm4679_vm2, %v6088_v32  ;;  %v3147_v41 = vadd.f32 %v8071_v28, %v2868_v33  ;;  %v3283_v42 = vadd.f32 %v8071_v28, %v3004_v34 }
 0x1d4   : > { %4913 = vst.msk [vmem:[%s7380_s15 + $0x3a4] sm:$0xf] %vm4679_vm2, %v6224_v31  ;;  %v2869_v45 = vmul.f32 %v8088_v51, %v2077_v39  ;;  %v3005_v43 = vmul.f32 %v8088_v51, %v2621_v40  ;;  %v3421_v44 = vmax.f32 %v3149_v36, 0.0  ;;  %v3557_v46 = vmax.f32 %v3285_v37, 0.0  ;;  %v6533_v39 = vpop.f32.mrb[108].mxu0  ;;  %v6669_v40 = vpop.f32.mrb[108].mxu1 }
 0x1d5   : > { %v3150_v47 = vadd.f32 %v8071_v28, %v2871_v38  ;;  %v3286_v48 = vadd.f32 %v8071_v28, %v3007_v56  ;;  %v3419_v49 = vmax.f32 %v3147_v41, 0.0  ;;  %v3555_v50 = vmax.f32 %v3283_v42, 0.0 }
 0x1d6   : > { %v3148_v52 = vadd.f32 %v8071_v28, %v2869_v45  ;;  %v3284_v53 = vadd.f32 %v8071_v28, %v3005_v43  ;;  %v6093_v55 = vpack.c.bf16 %v3421_v44, %v3421_v44  ;;  %v6229_v57 = vpack.c.bf16 %v3557_v46, %v3557_v46  ;;  %v2106_v44 = vpop.f32.mrb[109].mxu0  ;;  %v2650_v46 = vpop.f32.mrb[109].mxu1 }
 0x1d7   : > { %v3422_v58 = vmax.f32 %v3150_v47, 0.0  ;;  %v3558_v59 = vmax.f32 %v3286_v48, 0.0  ;;  %v6091_v60 = vpack.c.bf16 %v3419_v49, %v3419_v49  ;;  %v6227_v61 = vpack.c.bf16 %v3555_v50, %v3555_v50 }
 0x1d8   : > { %v3420_v62 = vmax.f32 %v3148_v52, 0.0  ;;  %v3556_v63 = vmax.f32 %v3284_v53, 0.0  ;;  %4782 = vst.msk [vmem:[%s7380_s15 + $0x198] sm:$0xf] %vm4679_vm2, %v6093_v55  ;;  %4918 = vst.msk [vmem:[%s7380_s15 + $0x3b8] sm:$0xf] %vm4679_vm2, %v6229_v57  ;;  %v2874_v4 = vmul.f32 %v8088_v51, %v6529_v0  ;;  %v3010_v5 = vmul.f32 %v8088_v51, %v6665_v1 }
 0x1d9   : > { %v6094_v2 = vpack.c.bf16 %v3422_v58, %v3422_v58  ;;  %v6230_v3 = vpack.c.bf16 %v3558_v59, %v3558_v59  ;;  %4780 = vst.msk [vmem:[%s7380_s15 + $0x190] sm:$0xf] %vm4679_vm2, %v6091_v60  ;;  %4916 = vst.msk [vmem:[%s7380_s15 + $0x3b0] sm:$0xf] %vm4679_vm2, %v6227_v61  ;;  %v2872_v10 = vmul.f32 %v8088_v51, %v2090_v6  ;;  %v6534_v52 = vpop.f32.mrb[110].mxu0  ;;  %v6670_v53 = vpop.f32.mrb[110].mxu1 }
 0x1da   : > { %v6092_v8 = vpack.c.bf16 %v3420_v62, %v3420_v62  ;;  %v6228_v9 = vpack.c.bf16 %v3556_v63, %v3556_v63  ;;  %v3008_v11 = vmul.f32 %v8088_v51, %v2634_v7  ;;  %v3153_v14 = vadd.f32 %v8071_v28, %v2874_v4  ;;  %v2109_v60 = vpop.f32.mrb[111].mxu0  ;;  %v2653_v61 = vpop.f32.mrb[111].mxu1 }
 0x1db   : > { %4783 = vst.msk [vmem:[%s7380_s15 + $0x19c] sm:$0xf] %vm4679_vm2, %v6094_v2  ;;  %4919 = vst.msk [vmem:[%s7380_s15 + $0x3bc] sm:$0xf] %vm4679_vm2, %v6230_v3  ;;  %v3289_v15 = vadd.f32 %v8071_v28, %v3010_v5  ;;  %v2875_v16 = vmul.f32 %v8088_v51, %v6530_v12  ;;  %v3011_v17 = vmul.f32 %v8088_v51, %v6666_v13 }
 0x1dc   : > { %4781 = vst.msk [vmem:[%s7380_s15 + $0x194] sm:$0xf] %vm4679_vm2, %v6092_v8  ;;  %4917 = vst.msk [vmem:[%s7380_s15 + $0x3b4] sm:$0xf] %vm4679_vm2, %v6228_v9  ;;  %v3151_v20 = vadd.f32 %v8071_v28, %v2872_v10  ;;  %v3287_v21 = vadd.f32 %v8071_v28, %v3008_v11  ;;  %v2873_v22 = vmul.f32 %v8088_v51, %v2093_v18  ;;  %v3425_v24 = vmax.f32 %v3153_v14, 0.0  ;;  %v6537_v18 = vpop.f32.mrb[112].mxu0 }
 0x1dd   : > { %v3009_v23 = vmul.f32 %v8088_v51, %v2637_v19  ;;  %v3561_v25 = vmax.f32 %v3289_v15, 0.0  ;;  %v3154_v26 = vadd.f32 %v8071_v28, %v2875_v16  ;;  %v3290_v27 = vadd.f32 %v8071_v28, %v3011_v17  ;;  %v6673_v19 = vpop.f32.mrb[112].mxu1 }
 0x1de   : > { %v3423_v29 = vmax.f32 %v3151_v20, 0.0  ;;  %v3559_v30 = vmax.f32 %v3287_v21, 0.0  ;;  %v3152_v32 = vadd.f32 %v8071_v28, %v2873_v22  ;;  %v6097_v33 = vpack.c.bf16 %v3425_v24, %v3425_v24  ;;  %v2122_v24 = vpop.f32.mrb[113].mxu0 }
 0x1df   : > { %v3288_v31 = vadd.f32 %v8071_v28, %v3009_v23  ;;  %v6233_v34 = vpack.c.bf16 %v3561_v25, %v3561_v25  ;;  %v3426_v54 = vmax.f32 %v3154_v26, 0.0  ;;  %v3562_v35 = vmax.f32 %v3290_v27, 0.0  ;;  %v2666_v25 = vpop.f32.mrb[113].mxu1 }
 0x1e0   : > { %v6095_v36 = vpack.c.bf16 %v3423_v29, %v3423_v29  ;;  %v6231_v37 = vpack.c.bf16 %v3559_v30, %v3559_v30  ;;  %v3424_v38 = vmax.f32 %v3152_v32, 0.0  ;;  %4786 = vst.msk [vmem:[%s7380_s15 + $0x1a8] sm:$0xf] %vm4679_vm2, %v6097_v33  ;;  %v2878_v45 = vmul.f32 %v8088_v51, %v6533_v39  ;;  %v6538_v32 = vpop.f32.mrb[114].mxu0 }
 0x1e1   : > { %v3560_v56 = vmax.f32 %v3288_v31, 0.0  ;;  %4922 = vst.msk [vmem:[%s7380_s15 + $0x3c8] sm:$0xf] %vm4679_vm2, %v6233_v34  ;;  %v6098_v41 = vpack.c.bf16 %v3426_v54, %v3426_v54  ;;  %v6234_v42 = vpack.c.bf16 %v3562_v35, %v3562_v35  ;;  %v3014_v43 = vmul.f32 %v8088_v51, %v6669_v40  ;;  %v6674_v31 = vpop.f32.mrb[114].mxu1 }
 0x1e2   : > { %4784 = vst.msk [vmem:[%s7380_s15 + $0x1a0] sm:$0xf] %vm4679_vm2, %v6095_v36  ;;  %4920 = vst.msk [vmem:[%s7380_s15 + $0x3c0] sm:$0xf] %vm4679_vm2, %v6231_v37  ;;  %v6096_v47 = vpack.c.bf16 %v3424_v38, %v3424_v38  ;;  %v2876_v49 = vmul.f32 %v8088_v51, %v2106_v44  ;;  %v3012_v50 = vmul.f32 %v8088_v51, %v2650_v46  ;;  %v2125_v36 = vpop.f32.mrb[115].mxu0  ;;  %v2669_v37 = vpop.f32.mrb[115].mxu1 }
 0x1e3   : > { %v6232_v48 = vpack.c.bf16 %v3560_v56, %v3560_v56  ;;  %4787 = vst.msk [vmem:[%s7380_s15 + $0x1ac] sm:$0xf] %vm4679_vm2, %v6098_v41  ;;  %4923 = vst.msk [vmem:[%s7380_s15 + $0x3cc] sm:$0xf] %vm4679_vm2, %v6234_v42  ;;  %v3157_v55 = vadd.f32 %v8071_v28, %v2878_v45  ;;  %v3293_v57 = vadd.f32 %v8071_v28, %v3014_v43 }
 0x1e4   : > { %v2879_v58 = vmul.f32 %v8088_v51, %v6534_v52  ;;  %v3015_v59 = vmul.f32 %v8088_v51, %v6670_v53  ;;  %4785 = vst.msk [vmem:[%s7380_s15 + $0x1a4] sm:$0xf] %vm4679_vm2, %v6096_v47  ;;  %v3155_v62 = vadd.f32 %v8071_v28, %v2876_v49  ;;  %v3291_v63 = vadd.f32 %v8071_v28, %v3012_v50 }
 0x1e5   : > { %4921 = vst.msk [vmem:[%s7380_s15 + $0x3c4] sm:$0xf] %vm4679_vm2, %v6232_v48  ;;  %v2877_v0 = vmul.f32 %v8088_v51, %v2109_v60  ;;  %v3013_v1 = vmul.f32 %v8088_v51, %v2653_v61  ;;  %v3429_v2 = vmax.f32 %v3157_v55, 0.0  ;;  %v3565_v3 = vmax.f32 %v3293_v57, 0.0  ;;  %v6541_v60 = vpop.f32.mrb[116].mxu0  ;;  %v6677_v61 = vpop.f32.mrb[116].mxu1 }
 0x1e6   : > { %v3158_v4 = vadd.f32 %v8071_v28, %v2879_v58  ;;  %v3294_v5 = vadd.f32 %v8071_v28, %v3015_v59  ;;  %v3427_v6 = vmax.f32 %v3155_v62, 0.0  ;;  %v3563_v7 = vmax.f32 %v3291_v63, 0.0 }
 0x1e7   : > { %v3156_v8 = vadd.f32 %v8071_v28, %v2877_v0  ;;  %v3292_v9 = vadd.f32 %v8071_v28, %v3013_v1  ;;  %v6101_v10 = vpack.c.bf16 %v3429_v2, %v3429_v2  ;;  %v6237_v11 = vpack.c.bf16 %v3565_v3, %v3565_v3  ;;  %v2138_v2 = vpop.f32.mrb[117].mxu0  ;;  %v2682_v3 = vpop.f32.mrb[117].mxu1 }
 0x1e8   : > { %v3430_v12 = vmax.f32 %v3158_v4, 0.0  ;;  %v3566_v13 = vmax.f32 %v3294_v5, 0.0  ;;  %v6099_v14 = vpack.c.bf16 %v3427_v6, %v3427_v6  ;;  %v6235_v15 = vpack.c.bf16 %v3563_v7, %v3563_v7 }
 0x1e9   : > { %v3428_v16 = vmax.f32 %v3156_v8, 0.0  ;;  %v3564_v17 = vmax.f32 %v3292_v9, 0.0  ;;  %4790 = vst.msk [vmem:[%s7380_s15 + $0x1b8] sm:$0xf] %vm4679_vm2, %v6101_v10  ;;  %4926 = vst.msk [vmem:[%s7380_s15 + $0x3d8] sm:$0xf] %vm4679_vm2, %v6237_v11  ;;  %v2882_v22 = vmul.f32 %v8088_v51, %v6537_v18  ;;  %v3018_v23 = vmul.f32 %v8088_v51, %v6673_v19 }
 0x1ea   : > { %v6102_v20 = vpack.c.bf16 %v3430_v12, %v3430_v12  ;;  %v6238_v21 = vpack.c.bf16 %v3566_v13, %v3566_v13  ;;  %4788 = vst.msk [vmem:[%s7380_s15 + $0x1b0] sm:$0xf] %vm4679_vm2, %v6099_v14  ;;  %4924 = vst.msk [vmem:[%s7380_s15 + $0x3d0] sm:$0xf] %vm4679_vm2, %v6235_v15  ;;  %v2880_v29 = vmul.f32 %v8088_v51, %v2122_v24  ;;  %v6542_v8 = vpop.f32.mrb[118].mxu0  ;;  %v6678_v9 = vpop.f32.mrb[118].mxu1 }
 0x1eb   : > { %v6100_v26 = vpack.c.bf16 %v3428_v16, %v3428_v16  ;;  %v6236_v27 = vpack.c.bf16 %v3564_v17, %v3564_v17  ;;  %v3016_v30 = vmul.f32 %v8088_v51, %v2666_v25  ;;  %v3161_v33 = vadd.f32 %v8071_v28, %v2882_v22  ;;  %v2141_v14 = vpop.f32.mrb[119].mxu0  ;;  %v2685_v15 = vpop.f32.mrb[119].mxu1 }
 0x1ec   : > { %4791 = vst.msk [vmem:[%s7380_s15 + $0x1bc] sm:$0xf] %vm4679_vm2, %v6102_v20  ;;  %4927 = vst.msk [vmem:[%s7380_s15 + $0x3dc] sm:$0xf] %vm4679_vm2, %v6238_v21  ;;  %v3297_v34 = vadd.f32 %v8071_v28, %v3018_v23  ;;  %v2883_v54 = vmul.f32 %v8088_v51, %v6538_v32  ;;  %v3019_v35 = vmul.f32 %v8088_v51, %v6674_v31 }
 0x1ed   : > { %4789 = vst.msk [vmem:[%s7380_s15 + $0x1b4] sm:$0xf] %vm4679_vm2, %v6100_v26  ;;  %4925 = vst.msk [vmem:[%s7380_s15 + $0x3d4] sm:$0xf] %vm4679_vm2, %v6236_v27  ;;  %v3159_v38 = vadd.f32 %v8071_v28, %v2880_v29  ;;  %v3295_v56 = vadd.f32 %v8071_v28, %v3016_v30  ;;  %v2881_v39 = vmul.f32 %v8088_v51, %v2125_v36  ;;  %v3433_v41 = vmax.f32 %v3161_v33, 0.0  ;;  %v6545_v36 = vpop.f32.mrb[120].mxu0 }
 0x1ee   : > { %v3017_v40 = vmul.f32 %v8088_v51, %v2669_v37  ;;  %v3569_v42 = vmax.f32 %v3297_v34, 0.0  ;;  %v3162_v45 = vadd.f32 %v8071_v28, %v2883_v54  ;;  %v3298_v43 = vadd.f32 %v8071_v28, %v3019_v35  ;;  %v6681_v37 = vpop.f32.mrb[120].mxu1 }
 0x1ef   : > { %v3431_v44 = vmax.f32 %v3159_v38, 0.0  ;;  %v3567_v46 = vmax.f32 %v3295_v56, 0.0  ;;  %v3160_v47 = vadd.f32 %v8071_v28, %v2881_v39  ;;  %v6105_v49 = vpack.c.bf16 %v3433_v41, %v3433_v41  ;;  %v2154_v41 = vpop.f32.mrb[121].mxu0 }
 0x1f0   : > { %v3296_v48 = vadd.f32 %v8071_v28, %v3017_v40  ;;  %v6241_v50 = vpack.c.bf16 %v3569_v42, %v3569_v42  ;;  %v3434_v52 = vmax.f32 %v3162_v45, 0.0  ;;  %v3570_v53 = vmax.f32 %v3298_v43, 0.0  ;;  %v2698_v42 = vpop.f32.mrb[121].mxu1 }
 0x1f1   : > { %v6103_v55 = vpack.c.bf16 %v3431_v44, %v3431_v44  ;;  %v6239_v57 = vpack.c.bf16 %v3567_v46, %v3567_v46  ;;  %v3432_v58 = vmax.f32 %v3160_v47, 0.0  ;;  %4794 = vst.msk [vmem:[%s7380_s15 + $0x1c8] sm:$0xf] %vm4679_vm2, %v6105_v49  ;;  %v2886_v0 = vmul.f32 %v8088_v51, %v6541_v60  ;;  %v6546_v47 = vpop.f32.mrb[122].mxu0 }
 0x1f2   : > { %v3568_v59 = vmax.f32 %v3296_v48, 0.0  ;;  %4930 = vst.msk [vmem:[%s7380_s15 + $0x3e8] sm:$0xf] %vm4679_vm2, %v6241_v50  ;;  %v6106_v62 = vpack.c.bf16 %v3434_v52, %v3434_v52  ;;  %v6242_v63 = vpack.c.bf16 %v3570_v53, %v3570_v53  ;;  %v3022_v1 = vmul.f32 %v8088_v51, %v6677_v61  ;;  %v6682_v48 = vpop.f32.mrb[122].mxu1 }
 0x1f3   : > { %4792 = vst.msk [vmem:[%s7380_s15 + $0x1c0] sm:$0xf] %vm4679_vm2, %v6103_v55  ;;  %4928 = vst.msk [vmem:[%s7380_s15 + $0x3e0] sm:$0xf] %vm4679_vm2, %v6239_v57  ;;  %v6104_v4 = vpack.c.bf16 %v3432_v58, %v3432_v58  ;;  %v2884_v6 = vmul.f32 %v8088_v51, %v2138_v2  ;;  %v3020_v7 = vmul.f32 %v8088_v51, %v2682_v3  ;;  %v2157_v55 = vpop.f32.mrb[123].mxu0  ;;  %v2701_v57 = vpop.f32.mrb[123].mxu1 }
 0x1f4   : > { %v6240_v5 = vpack.c.bf16 %v3568_v59, %v3568_v59  ;;  %4795 = vst.msk [vmem:[%s7380_s15 + $0x1cc] sm:$0xf] %vm4679_vm2, %v6106_v62  ;;  %4931 = vst.msk [vmem:[%s7380_s15 + $0x3ec] sm:$0xf] %vm4679_vm2, %v6242_v63  ;;  %v3165_v10 = vadd.f32 %v8071_v28, %v2886_v0  ;;  %v3301_v11 = vadd.f32 %v8071_v28, %v3022_v1 }
 0x1f5   : > { %v2887_v12 = vmul.f32 %v8088_v51, %v6542_v8  ;;  %v3023_v13 = vmul.f32 %v8088_v51, %v6678_v9  ;;  %4793 = vst.msk [vmem:[%s7380_s15 + $0x1c4] sm:$0xf] %vm4679_vm2, %v6104_v4  ;;  %v3163_v16 = vadd.f32 %v8071_v28, %v2884_v6  ;;  %v3299_v17 = vadd.f32 %v8071_v28, %v3020_v7 }
 0x1f6   : > { %4929 = vst.msk [vmem:[%s7380_s15 + $0x3e4] sm:$0xf] %vm4679_vm2, %v6240_v5  ;;  %v2885_v18 = vmul.f32 %v8088_v51, %v2141_v14  ;;  %v3021_v19 = vmul.f32 %v8088_v51, %v2685_v15  ;;  %v3437_v20 = vmax.f32 %v3165_v10, 0.0  ;;  %v3573_v21 = vmax.f32 %v3301_v11, 0.0  ;;  %v6549_v14 = vpop.f32.mrb[124].mxu0  ;;  %v6685_v15 = vpop.f32.mrb[124].mxu1 }
 0x1f7   : > { %v3166_v22 = vadd.f32 %v8071_v28, %v2887_v12  ;;  %v3302_v23 = vadd.f32 %v8071_v28, %v3023_v13  ;;  %v3435_v24 = vmax.f32 %v3163_v16, 0.0  ;;  %v3571_v25 = vmax.f32 %v3299_v17, 0.0 }
 0x1f8   : > { %v3164_v26 = vadd.f32 %v8071_v28, %v2885_v18  ;;  %v3300_v27 = vadd.f32 %v8071_v28, %v3021_v19  ;;  %v6109_v29 = vpack.c.bf16 %v3437_v20, %v3437_v20  ;;  %v6245_v30 = vpack.c.bf16 %v3573_v21, %v3573_v21  ;;  %v2170_v19 = vpop.f32.mrb[125].mxu0  ;;  %v2714_v20 = vpop.f32.mrb[125].mxu1 }
 0x1f9   : > { %v3438_v32 = vmax.f32 %v3166_v22, 0.0  ;;  %v3574_v31 = vmax.f32 %v3302_v23, 0.0  ;;  %v6107_v33 = vpack.c.bf16 %v3435_v24, %v3435_v24  ;;  %v6243_v34 = vpack.c.bf16 %v3571_v25, %v3571_v25  ;;  %v6550_v25 = vpop.f32.mrb[126].mxu0 }
 0x1fa   : > { %v3436_v54 = vmax.f32 %v3164_v26, 0.0  ;;  %v3572_v35 = vmax.f32 %v3300_v27, 0.0  ;;  %4798 = vst.msk [vmem:[%s7380_s15 + $0x1d8] sm:$0xf] %vm4679_vm2, %v6109_v29  ;;  %4934 = vst.msk [vmem:[%s7380_s15 + $0x3f8] sm:$0xf] %vm4679_vm2, %v6245_v30  ;;  %v2890_v39 = vmul.f32 %v8088_v51, %v6545_v36  ;;  %v3026_v40 = vmul.f32 %v8088_v51, %v6681_v37 }
 0x1fb   : > { %v6110_v38 = vpack.c.bf16 %v3438_v32, %v3438_v32  ;;  %v6246_v56 = vpack.c.bf16 %v3574_v31, %v3574_v31  ;;  %4796 = vst.msk [vmem:[%s7380_s15 + $0x1d0] sm:$0xf] %vm4679_vm2, %v6107_v33  ;;  %4932 = vst.msk [vmem:[%s7380_s15 + $0x3f0] sm:$0xf] %vm4679_vm2, %v6243_v34  ;;  %v2888_v44 = vmul.f32 %v8088_v51, %v2154_v41  ;;  %v6686_v26 = vpop.f32.mrb[126].mxu1  ;;  %v2173_v33 = vpop.f32.mrb[127].mxu0 }
 0x1fc   : > { %v6108_v45 = vpack.c.bf16 %v3436_v54, %v3436_v54  ;;  %v6244_v43 = vpack.c.bf16 %v3572_v35, %v3572_v35  ;;  %v3024_v46 = vmul.f32 %v8088_v51, %v2698_v42  ;;  %v3169_v49 = vadd.f32 %v8071_v28, %v2890_v39  ;;  %v8425_v27 = vld [vmem:[%s8730_s3] ss:$0 sm:$0xff]  ;;  %v2717_v34 = vpop.f32.mrb[127].mxu1 }
 0x1fd   : > { %4799 = vst.msk [vmem:[%s7380_s15 + $0x1dc] sm:$0xf] %vm4679_vm2, %v6110_v38  ;;  %4935 = vst.msk [vmem:[%s7380_s15 + $0x3fc] sm:$0xf] %vm4679_vm2, %v6246_v56  ;;  %v3305_v50 = vadd.f32 %v8071_v28, %v3026_v40  ;;  %v2891_v52 = vmul.f32 %v8088_v51, %v6546_v47  ;;  %v3027_v53 = vmul.f32 %v8088_v51, %v6682_v48 }
 0x1fe   : > { %4797 = vst.msk [vmem:[%s7380_s15 + $0x1d4] sm:$0xf] %vm4679_vm2, %v6108_v45  ;;  %4933 = vst.msk [vmem:[%s7380_s15 + $0x3f4] sm:$0xf] %vm4679_vm2, %v6244_v43  ;;  %v3167_v58 = vadd.f32 %v8071_v28, %v2888_v44  ;;  %v3303_v59 = vadd.f32 %v8071_v28, %v3024_v46  ;;  %v2889_v60 = vmul.f32 %v8088_v51, %v2157_v55  ;;  %v3441_v62 = vmax.f32 %v3169_v49, 0.0  ;;  %v6689_v55 = vpop.f32.mrb[128].mxu1 }
 0x1ff   : > { %v3025_v61 = vmul.f32 %v8088_v51, %v2701_v57  ;;  %v3577_v63 = vmax.f32 %v3305_v50, 0.0  ;;  %v3170_v0 = vadd.f32 %v8071_v28, %v2891_v52  ;;  %v3306_v1 = vadd.f32 %v8071_v28, %v3027_v53  ;;  %v6553_v53 = vpop.f32.mrb[128].mxu0 }
 0x200   : > { %v3439_v2 = vmax.f32 %v3167_v58, 0.0  ;;  %v3575_v3 = vmax.f32 %v3303_v59, 0.0  ;;  %v3168_v4 = vadd.f32 %v8071_v28, %v2889_v60  ;;  %v6113_v6 = vpack.c.bf16 %v3441_v62, %v3441_v62  ;;  %v8450_v59 = vld [vmem:[%s8729_s2] ss:$0 sm:$0xff]  ;;  %v2186_v62 = vpop.f32.mrb[129].mxu0 }
 0x201   : > { %v3304_v5 = vadd.f32 %v8071_v28, %v3025_v61  ;;  %v6249_v7 = vpack.c.bf16 %v3577_v63, %v3577_v63  ;;  %v3442_v8 = vmax.f32 %v3170_v0, 0.0  ;;  %v3578_v9 = vmax.f32 %v3306_v1, 0.0  ;;  %v2730_v63 = vpop.f32.mrb[129].mxu1 }
 0x202   : > { %v6111_v10 = vpack.c.bf16 %v3439_v2, %v3439_v2  ;;  %v6247_v11 = vpack.c.bf16 %v3575_v3, %v3575_v3  ;;  %v3440_v12 = vmax.f32 %v3168_v4, 0.0  ;;  %4802 = vst.msk [vmem:[%s7380_s15 + $0x1e8] sm:$0xf] %vm4679_vm2, %v6113_v6  ;;  %v2894_v17 = vmul.f32 %v8088_v51, %v6549_v14  ;;  %v6554_v4 = vpop.f32.mrb[130].mxu0 }
 0x203   : > { %v3576_v13 = vmax.f32 %v3304_v5, 0.0  ;;  %4938 = vst.msk [vmem:[%s7380_s15 + $0x408] sm:$0xf] %vm4679_vm2, %v6249_v7  ;;  %v6114_v16 = vpack.c.bf16 %v3442_v8, %v3442_v8  ;;  %v6250_v28 = vpack.c.bf16 %v3578_v9, %v3578_v9  ;;  %v3030_v18 = vmul.f32 %v8088_v51, %v6685_v15  ;;  %v6690_v5 = vpop.f32.mrb[130].mxu1 }
 0x204   : > { %4800 = vst.msk [vmem:[%s7380_s15 + $0x1e0] sm:$0xf] %vm4679_vm2, %v6111_v10  ;;  %4936 = vst.msk [vmem:[%s7380_s15 + $0x400] sm:$0xf] %vm4679_vm2, %v6247_v11  ;;  %v6112_v21 = vpack.c.bf16 %v3440_v12, %v3440_v12  ;;  %v2892_v23 = vmul.f32 %v8088_v51, %v2170_v19  ;;  %v3028_v24 = vmul.f32 %v8088_v51, %v2714_v20  ;;  %v2189_v10 = vpop.f32.mrb[131].mxu0  ;;  %v2733_v11 = vpop.f32.mrb[131].mxu1 }
 0x205   : > { %v6248_v22 = vpack.c.bf16 %v3576_v13, %v3576_v13  ;;  %4803 = vst.msk [vmem:[%s7380_s15 + $0x1ec] sm:$0xf] %vm4679_vm2, %v6114_v16  ;;  %4939 = vst.msk [vmem:[%s7380_s15 + $0x40c] sm:$0xf] %vm4679_vm2, %v6250_v28  ;;  %v3173_v29 = vadd.f32 %v8425_v27, %v2894_v17  ;;  %v3309_v30 = vadd.f32 %v8425_v27, %v3030_v18 }
 0x206   : > { %v2895_v32 = vmul.f32 %v8088_v51, %v6550_v25  ;;  %v3031_v31 = vmul.f32 %v8088_v51, %v6686_v26  ;;  %4801 = vst.msk [vmem:[%s7380_s15 + $0x1e4] sm:$0xf] %vm4679_vm2, %v6112_v21  ;;  %v3171_v54 = vadd.f32 %v8425_v27, %v2892_v23  ;;  %v3307_v35 = vadd.f32 %v8425_v27, %v3028_v24 }
 0x207   : > { %4937 = vst.msk [vmem:[%s7380_s15 + $0x404] sm:$0xf] %vm4679_vm2, %v6248_v22  ;;  %v2893_v36 = vmul.f32 %v8088_v51, %v2173_v33  ;;  %v3029_v37 = vmul.f32 %v8088_v51, %v2717_v34  ;;  %v3445_v38 = vmax.f32 %v3173_v29, 0.0  ;;  %v3581_v56 = vmax.f32 %v3309_v30, 0.0  ;;  %v6557_v33 = vpop.f32.mrb[132].mxu0  ;;  %v6693_v34 = vpop.f32.mrb[132].mxu1 }
 0x208   : > { %v3174_v39 = vadd.f32 %v8425_v27, %v2895_v32  ;;  %v3310_v40 = vadd.f32 %v8425_v27, %v3031_v31  ;;  %v3443_v41 = vmax.f32 %v3171_v54, 0.0  ;;  %v3579_v42 = vmax.f32 %v3307_v35, 0.0 }
 0x209   : > { %v3172_v45 = vadd.f32 %v8425_v27, %v2893_v36  ;;  %v3308_v43 = vadd.f32 %v8425_v27, %v3029_v37  ;;  %v6117_v44 = vpack.c.bf16 %v3445_v38, %v3445_v38  ;;  %v6253_v46 = vpack.c.bf16 %v3581_v56, %v3581_v56  ;;  %v2202_v38 = vpop.f32.mrb[133].mxu0  ;;  %v2746_v56 = vpop.f32.mrb[133].mxu1 }
 0x20a   : > { %v3446_v47 = vmax.f32 %v3174_v39, 0.0  ;;  %v3582_v48 = vmax.f32 %v3310_v40, 0.0  ;;  %v6115_v51 = vpack.c.bf16 %v3443_v41, %v3443_v41  ;;  %v6251_v49 = vpack.c.bf16 %v3579_v42, %v3579_v42 }
 0x20b   : > { %v3444_v50 = vmax.f32 %v3172_v45, 0.0  ;;  %v3580_v52 = vmax.f32 %v3308_v43, 0.0  ;;  %4806 = vst.msk [vmem:[%s7380_s15 + $0x1f8] sm:$0xf] %vm4679_vm2, %v6117_v44  ;;  %4942 = vst.msk [vmem:[%s7380_s15 + $0x418] sm:$0xf] %vm4679_vm2, %v6253_v46  ;;  %v2898_v60 = vmul.f32 %v8450_v59, %v6553_v53  ;;  %v3034_v61 = vmul.f32 %v8450_v59, %v6689_v55 }
 0x20c   : > { %v6118_v57 = vpack.c.bf16 %v3446_v47, %v3446_v47  ;;  %v6254_v58 = vpack.c.bf16 %v3582_v48, %v3582_v48  ;;  %4804 = vst.msk [vmem:[%s7380_s15 + $0x1f0] sm:$0xf] %vm4679_vm2, %v6115_v51  ;;  %4940 = vst.msk [vmem:[%s7380_s15 + $0x410] sm:$0xf] %vm4679_vm2, %v6251_v49  ;;  %v2896_v2 = vmul.f32 %v8450_v59, %v2186_v62  ;;  %v6558_v45 = vpop.f32.mrb[134].mxu0  ;;  %v6694_v43 = vpop.f32.mrb[134].mxu1 }
 0x20d   : > { %v6116_v0 = vpack.c.bf16 %v3444_v50, %v3444_v50  ;;  %v6252_v1 = vpack.c.bf16 %v3580_v52, %v3580_v52  ;;  %v3032_v3 = vmul.f32 %v8450_v59, %v2730_v63  ;;  %v3177_v6 = vadd.f32 %v8425_v27, %v2898_v60  ;;  %v2205_v51 = vpop.f32.mrb[135].mxu0  ;;  %v2749_v49 = vpop.f32.mrb[135].mxu1 }
 0x20e   : > { %4807 = vst.msk [vmem:[%s7380_s15 + $0x1fc] sm:$0xf] %vm4679_vm2, %v6118_v57  ;;  %4943 = vst.msk [vmem:[%s7380_s15 + $0x41c] sm:$0xf] %vm4679_vm2, %v6254_v58  ;;  %v3313_v7 = vadd.f32 %v8425_v27, %v3034_v61  ;;  %v2899_v8 = vmul.f32 %v8450_v59, %v6554_v4  ;;  %v3035_v9 = vmul.f32 %v8450_v59, %v6690_v5 }
 0x20f   : > { %4805 = vst.msk [vmem:[%s7380_s15 + $0x1f4] sm:$0xf] %vm4679_vm2, %v6116_v0  ;;  %4941 = vst.msk [vmem:[%s7380_s15 + $0x414] sm:$0xf] %vm4679_vm2, %v6252_v1  ;;  %v3175_v12 = vadd.f32 %v8425_v27, %v2896_v2  ;;  %v3311_v13 = vadd.f32 %v8425_v27, %v3032_v3  ;;  %v2897_v14 = vmul.f32 %v8450_v59, %v2189_v10  ;;  %v3449_v16 = vmax.f32 %v3177_v6, 0.0 }
 0x210   : > { %v3033_v15 = vmul.f32 %v8450_v59, %v2733_v11  ;;  %v3585_v28 = vmax.f32 %v3313_v7, 0.0  ;;  %v3178_v17 = vadd.f32 %v8425_v27, %v2899_v8  ;;  %v3314_v18 = vadd.f32 %v8425_v27, %v3035_v9 }
 0x211   : > { %v3447_v19 = vmax.f32 %v3175_v12, 0.0  ;;  %v3583_v20 = vmax.f32 %v3311_v13, 0.0  ;;  %v3176_v21 = vadd.f32 %v8425_v27, %v2897_v14  ;;  %v6121_v23 = vpack.c.bf16 %v3449_v16, %v3449_v16 }
 0x212   : > { %v3312_v22 = vadd.f32 %v8425_v27, %v3033_v15  ;;  %v6257_v24 = vpack.c.bf16 %v3585_v28, %v3585_v28  ;;  %v3450_v25 = vmax.f32 %v3178_v17, 0.0  ;;  %v3586_v26 = vmax.f32 %v3314_v18, 0.0 }
 0x213   : > { %v6119_v29 = vpack.c.bf16 %v3447_v19, %v3447_v19  ;;  %v6255_v30 = vpack.c.bf16 %v3583_v20, %v3583_v20  ;;  %v3448_v32 = vmax.f32 %v3176_v21, 0.0  ;;  %4810 = vst.msk [vmem:[%s7380_s15 + $0x208] sm:$0xf] %vm4679_vm2, %v6121_v23  ;;  %v2902_v36 = vmul.f32 %v8450_v59, %v6557_v33 }
 0x214   : > { %v3584_v31 = vmax.f32 %v3312_v22, 0.0  ;;  %4946 = vst.msk [vmem:[%s7380_s15 + $0x428] sm:$0xf] %vm4679_vm2, %v6257_v24  ;;  %v6122_v54 = vpack.c.bf16 %v3450_v25, %v3450_v25  ;;  %v6258_v35 = vpack.c.bf16 %v3586_v26, %v3586_v26  ;;  %v3038_v37 = vmul.f32 %v8450_v59, %v6693_v34 }
 0x215   : > { %4808 = vst.msk [vmem:[%s7380_s15 + $0x200] sm:$0xf] %vm4679_vm2, %v6119_v29  ;;  %4944 = vst.msk [vmem:[%s7380_s15 + $0x420] sm:$0xf] %vm4679_vm2, %v6255_v30  ;;  %v6120_v39 = vpack.c.bf16 %v3448_v32, %v3448_v32  ;;  %v2900_v41 = vmul.f32 %v8450_v59, %v2202_v38  ;;  %v3036_v42 = vmul.f32 %v8450_v59, %v2746_v56 }
 0x216   : > { %v6256_v40 = vpack.c.bf16 %v3584_v31, %v3584_v31  ;;  %4811 = vst.msk [vmem:[%s7380_s15 + $0x20c] sm:$0xf] %vm4679_vm2, %v6122_v54  ;;  %4947 = vst.msk [vmem:[%s7380_s15 + $0x42c] sm:$0xf] %vm4679_vm2, %v6258_v35  ;;  %v3181_v44 = vadd.f32 %v8425_v27, %v2902_v36  ;;  %v3317_v46 = vadd.f32 %v8425_v27, %v3038_v37 }
 0x217   : > { %v2903_v47 = vmul.f32 %v8450_v59, %v6558_v45  ;;  %v3039_v48 = vmul.f32 %v8450_v59, %v6694_v43  ;;  %4809 = vst.msk [vmem:[%s7380_s15 + $0x204] sm:$0xf] %vm4679_vm2, %v6120_v39  ;;  %v3179_v50 = vadd.f32 %v8425_v27, %v2900_v41  ;;  %v3315_v52 = vadd.f32 %v8425_v27, %v3036_v42 }
 0x218   : > { %4945 = vst.msk [vmem:[%s7380_s15 + $0x424] sm:$0xf] %vm4679_vm2, %v6256_v40  ;;  %v2901_v53 = vmul.f32 %v8450_v59, %v2205_v51  ;;  %v3037_v55 = vmul.f32 %v8450_v59, %v2749_v49  ;;  %v3453_v57 = vmax.f32 %v3181_v44, 0.0  ;;  %v3589_v58 = vmax.f32 %v3317_v46, 0.0 }
 0x219   : > { %v3182_v60 = vadd.f32 %v8425_v27, %v2903_v47  ;;  %v3318_v61 = vadd.f32 %v8425_v27, %v3039_v48  ;;  %v3451_v62 = vmax.f32 %v3179_v50, 0.0  ;;  %v3587_v63 = vmax.f32 %v3315_v52, 0.0 }
 0x21a   : > { %v3180_v0 = vadd.f32 %v8425_v27, %v2901_v53  ;;  %v3316_v1 = vadd.f32 %v8425_v27, %v3037_v55  ;;  %v6125_v2 = vpack.c.bf16 %v3453_v57, %v3453_v57  ;;  %v6261_v3 = vpack.c.bf16 %v3589_v58, %v3589_v58  ;;  %4958 = sbr.rel (!%p7087_p4) target bundleno = 636 (0x27c), region = 40 }
 0x21b   : > { %v3454_v59 = vmax.f32 %v3182_v60, 0.0  ;;  %v3590_v4 = vmax.f32 %v3318_v61, 0.0  ;;  %v6123_v5 = vpack.c.bf16 %v3451_v62, %v3451_v62  ;;  %v6259_v6 = vpack.c.bf16 %v3587_v63, %v3587_v63 }
 0x21c   : > { %v3452_v7 = vmax.f32 %v3180_v0, 0.0  ;;  %v3588_v8 = vmax.f32 %v3316_v1, 0.0  ;;  %4814 = vst.msk [vmem:[%s7380_s15 + $0x218] sm:$0xf] %vm4679_vm2, %v6125_v2  ;;  %4950 = vst.msk [vmem:[%s7380_s15 + $0x438] sm:$0xf] %vm4679_vm2, %v6261_v3 }
 0x21d   : > { %v6126_v9 = vpack.c.bf16 %v3454_v59, %v3454_v59  ;;  %v6262_v10 = vpack.c.bf16 %v3590_v4, %v3590_v4  ;;  %4812 = vst.msk [vmem:[%s7380_s15 + $0x210] sm:$0xf] %vm4679_vm2, %v6123_v5  ;;  %4948 = vst.msk [vmem:[%s7380_s15 + $0x430] sm:$0xf] %vm4679_vm2, %v6259_v6 }
 0x21e   : > { %v6124_v27 = vpack.c.bf16 %v3452_v7, %v3452_v7  ;;  %v6260_v11 = vpack.c.bf16 %v3588_v8, %v3588_v8 }
 0x21f   : > { %4815 = vst.msk [vmem:[%s7380_s15 + $0x21c] sm:$0xf] %vm4679_vm2, %v6126_v9  ;;  %4951 = vst.msk [vmem:[%s7380_s15 + $0x43c] sm:$0xf] %vm4679_vm2, %v6262_v10 }
 0x220   : > { %4813 = vst.msk [vmem:[%s7380_s15 + $0x214] sm:$0xf] %vm4679_vm2, %v6124_v27  ;;  %4949 = vst.msk [vmem:[%s7380_s15 + $0x434] sm:$0xf] %vm4679_vm2, %v6260_v11 }
 0x221   : > { %s8740_s21 = smov (!%p4961_p8, %s4960_s21), 272 }
 0x222   : > { %s5976_s29 = sshll.u32 %s8740_s21, 6 }
 0x223   : > { %p5979_p9 = scmp.eq.s32.totalorder %s5976_s29, 0 }
 0x224   : > { %s8541_s30 = sshrl.u32 (!%p5979_p9), %s8740_s21, 6 }
 0x225   : > { %4969 = sbr.rel (%p5979_p9) target bundleno = 636 (0x27c), region = 44  ;;  %p5980_p10 = scmp.le.s32.totalorder (!%p5979_p9), %s8541_s30, 0 }
 0x22c   : > { %5374 = sbr.rel (%p5980_p10) target bundleno = 615 (0x267), region = 116  ;;  %s8733_s18 = smov (!%p5980_p10), %s8535_s27 }
 0x22d   : > { %s8734_s23 = smov (!%p5980_p10), %s7380_s15  ;;  %s8550_s28 = smov (!%p5980_p10), 0  }
 0x22e   : > { %s8552_s5 = smov (!%p5980_p10), 0  }
 0x233 LB: >> { %v4985_v12 = vld [vmem:[%s7011_s23] sm:$0xf]  ;;  %v4987_v13 = vld [vmem:[%s7011_s23 + $0x4] sm:$0xf]  ;;  %v4989_v14 = vld [vmem:[%s7011_s23 + $0x8] sm:$0xf]  ;;  %s7019_s5 = sphi %s8552_s5, %s4979_s5   ;;  %s7015_s28 = sphi %s8550_s28, %s8735_s28   ;;  %s7011_s23 = sphi %s8734_s23, %s5118_s23   ;;  %s7007_s18 = sphi %s8733_s18, %s5119_s18  }
 0x234   : >> { %4986 = vst [vmem:[%s7007_s18] sm:$0xf] %v4985_v12  ;;  %4988 = vst [vmem:[%s7007_s18 + $0x4] sm:$0xf] %v4987_v13  ;;  %v4991_v15 = vld [vmem:[%s7011_s23 + $0xc] sm:$0xf]  ;;  %s5113_s6 = sadd.s32 1, %s7015_s28 }
 0x235   : >> { %4990 = vst [vmem:[%s7007_s18 + $0x8] sm:$0xf] %v4989_v14  ;;  %v4993_v16 = vld [vmem:[%s7011_s23 + $0x10] sm:$0xf]  ;;  %v4995_v28 = vld [vmem:[%s7011_s23 + $0x14] sm:$0xf]  ;;  %p5114_p11 = scmp.ge.s32.totalorder %s5113_s6, %s8541_s30 }
 0x236   : >> { %4992 = vst [vmem:[%s7007_s18 + $0xc] sm:$0xf] %v4991_v15  ;;  %4994 = vst [vmem:[%s7007_s18 + $0x10] sm:$0xf] %v4993_v16  ;;  %v4997_v17 = vld [vmem:[%s7011_s23 + $0x18] sm:$0xf] }
 0x237   : >> { %4996 = vst [vmem:[%s7007_s18 + $0x14] sm:$0xf] %v4995_v28  ;;  %v4999_v18 = vld [vmem:[%s7011_s23 + $0x1c] sm:$0xf]  ;;  %v5001_v19 = vld [vmem:[%s7011_s23 + $0x20] sm:$0xf] }
 0x238   : >> { %4998 = vst [vmem:[%s7007_s18 + $0x18] sm:$0xf] %v4997_v17  ;;  %5000 = vst [vmem:[%s7007_s18 + $0x1c] sm:$0xf] %v4999_v18  ;;  %v5003_v20 = vld [vmem:[%s7011_s23 + $0x24] sm:$0xf] }
 0x239   : >> { %5002 = vst [vmem:[%s7007_s18 + $0x20] sm:$0xf] %v5001_v19  ;;  %v5005_v21 = vld [vmem:[%s7011_s23 + $0x28] sm:$0xf]  ;;  %v5007_v22 = vld [vmem:[%s7011_s23 + $0x2c] sm:$0xf] }
 0x23a   : >> { %5004 = vst [vmem:[%s7007_s18 + $0x24] sm:$0xf] %v5003_v20  ;;  %5006 = vst [vmem:[%s7007_s18 + $0x28] sm:$0xf] %v5005_v21  ;;  %v5009_v23 = vld [vmem:[%s7011_s23 + $0x30] sm:$0xf] }
 0x23b   : >> { %5008 = vst [vmem:[%s7007_s18 + $0x2c] sm:$0xf] %v5007_v22  ;;  %v5011_v24 = vld [vmem:[%s7011_s23 + $0x34] sm:$0xf]  ;;  %v5013_v25 = vld [vmem:[%s7011_s23 + $0x38] sm:$0xf] }
 0x23c   : >> { %5010 = vst [vmem:[%s7007_s18 + $0x30] sm:$0xf] %v5009_v23  ;;  %5012 = vst [vmem:[%s7007_s18 + $0x34] sm:$0xf] %v5011_v24  ;;  %v5015_v26 = vld [vmem:[%s7011_s23 + $0x3c] sm:$0xf] }
 0x23d   : >> { %5014 = vst [vmem:[%s7007_s18 + $0x38] sm:$0xf] %v5013_v25  ;;  %v5017_v29 = vld [vmem:[%s7011_s23 + $0x40] sm:$0xf]  ;;  %v5019_v30 = vld [vmem:[%s7011_s23 + $0x44] sm:$0xf] }
 0x23e   : >> { %5016 = vst [vmem:[%s7007_s18 + $0x3c] sm:$0xf] %v5015_v26  ;;  %5018 = vst [vmem:[%s7007_s18 + $0x40] sm:$0xf] %v5017_v29  ;;  %v5021_v32 = vld [vmem:[%s7011_s23 + $0x48] sm:$0xf] }
 0x23f   : >> { %5020 = vst [vmem:[%s7007_s18 + $0x44] sm:$0xf] %v5019_v30  ;;  %v5023_v31 = vld [vmem:[%s7011_s23 + $0x4c] sm:$0xf]  ;;  %v5025_v33 = vld [vmem:[%s7011_s23 + $0x50] sm:$0xf] }
 0x240   : >> { %5022 = vst [vmem:[%s7007_s18 + $0x48] sm:$0xf] %v5021_v32  ;;  %5024 = vst [vmem:[%s7007_s18 + $0x4c] sm:$0xf] %v5023_v31  ;;  %v5027_v34 = vld [vmem:[%s7011_s23 + $0x54] sm:$0xf] }
 0x241   : >> { %5026 = vst [vmem:[%s7007_s18 + $0x50] sm:$0xf] %v5025_v33  ;;  %v5029_v54 = vld [vmem:[%s7011_s23 + $0x58] sm:$0xf]  ;;  %v5031_v35 = vld [vmem:[%s7011_s23 + $0x5c] sm:$0xf] }
 0x242   : >> { %5028 = vst [vmem:[%s7007_s18 + $0x54] sm:$0xf] %v5027_v34  ;;  %5030 = vst [vmem:[%s7007_s18 + $0x58] sm:$0xf] %v5029_v54  ;;  %v5033_v36 = vld [vmem:[%s7011_s23 + $0x60] sm:$0xf] }
 0x243   : >> { %5032 = vst [vmem:[%s7007_s18 + $0x5c] sm:$0xf] %v5031_v35  ;;  %v5035_v37 = vld [vmem:[%s7011_s23 + $0x64] sm:$0xf]  ;;  %v5037_v38 = vld [vmem:[%s7011_s23 + $0x68] sm:$0xf] }
 0x244   : >> { %5034 = vst [vmem:[%s7007_s18 + $0x60] sm:$0xf] %v5033_v36  ;;  %5036 = vst [vmem:[%s7007_s18 + $0x64] sm:$0xf] %v5035_v37  ;;  %v5039_v56 = vld [vmem:[%s7011_s23 + $0x6c] sm:$0xf] }
 0x245   : >> { %5038 = vst [vmem:[%s7007_s18 + $0x68] sm:$0xf] %v5037_v38  ;;  %v5041_v39 = vld [vmem:[%s7011_s23 + $0x70] sm:$0xf]  ;;  %v5043_v40 = vld [vmem:[%s7011_s23 + $0x74] sm:$0xf] }
 0x246   : >> { %5040 = vst [vmem:[%s7007_s18 + $0x6c] sm:$0xf] %v5039_v56  ;;  %5042 = vst [vmem:[%s7007_s18 + $0x70] sm:$0xf] %v5041_v39  ;;  %v5045_v41 = vld [vmem:[%s7011_s23 + $0x78] sm:$0xf] }
 0x247   : >> { %5044 = vst [vmem:[%s7007_s18 + $0x74] sm:$0xf] %v5043_v40  ;;  %v5047_v42 = vld [vmem:[%s7011_s23 + $0x7c] sm:$0xf]  ;;  %v5049_v45 = vld [vmem:[%s7011_s23 + $0x80] sm:$0xf] }
 0x248   : >> { %5046 = vst [vmem:[%s7007_s18 + $0x78] sm:$0xf] %v5045_v41  ;;  %5048 = vst [vmem:[%s7007_s18 + $0x7c] sm:$0xf] %v5047_v42  ;;  %v5051_v43 = vld [vmem:[%s7011_s23 + $0x84] sm:$0xf] }
 0x249   : >> { %5050 = vst [vmem:[%s7007_s18 + $0x80] sm:$0xf] %v5049_v45  ;;  %v5053_v44 = vld [vmem:[%s7011_s23 + $0x88] sm:$0xf]  ;;  %v5055_v46 = vld [vmem:[%s7011_s23 + $0x8c] sm:$0xf] }
 0x24a   : >> { %5052 = vst [vmem:[%s7007_s18 + $0x84] sm:$0xf] %v5051_v43  ;;  %5054 = vst [vmem:[%s7007_s18 + $0x88] sm:$0xf] %v5053_v44  ;;  %v5057_v47 = vld [vmem:[%s7011_s23 + $0x90] sm:$0xf] }
 0x24b   : >> { %5056 = vst [vmem:[%s7007_s18 + $0x8c] sm:$0xf] %v5055_v46  ;;  %v5059_v48 = vld [vmem:[%s7011_s23 + $0x94] sm:$0xf]  ;;  %v5061_v51 = vld [vmem:[%s7011_s23 + $0x98] sm:$0xf] }
 0x24c   : >> { %5058 = vst [vmem:[%s7007_s18 + $0x90] sm:$0xf] %v5057_v47  ;;  %5060 = vst [vmem:[%s7007_s18 + $0x94] sm:$0xf] %v5059_v48  ;;  %v5063_v49 = vld [vmem:[%s7011_s23 + $0x9c] sm:$0xf] }
 0x24d   : >> { %5062 = vst [vmem:[%s7007_s18 + $0x98] sm:$0xf] %v5061_v51  ;;  %v5065_v50 = vld [vmem:[%s7011_s23 + $0xa0] sm:$0xf]  ;;  %v5067_v52 = vld [vmem:[%s7011_s23 + $0xa4] sm:$0xf] }
 0x24e   : >> { %5064 = vst [vmem:[%s7007_s18 + $0x9c] sm:$0xf] %v5063_v49  ;;  %5066 = vst [vmem:[%s7007_s18 + $0xa0] sm:$0xf] %v5065_v50  ;;  %v5069_v53 = vld [vmem:[%s7011_s23 + $0xa8] sm:$0xf] }
 0x24f   : >> { %5068 = vst [vmem:[%s7007_s18 + $0xa4] sm:$0xf] %v5067_v52  ;;  %v5071_v55 = vld [vmem:[%s7011_s23 + $0xac] sm:$0xf]  ;;  %v5073_v57 = vld [vmem:[%s7011_s23 + $0xb0] sm:$0xf] }
 0x250   : >> { %5070 = vst [vmem:[%s7007_s18 + $0xa8] sm:$0xf] %v5069_v53  ;;  %5072 = vst [vmem:[%s7007_s18 + $0xac] sm:$0xf] %v5071_v55  ;;  %v5075_v58 = vld [vmem:[%s7011_s23 + $0xb4] sm:$0xf] }
 0x251   : >> { %5074 = vst [vmem:[%s7007_s18 + $0xb0] sm:$0xf] %v5073_v57  ;;  %v5077_v60 = vld [vmem:[%s7011_s23 + $0xb8] sm:$0xf]  ;;  %v5079_v61 = vld [vmem:[%s7011_s23 + $0xbc] sm:$0xf] }
 0x252   : >> { %5076 = vst [vmem:[%s7007_s18 + $0xb4] sm:$0xf] %v5075_v58  ;;  %5078 = vst [vmem:[%s7007_s18 + $0xb8] sm:$0xf] %v5077_v60  ;;  %v5081_v62 = vld [vmem:[%s7011_s23 + $0xc0] sm:$0xf] }
 0x253   : >> { %5080 = vst [vmem:[%s7007_s18 + $0xbc] sm:$0xf] %v5079_v61  ;;  %v5083_v63 = vld [vmem:[%s7011_s23 + $0xc4] sm:$0xf]  ;;  %v5085_v0 = vld [vmem:[%s7011_s23 + $0xc8] sm:$0xf] }
 0x254   : >> { %5082 = vst [vmem:[%s7007_s18 + $0xc0] sm:$0xf] %v5081_v62  ;;  %5084 = vst [vmem:[%s7007_s18 + $0xc4] sm:$0xf] %v5083_v63  ;;  %v5087_v1 = vld [vmem:[%s7011_s23 + $0xcc] sm:$0xf] }
 0x255   : >> { %5086 = vst [vmem:[%s7007_s18 + $0xc8] sm:$0xf] %v5085_v0  ;;  %v5089_v2 = vld [vmem:[%s7011_s23 + $0xd0] sm:$0xf]  ;;  %v5091_v3 = vld [vmem:[%s7011_s23 + $0xd4] sm:$0xf] }
 0x256   : >> { %5088 = vst [vmem:[%s7007_s18 + $0xcc] sm:$0xf] %v5087_v1  ;;  %5090 = vst [vmem:[%s7007_s18 + $0xd0] sm:$0xf] %v5089_v2  ;;  %v5093_v59 = vld [vmem:[%s7011_s23 + $0xd8] sm:$0xf] }
 0x257   : >> { %5092 = vst [vmem:[%s7007_s18 + $0xd4] sm:$0xf] %v5091_v3  ;;  %v5095_v4 = vld [vmem:[%s7011_s23 + $0xdc] sm:$0xf]  ;;  %v5097_v5 = vld [vmem:[%s7011_s23 + $0xe0] sm:$0xf] }
 0x258   : >> { %5094 = vst [vmem:[%s7007_s18 + $0xd8] sm:$0xf] %v5093_v59  ;;  %5096 = vst [vmem:[%s7007_s18 + $0xdc] sm:$0xf] %v5095_v4  ;;  %v5099_v6 = vld [vmem:[%s7011_s23 + $0xe4] sm:$0xf] }
 0x259   : >> { %5098 = vst [vmem:[%s7007_s18 + $0xe0] sm:$0xf] %v5097_v5  ;;  %v5101_v7 = vld [vmem:[%s7011_s23 + $0xe8] sm:$0xf]  ;;  %v5103_v8 = vld [vmem:[%s7011_s23 + $0xec] sm:$0xf] }
 0x25a   : >> { %5100 = vst [vmem:[%s7007_s18 + $0xe4] sm:$0xf] %v5099_v6  ;;  %5102 = vst [vmem:[%s7007_s18 + $0xe8] sm:$0xf] %v5101_v7  ;;  %v5105_v9 = vld [vmem:[%s7011_s23 + $0xf0] sm:$0xf] }
 0x25b   : >> { %5104 = vst [vmem:[%s7007_s18 + $0xec] sm:$0xf] %v5103_v8  ;;  %v5107_v10 = vld [vmem:[%s7011_s23 + $0xf4] sm:$0xf]  ;;  %v5109_v27 = vld [vmem:[%s7011_s23 + $0xf8] sm:$0xf] }
 0x25c   : >> { %5106 = vst [vmem:[%s7007_s18 + $0xf0] sm:$0xf] %v5105_v9  ;;  %5108 = vst [vmem:[%s7007_s18 + $0xf4] sm:$0xf] %v5107_v10  ;;  %v5111_v11 = vld [vmem:[%s7011_s23 + $0xfc] sm:$0xf] }
 0x25d   : >> { %5110 = vst [vmem:[%s7007_s18 + $0xf8] sm:$0xf] %v5109_v27  ;;  %5112 = vst [vmem:[%s7007_s18 + $0xfc] sm:$0xf] %v5111_v11  ;;  %s8742_s6 = smov (%p5114_p11, %s5113_s6), 0  ;;  %s4979_s5 = sadd.s32 1, %s7019_s5  }
 0x25e   : >> { %s5981_s7 = sshll.u32 %s8742_s6, 8  ;;  %p4978_p12 = scmp.ge.s32.totalorder %s4979_s5, %s8541_s30 }
 0x25f   : >> { %s5118_s23 = scalar_lea.vmem %s7380_s15, %s5981_s7 [#allocation2]   ;;  %s5119_s18 = scalar_lea.vmem %s8535_s27, %s5981_s7  }
 0x260   : >> { %s8735_s28 = smov %s8742_s6  ;;  %4981 = sbr.rel (!%p4978_p12) target bundleno = 563 (0x233), region = 122 }
 0x267 PF: > { %s8709_s8 = sand.u32 63, %s8740_s21   ;;  %s6264_s9 = sshll.u32 %s8541_s30, 8 }
 0x268   : > { %s5124_s10 = scalar_lea.vmem %s7380_s15, %s6264_s9 [#allocation2]   ;;  %s5126_s11 = scalar_lea.vmem %s8535_s27, %s6264_s9  }
 0x269   : > { %p5986_p13 = scmp.le.s32.totalorder %s8709_s8, 0 }
 0x26a   : > { %s7021_s12 = smov (!%p5986_p13), %s5126_s11   ;;  %s7025_s13 = smov (!%p5986_p13), %s5124_s10  }
 0x26b   : > { %5388 = sbr.rel (%p5986_p13) target bundleno = 636 (0x27c), region = 127  ;;  %s7029_s14 = smov (!%p5986_p13), 0  }
 0x26c   : > { %s7033_s17 = smov (!%p5986_p13), 0  }
 0x272 LB: >> { %v5136_v12 = vld [vmem:[%s7027_s13] sm:$0xf]  ;;  %s5138_s20 = sadd.s32 1, %s7031_s14  ;;  %s5130_s17 = sadd.s32 1, %s7035_s17   ;;  %s7035_s17 = sphi %s7033_s17, %s5130_s17   ;;  %s7031_s14 = sphi %s7029_s14, %s7030_s14   ;;  %s7027_s13 = sphi %s7025_s13, %s5143_s13   ;;  %s7023_s12 = sphi %s7021_s12, %s5144_s12  }
 0x273   : >> { %5137 = vst [vmem:[%s7023_s12] sm:$0xf] %v5136_v12  ;;  %p5139_p0 = scmp.ge.s32.totalorder %s5138_s20, %s8709_s8  ;;  %p5129_p1 = scmp.ge.s32.totalorder %s5130_s17, %s8709_s8 }
 0x275   : >> { %s8744_s20 = smov (%p5139_p0, %s5138_s20), 0  ;;  %5132 = sbr.rel (!%p5129_p1) target bundleno = 626 (0x272), region = 133 }
 0x276   : >> { %s5987_s15 = sshll.u32 %s8744_s20, 2  ;;  %s7030_s14 = smov %s8744_s20  }
 0x277   : >> { %s5143_s13 = scalar_lea.vmem %s5124_s10, %s5987_s15 [#allocation2]   ;;  %s5144_s12 = scalar_lea.vmem %s5126_s11, %s5987_s15  }
 0x27c PF: > { %p11_p2 = scmp.ge.s32.totalorder %s7077_s19, 4   ;;  %s8736_s15 = smov %s6999_s16 }
 0x27d   : > { %s8737_s16 = smov %s7085_s22  ;;  %s8738_s17 = smov %s7077_s19 }
 0x27e   :  { %13 = sbr.rel (!%p11_p2) target bundleno = 2 (0x2), region = 144 }

// kernel: cnn_forward.4
= control target key start
LH: loop header
LB: loop body
LE: loop exit
PB: predicated region body
PF: predicated region fallthrough
CT: control target
= control target key end

     0   :  { %v5924_v0 = vmov 0   ;;  %vm2031_vm0 = vcmask 523264   ;;  %vm4432_vm1 = vcmask 257024   ;;  %vm4543_vm2 = vcmask 253952   ;;  %s8248_s1 = inlined_call_operand.vmem [shape: bf16[576,32], index: 1, kind: input, shape index: {}]   ;;  %s8249_s0 = inlined_call_operand.vmem [shape: bf16[882,576], index: 0, kind: input, shape index: {}]   ;;  %s8250_s2 = inlined_call_operand.vmem [shape: f32[1,32], index: 2, kind: input, shape index: {}]   ;;  %s8251_s3 = inlined_call_operand.vmem [shape: f32[1,32], index: 3, kind: input, shape index: {}]   ;;  %s8252_s4 = inlined_call_operand.vmem [shape: bf16[882,32], index: 4, kind: output, shape index: {}]  }
   0x1   :  { %2200 = vmatprep.subr.bf16.mxu0 %v5924_v0  ;;  %5325 = vmatprep.subr.bf16.mxu1 %v5924_v0  ;;  %v5496_v1 = vld [vmem:[%s8248_s1] sm:$0xff]   ;;  %v5497_v2 = vld [vmem:[%s8248_s1 + $0x8] sm:$0xff]   ;;  %v5498_v3 = vld [vmem:[%s8248_s1 + $0x10] sm:$0xff]  }
   0x2   :  { %2201 = vmatpush1.bf16.msra.mxu0 %v5496_v1  ;;  %5341 = vmatpush1.bf16.msra.mxu1 %v5496_v1  ;;  %v5499_v4 = vld [vmem:[%s8248_s1 + $0x18] sm:$0xff]   ;;  %v5500_v5 = vld [vmem:[%s8248_s1 + $0x20] sm:$0xff]   ;;  %v5501_v7 = vld [vmem:[%s8248_s1 + $0x28] sm:$0xff]  }
   0x3   :  { %2202 = vmatprep.subr.bf16.mxu0 %v5924_v0  ;;  %5326 = vmatprep.subr.bf16.mxu1 %v5924_v0  ;;  %v5514_v6 = vld [vmem:[%s8249_s0 + $0x4] ss:$20 sps:$4 sm:$0xff]   ;;  %v5517_v8 = vld [vmem:[%s8249_s0 + $0x234] ss:$20 sps:$4 sm:$0xff]   ;;  %v5520_v23 = vld [vmem:[%s8249_s0 + $0x2c] ss:$20 sps:$4 sm:$0xff]  }
   0x4   :  { %2232 = vmatprep.mubr.bf16.mxu0 %v5514_v6  ;;  %2344 = vmatprep.mubr.bf16.mxu1 %v5517_v8  ;;  %v5502_v9 = vld [vmem:[%s8248_s1 + $0x30] sm:$0xff]   ;;  %v5503_v10 = vld [vmem:[%s8248_s1 + $0x38] sm:$0xff]   ;;  %v5504_v11 = vld [vmem:[%s8248_s1 + $0x40] sm:$0xff]  }
   0x5   :  { %v5505_v12 = vld [vmem:[%s8248_s1 + $0x48] sm:$0xff]   ;;  %v5506_v13 = vld [vmem:[%s8248_s1 + $0x50] sm:$0xff]   ;;  %v5507_v14 = vld [vmem:[%s8248_s1 + $0x58] sm:$0xff]  }
   0x6   :  { %2203 = vmatpush1.bf16.msra.mxu0 %v5497_v2  ;;  %5342 = vmatpush1.bf16.msra.mxu1 %v5497_v2  ;;  %v5508_v15 = vld [vmem:[%s8248_s1 + $0x60] sm:$0xff]   ;;  %v5509_v16 = vld [vmem:[%s8248_s1 + $0x68] sm:$0xff]   ;;  %v5510_v17 = vld [vmem:[%s8248_s1 + $0x70] sm:$0xff]  }
   0x7   :  { %2204 = vmatprep.subr.bf16.mxu0 %v5924_v0  ;;  %5327 = vmatprep.subr.bf16.mxu1 %v5924_v0  ;;  %v5511_v18 = vld [vmem:[%s8248_s1 + $0x78] sm:$0xff]   ;;  %v5518_v19 = vld [vmem:[%s8248_s1 + $0x100] sm:$0xff]   ;;  %v5591_v25 = vld [vmem:[%s8248_s1 + $0x108] sm:$0xff]  }
   0x8   :  { %v5512_v20 = vld [vmem:[%s8249_s0] ss:$20 sps:$4 sm:$0xff]   ;;  %v5515_v21 = vld [vmem:[%s8249_s0 + $0x230] ss:$20 sps:$4 sm:$0xff]   ;;  %v5526_v26 = vld [vmem:[%s8248_s1 + $0x88] sm:$0xff]  }
   0x9   :  { %v5519_v22 = vld [vmem:[%s8248_s1 + $0x80] sm:$0xff]   ;;  %v5522_v24 = vld [vmem:[%s8249_s0 + $0x25c] ss:$20 sps:$4 sm:$0xff]   ;;  %v5525_v28 = vld [vmem:[%s8249_s0 + $0x258] ss:$20 sps:$4 sm:$0xff]  }
   0xa   :  { %2205 = vmatpush1.bf16.msra.mxu0 %v5498_v3  ;;  %5343 = vmatpush1.bf16.msra.mxu1 %v5498_v3  ;;  %v5524_v27 = vld [vmem:[%s8249_s0 + $0x28] ss:$20 sps:$4 sm:$0xff]   ;;  %v5529_v30 = vld [vmem:[%s8249_s0 + $0x284] ss:$20 sps:$4 sm:$0xff]   ;;  %v5533_v31 = vld [vmem:[%s8248_s1 + $0x90] sm:$0xff]  }
   0xb   :  { %2206 = vmatprep.subr.bf16.mxu0 %v5924_v0  ;;  %5328 = vmatprep.subr.bf16.mxu1 %v5924_v0  ;;  %v5527_v29 = vld [vmem:[%s8249_s0 + $0x54] ss:$20 sps:$4 sm:$0xff]   ;;  %v5538_v32 = vld [vmem:[%s8248_s1 + $0x98] sm:$0xff]   ;;  %v5531_v33 = vld [vmem:[%s8249_s0 + $0x50] ss:$20 sps:$4 sm:$0xff]  }
   0xc   :  { %v5532_v34 = vld [vmem:[%s8249_s0 + $0x280] ss:$20 sps:$4 sm:$0xff]   ;;  %v5534_v35 = vld [vmem:[%s8249_s0 + $0x7c] ss:$20 sps:$4 sm:$0xff]   ;;  %v5548_v38 = vld [vmem:[%s8248_s1 + $0xa8] sm:$0xff]  }
   0xd   :  { %v5536_v36 = vld [vmem:[%s8249_s0 + $0x2ac] ss:$20 sps:$4 sm:$0xff]   ;;  %v5540_v40 = vld [vmem:[%s8249_s0 + $0x2a8] ss:$20 sps:$4 sm:$0xff]   ;;  %v5542_v41 = vld [vmem:[%s8249_s0 + $0xa4] ss:$20 sps:$4 sm:$0xff]  }
   0xe   :  { %2207 = vmatpush1.bf16.msra.mxu0 %v5499_v4  ;;  %5344 = vmatpush1.bf16.msra.mxu1 %v5499_v4  ;;  %v5541_v37 = vld [vmem:[%s8248_s1 + $0xa0] sm:$0xff]   ;;  %v5539_v39 = vld [vmem:[%s8249_s0 + $0x78] ss:$20 sps:$4 sm:$0xff]   ;;  %v5544_v42 = vld [vmem:[%s8249_s0 + $0x2d4] ss:$20 sps:$4 sm:$0xff]  }
   0xf   :  { %2208 = vmatprep.subr.bf16.mxu0 %v5924_v0  ;;  %5329 = vmatprep.subr.bf16.mxu1 %v5924_v0  ;;  %v5555_v43 = vld [vmem:[%s8248_s1 + $0xb0] sm:$0xff]   ;;  %v5562_v44 = vld [vmem:[%s8248_s1 + $0xb8] sm:$0xff]   ;;  %v5549_v47 = vld [vmem:[%s8249_s0 + $0xcc] ss:$20 sps:$4 sm:$0xff]  }
  0x10   :  { %v5546_v45 = vld [vmem:[%s8249_s0 + $0xa0] ss:$20 sps:$4 sm:$0xff]   ;;  %v5547_v46 = vld [vmem:[%s8249_s0 + $0x2d0] ss:$20 sps:$4 sm:$0xff]   ;;  %v5576_v50 = vld [vmem:[%s8248_s1 + $0xc8] sm:$0xff]  }
  0x11   :  { %v5551_v48 = vld [vmem:[%s8249_s0 + $0x2fc] ss:$20 sps:$4 sm:$0xff]   ;;  %v5569_v49 = vld [vmem:[%s8248_s1 + $0xc0] sm:$0xff]   ;;  %v5554_v52 = vld [vmem:[%s8249_s0 + $0x2f8] ss:$20 sps:$4 sm:$0xff]  }
  0x12   :  { %2209 = vmatpush1.bf16.msra.mxu0 %v5500_v5  ;;  %5345 = vmatpush1.bf16.msra.mxu1 %v5500_v5  ;;  %v5553_v51 = vld [vmem:[%s8249_s0 + $0xc8] ss:$20 sps:$4 sm:$0xff]   ;;  %v5558_v54 = vld [vmem:[%s8249_s0 + $0x324] ss:$20 sps:$4 sm:$0xff]   ;;  %v5583_v55 = vld [vmem:[%s8248_s1 + $0xd0] sm:$0xff]  }
  0x13   :  { %2210 = vmatprep.subr.bf16.mxu0 %v5924_v0  ;;  %5330 = vmatprep.subr.bf16.mxu1 %v5924_v0  ;;  %v5556_v53 = vld [vmem:[%s8249_s0 + $0xf4] ss:$20 sps:$4 sm:$0xff]   ;;  %v5588_v57 = vld [vmem:[%s8248_s1 + $0xd8] sm:$0xff]   ;;  %v5560_v58 = vld [vmem:[%s8249_s0 + $0xf0] ss:$20 sps:$4 sm:$0xff]  }
  0x14   :  { %v5662_v56 = vld [vmem:[%s8248_s1 + $0x110] sm:$0xff]   ;;  %v5565_v61 = vld [vmem:[%s8249_s0 + $0x34c] ss:$20 sps:$4 sm:$0xff]   ;;  %v5568_v2 = vld [vmem:[%s8249_s0 + $0x348] ss:$20 sps:$4 sm:$0xff]  }
  0x15   :  { %v5561_v59 = vld [vmem:[%s8249_s0 + $0x320] ss:$20 sps:$4 sm:$0xff]   ;;  %v5563_v60 = vld [vmem:[%s8249_s0 + $0x11c] ss:$20 sps:$4 sm:$0xff]   ;;  %v5599_v63 = vld [vmem:[%s8248_s1 + $0xe8] sm:$0xff]  }
  0x16   :  { %2211 = vmatpush1.bf16.msra.mxu0 %v5501_v7  ;;  %5346 = vmatpush1.bf16.msra.mxu1 %v5501_v7  ;;  %v5592_v62 = vld [vmem:[%s8248_s1 + $0xe0] sm:$0xff]   ;;  %v5567_v1 = vld [vmem:[%s8249_s0 + $0x118] ss:$20 sps:$4 sm:$0xff]   ;;  %v5572_v4 = vld [vmem:[%s8249_s0 + $0x374] ss:$20 sps:$4 sm:$0xff]  }
  0x17   :  { %2212 = vmatprep.subr.bf16.mxu0 %v5924_v0  ;;  %5331 = vmatprep.subr.bf16.mxu1 %v5924_v0  ;;  %v5570_v3 = vld [vmem:[%s8249_s0 + $0x144] ss:$20 sps:$4 sm:$0xff]   ;;  %v5606_v5 = vld [vmem:[%s8248_s1 + $0xf0] sm:$0xff]  }
  0x18   :  { %v5613_v6 = vld [vmem:[%s8248_s1 + $0xf8] sm:$0xff]   ;;  %v5574_v7 = vld [vmem:[%s8249_s0 + $0x140] ss:$20 sps:$4 sm:$0xff]   ;;  %v5575_v8 = vld [vmem:[%s8249_s0 + $0x370] ss:$20 sps:$4 sm:$0xff]  }
  0x1a   :  { %2213 = vmatpush1.bf16.msra.mxu0 %v5502_v9  ;;  %5347 = vmatpush1.bf16.msra.mxu1 %v5502_v9  ;;  %v5577_v9 = vld [vmem:[%s8249_s0 + $0x16c] ss:$20 sps:$4 sm:$0xff]  }
  0x1b   :  { %2214 = vmatprep.subr.bf16.mxu0 %v5924_v0  ;;  %5332 = vmatprep.subr.bf16.mxu1 %v5924_v0 }
  0x1e   :  { %2215 = vmatpush1.bf16.msra.mxu0 %v5503_v10  ;;  %5348 = vmatpush1.bf16.msra.mxu1 %v5503_v10  ;;  %v5579_v10 = vld [vmem:[%s8249_s0 + $0x39c] ss:$20 sps:$4 sm:$0xff]  }
  0x1f   :  { %2216 = vmatprep.subr.bf16.mxu0 %v5924_v0  ;;  %5333 = vmatprep.subr.bf16.mxu1 %v5924_v0 }
  0x22   :  { %2217 = vmatpush1.bf16.msra.mxu0 %v5504_v11  ;;  %5349 = vmatpush1.bf16.msra.mxu1 %v5504_v11  ;;  %v5581_v11 = vld [vmem:[%s8249_s0 + $0x168] ss:$20 sps:$4 sm:$0xff]  }
  0x23   :  { %2218 = vmatprep.subr.bf16.mxu0 %v5924_v0  ;;  %5334 = vmatprep.subr.bf16.mxu1 %v5924_v0 }
  0x26   :  { %2219 = vmatpush1.bf16.msra.mxu0 %v5505_v12  ;;  %5350 = vmatpush1.bf16.msra.mxu1 %v5505_v12  ;;  %v5582_v12 = vld [vmem:[%s8249_s0 + $0x398] ss:$20 sps:$4 sm:$0xff]  }
  0x27   :  { %2220 = vmatprep.subr.bf16.mxu0 %v5924_v0  ;;  %5335 = vmatprep.subr.bf16.mxu1 %v5924_v0 }
  0x2a   :  { %2221 = vmatpush1.bf16.msra.mxu0 %v5506_v13  ;;  %5351 = vmatpush1.bf16.msra.mxu1 %v5506_v13  ;;  %v5584_v13 = vld [vmem:[%s8249_s0 + $0x194] ss:$20 sps:$4 sm:$0xff]  }
  0x2b   :  { %2222 = vmatprep.subr.bf16.mxu0 %v5924_v0  ;;  %5336 = vmatprep.subr.bf16.mxu1 %v5924_v0 }
  0x2e   :  { %2223 = vmatpush1.bf16.msra.mxu0 %v5507_v14  ;;  %5352 = vmatpush1.bf16.msra.mxu1 %v5507_v14  ;;  %v5589_v14 = vld [vmem:[%s8249_s0 + $0x190] ss:$20 sps:$4 sm:$0xff]  }
  0x2f   :  { %2224 = vmatprep.subr.bf16.mxu0 %v5924_v0  ;;  %5337 = vmatprep.subr.bf16.mxu1 %v5924_v0 }
  0x32   :  { %2225 = vmatpush1.bf16.msra.mxu0 %v5508_v15  ;;  %5353 = vmatpush1.bf16.msra.mxu1 %v5508_v15  ;;  %v5590_v15 = vld [vmem:[%s8249_s0 + $0x3c0] ss:$20 sps:$4 sm:$0xff]  }
  0x33   :  { %2226 = vmatprep.subr.bf16.mxu0 %v5924_v0  ;;  %5338 = vmatprep.subr.bf16.mxu1 %v5924_v0 }
  0x36   :  { %2227 = vmatpush1.bf16.msra.mxu0 %v5509_v16  ;;  %5354 = vmatpush1.bf16.msra.mxu1 %v5509_v16  ;;  %v5593_v16 = vld [vmem:[%s8249_s0 + $0x1bc] ss:$20 sps:$4 sm:$0xff]  }
  0x37   :  { %2228 = vmatprep.subr.bf16.mxu0 %v5924_v0  ;;  %5339 = vmatprep.subr.bf16.mxu1 %v5924_v0 }
  0x3a   :  { %2229 = vmatpush1.bf16.msra.mxu0 %v5510_v17  ;;  %5355 = vmatpush1.bf16.msra.mxu1 %v5510_v17  ;;  %v5595_v17 = vld [vmem:[%s8249_s0 + $0x3ec] ss:$20 sps:$4 sm:$0xff]  }
  0x3b   :  { %2230 = vmatprep.subr.bf16.mxu0 %v5924_v0  ;;  %5340 = vmatprep.subr.bf16.mxu1 %v5924_v0 }
  0x3e   :  { %2231 = vmatpush1.bf16.msra.mxu0 %v5511_v18  ;;  %5356 = vmatpush1.bf16.msra.mxu1 %v5511_v18  ;;  %v5597_v18 = vld [vmem:[%s8249_s0 + $0x1b8] ss:$20 sps:$4 sm:$0xff]  }
  0x3f   :  { %5205 = vmatprep.subr.bf16.mxu1 %v5518_v19  ;;  %2680 = vmatprep.subr.bf16.mxu0 %v5924_v0 }
  0x41   :  { %2233 = vmatmul.mubr.bf16.vlgmr.msra.gmra.mrb[0].mxu0 %v5512_v20  ;;  %2345 = vmatmul.mubr.bf16.vlgmr.msra.gmra.mrb[0].mxu1 %v5515_v21  ;;  %v5600_v20 = vld [vmem:[%s8249_s0 + $0x1e4] ss:$20 sps:$4 sm:$0xff]   ;;  %v5602_v21 = vld [vmem:[%s8249_s0 + $0x414] ss:$20 sps:$4 sm:$0xff]  }
  0x42   :  { %5206 = vmatpush3.bf16.msra.mxu1 %v5518_v19  ;;  %2681 = vmatpush1.bf16.msra.mxu0 %v5519_v22  ;;  %v5598_v19 = vld [vmem:[%s8249_s0 + $0x3e8] ss:$20 sps:$4 sm:$0xff]   ;;  %v5604_v22 = vld [vmem:[%s8249_s0 + $0x1e0] ss:$20 sps:$4 sm:$0xff]  }
  0x43   :  { %2240 = vmatprep.mubr.bf16.mxu0 %v5520_v23  ;;  %2352 = vmatprep.mubr.bf16.mxu1 %v5522_v24  ;;  %v5605_v23 = vld [vmem:[%s8249_s0 + $0x410] ss:$20 sps:$4 sm:$0xff]   ;;  %v5607_v24 = vld [vmem:[%s8249_s0 + $0x20c] ss:$20 sps:$4 sm:$0xff]  }
  0x44   :  { %2682 = vmatprep.subr.bf16.mxu0 %v5924_v0  ;;  %5207 = vmatprep.subr.bf16.mxu1 %v5591_v25 }
  0x46   :  { %2683 = vmatpush1.bf16.msra.mxu0 %v5526_v26  ;;  %5208 = vmatpush3.bf16.msra.mxu1 %v5591_v25  ;;  %v5609_v25 = vld [vmem:[%s8249_s0 + $0x43c] ss:$20 sps:$4 sm:$0xff]  }
  0x47   :  { %2684 = vmatprep.subr.bf16.mxu0 %v5924_v0  ;;  %5209 = vmatprep.subr.bf16.mxu1 %v5662_v56  ;;  %v5611_v26 = vld [vmem:[%s8249_s0 + $0x208] ss:$20 sps:$4 sm:$0xff]  }
  0x49   :  { %2241 = vmatmul.mubr.bf16.gmra.mrb[4].mxu0 %v5524_v27  ;;  %2353 = vmatmul.mubr.bf16.gmra.mrb[4].mxu1 %v5525_v28  ;;  %v5612_v27 = vld [vmem:[%s8249_s0 + $0x438] ss:$20 sps:$4 sm:$0xff]  }
  0x4a   :  { %2248 = vmatprep.mubr.bf16.mxu0 %v5527_v29  ;;  %2360 = vmatprep.mubr.bf16.mxu1 %v5529_v30  ;;  %v5614_v28 = vld [vmem:[%s8249_s0 + $0x464] ss:$20 sps:$4 sm:$0xff]   ;;  %v5618_v29 = vld [vmem:[%s8249_s0 + $0xc] ss:$20 sps:$4 sm:$0xff]   ;;  %v5616_v30 = vld [vmem:[%s8249_s0 + $0x8] ss:$20 sps:$4 sm:$0xff]  }
  0x4b   :  { %2685 = vmatpush1.bf16.msra.mxu0 %v5533_v31  ;;  %5210 = vmatpush3.bf16.msra.mxu1 %v5662_v56  ;;  %v5619_v31 = vld [vmem:[%s8249_s0 + $0x460] ss:$20 sps:$4 sm:$0xff]   ;;  %v5655_v56 = vld [vmem:[%s8249_s0 + $0xf8] ss:$20 sps:$4 sm:$0xff]  }
  0x4c   :  { %2686 = vmatprep.subr.bf16.mxu0 %v5924_v0 }
  0x4f   :  { %2687 = vmatpush1.bf16.msra.mxu0 %v5538_v32  ;;  %v5620_v32 = vld [vmem:[%s8249_s0 + $0x48c] ss:$20 sps:$4 sm:$0xff]  }
  0x50   :  { %2688 = vmatprep.subr.bf16.mxu0 %v5924_v0 }
  0x51   :  { %2249 = vmatmul.mubr.bf16.gmra.mrb[8].mxu0 %v5531_v33  ;;  %2361 = vmatmul.mubr.bf16.gmra.mrb[8].mxu1 %v5532_v34  ;;  %v5622_v33 = vld [vmem:[%s8249_s0 + $0x34] ss:$20 sps:$4 sm:$0xff]  }
  0x52   :  { %2256 = vmatprep.mubr.bf16.mxu0 %v5534_v35  ;;  %2368 = vmatprep.mubr.bf16.mxu1 %v5536_v36  ;;  %v5624_v34 = vld [vmem:[%s8249_s0 + $0x488] ss:$20 sps:$4 sm:$0xff]   ;;  %v5625_v35 = vld [vmem:[%s8249_s0 + $0x30] ss:$20 sps:$4 sm:$0xff]  }
  0x53   :  { %2689 = vmatpush1.bf16.msra.mxu0 %v5541_v37  ;;  %v5626_v36 = vld [vmem:[%s8249_s0 + $0x4b4] ss:$20 sps:$4 sm:$0xff]   ;;  %v5628_v37 = vld [vmem:[%s8249_s0 + $0x5c] ss:$20 sps:$4 sm:$0xff]  }
  0x54   :  { %2690 = vmatprep.subr.bf16.mxu0 %v5924_v0 }
  0x57   :  { %2691 = vmatpush1.bf16.msra.mxu0 %v5548_v38  ;;  %v5630_v38 = vld [vmem:[%s8249_s0 + $0x4b0] ss:$20 sps:$4 sm:$0xff]  }
  0x58   :  { %2692 = vmatprep.subr.bf16.mxu0 %v5924_v0 }
  0x59   :  { %2257 = vmatmul.mubr.bf16.gmra.mrb[12].mxu0 %v5539_v39  ;;  %2369 = vmatmul.mubr.bf16.gmra.mrb[12].mxu1 %v5540_v40  ;;  %v5631_v39 = vld [vmem:[%s8249_s0 + $0x58] ss:$20 sps:$4 sm:$0xff]  }
  0x5a   :  { %2264 = vmatprep.mubr.bf16.mxu0 %v5542_v41  ;;  %2376 = vmatprep.mubr.bf16.mxu1 %v5544_v42  ;;  %v5723_v40 = vld [vmem:[%s8248_s1 + $0x118] sm:$0xff]  }
  0x5b   :  { %2693 = vmatpush1.bf16.msra.mxu0 %v5555_v43  ;;  %v5632_v41 = vld [vmem:[%s8249_s0 + $0x4dc] ss:$20 sps:$4 sm:$0xff]   ;;  %v5634_v42 = vld [vmem:[%s8249_s0 + $0x84] ss:$20 sps:$4 sm:$0xff]   ;;  %5211 = vmatprep.subr.bf16.mxu1 %v5723_v40 }
  0x5c   :  { %2694 = vmatprep.subr.bf16.mxu0 %v5924_v0  ;;  %5212 = vmatpush3.bf16.msra.mxu1 %v5723_v40  ;;  %v5636_v43 = vld [vmem:[%s8249_s0 + $0x4d8] ss:$20 sps:$4 sm:$0xff]  }
  0x5d   :  { %v5711_v40 = vld [vmem:[%s8249_s0 + $0x6e4] ss:$20 sps:$4 sm:$0xff]  }
  0x5f   :  { %2695 = vmatpush1.bf16.msra.mxu0 %v5562_v44  ;;  %v5637_v44 = vld [vmem:[%s8249_s0 + $0x80] ss:$20 sps:$4 sm:$0xff]  }
  0x60   :  { %2696 = vmatprep.subr.bf16.mxu0 %v5924_v0 }
  0x61   :  { %2265 = vmatmul.mubr.bf16.gmra.mrb[16].mxu0 %v5546_v45  ;;  %2377 = vmatmul.mubr.bf16.gmra.mrb[16].mxu1 %v5547_v46  ;;  %v5638_v45 = vld [vmem:[%s8249_s0 + $0x504] ss:$20 sps:$4 sm:$0xff]   ;;  %v5640_v46 = vld [vmem:[%s8249_s0 + $0xac] ss:$20 sps:$4 sm:$0xff]  }
  0x62   :  { %2272 = vmatprep.mubr.bf16.mxu0 %v5549_v47  ;;  %2384 = vmatprep.mubr.bf16.mxu1 %v5551_v48  ;;  %v5642_v47 = vld [vmem:[%s8249_s0 + $0x500] ss:$20 sps:$4 sm:$0xff]   ;;  %v5643_v48 = vld [vmem:[%s8249_s0 + $0xa8] ss:$20 sps:$4 sm:$0xff]  }
  0x63   :  { %2697 = vmatpush1.bf16.msra.mxu0 %v5569_v49  ;;  %v5644_v49 = vld [vmem:[%s8249_s0 + $0x52c] ss:$20 sps:$4 sm:$0xff]  }
  0x64   :  { %2698 = vmatprep.subr.bf16.mxu0 %v5924_v0 }
  0x67   :  { %2699 = vmatpush1.bf16.msra.mxu0 %v5576_v50  ;;  %v5646_v50 = vld [vmem:[%s8249_s0 + $0xd4] ss:$20 sps:$4 sm:$0xff]  }
  0x68   :  { %2700 = vmatprep.subr.bf16.mxu0 %v5924_v0 }
  0x69   :  { %2273 = vmatmul.mubr.bf16.gmra.mrb[20].mxu0 %v5553_v51  ;;  %2385 = vmatmul.mubr.bf16.gmra.mrb[20].mxu1 %v5554_v52  ;;  %v5648_v51 = vld [vmem:[%s8249_s0 + $0x528] ss:$20 sps:$4 sm:$0xff]   ;;  %v5649_v52 = vld [vmem:[%s8249_s0 + $0xd0] ss:$20 sps:$4 sm:$0xff]  }
  0x6a   :  { %2280 = vmatprep.mubr.bf16.mxu0 %v5556_v53  ;;  %2392 = vmatprep.mubr.bf16.mxu1 %v5558_v54  ;;  %v5650_v53 = vld [vmem:[%s8249_s0 + $0x554] ss:$20 sps:$4 sm:$0xff]   ;;  %v5652_v54 = vld [vmem:[%s8249_s0 + $0xfc] ss:$20 sps:$4 sm:$0xff]  }
  0x6b   :  { %2701 = vmatpush1.bf16.msra.mxu0 %v5583_v55  ;;  %v5654_v55 = vld [vmem:[%s8249_s0 + $0x550] ss:$20 sps:$4 sm:$0xff]  }
  0x6c   :  { %2702 = vmatprep.subr.bf16.mxu0 %v5924_v0 }
  0x6f   :  { %2703 = vmatpush1.bf16.msra.mxu0 %v5588_v57  ;;  %v5656_v57 = vld [vmem:[%s8249_s0 + $0x57c] ss:$20 sps:$4 sm:$0xff]  }
  0x70   :  { %2704 = vmatprep.subr.bf16.mxu0 %v5924_v0 }
  0x71   :  { %2281 = vmatmul.mubr.bf16.gmra.mrb[24].mxu0 %v5560_v58  ;;  %2393 = vmatmul.mubr.bf16.gmra.mrb[24].mxu1 %v5561_v59  ;;  %v5658_v58 = vld [vmem:[%s8249_s0 + $0x124] ss:$20 sps:$4 sm:$0xff]  }
  0x72   :  { %2288 = vmatprep.mubr.bf16.mxu0 %v5563_v60  ;;  %2400 = vmatprep.mubr.bf16.mxu1 %v5565_v61  ;;  %v5660_v59 = vld [vmem:[%s8249_s0 + $0x578] ss:$20 sps:$4 sm:$0xff]   ;;  %v5661_v60 = vld [vmem:[%s8249_s0 + $0x120] ss:$20 sps:$4 sm:$0xff]  }
  0x73   :  { %2705 = vmatpush1.bf16.msra.mxu0 %v5592_v62  ;;  %v5663_v61 = vld [vmem:[%s8249_s0 + $0x5a4] ss:$20 sps:$4 sm:$0xff]   ;;  %v5665_v62 = vld [vmem:[%s8249_s0 + $0x14c] ss:$20 sps:$4 sm:$0xff]  }
  0x74   :  { %2706 = vmatprep.subr.bf16.mxu0 %v5924_v0 }
  0x77   :  { %2707 = vmatpush1.bf16.msra.mxu0 %v5599_v63  ;;  %v5667_v63 = vld [vmem:[%s8249_s0 + $0x5a0] ss:$20 sps:$4 sm:$0xff]  }
  0x78   :  { %2708 = vmatprep.subr.bf16.mxu0 %v5924_v0 }
  0x79   :  { %2289 = vmatmul.mubr.bf16.gmra.mrb[28].mxu0 %v5567_v1  ;;  %2401 = vmatmul.mubr.bf16.gmra.mrb[28].mxu1 %v5568_v2  ;;  %v5668_v1 = vld [vmem:[%s8249_s0 + $0x148] ss:$20 sps:$4 sm:$0xff]   ;;  %v5669_v2 = vld [vmem:[%s8249_s0 + $0x5cc] ss:$20 sps:$4 sm:$0xff]  }
  0x7a   :  { %2296 = vmatprep.mubr.bf16.mxu0 %v5570_v3  ;;  %2408 = vmatprep.mubr.bf16.mxu1 %v5572_v4  ;;  %v5671_v3 = vld [vmem:[%s8249_s0 + $0x174] ss:$20 sps:$4 sm:$0xff]  }
  0x7b   :  { %2709 = vmatpush1.bf16.msra.mxu0 %v5606_v5  ;;  %v5673_v4 = vld [vmem:[%s8249_s0 + $0x5c8] ss:$20 sps:$4 sm:$0xff]   ;;  %v5674_v5 = vld [vmem:[%s8249_s0 + $0x170] ss:$20 sps:$4 sm:$0xff]  }
  0x7c   :  { %2710 = vmatprep.subr.bf16.mxu0 %v5924_v0  ;;  %v5586_v0 = vld [vmem:[%s8249_s0 + $0x3c4] ss:$20 sps:$4 sm:$0xff]  }
  0x7f   :  { %2711 = vmatpush1.bf16.msra.mxu0 %v5613_v6  ;;  %v5675_v6 = vld [vmem:[%s8249_s0 + $0x5f4] ss:$20 sps:$4 sm:$0xff]  }
  0x81   :  { %2297 = vmatmul.mubr.bf16.gmra.mrb[32].mxu0 %v5574_v7  ;;  %2409 = vmatmul.mubr.bf16.gmra.mrb[32].mxu1 %v5575_v8  ;;  %v5677_v7 = vld [vmem:[%s8249_s0 + $0x19c] ss:$20 sps:$4 sm:$0xff]  }
  0x82   :  { %2304 = vmatprep.mubr.bf16.mxu0 %v5577_v9  ;;  %2416 = vmatprep.mubr.bf16.mxu1 %v5579_v10  ;;  %v5679_v8 = vld [vmem:[%s8249_s0 + $0x5f0] ss:$20 sps:$4 sm:$0xff]   ;;  %v5680_v9 = vld [vmem:[%s8249_s0 + $0x198] ss:$20 sps:$4 sm:$0xff]  }
  0x83   :  { %v5681_v10 = vld [vmem:[%s8249_s0 + $0x61c] ss:$20 sps:$4 sm:$0xff]  }
  0x89   :  { %2305 = vmatmul.mubr.bf16.gmra.mrb[36].mxu0 %v5581_v11  ;;  %2417 = vmatmul.mubr.bf16.gmra.mrb[36].mxu1 %v5582_v12  ;;  %v5683_v11 = vld [vmem:[%s8249_s0 + $0x1c4] ss:$20 sps:$4 sm:$0xff]  }
  0x8a   :  { %2312 = vmatprep.mubr.bf16.mxu0 %v5584_v13  ;;  %2424 = vmatprep.mubr.bf16.mxu1 %v5586_v0  ;;  %v5685_v12 = vld [vmem:[%s8249_s0 + $0x618] ss:$20 sps:$4 sm:$0xff]   ;;  %v5686_v13 = vld [vmem:[%s8249_s0 + $0x1c0] ss:$20 sps:$4 sm:$0xff]  }
  0x8b   :  { %v5687_v0 = vld [vmem:[%s8249_s0 + $0x644] ss:$20 sps:$4 sm:$0xff]  }
  0x91   :  { %2313 = vmatmul.mubr.bf16.gmra.mrb[40].mxu0 %v5589_v14  ;;  %2425 = vmatmul.mubr.bf16.gmra.mrb[40].mxu1 %v5590_v15  ;;  %v5689_v14 = vld [vmem:[%s8249_s0 + $0x1ec] ss:$20 sps:$4 sm:$0xff]  }
  0x92   :  { %2320 = vmatprep.mubr.bf16.mxu0 %v5593_v16  ;;  %2432 = vmatprep.mubr.bf16.mxu1 %v5595_v17  ;;  %v5691_v15 = vld [vmem:[%s8249_s0 + $0x640] ss:$20 sps:$4 sm:$0xff]   ;;  %v5692_v16 = vld [vmem:[%s8249_s0 + $0x1e8] ss:$20 sps:$4 sm:$0xff]  }
  0x93   :  { %v5693_v17 = vld [vmem:[%s8249_s0 + $0x66c] ss:$20 sps:$4 sm:$0xff]  }
  0x99   :  { %2321 = vmatmul.mubr.bf16.gmra.mrb[44].mxu0 %v5597_v18  ;;  %2433 = vmatmul.mubr.bf16.gmra.mrb[44].mxu1 %v5598_v19  ;;  %v5695_v18 = vld [vmem:[%s8249_s0 + $0x214] ss:$20 sps:$4 sm:$0xff]  }
  0x9a   :  { %2328 = vmatprep.mubr.bf16.mxu0 %v5600_v20  ;;  %2440 = vmatprep.mubr.bf16.mxu1 %v5602_v21  ;;  %v5697_v21 = vld [vmem:[%s8249_s0 + $0x668] ss:$20 sps:$4 sm:$0xff]  }
  0xa1   :  { %2329 = vmatmul.mubr.bf16.gmra.mrb[48].mxu0 %v5604_v22  ;;  %2441 = vmatmul.mubr.bf16.gmra.mrb[48].mxu1 %v5605_v23  ;;  %v5698_v22 = vld [vmem:[%s8249_s0 + $0x210] ss:$20 sps:$4 sm:$0xff]  }
  0xa2   :  { %2336 = vmatprep.mubr.bf16.mxu0 %v5607_v24  ;;  %2448 = vmatprep.mubr.bf16.mxu1 %v5609_v25  ;;  %v5699_v24 = vld [vmem:[%s8249_s0 + $0x694] ss:$20 sps:$4 sm:$0xff]   ;;  %v5701_v25 = vld [vmem:[%s8249_s0 + $0x23c] ss:$20 sps:$4 sm:$0xff]  }
  0xa9   :  { %2337 = vmatmul.mubr.bf16.gmra.mrb[52].mxu0 %v5611_v26  ;;  %2449 = vmatmul.mubr.bf16.gmra.mrb[52].mxu1 %v5612_v27 }
  0xaa   :  { %2456 = vmatprep.mubr.bf16.mxu1 %v5614_v28  ;;  %2712 = vmatprep.mubr.bf16.mxu0 %v5618_v29  ;;  %v5703_v29 = vld [vmem:[%s8249_s0 + $0x690] ss:$20 sps:$4 sm:$0xff]  }
  0xb1   :  { %2457 = vmatmul.mubr.bf16.gmra.mrb[56].mxu1 %v5619_v31  ;;  %2713 = vmatmul.mubr.bf16.vlgmr.msra.gmra.mrb[0].mxu0 %v5616_v30  ;;  %v5704_v30 = vld [vmem:[%s8249_s0 + $0x238] ss:$20 sps:$4 sm:$0xff]  }
  0xb2   :  { %2464 = vmatprep.mubr.bf16.mxu1 %v5620_v32  ;;  %2720 = vmatprep.mubr.bf16.mxu0 %v5622_v33  ;;  %v5705_v32 = vld [vmem:[%s8249_s0 + $0x6bc] ss:$20 sps:$4 sm:$0xff]   ;;  %v5707_v33 = vld [vmem:[%s8249_s0 + $0x264] ss:$20 sps:$4 sm:$0xff]  }
  0xb9   :  { %2465 = vmatmul.mubr.bf16.gmra.mrb[60].mxu1 %v5624_v34  ;;  %2721 = vmatmul.mubr.bf16.gmra.mrb[4].mxu0 %v5625_v35 }
  0xba   :  { %2472 = vmatprep.mubr.bf16.mxu1 %v5626_v36  ;;  %2728 = vmatprep.mubr.bf16.mxu0 %v5628_v37  ;;  %v5709_v37 = vld [vmem:[%s8249_s0 + $0x6b8] ss:$20 sps:$4 sm:$0xff]  }
  0xc1   :  { %2473 = vmatmul.mubr.bf16.gmra.mrb[64].mxu1 %v5630_v38  ;;  %2729 = vmatmul.mubr.bf16.gmra.mrb[8].mxu0 %v5631_v39  ;;  %v5710_v38 = vld [vmem:[%s8249_s0 + $0x260] ss:$20 sps:$4 sm:$0xff]  }
  0xc2   :  { %2480 = vmatprep.mubr.bf16.mxu1 %v5632_v41  ;;  %2736 = vmatprep.mubr.bf16.mxu0 %v5634_v42  ;;  %v5713_v41 = vld [vmem:[%s8249_s0 + $0x28c] ss:$20 sps:$4 sm:$0xff]  }
  0xc9   :  { %2481 = vmatmul.mubr.bf16.gmra.mrb[68].mxu1 %v5636_v43  ;;  %2737 = vmatmul.mubr.bf16.gmra.mrb[12].mxu0 %v5637_v44 }
  0xca   :  { %2488 = vmatprep.mubr.bf16.mxu1 %v5638_v45  ;;  %2744 = vmatprep.mubr.bf16.mxu0 %v5640_v46  ;;  %v5715_v45 = vld [vmem:[%s8249_s0 + $0x6e0] ss:$20 sps:$4 sm:$0xff]   ;;  %v5716_v46 = vld [vmem:[%s8249_s0 + $0x288] ss:$20 sps:$4 sm:$0xff]  }
  0xd1   :  { %2489 = vmatmul.mubr.bf16.gmra.mrb[72].mxu1 %v5642_v47  ;;  %2745 = vmatmul.mubr.bf16.gmra.mrb[16].mxu0 %v5643_v48  ;;  %v5717_v48 = vld [vmem:[%s8249_s0 + $0x70c] ss:$20 sps:$4 sm:$0xff]  }
  0xd2   :  { %2496 = vmatprep.mubr.bf16.mxu1 %v5644_v49  ;;  %2752 = vmatprep.mubr.bf16.mxu0 %v5646_v50  ;;  %v5719_v49 = vld [vmem:[%s8249_s0 + $0x2b4] ss:$20 sps:$4 sm:$0xff]  }
  0xd9   :  { %2497 = vmatmul.mubr.bf16.gmra.mrb[76].mxu1 %v5648_v51  ;;  %2753 = vmatmul.mubr.bf16.gmra.mrb[20].mxu0 %v5649_v52 }
  0xda   :  { %2504 = vmatprep.mubr.bf16.mxu1 %v5650_v53  ;;  %2760 = vmatprep.mubr.bf16.mxu0 %v5652_v54  ;;  %v5721_v53 = vld [vmem:[%s8249_s0 + $0x708] ss:$20 sps:$4 sm:$0xff]   ;;  %v5722_v54 = vld [vmem:[%s8249_s0 + $0x2b0] ss:$20 sps:$4 sm:$0xff]  }
  0xe1   :  { %2505 = vmatmul.mubr.bf16.gmra.mrb[80].mxu1 %v5654_v55  ;;  %2761 = vmatmul.mubr.bf16.gmra.mrb[24].mxu0 %v5655_v56  ;;  %v5724_v56 = vld [vmem:[%s8249_s0 + $0x734] ss:$20 sps:$4 sm:$0xff]  }
  0xe2   :  { %2512 = vmatprep.mubr.bf16.mxu1 %v5656_v57  ;;  %2768 = vmatprep.mubr.bf16.mxu0 %v5658_v58  ;;  %v5726_v57 = vld [vmem:[%s8249_s0 + $0x2dc] ss:$20 sps:$4 sm:$0xff]  }
  0xe9   :  { %2513 = vmatmul.mubr.bf16.gmra.mrb[84].mxu1 %v5660_v59  ;;  %2769 = vmatmul.mubr.bf16.gmra.mrb[28].mxu0 %v5661_v60 }
  0xea   :  { %2520 = vmatprep.mubr.bf16.mxu1 %v5663_v61  ;;  %2776 = vmatprep.mubr.bf16.mxu0 %v5665_v62  ;;  %v5728_v61 = vld [vmem:[%s8249_s0 + $0x730] ss:$20 sps:$4 sm:$0xff]   ;;  %v5729_v62 = vld [vmem:[%s8249_s0 + $0x2d8] ss:$20 sps:$4 sm:$0xff]  }
  0xf1   :  { %2521 = vmatmul.mubr.bf16.gmra.mrb[88].mxu1 %v5667_v63  ;;  %2777 = vmatmul.mubr.bf16.gmra.mrb[32].mxu0 %v5668_v1  ;;  %v5730_v1 = vld [vmem:[%s8249_s0 + $0x75c] ss:$20 sps:$4 sm:$0xff]  }
  0xf2   :  { %2528 = vmatprep.mubr.bf16.mxu1 %v5669_v2  ;;  %2784 = vmatprep.mubr.bf16.mxu0 %v5671_v3  ;;  %v5732_v2 = vld [vmem:[%s8249_s0 + $0x304] ss:$20 sps:$4 sm:$0xff]  }
  0xf9   :  { %2529 = vmatmul.mubr.bf16.gmra.mrb[92].mxu1 %v5673_v4  ;;  %2785 = vmatmul.mubr.bf16.gmra.mrb[36].mxu0 %v5674_v5 }
  0xfa   :  { %2536 = vmatprep.mubr.bf16.mxu1 %v5675_v6  ;;  %2792 = vmatprep.mubr.bf16.mxu0 %v5677_v7  ;;  %v5734_v6 = vld [vmem:[%s8249_s0 + $0x758] ss:$20 sps:$4 sm:$0xff]   ;;  %v5735_v7 = vld [vmem:[%s8249_s0 + $0x300] ss:$20 sps:$4 sm:$0xff]  }
 0x101   :  { %2537 = vmatmul.mubr.bf16.gmra.mrb[96].mxu1 %v5679_v8  ;;  %2793 = vmatmul.mubr.bf16.gmra.mrb[40].mxu0 %v5680_v9  ;;  %v5736_v9 = vld [vmem:[%s8249_s0 + $0x784] ss:$20 sps:$4 sm:$0xff]  }
 0x102   :  { %2544 = vmatprep.mubr.bf16.mxu1 %v5681_v10  ;;  %2800 = vmatprep.mubr.bf16.mxu0 %v5683_v11  ;;  %v5738_v10 = vld [vmem:[%s8249_s0 + $0x32c] ss:$20 sps:$4 sm:$0xff]  }
 0x109   :  { %2545 = vmatmul.mubr.bf16.gmra.mrb[100].mxu1 %v5685_v12  ;;  %2801 = vmatmul.mubr.bf16.gmra.mrb[44].mxu0 %v5686_v13 }
 0x10a   :  { %2552 = vmatprep.mubr.bf16.mxu1 %v5687_v0  ;;  %2808 = vmatprep.mubr.bf16.mxu0 %v5689_v14  ;;  %v5740_v0 = vld [vmem:[%s8249_s0 + $0x780] ss:$20 sps:$4 sm:$0xff]   ;;  %v5741_v14 = vld [vmem:[%s8249_s0 + $0x328] ss:$20 sps:$4 sm:$0xff]  }
 0x111   :  { %2553 = vmatmul.mubr.bf16.gmra.mrb[104].mxu1 %v5691_v15  ;;  %2809 = vmatmul.mubr.bf16.gmra.mrb[48].mxu0 %v5692_v16  ;;  %v5742_v16 = vld [vmem:[%s8249_s0 + $0x7ac] ss:$20 sps:$4 sm:$0xff]  }
 0x112   :  { %2560 = vmatprep.mubr.bf16.mxu1 %v5693_v17  ;;  %2816 = vmatprep.mubr.bf16.mxu0 %v5695_v18  ;;  %v5744_v17 = vld [vmem:[%s8249_s0 + $0x354] ss:$20 sps:$4 sm:$0xff]  }
 0x114   :  { %v6436_v19 = vpop.f32.mrb[0].mxu1 }
 0x115   :  { %v2348_v20 = vpop.f32.mrb[1].mxu1 }
 0x116   :  { %v6444_v23 = vpop.f32.mrb[2].mxu1 }
 0x117   :  { %v2351_v26 = vpop.f32.mrb[3].mxu1 }
 0x118   :  { %v5748_v26 = vld [vmem:[%s8249_s0 + $0x7d4] ss:$20 sps:$4 sm:$0xff]  }
 0x119   :  { %2561 = vmatmul.mubr.bf16.gmra.mrb[108].mxu1 %v5697_v21  ;;  %2817 = vmatmul.mubr.bf16.gmra.mrb[52].mxu0 %v5698_v22  ;;  %v5746_v22 = vld [vmem:[%s8249_s0 + $0x7a8] ss:$20 sps:$4 sm:$0xff]  }
 0x11a   :  { %2568 = vmatprep.mubr.bf16.mxu1 %v5699_v24  ;;  %2824 = vmatprep.mubr.bf16.mxu0 %v5701_v25  ;;  %v5747_v24 = vld [vmem:[%s8249_s0 + $0x350] ss:$20 sps:$4 sm:$0xff]  }
 0x11c   :  { %v6452_v27 = vpop.f32.mrb[4].mxu1 }
 0x11d   :  { %v2356_v28 = vpop.f32.mrb[5].mxu1 }
 0x11e   :  { %v6460_v31 = vpop.f32.mrb[6].mxu1  ;;  %v5750_v28 = vld [vmem:[%s8249_s0 + $0x37c] ss:$20 sps:$4 sm:$0xff]  }
 0x11f   :  { %v2359_v34 = vpop.f32.mrb[7].mxu1 }
 0x120   :  { %v5753_v34 = vld [vmem:[%s8249_s0 + $0x378] ss:$20 sps:$4 sm:$0xff]  }
 0x121   :  { %2569 = vmatmul.mubr.bf16.gmra.mrb[112].mxu1 %v5703_v29  ;;  %2825 = vmatmul.mubr.bf16.gmra.mrb[56].mxu0 %v5704_v30 }
 0x122   :  { %2576 = vmatprep.mubr.bf16.mxu1 %v5705_v32  ;;  %2832 = vmatprep.mubr.bf16.mxu0 %v5707_v33  ;;  %v5752_v33 = vld [vmem:[%s8249_s0 + $0x7d0] ss:$20 sps:$4 sm:$0xff]  }
 0x124   :  { %v6468_v35 = vpop.f32.mrb[8].mxu1 }
 0x125   :  { %v2364_v36 = vpop.f32.mrb[9].mxu1 }
 0x126   :  { %v6476_v39 = vpop.f32.mrb[10].mxu1 }
 0x127   :  { %v2367_v42 = vpop.f32.mrb[11].mxu1 }
 0x129   :  { %2577 = vmatmul.mubr.bf16.gmra.mrb[116].mxu1 %v5709_v37  ;;  %2833 = vmatmul.mubr.bf16.gmra.mrb[60].mxu0 %v5710_v38  ;;  %v5754_v37 = vld [vmem:[%s8249_s0 + $0x7fc] ss:$20 sps:$4 sm:$0xff]   ;;  %v5756_v38 = vld [vmem:[%s8249_s0 + $0x3a4] ss:$20 sps:$4 sm:$0xff]  }
 0x12a   :  { %2584 = vmatprep.mubr.bf16.mxu1 %v5711_v40  ;;  %2840 = vmatprep.mubr.bf16.mxu0 %v5713_v41 }
 0x12c   :  { %v6484_v43 = vpop.f32.mrb[12].mxu1 }
 0x12d   :  { %v2372_v44 = vpop.f32.mrb[13].mxu1 }
 0x12e   :  { %v6492_v47 = vpop.f32.mrb[14].mxu1  ;;  %v5758_v44 = vld [vmem:[%s8249_s0 + $0x7f8] ss:$20 sps:$4 sm:$0xff]  }
 0x12f   :  { %v2375_v50 = vpop.f32.mrb[15].mxu1 }
 0x131   :  { %2585 = vmatmul.mubr.bf16.gmra.mrb[120].mxu1 %v5715_v45  ;;  %2841 = vmatmul.mubr.bf16.gmra.mrb[64].mxu0 %v5716_v46  ;;  %v5759_v45 = vld [vmem:[%s8249_s0 + $0x3a0] ss:$20 sps:$4 sm:$0xff]  }
 0x132   :  { %2592 = vmatprep.mubr.bf16.mxu1 %v5717_v48  ;;  %2848 = vmatprep.mubr.bf16.mxu0 %v5719_v49  ;;  %v5760_v48 = vld [vmem:[%s8249_s0 + $0x824] ss:$20 sps:$4 sm:$0xff]   ;;  %v5762_v49 = vld [vmem:[%s8249_s0 + $0x3cc] ss:$20 sps:$4 sm:$0xff]  }
 0x134   :  { %v6500_v51 = vpop.f32.mrb[16].mxu1 }
 0x135   :  { %v2380_v52 = vpop.f32.mrb[17].mxu1 }
 0x136   :  { %v6508_v55 = vpop.f32.mrb[18].mxu1 }
 0x137   :  { %v2383_v58 = vpop.f32.mrb[19].mxu1 }
 0x138   :  { %v5766_v58 = vld [vmem:[%s8249_s0 + $0x84c] ss:$20 sps:$4 sm:$0xff]  }
 0x139   :  { %2593 = vmatmul.mubr.bf16.gmra.mrb[124].mxu1 %v5721_v53  ;;  %2849 = vmatmul.mubr.bf16.gmra.mrb[68].mxu0 %v5722_v54  ;;  %v5764_v54 = vld [vmem:[%s8249_s0 + $0x820] ss:$20 sps:$4 sm:$0xff]  }
 0x13a   :  { %2600 = vmatprep.mubr.bf16.mxu1 %v5724_v56  ;;  %2856 = vmatprep.mubr.bf16.mxu0 %v5726_v57  ;;  %v5765_v56 = vld [vmem:[%s8249_s0 + $0x3c8] ss:$20 sps:$4 sm:$0xff]  }
 0x13c   :  { %v6516_v59 = vpop.f32.mrb[20].mxu1 }
 0x13d   :  { %v2388_v60 = vpop.f32.mrb[21].mxu1 }
 0x13e   :  { %v6524_v63 = vpop.f32.mrb[22].mxu1  ;;  %v5768_v60 = vld [vmem:[%s8249_s0 + $0x3f4] ss:$20 sps:$4 sm:$0xff]  }
 0x13f   :  { %v2391_v3 = vpop.f32.mrb[23].mxu1 }
 0x140   :  { %v5771_v3 = vld [vmem:[%s8249_s0 + $0x3f0] ss:$20 sps:$4 sm:$0xff]  }
 0x141   :  { %2601 = vmatmul.mubr.bf16.gmra.mrb[128].mxu1 %v5728_v61  ;;  %2857 = vmatmul.mubr.bf16.gmra.mrb[72].mxu0 %v5729_v62 }
 0x142   :  { %2608 = vmatprep.mubr.bf16.mxu1 %v5730_v1  ;;  %2864 = vmatprep.mubr.bf16.mxu0 %v5732_v2  ;;  %v5770_v2 = vld [vmem:[%s8249_s0 + $0x848] ss:$20 sps:$4 sm:$0xff]  }
 0x144   :  { %v6532_v4 = vpop.f32.mrb[24].mxu1 }
 0x145   :  { %v2396_v5 = vpop.f32.mrb[25].mxu1 }
 0x146   :  { %v6540_v8 = vpop.f32.mrb[26].mxu1 }
 0x147   :  { %v2399_v11 = vpop.f32.mrb[27].mxu1 }
 0x149   :  { %2609 = vmatmul.mubr.bf16.gmra.mrb[132].mxu1 %v5734_v6  ;;  %2865 = vmatmul.mubr.bf16.gmra.mrb[76].mxu0 %v5735_v7  ;;  %v5772_v6 = vld [vmem:[%s8249_s0 + $0x874] ss:$20 sps:$4 sm:$0xff]   ;;  %v5774_v7 = vld [vmem:[%s8249_s0 + $0x41c] ss:$20 sps:$4 sm:$0xff]  }
 0x14a   :  { %2616 = vmatprep.mubr.bf16.mxu1 %v5736_v9  ;;  %2872 = vmatprep.mubr.bf16.mxu0 %v5738_v10  ;;  %v348_v10 = vld [vmem:[%s8249_s0 + $0x898] sm:$0x11] }
 0x14c   :  { %v6548_v12 = vpop.f32.mrb[28].mxu1 }
 0x14d   :  { %v2404_v13 = vpop.f32.mrb[29].mxu1 }
 0x14e   :  { %v6556_v15 = vpop.f32.mrb[30].mxu1 }
 0x14f   :  { %v2407_v18 = vpop.f32.mrb[31].mxu1 }
 0x150   :  { %v5779_v18 = vld [vmem:[%s8249_s0 + $0x444] ss:$20 sps:$4 sm:$0xff]  }
 0x151   :  { %2617 = vmatmul.mubr.bf16.gmra.mrb[136].mxu1 %v5740_v0  ;;  %2873 = vmatmul.mubr.bf16.gmra.mrb[80].mxu0 %v5741_v14  ;;  %v5776_v0 = vld [vmem:[%s8249_s0 + $0x870] ss:$20 sps:$4 sm:$0xff]   ;;  %v5777_v14 = vld [vmem:[%s8249_s0 + $0x418] ss:$20 sps:$4 sm:$0xff]  }
 0x152   :  { %2624 = vmatprep.mubr.bf16.mxu1 %v5742_v16  ;;  %2880 = vmatprep.mubr.bf16.mxu0 %v5744_v17  ;;  %v4825_v17 = vcombine.high %v348_v10, %v348_v10 }
 0x154   :  { %v6564_v20 = vpop.f32.mrb[32].mxu1 }
 0x155   :  { %v2412_v21 = vpop.f32.mrb[33].mxu1 }
 0x156   :  { %v6572_v25 = vpop.f32.mrb[34].mxu1 }
 0x157   :  { %v2415_v29 = vpop.f32.mrb[35].mxu1 }
 0x158   :  { %v4824_v29 = vcombine.low %v348_v10, %v348_v10  ;;  %v5792_v10 = vld [vmem:[%s8249_s0 + $0x88] ss:$20 sps:$4 sm:$0xff]  }
 0x159   :  { %2625 = vmatmul.mubr.bf16.gmra.mrb[140].mxu1 %v5746_v22  ;;  %2881 = vmatmul.mubr.bf16.gmra.mrb[84].mxu0 %v5747_v24 }
 0x15a   :  { %2632 = vmatprep.mubr.bf16.mxu1 %v5748_v26  ;;  %2888 = vmatprep.mubr.bf16.mxu0 %v5750_v28 }
 0x15c   :  { %v6580_v30 = vpop.f32.mrb[36].mxu1 }
 0x15d   :  { %v2420_v32 = vpop.f32.mrb[37].mxu1 }
 0x15e   :  { %v6588_v36 = vpop.f32.mrb[38].mxu1  ;;  %v5782_v32 = vld [vmem:[%s8249_s0 + $0x440] ss:$20 sps:$4 sm:$0xff]  }
 0x15f   :  { %v2423_v40 = vpop.f32.mrb[39].mxu1 }
 0x161   :  { %2633 = vmatmul.mubr.bf16.gmra.mrb[144].mxu1 %v5752_v33  ;;  %2889 = vmatmul.mubr.bf16.gmra.mrb[88].mxu0 %v5753_v34 }
 0x162   :  { %2640 = vmatprep.mubr.bf16.mxu1 %v5754_v37  ;;  %2896 = vmatprep.mubr.bf16.mxu0 %v5756_v38  ;;  %v5783_v37 = vld [vmem:[%s8249_s0 + $0x46c] ss:$20 sps:$4 sm:$0xff]   ;;  %v5785_v38 = vld [vmem:[%s8249_s0 + $0x10] ss:$20 sps:$4 sm:$0xff]  }
 0x164   :  { %v6596_v41 = vpop.f32.mrb[40].mxu1 }
 0x165   :  { %v2428_v42 = vpop.f32.mrb[41].mxu1 }
 0x166   :  { %v6604_v46 = vpop.f32.mrb[42].mxu1 }
 0x167   :  { %v2431_v50 = vpop.f32.mrb[43].mxu1 }
 0x168   :  { %v5786_v50 = vld [vmem:[%s8249_s0 + $0x468] ss:$20 sps:$4 sm:$0xff]  }
 0x169   :  { %2641 = vmatmul.mubr.bf16.gmra.mrb[148].mxu1 %v5758_v44  ;;  %2897 = vmatmul.mubr.bf16.gmra.mrb[92].mxu0 %v5759_v45 }
 0x16a   :  { %2648 = vmatprep.mubr.bf16.mxu1 %v5760_v48  ;;  %2904 = vmatprep.mubr.bf16.mxu0 %v5762_v49 }
 0x16c   :  { %v6612_v52 = vpop.f32.mrb[44].mxu1 }
 0x16d   :  { %v2436_v53 = vpop.f32.mrb[45].mxu1 }
 0x16e   :  { %v6620_v57 = vpop.f32.mrb[46].mxu1  ;;  %v5787_v53 = vld [vmem:[%s8249_s0 + $0x38] ss:$20 sps:$4 sm:$0xff]  }
 0x16f   :  { %v2439_v61 = vpop.f32.mrb[47].mxu1 }
 0x171   :  { %2649 = vmatmul.mubr.bf16.gmra.mrb[152].mxu1 %v5764_v54  ;;  %2905 = vmatmul.mubr.bf16.gmra.mrb[96].mxu0 %v5765_v56 }
 0x172   :  { %2656 = vmatprep.mubr.bf16.mxu1 %v5766_v58  ;;  %2912 = vmatprep.mubr.bf16.mxu0 %v5768_v60  ;;  %v5788_v58 = vld [vmem:[%s8249_s0 + $0x494] ss:$20 sps:$4 sm:$0xff]  }
 0x173   :  { %v5790_v60 = vld [vmem:[%s8249_s0 + $0x60] ss:$20 sps:$4 sm:$0xff]  }
 0x174   :  { %v6628_v62 = vpop.f32.mrb[48].mxu1 }
 0x175   :  { %v2444_v1 = vpop.f32.mrb[49].mxu1 }
 0x176   :  { %v6636_v5 = vpop.f32.mrb[50].mxu1 }
 0x177   :  { %v2447_v9 = vpop.f32.mrb[51].mxu1 }
 0x178   :  { %v5791_v9 = vld [vmem:[%s8249_s0 + $0x490] ss:$20 sps:$4 sm:$0xff]  }
 0x179   :  { %2657 = vmatmul.mubr.bf16.gmra.mrb[156].mxu1 %v5770_v2  ;;  %2913 = vmatmul.mubr.bf16.gmra.mrb[100].mxu0 %v5771_v3 }
 0x17a   :  { %2664 = vmatprep.mubr.bf16.mxu1 %v5772_v6  ;;  %2920 = vmatprep.mubr.bf16.mxu0 %v5774_v7 }
 0x17c   :  { %v6647_v11 = vpop.f32.mrb[52].mxu1 }
 0x17d   :  { %v2452_v13 = vpop.f32.mrb[53].mxu1 }
 0x17e   :  { %v6655_v16 = vpop.f32.mrb[54].mxu1 }
 0x17f   :  { %v2455_v21 = vpop.f32.mrb[55].mxu1 }
 0x181   :  { %2665 = vmatmul.mubr.bf16.gmra.mrb[160].mxu1 %v5776_v0  ;;  %2921 = vmatmul.mubr.bf16.gmra.mrb[104].mxu0 %v5777_v14  ;;  %v5793_v14 = vld [vmem:[%s8249_s0 + $0x4bc] ss:$20 sps:$4 sm:$0xff]  }
 0x182   :  { %2672 = vmatprep.mubr.bf16.mxu1 %v4825_v17  ;;  %2928 = vmatprep.mubr.bf16.mxu0 %v5779_v18  ;;  %v5795_v17 = vld [vmem:[%s8249_s0 + $0xb0] ss:$20 sps:$4 sm:$0xff]  }
 0x184   :  { %v6660_v22 = vpop.f32.mrb[56].mxu1  ;;  %v6662_v24 = vpop.f32.mrb[0].mxu0 }
 0x185   :  { %v2460_v26 = vpop.f32.mrb[57].mxu1  ;;  %v2716_v28 = vpop.f32.mrb[1].mxu0 }
 0x186   :  { %v6667_v33 = vpop.f32.mrb[58].mxu1  ;;  %v6669_v34 = vpop.f32.mrb[2].mxu0 }
 0x187   :  { %v2463_v40 = vpop.f32.mrb[59].mxu1  ;;  %v2719_v42 = vpop.f32.mrb[3].mxu0 }
 0x189   :  { %2673 = vmatmul.mubr.bf16.gmra.mrb[164].mxu1 %v4824_v29  ;;  %2929 = vmatmul.mubr.bf16.gmra.mrb[108].mxu0 %v5782_v32 }
 0x18a   :  { %2936 = vmatprep.mubr.bf16.mxu0 %v5783_v37  ;;  %5213 = vmatprep.mubr.msk.bf16.mxu1 %vm2031_vm0, %v5785_v38  ;;  %v5796_v37 = vld [vmem:[%s8249_s0 + $0x4b8] ss:$20 sps:$4 sm:$0xff]  }
 0x18b   :  { %v5797_v38 = vld [vmem:[%s8249_s0 + $0xd8] ss:$20 sps:$4 sm:$0xff]  }
 0x18c   :  { %v6678_v44 = vpop.f32.mrb[60].mxu1  ;;  %v6680_v45 = vpop.f32.mrb[4].mxu0 }
 0x18d   :  { %v2468_v48 = vpop.f32.mrb[61].mxu1  ;;  %v2724_v49 = vpop.f32.mrb[5].mxu0 }
 0x18e   :  { %v6688_v54 = vpop.f32.mrb[62].mxu1  ;;  %v6690_v56 = vpop.f32.mrb[6].mxu0  ;;  %v5798_v48 = vld [vmem:[%s8249_s0 + $0x4e4] ss:$20 sps:$4 sm:$0xff]   ;;  %v5800_v49 = vld [vmem:[%s8249_s0 + $0x100] ss:$20 sps:$4 sm:$0xff]  }
 0x18f   :  { %v2471_v61 = vpop.f32.mrb[63].mxu1  ;;  %v2727_v1 = vpop.f32.mrb[7].mxu0 }
 0x191   :  { %2937 = vmatmul.mubr.bf16.gmra.mrb[112].mxu0 %v5786_v50  ;;  %5214 = vmatmul.mubr.msk.bf16.vlgmr.msra.gmra.mrb[168].mxu1 %vm2031_vm0, %v5787_v53 }
 0x192   :  { %2944 = vmatprep.mubr.bf16.mxu0 %v5788_v58  ;;  %5217 = vmatprep.mubr.msk.bf16.mxu1 %vm2031_vm0, %v5790_v60 }
 0x194   :  { %v6700_v2 = vpop.f32.mrb[64].mxu1  ;;  %v6702_v3 = vpop.f32.mrb[8].mxu0 }
 0x195   :  { %v2476_v6 = vpop.f32.mrb[65].mxu1  ;;  %v2732_v7 = vpop.f32.mrb[9].mxu0 }
 0x196   :  { %v6710_v13 = vpop.f32.mrb[66].mxu1  ;;  %v6712_v0 = vpop.f32.mrb[10].mxu0  ;;  %v5801_v6 = vld [vmem:[%s8249_s0 + $0x4e0] ss:$20 sps:$4 sm:$0xff]   ;;  %v5802_v7 = vld [vmem:[%s8249_s0 + $0x128] ss:$20 sps:$4 sm:$0xff]  }
 0x197   :  { %v2479_v18 = vpop.f32.mrb[67].mxu1  ;;  %v2735_v21 = vpop.f32.mrb[11].mxu0 }
 0x199   :  { %2945 = vmatmul.mubr.bf16.gmra.mrb[116].mxu0 %v5791_v9  ;;  %5218 = vmatmul.mubr.msk.bf16.gmra.mrb[172].mxu1 %vm2031_vm0, %v5792_v10 }
 0x19a   :  { %2952 = vmatprep.mubr.bf16.mxu0 %v5793_v14  ;;  %5221 = vmatprep.mubr.msk.bf16.mxu1 %vm2031_vm0, %v5795_v17  ;;  %v5803_v14 = vld [vmem:[%s8249_s0 + $0x50c] ss:$20 sps:$4 sm:$0xff]   ;;  %v5805_v17 = vld [vmem:[%s8249_s0 + $0x150] ss:$20 sps:$4 sm:$0xff]  }
 0x19c   :  { %v6722_v26 = vpop.f32.mrb[68].mxu1  ;;  %v6724_v28 = vpop.f32.mrb[12].mxu0 }
 0x19d   :  { %v2484_v29 = vpop.f32.mrb[69].mxu1  ;;  %v2740_v32 = vpop.f32.mrb[13].mxu0 }
 0x19e   :  { %v6732_v40 = vpop.f32.mrb[70].mxu1  ;;  %v6734_v42 = vpop.f32.mrb[14].mxu0 }
 0x19f   :  { %v2487_v50 = vpop.f32.mrb[71].mxu1  ;;  %v2743_v53 = vpop.f32.mrb[15].mxu0 }
 0x1a1   :  { %2953 = vmatmul.mubr.bf16.gmra.mrb[120].mxu0 %v5796_v37  ;;  %5222 = vmatmul.mubr.msk.bf16.gmra.mrb[176].mxu1 %vm2031_vm0, %v5797_v38 }
 0x1a2   :  { %2960 = vmatprep.mubr.bf16.mxu0 %v5798_v48  ;;  %5225 = vmatprep.mubr.msk.bf16.mxu1 %vm2031_vm0, %v5800_v49  ;;  %v5806_v48 = vld [vmem:[%s8249_s0 + $0x508] ss:$20 sps:$4 sm:$0xff]   ;;  %v5807_v49 = vld [vmem:[%s8249_s0 + $0x178] ss:$20 sps:$4 sm:$0xff]  }
 0x1a4   :  { %v6744_v58 = vpop.f32.mrb[72].mxu1  ;;  %v6746_v60 = vpop.f32.mrb[16].mxu0 }
 0x1a5   :  { %8253 = vst [vmem:[#allocation2_spill] sm:$0xff] %v6744_v58  ;;  %v2492_v61 = vpop.f32.mrb[73].mxu1  ;;  %v2748_v1 = vpop.f32.mrb[17].mxu0  ;;  %v5851_v58 = vld [vmem:[%s8249_s0 + $0x670] ss:$20 sps:$4 sm:$0xff]  }
 0x1a6   :  { %v6754_v9 = vpop.f32.mrb[74].mxu1  ;;  %v6756_v10 = vpop.f32.mrb[18].mxu0  ;;  %v5808_v61 = vld [vmem:[%s8249_s0 + $0x534] ss:$20 sps:$4 sm:$0xff]  }
 0x1a7   :  { %8254 = vst [vmem:[#allocation3_spill] sm:$0xff] %v6754_v9  ;;  %v2495_v18 = vpop.f32.mrb[75].mxu1  ;;  %v2751_v21 = vpop.f32.mrb[19].mxu0  ;;  %v5810_v1 = vld [vmem:[%s8249_s0 + $0x1a0] ss:$20 sps:$4 sm:$0xff]  }
 0x1a8   :  { %v5821_v9 = vld [vmem:[%s8249_s0 + $0x580] ss:$20 sps:$4 sm:$0xff]  }
 0x1a9   :  { %2961 = vmatmul.mubr.bf16.gmra.mrb[124].mxu0 %v5801_v6  ;;  %5226 = vmatmul.mubr.msk.bf16.gmra.mrb[180].mxu1 %vm2031_vm0, %v5802_v7 }
 0x1aa   :  { %2968 = vmatprep.mubr.bf16.mxu0 %v5803_v14  ;;  %5229 = vmatprep.mubr.msk.bf16.mxu1 %vm2031_vm0, %v5805_v17 }
 0x1ac   :  { %v6766_v29 = vpop.f32.mrb[76].mxu1  ;;  %v6768_v32 = vpop.f32.mrb[20].mxu0 }
 0x1ad   :  { %8255 = vst [vmem:[#allocation4_spill] sm:$0xff] %v6766_v29  ;;  %v2500_v37 = vpop.f32.mrb[77].mxu1  ;;  %v2756_v38 = vpop.f32.mrb[21].mxu0 }
 0x1ae   :  { %v6776_v50 = vpop.f32.mrb[78].mxu1  ;;  %v6778_v53 = vpop.f32.mrb[22].mxu0  ;;  %v5811_v37 = vld [vmem:[%s8249_s0 + $0x530] ss:$20 sps:$4 sm:$0xff]   ;;  %v5812_v38 = vld [vmem:[%s8249_s0 + $0x1c8] ss:$20 sps:$4 sm:$0xff]  }
 0x1af   :  { %8256 = vst [vmem:[#allocation5_spill] sm:$0xff] %v6776_v50  ;;  %v2503_v6 = vpop.f32.mrb[79].mxu1  ;;  %v2759_v7 = vpop.f32.mrb[23].mxu0  ;;  %v5816_v50 = vld [vmem:[%s8249_s0 + $0x558] ss:$20 sps:$4 sm:$0xff]  }
 0x1b1   :  { %2969 = vmatmul.mubr.bf16.gmra.mrb[128].mxu0 %v5806_v48  ;;  %5230 = vmatmul.mubr.msk.bf16.gmra.mrb[184].mxu1 %vm2031_vm0, %v5807_v49 }
 0x1b2   :  { %2976 = vmatprep.mubr.bf16.mxu0 %v5808_v61  ;;  %5233 = vmatprep.mubr.msk.bf16.mxu1 %vm2031_vm0, %v5810_v1  ;;  %v5813_v61 = vld [vmem:[%s8249_s0 + $0x55c] ss:$20 sps:$4 sm:$0xff]  }
 0x1b3   :  { %v5815_v1 = vld [vmem:[%s8249_s0 + $0x1f0] ss:$20 sps:$4 sm:$0xff]  }
 0x1b4   :  { %v6788_v14 = vpop.f32.mrb[80].mxu1  ;;  %v6790_v17 = vpop.f32.mrb[24].mxu0 }
 0x1b5   :  { %8257 = vst [vmem:[#allocation6_spill] sm:$0xff] %v6788_v14  ;;  %v2508_v18 = vpop.f32.mrb[81].mxu1  ;;  %v2764_v21 = vpop.f32.mrb[25].mxu0 }
 0x1b6   :  { %v6798_v48 = vpop.f32.mrb[82].mxu1  ;;  %v6800_v49 = vpop.f32.mrb[26].mxu0 }
 0x1b7   :  { %8258 = vst [vmem:[#allocation7_spill] sm:$0xff] %v6798_v48  ;;  %v2511_v6 = vpop.f32.mrb[83].mxu1  ;;  %v2767_v7 = vpop.f32.mrb[27].mxu0 }
 0x1b8   :  { %v5817_v6 = vld [vmem:[%s8249_s0 + $0x218] ss:$20 sps:$4 sm:$0xff]  }
 0x1b9   :  { %2977 = vmatmul.mubr.bf16.gmra.mrb[132].mxu0 %v5811_v37  ;;  %5234 = vmatmul.mubr.msk.bf16.gmra.mrb[188].mxu1 %vm2031_vm0, %v5812_v38 }
 0x1ba   :  { %2984 = vmatprep.mubr.bf16.mxu0 %v5813_v61  ;;  %5237 = vmatprep.mubr.msk.bf16.mxu1 %vm2031_vm0, %v5815_v1  ;;  %v5818_v61 = vld [vmem:[%s8249_s0 + $0x584] ss:$20 sps:$4 sm:$0xff]  }
 0x1bc   :  { %v6810_v18 = vpop.f32.mrb[84].mxu1  ;;  %v6812_v21 = vpop.f32.mrb[28].mxu0 }
 0x1bd   :  { %8259 = vst [vmem:[#allocation8_spill] sm:$0xff] %v6810_v18  ;;  %v2516_v48 = vpop.f32.mrb[85].mxu1  ;;  %v2772_v14 = vpop.f32.mrb[29].mxu0 }
 0x1be   :  { %v6820_v37 = vpop.f32.mrb[86].mxu1  ;;  %v6822_v38 = vpop.f32.mrb[30].mxu0  ;;  %v5820_v14 = vld [vmem:[%s8249_s0 + $0x240] ss:$20 sps:$4 sm:$0xff]  }
 0x1bf   :  { %8260 = vst [vmem:[#allocation9_spill] sm:$0xff] %v6820_v37  ;;  %v2519_v48 = vpop.f32.mrb[87].mxu1  ;;  %v2775_v1 = vpop.f32.mrb[31].mxu0 }
 0x1c0   :  { %v5822_v48 = vld [vmem:[%s8249_s0 + $0x268] ss:$20 sps:$4 sm:$0xff]  }
 0x1c1   :  { %2985 = vmatmul.mubr.bf16.gmra.mrb[136].mxu0 %v5816_v50  ;;  %5238 = vmatmul.mubr.msk.bf16.gmra.mrb[192].mxu1 %vm2031_vm0, %v5817_v6 }
 0x1c2   :  { %2992 = vmatprep.mubr.bf16.mxu0 %v5818_v61  ;;  %5241 = vmatprep.mubr.msk.bf16.mxu1 %vm2031_vm0, %v5820_v14  ;;  %v5823_v61 = vld [vmem:[%s8249_s0 + $0x5ac] ss:$20 sps:$4 sm:$0xff]  }
 0x1c4   :  { %v6832_v7 = vpop.f32.mrb[88].mxu1  ;;  %v6834_v37 = vpop.f32.mrb[32].mxu0 }
 0x1c5   :  { %8261 = vst [vmem:[#allocation10_spill] sm:$0xff] %v6832_v7  ;;  %8262 = vst [vmem:[#allocation11_spill] sm:$0xff] %v6834_v37  ;;  %v2524_v18 = vpop.f32.mrb[89].mxu1  ;;  %v2780_v29 = vpop.f32.mrb[33].mxu0  ;;  %v5826_v37 = vld [vmem:[%s8249_s0 + $0x5a8] ss:$20 sps:$4 sm:$0xff]  }
 0x1c6   :  { %v6842_v50 = vpop.f32.mrb[90].mxu1  ;;  %v6844_v6 = vpop.f32.mrb[34].mxu0  ;;  %v5825_v29 = vld [vmem:[%s8249_s0 + $0x290] ss:$20 sps:$4 sm:$0xff]  }
 0x1c7   :  { %8263 = vst [vmem:[#allocation12_spill] sm:$0xff] %v6842_v50  ;;  %8264 = vst [vmem:[#allocation13_spill] sm:$0xff] %v6844_v6  ;;  %v2527_v18 = vpop.f32.mrb[91].mxu1  ;;  %v2783_v14 = vpop.f32.mrb[35].mxu0 }
 0x1c8   :  { %v5827_v18 = vld [vmem:[%s8249_s0 + $0x2b8] ss:$20 sps:$4 sm:$0xff]  }
 0x1c9   :  { %2993 = vmatmul.mubr.bf16.gmra.mrb[140].mxu0 %v5821_v9  ;;  %5242 = vmatmul.mubr.msk.bf16.gmra.mrb[196].mxu1 %vm2031_vm0, %v5822_v48 }
 0x1ca   :  { %3000 = vmatprep.mubr.bf16.mxu0 %v5823_v61  ;;  %5245 = vmatprep.mubr.msk.bf16.mxu1 %vm2031_vm0, %v5825_v29  ;;  %v5828_v61 = vld [vmem:[%s8249_s0 + $0x5d4] ss:$20 sps:$4 sm:$0xff]  }
 0x1cc   :  { %v6854_v1 = vpop.f32.mrb[92].mxu1  ;;  %v6856_v50 = vpop.f32.mrb[36].mxu0 }
 0x1cd   :  { %8265 = vst [vmem:[#allocation14_spill] sm:$0xff] %v6854_v1  ;;  %8266 = vst [vmem:[#allocation15_spill] sm:$0xff] %v6856_v50  ;;  %v2532_v7 = vpop.f32.mrb[93].mxu1  ;;  %v2788_v6 = vpop.f32.mrb[37].mxu0  ;;  %v5831_v50 = vld [vmem:[%s8249_s0 + $0x5d0] ss:$20 sps:$4 sm:$0xff]  }
 0x1ce   :  { %v6864_v9 = vpop.f32.mrb[94].mxu1  ;;  %v6866_v48 = vpop.f32.mrb[38].mxu0  ;;  %v5830_v7 = vld [vmem:[%s8249_s0 + $0x2e0] ss:$20 sps:$4 sm:$0xff]  }
 0x1cf   :  { %8267 = vst [vmem:[#allocation16_spill] sm:$0xff] %v6864_v9  ;;  %8268 = vst [vmem:[#allocation17_spill] sm:$0xff] %v6866_v48  ;;  %v2535_v6 = vpop.f32.mrb[95].mxu1  ;;  %v2791_v29 = vpop.f32.mrb[39].mxu0 }
 0x1d0   :  { %v5832_v6 = vld [vmem:[%s8249_s0 + $0x308] ss:$20 sps:$4 sm:$0xff]  }
 0x1d1   :  { %3001 = vmatmul.mubr.bf16.gmra.mrb[144].mxu0 %v5826_v37  ;;  %5246 = vmatmul.mubr.msk.bf16.gmra.mrb[200].mxu1 %vm2031_vm0, %v5827_v18 }
 0x1d2   :  { %3008 = vmatprep.mubr.bf16.mxu0 %v5828_v61  ;;  %5249 = vmatprep.mubr.msk.bf16.mxu1 %vm2031_vm0, %v5830_v7  ;;  %v5833_v61 = vld [vmem:[%s8249_s0 + $0x5fc] ss:$20 sps:$4 sm:$0xff]  }
 0x1d4   :  { %v6876_v14 = vpop.f32.mrb[96].mxu1  ;;  %v6878_v9 = vpop.f32.mrb[40].mxu0 }
 0x1d5   :  { %8269 = vst [vmem:[#allocation18_spill] sm:$0xff] %v6876_v14  ;;  %8270 = vst [vmem:[#allocation19_spill] sm:$0xff] %v6878_v9  ;;  %v2540_v1 = vpop.f32.mrb[97].mxu1  ;;  %v2796_v48 = vpop.f32.mrb[41].mxu0  ;;  %v5836_v9 = vld [vmem:[%s8249_s0 + $0x5f8] ss:$20 sps:$4 sm:$0xff]  }
 0x1d6   :  { %v6886_v37 = vpop.f32.mrb[98].mxu1  ;;  %v6888_v18 = vpop.f32.mrb[42].mxu0  ;;  %v5835_v1 = vld [vmem:[%s8249_s0 + $0x330] ss:$20 sps:$4 sm:$0xff]  }
 0x1d7   :  { %8271 = vst [vmem:[#allocation20_spill] sm:$0xff] %v6886_v37  ;;  %8272 = vst [vmem:[#allocation21_spill] sm:$0xff] %v6888_v18  ;;  %v2543_v48 = vpop.f32.mrb[99].mxu1  ;;  %v2799_v7 = vpop.f32.mrb[43].mxu0 }
 0x1d8   :  { %v5837_v48 = vld [vmem:[%s8249_s0 + $0x358] ss:$20 sps:$4 sm:$0xff]  }
 0x1d9   :  { %3009 = vmatmul.mubr.bf16.gmra.mrb[148].mxu0 %v5831_v50  ;;  %5250 = vmatmul.mubr.msk.bf16.gmra.mrb[204].mxu1 %vm2031_vm0, %v5832_v6 }
 0x1da   :  { %3016 = vmatprep.mubr.bf16.mxu0 %v5833_v61  ;;  %5253 = vmatprep.mubr.msk.bf16.mxu1 %vm2031_vm0, %v5835_v1  ;;  %v5838_v61 = vld [vmem:[%s8249_s0 + $0x624] ss:$20 sps:$4 sm:$0xff]  }
 0x1dc   :  { %v6898_v29 = vpop.f32.mrb[100].mxu1  ;;  %v6900_v37 = vpop.f32.mrb[44].mxu0 }
 0x1dd   :  { %8273 = vst [vmem:[#allocation22_spill] sm:$0xff] %v6898_v29  ;;  %8274 = vst [vmem:[#allocation23_spill] sm:$0xff] %v6900_v37  ;;  %v2548_v14 = vpop.f32.mrb[101].mxu1  ;;  %v2804_v18 = vpop.f32.mrb[45].mxu0  ;;  %v5841_v37 = vld [vmem:[%s8249_s0 + $0x620] ss:$20 sps:$4 sm:$0xff]  }
 0x1de   :  { %v6908_v50 = vpop.f32.mrb[102].mxu1  ;;  %v6910_v6 = vpop.f32.mrb[46].mxu0  ;;  %v5840_v14 = vld [vmem:[%s8249_s0 + $0x380] ss:$20 sps:$4 sm:$0xff]  }
 0x1df   :  { %8275 = vst [vmem:[#allocation24_spill] sm:$0xff] %v6908_v50  ;;  %8276 = vst [vmem:[#allocation25_spill] sm:$0xff] %v6910_v6  ;;  %v2551_v18 = vpop.f32.mrb[103].mxu1  ;;  %v2807_v1 = vpop.f32.mrb[47].mxu0 }
 0x1e0   :  { %v5842_v18 = vld [vmem:[%s8249_s0 + $0x3a8] ss:$20 sps:$4 sm:$0xff]  }
 0x1e1   :  { %3017 = vmatmul.mubr.bf16.gmra.mrb[152].mxu0 %v5836_v9  ;;  %5254 = vmatmul.mubr.msk.bf16.gmra.mrb[208].mxu1 %vm2031_vm0, %v5837_v48 }
 0x1e2   :  { %3024 = vmatprep.mubr.bf16.mxu0 %v5838_v61  ;;  %5257 = vmatprep.mubr.msk.bf16.mxu1 %vm2031_vm0, %v5840_v14  ;;  %v5843_v61 = vld [vmem:[%s8249_s0 + $0x64c] ss:$20 sps:$4 sm:$0xff]  }
 0x1e4   :  { %v6920_v7 = vpop.f32.mrb[104].mxu1  ;;  %v6922_v50 = vpop.f32.mrb[48].mxu0 }
 0x1e5   :  { %8277 = vst [vmem:[#allocation26_spill] sm:$0xff] %v6920_v7  ;;  %8278 = vst [vmem:[#allocation27_spill] sm:$0xff] %v6922_v50  ;;  %v2556_v29 = vpop.f32.mrb[105].mxu1  ;;  %v2812_v6 = vpop.f32.mrb[49].mxu0  ;;  %v5846_v50 = vld [vmem:[%s8249_s0 + $0x648] ss:$20 sps:$4 sm:$0xff]  }
 0x1e6   :  { %v6930_v9 = vpop.f32.mrb[106].mxu1  ;;  %v6932_v48 = vpop.f32.mrb[50].mxu0  ;;  %v5845_v29 = vld [vmem:[%s8249_s0 + $0x3d0] ss:$20 sps:$4 sm:$0xff]  }
 0x1e7   :  { %8279 = vst [vmem:[#allocation28_spill] sm:$0xff] %v6930_v9  ;;  %8280 = vst [vmem:[#allocation29_spill] sm:$0xff] %v6932_v48  ;;  %v2559_v6 = vpop.f32.mrb[107].mxu1  ;;  %v2815_v14 = vpop.f32.mrb[51].mxu0 }
 0x1e8   :  { %v5847_v6 = vld [vmem:[%s8249_s0 + $0x3f8] ss:$20 sps:$4 sm:$0xff]  }
 0x1e9   :  { %3025 = vmatmul.mubr.bf16.gmra.mrb[156].mxu0 %v5841_v37  ;;  %5258 = vmatmul.mubr.msk.bf16.gmra.mrb[212].mxu1 %vm2031_vm0, %v5842_v18 }
 0x1ea   :  { %3032 = vmatprep.mubr.bf16.mxu0 %v5843_v61  ;;  %5261 = vmatprep.mubr.msk.bf16.mxu1 %vm2031_vm0, %v5845_v29  ;;  %v5848_v61 = vld [vmem:[%s8249_s0 + $0x674] ss:$20 sps:$4 sm:$0xff]  }
 0x1ec   :  { %v6942_v1 = vpop.f32.mrb[108].mxu1  ;;  %v6944_v9 = vpop.f32.mrb[52].mxu0 }
 0x1ed   :  { %8281 = vst [vmem:[#allocation30_spill] sm:$0xff] %v6942_v1  ;;  %8282 = vst [vmem:[#allocation31_spill] sm:$0xff] %v6944_v9  ;;  %v2564_v7 = vpop.f32.mrb[109].mxu1  ;;  %v2820_v48 = vpop.f32.mrb[53].mxu0 }
 0x1ee   :  { %v6952_v37 = vpop.f32.mrb[110].mxu1  ;;  %v6954_v18 = vpop.f32.mrb[54].mxu0  ;;  %v5850_v7 = vld [vmem:[%s8249_s0 + $0x420] ss:$20 sps:$4 sm:$0xff]  }
 0x1ef   :  { %8283 = vst [vmem:[#allocation32_spill] sm:$0xff] %v6952_v37  ;;  %8284 = vst [vmem:[#allocation33_spill] sm:$0xff] %v6954_v18  ;;  %v2567_v48 = vpop.f32.mrb[111].mxu1  ;;  %v2823_v29 = vpop.f32.mrb[55].mxu0 }
 0x1f1   :  { %3033 = vmatmul.mubr.bf16.gmra.mrb[160].mxu0 %v5846_v50  ;;  %5262 = vmatmul.mubr.msk.bf16.gmra.mrb[216].mxu1 %vm2031_vm0, %v5847_v6  ;;  %v5852_v50 = vld [vmem:[%s8249_s0 + $0x448] ss:$20 sps:$4 sm:$0xff]  }
 0x1f2   :  { %3040 = vmatprep.mubr.bf16.mxu0 %v5848_v61  ;;  %5265 = vmatprep.mubr.msk.bf16.mxu1 %vm2031_vm0, %v5850_v7  ;;  %v5853_v7 = vld [vmem:[%s8249_s0 + $0x69c] ss:$20 sps:$4 sm:$0xff]  }
 0x1f4   :  { %v6964_v14 = vpop.f32.mrb[112].mxu1  ;;  %v2826_v37 = vpop.f32.mrb[56].mxu0 }
 0x1f5   :  { %8285 = vst [vmem:[#allocation34_spill] sm:$0xff] %v6964_v14  ;;  %v6967_v1 = vadd.f32 %v2826_v37, %v6436_v19  ;;  %v2572_v18 = vpop.f32.mrb[113].mxu1  ;;  %v2828_v9 = vpop.f32.mrb[57].mxu0  ;;  %v5855_v19 = vld [vmem:[%s8249_s0 + $0x470] ss:$20 sps:$4 sm:$0xff]  }
 0x1f6   :  { %v6975_v6 = vpop.f32.mrb[114].mxu1  ;;  %v2829_v61 = vpop.f32.mrb[58].mxu0 }
 0x1f7   :  { %8286 = vst [vmem:[#allocation35_spill] sm:$0xff] %v6967_v1  ;;  %8287 = vst [vmem:[#allocation36_spill] sm:$0xff] %v6975_v6  ;;  %v6984_v9 = vadd.f32 %v2829_v61, %v6444_v23  ;;  %v2575_v37 = vpop.f32.mrb[115].mxu1  ;;  %v2831_v18 = vpop.f32.mrb[59].mxu0  ;;  %v5856_v23 = vld [vmem:[%s8249_s0 + $0x698] ss:$20 sps:$4 sm:$0xff]  }
 0x1f9   :  { %3041 = vmatmul.mubr.bf16.gmra.mrb[164].mxu0 %v5851_v58  ;;  %5266 = vmatmul.mubr.msk.bf16.gmra.mrb[220].mxu1 %vm2031_vm0, %v5852_v50  ;;  %v5857_v58 = vld [vmem:[%s8249_s0 + $0x498] ss:$20 sps:$4 sm:$0xff]  }
 0x1fa   :  { %3048 = vmatprep.mubr.bf16.mxu0 %v5853_v7  ;;  %5269 = vmatprep.mubr.msk.bf16.mxu1 %vm2031_vm0, %v5855_v19  ;;  %v5858_v7 = vld [vmem:[%s8249_s0 + $0x6c4] ss:$20 sps:$4 sm:$0xff]  }
 0x1fc   :  { %v6988_v48 = vpop.f32.mrb[116].mxu1  ;;  %v2834_v29 = vpop.f32.mrb[60].mxu0 }
 0x1fd   :  { %8288 = vst [vmem:[#allocation37_spill] sm:$0xff] %v6988_v48  ;;  %v6991_v6 = vadd.f32 %v2834_v29, %v6452_v27  ;;  %v2580_v14 = vpop.f32.mrb[117].mxu1  ;;  %v2836_v1 = vpop.f32.mrb[61].mxu0  ;;  %v5860_v27 = vld [vmem:[%s8249_s0 + $0x4c0] ss:$20 sps:$4 sm:$0xff]  }
 0x1fe   :  { %v6999_v50 = vpop.f32.mrb[118].mxu1  ;;  %v2837_v61 = vpop.f32.mrb[62].mxu0 }
 0x1ff   :  { %8289 = vst [vmem:[#allocation38_spill] sm:$0xff] %v6999_v50  ;;  %v7008_v1 = vadd.f32 %v2837_v61, %v6460_v31  ;;  %v2583_v14 = vpop.f32.mrb[119].mxu1  ;;  %v2839_v19 = vpop.f32.mrb[63].mxu0  ;;  %v5861_v31 = vld [vmem:[%s8249_s0 + $0x6c0] ss:$20 sps:$4 sm:$0xff]  }
 0x201   :  { %3049 = vmatmul.mubr.bf16.gmra.mrb[168].mxu0 %v5856_v23  ;;  %5270 = vmatmul.mubr.msk.bf16.gmra.mrb[224].mxu1 %vm2031_vm0, %v5857_v58  ;;  %v5862_v23 = vld [vmem:[%s8249_s0 + $0x4e8] ss:$20 sps:$4 sm:$0xff]  }
 0x202   :  { %3056 = vmatprep.mubr.bf16.mxu0 %v5858_v7  ;;  %5273 = vmatprep.mubr.msk.bf16.mxu1 %vm2031_vm0, %v5860_v27  ;;  %v5863_v7 = vld [vmem:[%s8249_s0 + $0x6ec] ss:$20 sps:$4 sm:$0xff]  }
 0x204   :  { %v7012_v37 = vpop.f32.mrb[120].mxu1  ;;  %v2842_v18 = vpop.f32.mrb[64].mxu0 }
 0x205   :  { %8290 = vst [vmem:[#allocation39_spill] sm:$0xff] %v7012_v37  ;;  %v7015_v29 = vadd.f32 %v2842_v18, %v6468_v35  ;;  %v2588_v50 = vpop.f32.mrb[121].mxu1  ;;  %v2844_v48 = vpop.f32.mrb[65].mxu0  ;;  %v5865_v35 = vld [vmem:[%s8249_s0 + $0x510] ss:$20 sps:$4 sm:$0xff]  }
 0x206   :  { %v7023_v58 = vpop.f32.mrb[122].mxu1  ;;  %v2845_v61 = vpop.f32.mrb[66].mxu0 }
 0x207   :  { %8291 = vst [vmem:[#allocation40_spill] sm:$0xff] %v7023_v58  ;;  %v7032_v48 = vadd.f32 %v2845_v61, %v6476_v39  ;;  %v2591_v50 = vpop.f32.mrb[123].mxu1  ;;  %v2847_v27 = vpop.f32.mrb[67].mxu0  ;;  %v5866_v39 = vld [vmem:[%s8249_s0 + $0x6e8] ss:$20 sps:$4 sm:$0xff]  }
 0x209   :  { %3057 = vmatmul.mubr.bf16.gmra.mrb[172].mxu0 %v5861_v31  ;;  %5274 = vmatmul.mubr.msk.bf16.gmra.mrb[228].mxu1 %vm2031_vm0, %v5862_v23  ;;  %v5867_v31 = vld [vmem:[%s8249_s0 + $0x538] ss:$20 sps:$4 sm:$0xff]  }
 0x20a   :  { %3064 = vmatprep.mubr.bf16.mxu0 %v5863_v7  ;;  %5277 = vmatprep.mubr.msk.bf16.mxu1 %vm2031_vm0, %v5865_v35  ;;  %v5868_v7 = vld [vmem:[%s8249_s0 + $0x714] ss:$20 sps:$4 sm:$0xff]  }
 0x20c   :  { %v7036_v14 = vpop.f32.mrb[124].mxu1  ;;  %v2850_v19 = vpop.f32.mrb[68].mxu0 }
 0x20d   :  { %8292 = vst [vmem:[#allocation41_spill] sm:$0xff] %v7036_v14  ;;  %v7039_v18 = vadd.f32 %v2850_v19, %v6484_v43  ;;  %v2596_v58 = vpop.f32.mrb[125].mxu1  ;;  %v2852_v37 = vpop.f32.mrb[69].mxu0  ;;  %v5870_v43 = vld [vmem:[%s8249_s0 + $0x560] ss:$20 sps:$4 sm:$0xff]  }
 0x20e   :  { %v7047_v23 = vpop.f32.mrb[126].mxu1  ;;  %v2853_v61 = vpop.f32.mrb[70].mxu0 }
 0x20f   :  { %8293 = vst [vmem:[#allocation42_spill] sm:$0xff] %v7047_v23  ;;  %v7056_v37 = vadd.f32 %v2853_v61, %v6492_v47  ;;  %v2599_v58 = vpop.f32.mrb[127].mxu1  ;;  %v2855_v35 = vpop.f32.mrb[71].mxu0  ;;  %v5871_v47 = vld [vmem:[%s8249_s0 + $0x710] ss:$20 sps:$4 sm:$0xff]  }
 0x211   :  { %3065 = vmatmul.mubr.bf16.gmra.mrb[176].mxu0 %v5866_v39  ;;  %5278 = vmatmul.mubr.msk.bf16.gmra.mrb[232].mxu1 %vm2031_vm0, %v5867_v31  ;;  %v5872_v39 = vld [vmem:[%s8249_s0 + $0x588] ss:$20 sps:$4 sm:$0xff]  }
 0x212   :  { %3072 = vmatprep.mubr.bf16.mxu0 %v5868_v7  ;;  %5281 = vmatprep.mubr.msk.bf16.mxu1 %vm2031_vm0, %v5870_v43  ;;  %v5873_v7 = vld [vmem:[%s8249_s0 + $0x73c] ss:$20 sps:$4 sm:$0xff]  }
 0x214   :  { %v7060_v50 = vpop.f32.mrb[128].mxu1  ;;  %v2858_v27 = vpop.f32.mrb[72].mxu0 }
 0x215   :  { %8294 = vst [vmem:[#allocation43_spill] sm:$0xff] %v7060_v50  ;;  %v7063_v19 = vadd.f32 %v2858_v27, %v6500_v51  ;;  %v2604_v23 = vpop.f32.mrb[129].mxu1  ;;  %v2860_v14 = vpop.f32.mrb[73].mxu0  ;;  %v5875_v51 = vld [vmem:[%s8249_s0 + $0x5b0] ss:$20 sps:$4 sm:$0xff]  }
 0x216   :  { %v7071_v31 = vpop.f32.mrb[130].mxu1  ;;  %v2861_v61 = vpop.f32.mrb[74].mxu0 }
 0x217   :  { %8295 = vst [vmem:[#allocation44_spill] sm:$0xff] %v7071_v31  ;;  %v7080_v14 = vadd.f32 %v2861_v61, %v6508_v55  ;;  %v2607_v23 = vpop.f32.mrb[131].mxu1  ;;  %v2863_v43 = vpop.f32.mrb[75].mxu0  ;;  %v5876_v55 = vld [vmem:[%s8249_s0 + $0x738] ss:$20 sps:$4 sm:$0xff]  }
 0x219   :  { %3073 = vmatmul.mubr.bf16.gmra.mrb[180].mxu0 %v5871_v47  ;;  %5282 = vmatmul.mubr.msk.bf16.gmra.mrb[236].mxu1 %vm2031_vm0, %v5872_v39  ;;  %v5877_v47 = vld [vmem:[%s8249_s0 + $0x5d8] ss:$20 sps:$4 sm:$0xff]  }
 0x21a   :  { %3080 = vmatprep.mubr.bf16.mxu0 %v5873_v7  ;;  %5285 = vmatprep.mubr.msk.bf16.mxu1 %vm2031_vm0, %v5875_v51  ;;  %v5878_v7 = vld [vmem:[%s8249_s0 + $0x764] ss:$20 sps:$4 sm:$0xff]  }
 0x21c   :  { %v7084_v58 = vpop.f32.mrb[132].mxu1  ;;  %v2866_v35 = vpop.f32.mrb[76].mxu0 }
 0x21d   :  { %8296 = vst [vmem:[#allocation45_spill] sm:$0xff] %v7084_v58  ;;  %v7087_v27 = vadd.f32 %v2866_v35, %v6516_v59  ;;  %v2612_v31 = vpop.f32.mrb[133].mxu1  ;;  %v2868_v50 = vpop.f32.mrb[77].mxu0  ;;  %v5880_v59 = vld [vmem:[%s8249_s0 + $0x600] ss:$20 sps:$4 sm:$0xff]  }
 0x21e   :  { %v7095_v39 = vpop.f32.mrb[134].mxu1  ;;  %v2869_v61 = vpop.f32.mrb[78].mxu0 }
 0x21f   :  { %8297 = vst [vmem:[#allocation46_spill] sm:$0xff] %v7095_v39  ;;  %v7104_v50 = vadd.f32 %v2869_v61, %v6524_v63  ;;  %v2615_v31 = vpop.f32.mrb[135].mxu1  ;;  %v2871_v51 = vpop.f32.mrb[79].mxu0  ;;  %v5881_v63 = vld [vmem:[%s8249_s0 + $0x760] ss:$20 sps:$4 sm:$0xff]  }
 0x221   :  { %3081 = vmatmul.mubr.bf16.gmra.mrb[184].mxu0 %v5876_v55  ;;  %5286 = vmatmul.mubr.msk.bf16.gmra.mrb[240].mxu1 %vm2031_vm0, %v5877_v47  ;;  %v5882_v55 = vld [vmem:[%s8249_s0 + $0x628] ss:$20 sps:$4 sm:$0xff]  }
 0x222   :  { %3088 = vmatprep.mubr.bf16.mxu0 %v5878_v7  ;;  %5289 = vmatprep.mubr.msk.bf16.mxu1 %vm2031_vm0, %v5880_v59  ;;  %v5883_v7 = vld [vmem:[%s8249_s0 + $0x78c] ss:$20 sps:$4 sm:$0xff]  }
 0x224   :  { %v7108_v23 = vpop.f32.mrb[136].mxu1  ;;  %v2874_v43 = vpop.f32.mrb[80].mxu0 }
 0x225   :  { %8298 = vst [vmem:[#allocation47_spill] sm:$0xff] %v7108_v23  ;;  %v7111_v35 = vadd.f32 %v2874_v43, %v6532_v4  ;;  %v2620_v39 = vpop.f32.mrb[137].mxu1  ;;  %v2876_v58 = vpop.f32.mrb[81].mxu0  ;;  %v5885_v4 = vld [vmem:[%s8249_s0 + $0x650] ss:$20 sps:$4 sm:$0xff]  }
 0x226   :  { %v7119_v47 = vpop.f32.mrb[138].mxu1  ;;  %v2877_v61 = vpop.f32.mrb[82].mxu0 }
 0x227   :  { %8299 = vst [vmem:[#allocation48_spill] sm:$0xff] %v7119_v47  ;;  %v7128_v58 = vadd.f32 %v2877_v61, %v6540_v8  ;;  %v2623_v39 = vpop.f32.mrb[139].mxu1  ;;  %v2879_v59 = vpop.f32.mrb[83].mxu0  ;;  %v5886_v8 = vld [vmem:[%s8249_s0 + $0x788] ss:$20 sps:$4 sm:$0xff]  }
 0x229   :  { %3089 = vmatmul.mubr.bf16.gmra.mrb[188].mxu0 %v5881_v63  ;;  %5290 = vmatmul.mubr.msk.bf16.gmra.mrb[244].mxu1 %vm2031_vm0, %v5882_v55  ;;  %v5887_v63 = vld [vmem:[%s8249_s0 + $0x678] ss:$20 sps:$4 sm:$0xff]  }
 0x22a   :  { %3096 = vmatprep.mubr.bf16.mxu0 %v5883_v7  ;;  %5293 = vmatprep.mubr.msk.bf16.mxu1 %vm2031_vm0, %v5885_v4  ;;  %v5888_v7 = vld [vmem:[%s8249_s0 + $0x7b4] ss:$20 sps:$4 sm:$0xff]  }
 0x22c   :  { %v7132_v31 = vpop.f32.mrb[140].mxu1  ;;  %v2882_v51 = vpop.f32.mrb[84].mxu0 }
 0x22d   :  { %8300 = vst [vmem:[#allocation49_spill] sm:$0xff] %v7132_v31  ;;  %v7135_v43 = vadd.f32 %v2882_v51, %v6548_v12  ;;  %v2628_v47 = vpop.f32.mrb[141].mxu1  ;;  %v2884_v23 = vpop.f32.mrb[85].mxu0  ;;  %v5890_v12 = vld [vmem:[%s8249_s0 + $0x6a0] ss:$20 sps:$4 sm:$0xff]  }
 0x22e   :  { %v7143_v55 = vpop.f32.mrb[142].mxu1  ;;  %v2885_v61 = vpop.f32.mrb[86].mxu0 }
 0x22f   :  { %8301 = vst [vmem:[#allocation50_spill] sm:$0xff] %v7143_v55  ;;  %v7152_v23 = vadd.f32 %v2885_v61, %v6556_v15  ;;  %v2631_v47 = vpop.f32.mrb[143].mxu1  ;;  %v2887_v4 = vpop.f32.mrb[87].mxu0  ;;  %v5891_v15 = vld [vmem:[%s8249_s0 + $0x7b0] ss:$20 sps:$4 sm:$0xff]  }
 0x231   :  { %3097 = vmatmul.mubr.bf16.gmra.mrb[192].mxu0 %v5886_v8  ;;  %5294 = vmatmul.mubr.msk.bf16.gmra.mrb[248].mxu1 %vm2031_vm0, %v5887_v63  ;;  %v5892_v8 = vld [vmem:[%s8249_s0 + $0x6c8] ss:$20 sps:$4 sm:$0xff]  }
 0x232   :  { %3104 = vmatprep.mubr.bf16.mxu0 %v5888_v7  ;;  %5297 = vmatprep.mubr.msk.bf16.mxu1 %vm2031_vm0, %v5890_v12  ;;  %v5893_v7 = vld [vmem:[%s8249_s0 + $0x7dc] ss:$20 sps:$4 sm:$0xff]  }
 0x234   :  { %v7156_v39 = vpop.f32.mrb[144].mxu1  ;;  %v2890_v59 = vpop.f32.mrb[88].mxu0 }
 0x235   :  { %8302 = vst [vmem:[#allocation51_spill] sm:$0xff] %v7156_v39  ;;  %v7159_v51 = vadd.f32 %v2890_v59, %v6564_v20  ;;  %v2636_v55 = vpop.f32.mrb[145].mxu1  ;;  %v2892_v31 = vpop.f32.mrb[89].mxu0  ;;  %v5895_v20 = vld [vmem:[%s8249_s0 + $0x6f0] ss:$20 sps:$4 sm:$0xff]  }
 0x236   :  { %v7167_v63 = vpop.f32.mrb[146].mxu1  ;;  %v2893_v61 = vpop.f32.mrb[90].mxu0 }
 0x237   :  { %8303 = vst [vmem:[#allocation52_spill] sm:$0xff] %v7167_v63  ;;  %v7176_v31 = vadd.f32 %v2893_v61, %v6572_v25  ;;  %v2639_v55 = vpop.f32.mrb[147].mxu1  ;;  %v2895_v12 = vpop.f32.mrb[91].mxu0  ;;  %v5896_v25 = vld [vmem:[%s8249_s0 + $0x7d8] ss:$20 sps:$4 sm:$0xff]  }
 0x239   :  { %3105 = vmatmul.mubr.bf16.gmra.mrb[196].mxu0 %v5891_v15  ;;  %5298 = vmatmul.mubr.msk.bf16.gmra.mrb[252].mxu1 %vm2031_vm0, %v5892_v8  ;;  %v5897_v15 = vld [vmem:[%s8249_s0 + $0x718] ss:$20 sps:$4 sm:$0xff]  }
 0x23a   :  { %3112 = vmatprep.mubr.bf16.mxu0 %v5893_v7  ;;  %5301 = vmatprep.mubr.msk.bf16.mxu1 %vm2031_vm0, %v5895_v20  ;;  %v5898_v7 = vld [vmem:[%s8249_s0 + $0x804] ss:$20 sps:$4 sm:$0xff]  }
 0x23c   :  { %v7180_v47 = vpop.f32.mrb[148].mxu1  ;;  %v2898_v4 = vpop.f32.mrb[92].mxu0 }
 0x23d   :  { %8304 = vst [vmem:[#allocation53_spill] sm:$0xff] %v7180_v47  ;;  %v7183_v59 = vadd.f32 %v2898_v4, %v6580_v30  ;;  %v2644_v63 = vpop.f32.mrb[149].mxu1  ;;  %v2900_v39 = vpop.f32.mrb[93].mxu0  ;;  %v5900_v30 = vld [vmem:[%s8249_s0 + $0x740] ss:$20 sps:$4 sm:$0xff]  }
 0x23e   :  { %v7191_v8 = vpop.f32.mrb[150].mxu1  ;;  %v2901_v61 = vpop.f32.mrb[94].mxu0 }
 0x23f   :  { %8305 = vst [vmem:[#allocation54_spill] sm:$0xff] %v7191_v8  ;;  %v7200_v39 = vadd.f32 %v2901_v61, %v6588_v36  ;;  %v2647_v63 = vpop.f32.mrb[151].mxu1  ;;  %v2903_v20 = vpop.f32.mrb[95].mxu0  ;;  %v5901_v36 = vld [vmem:[%s8249_s0 + $0x800] ss:$20 sps:$4 sm:$0xff]  }
 0x241   :  { %3113 = vmatmul.mubr.bf16.gmra.mrb[200].mxu0 %v5896_v25  ;;  %5302 = vmatmul.mubr.msk.bf16.gmra.mrb[0].mxu1 %vm2031_vm0, %v5897_v15  ;;  %v5902_v25 = vld [vmem:[%s8249_s0 + $0x768] ss:$20 sps:$4 sm:$0xff]  }
 0x242   :  { %3120 = vmatprep.mubr.bf16.mxu0 %v5898_v7  ;;  %5305 = vmatprep.mubr.msk.bf16.mxu1 %vm2031_vm0, %v5900_v30  ;;  %v5903_v7 = vld [vmem:[%s8249_s0 + $0x82c] ss:$20 sps:$4 sm:$0xff]  }
 0x244   :  { %v7204_v55 = vpop.f32.mrb[152].mxu1  ;;  %v2906_v12 = vpop.f32.mrb[96].mxu0 }
 0x245   :  { %8306 = vst [vmem:[#allocation55_spill] sm:$0xff] %v7204_v55  ;;  %v7207_v4 = vadd.f32 %v2906_v12, %v6596_v41  ;;  %v2652_v8 = vpop.f32.mrb[153].mxu1  ;;  %v2908_v47 = vpop.f32.mrb[97].mxu0  ;;  %v5905_v41 = vld [vmem:[%s8249_s0 + $0x790] ss:$20 sps:$4 sm:$0xff]  }
 0x246   :  { %v7215_v15 = vpop.f32.mrb[154].mxu1  ;;  %v2909_v61 = vpop.f32.mrb[98].mxu0 }
 0x247   :  { %8307 = vst [vmem:[#allocation56_spill] sm:$0xff] %v7215_v15  ;;  %v7224_v47 = vadd.f32 %v2909_v61, %v6604_v46  ;;  %v2655_v8 = vpop.f32.mrb[155].mxu1  ;;  %v2911_v30 = vpop.f32.mrb[99].mxu0  ;;  %v5906_v46 = vld [vmem:[%s8249_s0 + $0x828] ss:$20 sps:$4 sm:$0xff]  }
 0x249   :  { %3121 = vmatmul.mubr.bf16.gmra.mrb[204].mxu0 %v5901_v36  ;;  %5306 = vmatmul.mubr.msk.bf16.gmra.mrb[4].mxu1 %vm2031_vm0, %v5902_v25  ;;  %v5907_v36 = vld [vmem:[%s8249_s0 + $0x7b8] ss:$20 sps:$4 sm:$0xff]  }
 0x24a   :  { %3128 = vmatprep.mubr.bf16.mxu0 %v5903_v7  ;;  %5309 = vmatprep.mubr.msk.bf16.mxu1 %vm2031_vm0, %v5905_v41  ;;  %v5908_v7 = vld [vmem:[%s8249_s0 + $0x854] ss:$20 sps:$4 sm:$0xff]  }
 0x24c   :  { %v7228_v63 = vpop.f32.mrb[156].mxu1  ;;  %v2914_v20 = vpop.f32.mrb[100].mxu0 }
 0x24d   :  { %8308 = vst [vmem:[#allocation57_spill] sm:$0xff] %v7228_v63  ;;  %v7231_v12 = vadd.f32 %v2914_v20, %v6612_v52  ;;  %v2660_v15 = vpop.f32.mrb[157].mxu1  ;;  %v2916_v55 = vpop.f32.mrb[101].mxu0  ;;  %v5910_v52 = vld [vmem:[%s8249_s0 + $0x7e0] ss:$20 sps:$4 sm:$0xff]  }
 0x24e   :  { %v7239_v25 = vpop.f32.mrb[158].mxu1  ;;  %v2917_v61 = vpop.f32.mrb[102].mxu0 }
 0x24f   :  { %8309 = vst [vmem:[#allocation58_spill] sm:$0xff] %v7239_v25  ;;  %v7248_v55 = vadd.f32 %v2917_v61, %v6620_v57  ;;  %v2663_v15 = vpop.f32.mrb[159].mxu1  ;;  %v2919_v41 = vpop.f32.mrb[103].mxu0  ;;  %v5911_v57 = vld [vmem:[%s8249_s0 + $0x850] ss:$20 sps:$4 sm:$0xff]  }
 0x250   :  { %v349_v15 = vld [vmem:[%s8249_s0 + $0x8a0] sm:$0x11] }
 0x251   :  { %3129 = vmatmul.mubr.bf16.gmra.mrb[208].mxu0 %v5906_v46  ;;  %5310 = vmatmul.mubr.msk.bf16.gmra.mrb[8].mxu1 %vm2031_vm0, %v5907_v36  ;;  %v5912_v46 = vld [vmem:[%s8249_s0 + $0x808] ss:$20 sps:$4 sm:$0xff]  }
 0x252   :  { %3136 = vmatprep.mubr.bf16.mxu0 %v5908_v7  ;;  %5313 = vmatprep.mubr.msk.bf16.mxu1 %vm2031_vm0, %v5910_v52  ;;  %v5913_v7 = vld [vmem:[%s8249_s0 + $0x87c] ss:$20 sps:$4 sm:$0xff]  }
 0x254   :  { %v7252_v8 = vpop.f32.mrb[160].mxu1  ;;  %v2922_v30 = vpop.f32.mrb[104].mxu0 }
 0x255   :  { %8310 = vst [vmem:[#allocation59_spill] sm:$0xff] %v7252_v8  ;;  %v7255_v20 = vadd.f32 %v2922_v30, %v6628_v62  ;;  %v2668_v25 = vpop.f32.mrb[161].mxu1  ;;  %v2924_v63 = vpop.f32.mrb[105].mxu0  ;;  %v5915_v62 = vld [vmem:[%s8249_s0 + $0x830] ss:$20 sps:$4 sm:$0xff]  }
 0x256   :  { %v7263_v36 = vpop.f32.mrb[162].mxu1  ;;  %v2925_v61 = vpop.f32.mrb[106].mxu0 }
 0x257   :  { %8311 = vst [vmem:[#allocation60_spill] sm:$0xff] %v7255_v20  ;;  %8312 = vst [vmem:[#allocation61_spill] sm:$0xff] %v7263_v36  ;;  %v7272_v63 = vadd.f32 %v2925_v61, %v6636_v5  ;;  %v2671_v25 = vpop.f32.mrb[163].mxu1  ;;  %v2927_v52 = vpop.f32.mrb[107].mxu0 }
 0x258   :  { %v4827_v25 = vcombine.high %v349_v15, %v349_v15  ;;  %v5919_v52 = vld [vmem:[%s8249_s0 + $0x880] ss:$20 sps:$4 sm:$0xff]  }
 0x259   :  { %8313 = vst [vmem:[#allocation62_spill] sm:$0xff] %v7272_v63  ;;  %3137 = vmatmul.mubr.bf16.gmra.mrb[212].mxu0 %v5911_v57  ;;  %5314 = vmatmul.mubr.msk.bf16.gmra.mrb[12].mxu1 %vm2031_vm0, %v5912_v46  ;;  %v5916_v57 = vld [vmem:[%s8249_s0 + $0x878] ss:$20 sps:$4 sm:$0xff]  }
 0x25a   :  { %3144 = vmatprep.mubr.bf16.mxu0 %v5913_v7  ;;  %5317 = vmatprep.mubr.msk.bf16.mxu1 %vm2031_vm0, %v5915_v62  ;;  %v5917_v46 = vld [vmem:[%s8249_s0 + $0x858] ss:$20 sps:$4 sm:$0xff]  }
 0x25c   :  { %v7279_v41 = vpop.f32.mrb[164].mxu1  ;;  %v2930_v30 = vpop.f32.mrb[108].mxu0 }
 0x25d   :  { %8314 = vst [vmem:[#allocation63_spill] sm:$0xff] %v7279_v41  ;;  %v7282_v36 = vadd.f32 %v2930_v30, %v6647_v11  ;;  %v2676_v5 = vpop.f32.mrb[165].mxu1  ;;  %v2932_v61 = vpop.f32.mrb[109].mxu0 }
 0x25e   :  { %v2677_v7 = vpop.f32.mrb[166].mxu1  ;;  %v2933_v62 = vpop.f32.mrb[110].mxu0 }
 0x25f   :  { %v7294_v11 = vadd.f32 %v2933_v62, %v6655_v16  ;;  %v2678_v30 = vpop.f32.mrb[167].mxu1  ;;  %v2935_v5 = vpop.f32.mrb[111].mxu0  ;;  %v7301_v7 = vld [vmem:[%s8250_s2] ss:$0 sm:$0xff] }
 0x261   :  { %8315 = vst [vmem:[#allocation64_spill] sm:$0xff] %v7294_v11  ;;  %3145 = vmatmul.mubr.bf16.gmra.mrb[216].mxu0 %v5916_v57  ;;  %5318 = vmatmul.mubr.msk.bf16.gmra.mrb[164].mxu1 %vm2031_vm0, %v5917_v46  ;;  %v4826_v57 = vcombine.low %v349_v15, %v349_v15  ;;  %v5921_v46 = vld [vmem:[%s8249_s0 + $0x8a8] ss:$0 sps:$4 sm:$0x11]  }
 0x262   :  { %3152 = vmatprep.mubr.bf16.mxu0 %v4827_v25  ;;  %5321 = vmatprep.mubr.msk.bf16.mxu1 %vm2031_vm0, %v5919_v52  ;;  %v7313_v25 = vld [vmem:[%s8251_s3] ss:$0 sm:$0xff] }
 0x264   :  { %v2938_v61 = vpop.f32.mrb[112].mxu0  ;;  %v5215_v41 = vpop.f32.mrb[168].mxu1 }
 0x265   :  { %v7304_v8 = vadd.f32 %v2938_v61, %v6660_v22  ;;  %v3203_v16 = vadd.f32 %v5215_v41, %v6680_v45  ;;  %v2940_v62 = vpop.f32.mrb[113].mxu0  ;;  %v3194_v30 = vpop.f32.mrb[169].mxu1 }
 0x266   :  { %v3195_v52 = vadd.f32 %v3194_v30, %v6662_v24  ;;  %v2941_v5 = vpop.f32.mrb[114].mxu0  ;;  %v5216_v63 = vpop.f32.mrb[170].mxu1 }
 0x267   :  { %8316 = vst [vmem:[#allocation65_spill] sm:$0xff] %v7304_v8  ;;  %v3649_v22 = vmul.f32 %v7301_v7, %v3203_v16  ;;  %v7318_v45 = vadd.f32 %v2941_v5, %v6667_v33  ;;  %v3206_v15 = vadd.f32 %v5216_v63, %v6690_v56  ;;  %v2943_v41 = vpop.f32.mrb[115].mxu0  ;;  %v3197_v61 = vpop.f32.mrb[171].mxu1 }
 0x268   :  { %v3647_v62 = vmul.f32 %v7301_v7, %v3195_v52  ;;  %v3198_v8 = vadd.f32 %v3197_v61, %v6669_v34 }
 0x269   :  { %v3767_v11 = vadd.f32 %v7313_v25, %v3649_v22  ;;  %v3650_v20 = vmul.f32 %v7301_v7, %v3206_v15  ;;  %3153 = vmatmul.mubr.bf16.gmra.mrb[220].mxu0 %v4826_v57  ;;  %5322 = vmatmul.mubr.msk.bf16.gmra.mrb[16].mxu1 %vm2031_vm0, %v5921_v46 }
 0x26a   :  { %v3765_v24 = vadd.f32 %v7313_v25, %v3647_v62  ;;  %v3648_v33 = vmul.f32 %v7301_v7, %v3198_v8 }
 0x26b   :  { %v3878_v16 = vmax.f32 %v3767_v11, 0.0  ;;  %v3768_v56 = vadd.f32 %v7313_v25, %v3650_v20 }
 0x26c   :  { %v3876_v63 = vmax.f32 %v3765_v24, 0.0  ;;  %v3766_v30 = vadd.f32 %v7313_v25, %v3648_v33  ;;  %v2946_v52 = vpop.f32.mrb[116].mxu0  ;;  %v5219_v34 = vpop.f32.mrb[172].mxu1 }
 0x26d   :  { %v5036_v5 = vpack.c.bf16 %v3878_v16, %v3878_v16  ;;  %v3879_v22 = vmax.f32 %v3768_v56, 0.0  ;;  %v7331_v15 = vadd.f32 %v2946_v52, %v6678_v44  ;;  %v3219_v57 = vadd.f32 %v5219_v34, %v6724_v28  ;;  %v2948_v46 = vpop.f32.mrb[117].mxu0  ;;  %v3210_v41 = vpop.f32.mrb[173].mxu1 }
 0x26e   :  { %v5034_v61 = vpack.c.bf16 %v3876_v63, %v3876_v63  ;;  %v3877_v8 = vmax.f32 %v3766_v30, 0.0  ;;  %v3211_v11 = vadd.f32 %v3210_v41, %v6702_v3  ;;  %v2949_v20 = vpop.f32.mrb[118].mxu0  ;;  %v5220_v62 = vpop.f32.mrb[174].mxu1 }
 0x26f   :  { %4435 = vst.msk [vmem:[%s8252_s4 + $0x8] sm:$0xf] %vm4432_vm1, %v5036_v5  ;;  %v5037_v24 = vpack.c.bf16 %v3879_v22, %v3879_v22  ;;  %v3653_v33 = vmul.f32 %v7301_v7, %v3219_v57  ;;  %v7341_v44 = vadd.f32 %v2949_v20, %v6688_v54  ;;  %v3222_v28 = vadd.f32 %v5220_v62, %v6734_v42  ;;  %v2951_v16 = vpop.f32.mrb[119].mxu0  ;;  %v3213_v56 = vpop.f32.mrb[175].mxu1 }
 0x270   :  { %4433 = vst.msk [vmem:[%s8252_s4] sm:$0xf] %vm4432_vm1, %v5034_v61  ;;  %v5035_v3 = vpack.c.bf16 %v3877_v8, %v3877_v8  ;;  %v3651_v63 = vmul.f32 %v7301_v7, %v3211_v11  ;;  %v3214_v30 = vadd.f32 %v3213_v56, %v6712_v0 }
 0x271   :  { %4436 = vst.msk [vmem:[%s8252_s4 + $0xc] sm:$0xf] %vm4432_vm1, %v5037_v24  ;;  %v3771_v54 = vadd.f32 %v7313_v25, %v3653_v33  ;;  %v3654_v42 = vmul.f32 %v7301_v7, %v3222_v28 }
 0x272   :  { %4434 = vst.msk [vmem:[%s8252_s4 + $0x4] sm:$0xf] %vm4432_vm1, %v5035_v3  ;;  %v3769_v52 = vadd.f32 %v7313_v25, %v3651_v63  ;;  %v3652_v34 = vmul.f32 %v7301_v7, %v3214_v30 }
 0x273   :  { %v3882_v5 = vmax.f32 %v3771_v54, 0.0  ;;  %v3772_v0 = vadd.f32 %v7313_v25, %v3654_v42 }
 0x274   :  { %v3880_v22 = vmax.f32 %v3769_v52, 0.0  ;;  %v3770_v57 = vadd.f32 %v7313_v25, %v3652_v34  ;;  %v2954_v46 = vpop.f32.mrb[120].mxu0  ;;  %v5223_v41 = vpop.f32.mrb[176].mxu1 }
 0x275   :  { %v5040_v61 = vpack.c.bf16 %v3882_v5, %v3882_v5  ;;  %v3883_v8 = vmax.f32 %v3772_v0, 0.0  ;;  %v7365_v11 = vadd.f32 %v2954_v46, %v6700_v2  ;;  %v3235_v20 = vadd.f32 %v5223_v41, %v6768_v32  ;;  %v2956_v62 = vpop.f32.mrb[121].mxu0  ;;  %v3226_v24 = vpop.f32.mrb[177].mxu1 }
 0x276   :  { %v5038_v33 = vpack.c.bf16 %v3880_v22, %v3880_v22  ;;  %v3881_v28 = vmax.f32 %v3770_v57, 0.0  ;;  %v3227_v16 = vadd.f32 %v3226_v24, %v6746_v60  ;;  %v2957_v56 = vpop.f32.mrb[122].mxu0  ;;  %v5224_v3 = vpop.f32.mrb[178].mxu1 }
 0x277   :  { %4439 = vst.msk [vmem:[%s8252_s4 + $0x18] sm:$0xf] %vm4432_vm1, %v5040_v61  ;;  %v5041_v63 = vpack.c.bf16 %v3883_v8, %v3883_v8  ;;  %v3657_v30 = vmul.f32 %v7301_v7, %v3235_v20  ;;  %v7375_v2 = vadd.f32 %v2957_v56, %v6710_v13  ;;  %v3238_v32 = vadd.f32 %v5224_v3, %v6778_v53  ;;  %v2959_v54 = vpop.f32.mrb[123].mxu0  ;;  %v3229_v42 = vpop.f32.mrb[179].mxu1 }
 0x278   :  { %4437 = vst.msk [vmem:[%s8252_s4 + $0x10] sm:$0xf] %vm4432_vm1, %v5038_v33  ;;  %v5039_v60 = vpack.c.bf16 %v3881_v28, %v3881_v28  ;;  %v3655_v52 = vmul.f32 %v7301_v7, %v3227_v16  ;;  %v3230_v34 = vadd.f32 %v3229_v42, %v6756_v10 }
 0x279   :  { %4440 = vst.msk [vmem:[%s8252_s4 + $0x1c] sm:$0xf] %vm4432_vm1, %v5041_v63  ;;  %v3775_v13 = vadd.f32 %v7313_v25, %v3657_v30  ;;  %v3658_v53 = vmul.f32 %v7301_v7, %v3238_v32 }
 0x27a   :  { %4438 = vst.msk [vmem:[%s8252_s4 + $0x14] sm:$0xf] %vm4432_vm1, %v5039_v60  ;;  %v3773_v5 = vadd.f32 %v7313_v25, %v3655_v52  ;;  %v3656_v0 = vmul.f32 %v7301_v7, %v3230_v34 }
 0x27b   :  { %v3886_v22 = vmax.f32 %v3775_v13, 0.0  ;;  %v3776_v10 = vadd.f32 %v7313_v25, %v3658_v53 }
 0x27c   :  { %v3884_v57 = vmax.f32 %v3773_v5, 0.0  ;;  %v3774_v46 = vadd.f32 %v7313_v25, %v3656_v0  ;;  %v2962_v41 = vpop.f32.mrb[124].mxu0  ;;  %v5227_v61 = vpop.f32.mrb[180].mxu1 }
 0x27d   :  { %v5044_v8 = vpack.c.bf16 %v3886_v22, %v3886_v22  ;;  %v3887_v20 = vmax.f32 %v3776_v10, 0.0  ;;  %v7399_v62 = vadd.f32 %v2962_v41, %v6722_v26  ;;  %v3251_v24 = vadd.f32 %v5227_v61, %v6812_v21  ;;  %v2964_v33 = vpop.f32.mrb[125].mxu0  ;;  %v3242_v28 = vpop.f32.mrb[181].mxu1  ;;  %v8317_v61 = vld [vmem:[#allocation2_spill] sm:$0xff] }
 0x27e   :  { %v5042_v16 = vpack.c.bf16 %v3884_v57, %v3884_v57  ;;  %v3885_v56 = vmax.f32 %v3774_v46, 0.0  ;;  %v3243_v3 = vadd.f32 %v3242_v28, %v6790_v17  ;;  %v2965_v63 = vpop.f32.mrb[126].mxu0  ;;  %v5228_v30 = vpop.f32.mrb[182].mxu1 }
 0x27f   :  { %4443 = vst.msk [vmem:[%s8252_s4 + $0x28] sm:$0xf] %vm4432_vm1, %v5044_v8  ;;  %v5045_v32 = vpack.c.bf16 %v3887_v20, %v3887_v20  ;;  %v3661_v54 = vmul.f32 %v7301_v7, %v3251_v24  ;;  %v7409_v26 = vadd.f32 %v2965_v63, %v6732_v40  ;;  %v3254_v21 = vadd.f32 %v5228_v30, %v6822_v38  ;;  %v2967_v42 = vpop.f32.mrb[127].mxu0  ;;  %v3245_v60 = vpop.f32.mrb[183].mxu1  ;;  %v8318_v20 = vld [vmem:[#allocation15_spill] sm:$0xff] }
 0x280   :  { %4441 = vst.msk [vmem:[%s8252_s4 + $0x20] sm:$0xf] %vm4432_vm1, %v5042_v16  ;;  %v5043_v17 = vpack.c.bf16 %v3885_v56, %v3885_v56  ;;  %v3659_v52 = vmul.f32 %v7301_v7, %v3243_v3  ;;  %v3246_v34 = vadd.f32 %v3245_v60, %v6800_v49  ;;  %v8319_v3 = vld [vmem:[#allocation11_spill] sm:$0xff] }
 0x281   :  { %4444 = vst.msk [vmem:[%s8252_s4 + $0x2c] sm:$0xf] %vm4432_vm1, %v5045_v32  ;;  %v3779_v40 = vadd.f32 %v7313_v25, %v3661_v54  ;;  %v3662_v38 = vmul.f32 %v7301_v7, %v3254_v21  ;;  %v8320_v42 = vld [vmem:[#allocation3_spill] sm:$0xff] }
 0x282   :  { %4442 = vst.msk [vmem:[%s8252_s4 + $0x24] sm:$0xf] %vm4432_vm1, %v5043_v17  ;;  %v3777_v13 = vadd.f32 %v7313_v25, %v3659_v52  ;;  %v3660_v53 = vmul.f32 %v7301_v7, %v3246_v34  ;;  %v8321_v17 = vld [vmem:[#allocation17_spill] sm:$0xff] }
 0x283   :  { %v3890_v5 = vmax.f32 %v3779_v40, 0.0  ;;  %v3780_v49 = vadd.f32 %v7313_v25, %v3662_v38 }
 0x284   :  { %v3888_v0 = vmax.f32 %v3777_v13, 0.0  ;;  %v3778_v22 = vadd.f32 %v7313_v25, %v3660_v53  ;;  %v2970_v10 = vpop.f32.mrb[128].mxu0  ;;  %v5231_v57 = vpop.f32.mrb[184].mxu1  ;;  %v8322_v53 = vld [vmem:[#allocation13_spill] sm:$0xff] }
 0x285   :  { %v5048_v46 = vpack.c.bf16 %v3890_v5, %v3890_v5  ;;  %v3891_v41 = vmax.f32 %v3780_v49, 0.0  ;;  %v7433_v8 = vadd.f32 %v2970_v10, %v8317_v61  ;;  %v3267_v24 = vadd.f32 %v5231_v57, %v8318_v20  ;;  %v2972_v33 = vpop.f32.mrb[129].mxu0  ;;  %v3258_v28 = vpop.f32.mrb[185].mxu1 }
 0x286   :  { %v5046_v16 = vpack.c.bf16 %v3888_v0, %v3888_v0  ;;  %v3889_v56 = vmax.f32 %v3778_v22, 0.0  ;;  %v3259_v63 = vadd.f32 %v3258_v28, %v8319_v3  ;;  %v2973_v30 = vpop.f32.mrb[130].mxu0  ;;  %v5232_v32 = vpop.f32.mrb[186].mxu1  ;;  %v8324_v3 = vld [vmem:[#allocation23_spill] sm:$0xff] }
 0x287   :  { %4447 = vst.msk [vmem:[%s8252_s4 + $0x38] sm:$0xf] %vm4432_vm1, %v5048_v46  ;;  %v5049_v54 = vpack.c.bf16 %v3891_v41, %v3891_v41  ;;  %v3665_v21 = vmul.f32 %v7301_v7, %v3267_v24  ;;  %v7443_v60 = vadd.f32 %v2973_v30, %v8320_v42  ;;  %v3270_v52 = vadd.f32 %v5232_v32, %v8321_v17  ;;  %v2975_v34 = vpop.f32.mrb[131].mxu0  ;;  %v3261_v40 = vpop.f32.mrb[187].mxu1  ;;  %v8325_v42 = vld [vmem:[#allocation19_spill] sm:$0xff] }
 0x288   :  { %4445 = vst.msk [vmem:[%s8252_s4 + $0x30] sm:$0xf] %vm4432_vm1, %v5046_v16  ;;  %v5047_v38 = vpack.c.bf16 %v3889_v56, %v3889_v56  ;;  %v3663_v13 = vmul.f32 %v7301_v7, %v3259_v63  ;;  %v3262_v5 = vadd.f32 %v3261_v40, %v8322_v53  ;;  %v8323_v16 = vld [vmem:[#allocation4_spill] sm:$0xff] }
 0x289   :  { %4448 = vst.msk [vmem:[%s8252_s4 + $0x3c] sm:$0xf] %vm4432_vm1, %v5049_v54  ;;  %v3783_v49 = vadd.f32 %v7313_v25, %v3665_v21  ;;  %v3666_v0 = vmul.f32 %v7301_v7, %v3270_v52 }
 0x28a   :  { %4446 = vst.msk [vmem:[%s8252_s4 + $0x34] sm:$0xf] %vm4432_vm1, %v5047_v38  ;;  %v3781_v22 = vadd.f32 %v7313_v25, %v3663_v13  ;;  %v3664_v10 = vmul.f32 %v7301_v7, %v3262_v5  ;;  %v8326_v13 = vld [vmem:[#allocation5_spill] sm:$0xff] }
 0x28b   :  { %v3894_v57 = vmax.f32 %v3783_v49, 0.0  ;;  %v3784_v46 = vadd.f32 %v7313_v25, %v3666_v0  ;;  %v8327_v5 = vld [vmem:[#allocation25_spill] sm:$0xff] }
 0x28c   :  { %v3892_v41 = vmax.f32 %v3781_v22, 0.0  ;;  %v3782_v61 = vadd.f32 %v7313_v25, %v3664_v10  ;;  %v2978_v20 = vpop.f32.mrb[132].mxu0  ;;  %v5235_v24 = vpop.f32.mrb[188].mxu1 }
 0x28d   :  { %v5052_v33 = vpack.c.bf16 %v3894_v57, %v3894_v57  ;;  %v3895_v28 = vmax.f32 %v3784_v46, 0.0  ;;  %v7467_v56 = vadd.f32 %v2978_v20, %v8323_v16  ;;  %v3283_v63 = vadd.f32 %v5235_v24, %v8324_v3  ;;  %v2980_v30 = vpop.f32.mrb[133].mxu0  ;;  %v3274_v32 = vpop.f32.mrb[189].mxu1  ;;  %v8328_v46 = vld [vmem:[#allocation21_spill] sm:$0xff] }
 0x28e   :  { %v5050_v54 = vpack.c.bf16 %v3892_v41, %v3892_v41  ;;  %v3893_v21 = vmax.f32 %v3782_v61, 0.0  ;;  %v3275_v17 = vadd.f32 %v3274_v32, %v8325_v42  ;;  %v2981_v52 = vpop.f32.mrb[134].mxu0  ;;  %v5236_v34 = vpop.f32.mrb[190].mxu1  ;;  %v8329_v42 = vld [vmem:[#allocation6_spill] sm:$0xff] }
 0x28f   :  { %4451 = vst.msk [vmem:[%s8252_s4 + $0x48] sm:$0xf] %vm4432_vm1, %v5052_v33  ;;  %v5053_v40 = vpack.c.bf16 %v3895_v28, %v3895_v28  ;;  %v3669_v38 = vmul.f32 %v7301_v7, %v3283_v63  ;;  %v7477_v53 = vadd.f32 %v2981_v52, %v8326_v13  ;;  %v3286_v49 = vadd.f32 %v5236_v34, %v8327_v5  ;;  %v2983_v0 = vpop.f32.mrb[135].mxu0  ;;  %v3277_v22 = vpop.f32.mrb[191].mxu1  ;;  %v8330_v52 = vld [vmem:[#allocation31_spill] sm:$0xff] }
 0x290   :  { %4449 = vst.msk [vmem:[%s8252_s4 + $0x40] sm:$0xf] %vm4432_vm1, %v5050_v54  ;;  %v5051_v10 = vpack.c.bf16 %v3893_v21, %v3893_v21  ;;  %v3667_v57 = vmul.f32 %v7301_v7, %v3275_v17  ;;  %v3278_v41 = vadd.f32 %v3277_v22, %v8328_v46 }
 0x291   :  { %4452 = vst.msk [vmem:[%s8252_s4 + $0x4c] sm:$0xf] %vm4432_vm1, %v5053_v40  ;;  %v3787_v61 = vadd.f32 %v7313_v25, %v3669_v38  ;;  %v3670_v20 = vmul.f32 %v7301_v7, %v3286_v49  ;;  %v8331_v49 = vld [vmem:[#allocation27_spill] sm:$0xff] }
 0x292   :  { %4450 = vst.msk [vmem:[%s8252_s4 + $0x44] sm:$0xf] %vm4432_vm1, %v5051_v10  ;;  %v3785_v24 = vadd.f32 %v7313_v25, %v3667_v57  ;;  %v3668_v33 = vmul.f32 %v7301_v7, %v3278_v41  ;;  %v8332_v41 = vld [vmem:[#allocation7_spill] sm:$0xff] }
 0x293   :  { %v3898_v28 = vmax.f32 %v3787_v61, 0.0  ;;  %v3788_v16 = vadd.f32 %v7313_v25, %v3670_v20  ;;  %v8333_v20 = vld [vmem:[#allocation33_spill] sm:$0xff] }
 0x294   :  { %v3896_v3 = vmax.f32 %v3785_v24, 0.0  ;;  %v3786_v63 = vadd.f32 %v7313_v25, %v3668_v33  ;;  %v2986_v30 = vpop.f32.mrb[136].mxu0  ;;  %v5239_v32 = vpop.f32.mrb[192].mxu1 }
 0x295   :  { %v5056_v54 = vpack.c.bf16 %v3898_v28, %v3898_v28  ;;  %v3899_v21 = vmax.f32 %v3788_v16, 0.0  ;;  %v7501_v17 = vadd.f32 %v2986_v30, %v8329_v42  ;;  %v3299_v34 = vadd.f32 %v5239_v32, %v8330_v52  ;;  %v2988_v40 = vpop.f32.mrb[137].mxu0  ;;  %v3290_v38 = vpop.f32.mrb[193].mxu1 }
 0x296   :  { %v5054_v13 = vpack.c.bf16 %v3896_v3, %v3896_v3  ;;  %v3897_v5 = vmax.f32 %v3786_v63, 0.0  ;;  %v3291_v0 = vadd.f32 %v3290_v38, %v8331_v49  ;;  %v2989_v22 = vpop.f32.mrb[138].mxu0  ;;  %v5240_v10 = vpop.f32.mrb[194].mxu1  ;;  %v8334_v63 = vld [vmem:[#allocation29_spill] sm:$0xff] }
 0x297   :  { %4455 = vst.msk [vmem:[%s8252_s4 + $0x58] sm:$0xf] %vm4432_vm1, %v5056_v54  ;;  %v5057_v57 = vpack.c.bf16 %v3899_v21, %v3899_v21  ;;  %v3673_v46 = vmul.f32 %v7301_v7, %v3299_v34  ;;  %v7511_v61 = vadd.f32 %v2989_v22, %v8332_v41  ;;  %v3302_v24 = vadd.f32 %v5240_v10, %v8333_v20  ;;  %v2991_v33 = vpop.f32.mrb[139].mxu0  ;;  %v3293_v28 = vpop.f32.mrb[195].mxu1  ;;  %v8335_v22 = vld [vmem:[#allocation8_spill] sm:$0xff] }
 0x298   :  { %4453 = vst.msk [vmem:[%s8252_s4 + $0x50] sm:$0xf] %vm4432_vm1, %v5054_v13  ;;  %v5055_v16 = vpack.c.bf16 %v3897_v5, %v3897_v5  ;;  %v3671_v3 = vmul.f32 %v7301_v7, %v3291_v0  ;;  %v3294_v30 = vadd.f32 %v3293_v28, %v8334_v63  ;;  %v8336_v33 = vld [vmem:[#allocation35_spill] sm:$0xff] }
 0x299   :  { %4456 = vst.msk [vmem:[%s8252_s4 + $0x5c] sm:$0xf] %vm4432_vm1, %v5057_v57  ;;  %v3791_v32 = vadd.f32 %v7313_v25, %v3673_v46  ;;  %v3674_v54 = vmul.f32 %v7301_v7, %v3302_v24 }
 0x29a   :  { %4454 = vst.msk [vmem:[%s8252_s4 + $0x54] sm:$0xf] %vm4432_vm1, %v5055_v16  ;;  %v3789_v21 = vadd.f32 %v7313_v25, %v3671_v3  ;;  %v3672_v42 = vmul.f32 %v7301_v7, %v3294_v30 }
 0x29b   :  { %v3902_v52 = vmax.f32 %v3791_v32, 0.0  ;;  %v3792_v34 = vadd.f32 %v7313_v25, %v3674_v54  ;;  %v8337_v32 = vld [vmem:[#allocation9_spill] sm:$0xff] }
 0x29c   :  { %v3900_v40 = vmax.f32 %v3789_v21, 0.0  ;;  %v3790_v38 = vadd.f32 %v7313_v25, %v3672_v42  ;;  %v2994_v13 = vpop.f32.mrb[140].mxu0  ;;  %v5243_v5 = vpop.f32.mrb[196].mxu1 }
 0x29d   :  { %v5060_v49 = vpack.c.bf16 %v3902_v52, %v3902_v52  ;;  %v3903_v0 = vmax.f32 %v3792_v34, 0.0  ;;  %v7535_v10 = vadd.f32 %v2994_v13, %v8335_v22  ;;  %v3315_v57 = vadd.f32 %v5243_v5, %v6991_v6  ;;  %v2996_v46 = vpop.f32.mrb[141].mxu0  ;;  %v3306_v41 = vpop.f32.mrb[197].mxu1 }
 0x29e   :  { %v5058_v20 = vpack.c.bf16 %v3900_v40, %v3900_v40  ;;  %v3901_v24 = vmax.f32 %v3790_v38, 0.0  ;;  %v3307_v28 = vadd.f32 %v3306_v41, %v8336_v33  ;;  %v2997_v16 = vpop.f32.mrb[142].mxu0  ;;  %v5244_v3 = vpop.f32.mrb[198].mxu1 }
 0x29f   :  { %4459 = vst.msk [vmem:[%s8252_s4 + $0x68] sm:$0xf] %vm4432_vm1, %v5060_v49  ;;  %v5061_v63 = vpack.c.bf16 %v3903_v0, %v3903_v0  ;;  %v3677_v30 = vmul.f32 %v7301_v7, %v3315_v57  ;;  %v7545_v54 = vadd.f32 %v2997_v16, %v8337_v32  ;;  %v3318_v6 = vadd.f32 %v5244_v3, %v7008_v1  ;;  %v2999_v21 = vpop.f32.mrb[143].mxu0  ;;  %v3309_v42 = vpop.f32.mrb[199].mxu1 }
 0x2a0   :  { %4457 = vst.msk [vmem:[%s8252_s4 + $0x60] sm:$0xf] %vm4432_vm1, %v5058_v20  ;;  %v5059_v52 = vpack.c.bf16 %v3901_v24, %v3901_v24  ;;  %v3675_v34 = vmul.f32 %v7301_v7, %v3307_v28  ;;  %v3310_v40 = vadd.f32 %v3309_v42, %v6984_v9  ;;  %v8338_v24 = vld [vmem:[#allocation10_spill] sm:$0xff] }
 0x2a1   :  { %4460 = vst.msk [vmem:[%s8252_s4 + $0x6c] sm:$0xf] %vm4432_vm1, %v5061_v63  ;;  %v3795_v38 = vadd.f32 %v7313_v25, %v3677_v30  ;;  %v3678_v1 = vmul.f32 %v7301_v7, %v3318_v6 }
 0x2a2   :  { %4458 = vst.msk [vmem:[%s8252_s4 + $0x64] sm:$0xf] %vm4432_vm1, %v5059_v52  ;;  %v3793_v13 = vadd.f32 %v7313_v25, %v3675_v34  ;;  %v3676_v5 = vmul.f32 %v7301_v7, %v3310_v40  ;;  %v8339_v34 = vld [vmem:[#allocation12_spill] sm:$0xff] }
 0x2a3   :  { %v3906_v49 = vmax.f32 %v3795_v38, 0.0  ;;  %v3796_v9 = vadd.f32 %v7313_v25, %v3678_v1 }
 0x2a4   :  { %v3904_v0 = vmax.f32 %v3793_v13, 0.0  ;;  %v3794_v22 = vadd.f32 %v7313_v25, %v3676_v5  ;;  %v3002_v57 = vpop.f32.mrb[144].mxu0  ;;  %v5247_v46 = vpop.f32.mrb[200].mxu1 }
 0x2a5   :  { %v5064_v41 = vpack.c.bf16 %v3906_v49, %v3906_v49  ;;  %v3907_v20 = vmax.f32 %v3796_v9, 0.0  ;;  %v7569_v33 = vadd.f32 %v3002_v57, %v8338_v24  ;;  %v3331_v28 = vadd.f32 %v5247_v46, %v7039_v18  ;;  %v3004_v16 = vpop.f32.mrb[145].mxu0  ;;  %v3322_v3 = vpop.f32.mrb[201].mxu1 }
 0x2a6   :  { %v5062_v63 = vpack.c.bf16 %v3904_v0, %v3904_v0  ;;  %v3905_v30 = vmax.f32 %v3794_v22, 0.0  ;;  %v3323_v32 = vadd.f32 %v3322_v3, %v7015_v29  ;;  %v3005_v6 = vpop.f32.mrb[146].mxu0  ;;  %v5248_v21 = vpop.f32.mrb[202].mxu1  ;;  %v8340_v16 = vld [vmem:[#allocation14_spill] sm:$0xff] }
 0x2a7   :  { %4463 = vst.msk [vmem:[%s8252_s4 + $0x78] sm:$0xf] %vm4432_vm1, %v5064_v41  ;;  %v5065_v42 = vpack.c.bf16 %v3907_v20, %v3907_v20  ;;  %v3681_v52 = vmul.f32 %v7301_v7, %v3331_v28  ;;  %v7579_v40 = vadd.f32 %v3005_v6, %v8339_v34  ;;  %v3334_v18 = vadd.f32 %v5248_v21, %v7056_v37  ;;  %v3007_v38 = vpop.f32.mrb[147].mxu0  ;;  %v3325_v1 = vpop.f32.mrb[203].mxu1 }
 0x2a8   :  { %4461 = vst.msk [vmem:[%s8252_s4 + $0x70] sm:$0xf] %vm4432_vm1, %v5062_v63  ;;  %v5063_v29 = vpack.c.bf16 %v3905_v30, %v3905_v30  ;;  %v3679_v13 = vmul.f32 %v7301_v7, %v3323_v32  ;;  %v3326_v5 = vadd.f32 %v3325_v1, %v7032_v48  ;;  %v8341_v1 = vld [vmem:[#allocation16_spill] sm:$0xff] }
 0x2a9   :  { %4464 = vst.msk [vmem:[%s8252_s4 + $0x7c] sm:$0xf] %vm4432_vm1, %v5065_v42  ;;  %v3799_v49 = vadd.f32 %v7313_v25, %v3681_v52  ;;  %v3682_v37 = vmul.f32 %v7301_v7, %v3334_v18 }
 0x2aa   :  { %4462 = vst.msk [vmem:[%s8252_s4 + $0x74] sm:$0xf] %vm4432_vm1, %v5063_v29  ;;  %v3797_v9 = vadd.f32 %v7313_v25, %v3679_v13  ;;  %v3680_v0 = vmul.f32 %v7301_v7, %v3326_v5 }
 0x2ab   :  { %v3910_v22 = vmax.f32 %v3799_v49, 0.0  ;;  %v3800_v48 = vadd.f32 %v7313_v25, %v3682_v37 }
 0x2ac   :  { %v3908_v57 = vmax.f32 %v3797_v9, 0.0  ;;  %v3798_v46 = vadd.f32 %v7313_v25, %v3680_v0  ;;  %v3010_v41 = vpop.f32.mrb[148].mxu0  ;;  %v5251_v20 = vpop.f32.mrb[204].mxu1 }
 0x2ad   :  { %v5068_v24 = vpack.c.bf16 %v3910_v22, %v3910_v22  ;;  %v3911_v28 = vmax.f32 %v3800_v48, 0.0  ;;  %v7603_v3 = vadd.f32 %v3010_v41, %v8340_v16  ;;  %v3347_v63 = vadd.f32 %v5251_v20, %v7087_v27  ;;  %v3012_v30 = vpop.f32.mrb[149].mxu0  ;;  %v3338_v32 = vpop.f32.mrb[205].mxu1  ;;  %v8342_v16 = vld [vmem:[#allocation18_spill] sm:$0xff] }
 0x2ae   :  { %v5066_v6 = vpack.c.bf16 %v3908_v57, %v3908_v57  ;;  %v3909_v21 = vmax.f32 %v3798_v46, 0.0  ;;  %v3339_v42 = vadd.f32 %v3338_v32, %v7063_v19  ;;  %v3013_v52 = vpop.f32.mrb[150].mxu0  ;;  %v5252_v34 = vpop.f32.mrb[206].mxu1 }
 0x2af   :  { %4467 = vst.msk [vmem:[%s8252_s4 + $0x88] sm:$0xf] %vm4432_vm1, %v5068_v24  ;;  %v5069_v18 = vpack.c.bf16 %v3911_v28, %v3911_v28  ;;  %v3685_v38 = vmul.f32 %v7301_v7, %v3347_v63  ;;  %v7613_v29 = vadd.f32 %v3013_v52, %v8341_v1  ;;  %v3350_v27 = vadd.f32 %v5252_v34, %v7104_v50  ;;  %v3015_v13 = vpop.f32.mrb[151].mxu0  ;;  %v3341_v5 = vpop.f32.mrb[207].mxu1 }
 0x2b0   :  { %4465 = vst.msk [vmem:[%s8252_s4 + $0x80] sm:$0xf] %vm4432_vm1, %v5066_v6  ;;  %v5067_v19 = vpack.c.bf16 %v3909_v21, %v3909_v21  ;;  %v3683_v49 = vmul.f32 %v7301_v7, %v3339_v42  ;;  %v3342_v37 = vadd.f32 %v3341_v5, %v7080_v14 }
 0x2b1   :  { %4468 = vst.msk [vmem:[%s8252_s4 + $0x8c] sm:$0xf] %vm4432_vm1, %v5069_v18  ;;  %v3803_v9 = vadd.f32 %v7313_v25, %v3685_v38  ;;  %v3686_v50 = vmul.f32 %v7301_v7, %v3350_v27  ;;  %v8343_v27 = vld [vmem:[#allocation20_spill] sm:$0xff] }
 0x2b2   :  { %4466 = vst.msk [vmem:[%s8252_s4 + $0x84] sm:$0xf] %vm4432_vm1, %v5067_v19  ;;  %v3801_v0 = vadd.f32 %v7313_v25, %v3683_v49  ;;  %v3684_v22 = vmul.f32 %v7301_v7, %v3342_v37 }
 0x2b3   :  { %v3914_v48 = vmax.f32 %v3803_v9, 0.0  ;;  %v3804_v14 = vadd.f32 %v7313_v25, %v3686_v50 }
 0x2b4   :  { %v3912_v57 = vmax.f32 %v3801_v0, 0.0  ;;  %v3802_v46 = vadd.f32 %v7313_v25, %v3684_v22  ;;  %v3018_v41 = vpop.f32.mrb[152].mxu0  ;;  %v5255_v20 = vpop.f32.mrb[208].mxu1 }
 0x2b5   :  { %v5072_v24 = vpack.c.bf16 %v3914_v48, %v3914_v48  ;;  %v3915_v28 = vmax.f32 %v3804_v14, 0.0  ;;  %v7637_v63 = vadd.f32 %v3018_v41, %v8342_v16  ;;  %v3363_v30 = vadd.f32 %v5255_v20, %v7135_v43  ;;  %v3020_v32 = vpop.f32.mrb[153].mxu0  ;;  %v3354_v6 = vpop.f32.mrb[209].mxu1 }
 0x2b6   :  { %v5070_v21 = vpack.c.bf16 %v3912_v57, %v3912_v57  ;;  %v3913_v42 = vmax.f32 %v3802_v46, 0.0  ;;  %v3355_v52 = vadd.f32 %v3354_v6, %v7111_v35  ;;  %v3021_v34 = vpop.f32.mrb[154].mxu0  ;;  %v5256_v18 = vpop.f32.mrb[210].mxu1 }
 0x2b7   :  { %4471 = vst.msk [vmem:[%s8252_s4 + $0x98] sm:$0xf] %vm4432_vm1, %v5072_v24  ;;  %v5073_v38 = vpack.c.bf16 %v3915_v28, %v3915_v28  ;;  %v3689_v1 = vmul.f32 %v7301_v7, %v3363_v30  ;;  %v7647_v13 = vadd.f32 %v3021_v34, %v8343_v27  ;;  %v3366_v43 = vadd.f32 %v5256_v18, %v7152_v23  ;;  %v3023_v5 = vpop.f32.mrb[155].mxu0  ;;  %v3357_v19 = vpop.f32.mrb[211].mxu1  ;;  %v8344_v24 = vld [vmem:[#allocation22_spill] sm:$0xff] }
 0x2b8   :  { %4469 = vst.msk [vmem:[%s8252_s4 + $0x90] sm:$0xf] %vm4432_vm1, %v5070_v21  ;;  %v5071_v35 = vpack.c.bf16 %v3913_v42, %v3913_v42  ;;  %v3687_v49 = vmul.f32 %v7301_v7, %v3355_v52  ;;  %v3358_v37 = vadd.f32 %v3357_v19, %v7128_v58 }
 0x2b9   :  { %4472 = vst.msk [vmem:[%s8252_s4 + $0x9c] sm:$0xf] %vm4432_vm1, %v5073_v38  ;;  %v3807_v9 = vadd.f32 %v7313_v25, %v3689_v1  ;;  %v3690_v23 = vmul.f32 %v7301_v7, %v3366_v43  ;;  %v8345_v1 = vld [vmem:[#allocation24_spill] sm:$0xff] }
 0x2ba   :  { %4470 = vst.msk [vmem:[%s8252_s4 + $0x94] sm:$0xf] %vm4432_vm1, %v5071_v35  ;;  %v3805_v50 = vadd.f32 %v7313_v25, %v3687_v49  ;;  %v3688_v0 = vmul.f32 %v7301_v7, %v3358_v37 }
 0x2bb   :  { %v3918_v22 = vmax.f32 %v3807_v9, 0.0  ;;  %v3808_v58 = vadd.f32 %v7313_v25, %v3690_v23 }
 0x2bc   :  { %v3916_v48 = vmax.f32 %v3805_v50, 0.0  ;;  %v3806_v14 = vadd.f32 %v7313_v25, %v3688_v0  ;;  %v3026_v57 = vpop.f32.mrb[156].mxu0  ;;  %v5259_v46 = vpop.f32.mrb[212].mxu1 }
 0x2bd   :  { %v5076_v41 = vpack.c.bf16 %v3918_v22, %v3918_v22  ;;  %v3919_v20 = vmax.f32 %v3808_v58, 0.0  ;;  %v7671_v28 = vadd.f32 %v3026_v57, %v8344_v24  ;;  %v3379_v16 = vadd.f32 %v5259_v46, %v7183_v59  ;;  %v3028_v30 = vpop.f32.mrb[157].mxu0  ;;  %v3370_v32 = vpop.f32.mrb[213].mxu1  ;;  %v8346_v57 = vld [vmem:[#allocation26_spill] sm:$0xff] }
 0x2be   :  { %v5074_v6 = vpack.c.bf16 %v3916_v48, %v3916_v48  ;;  %v3917_v21 = vmax.f32 %v3806_v14, 0.0  ;;  %v3371_v42 = vadd.f32 %v3370_v32, %v7159_v51  ;;  %v3029_v52 = vpop.f32.mrb[158].mxu0  ;;  %v5260_v34 = vpop.f32.mrb[214].mxu1 }
 0x2bf   :  { %4475 = vst.msk [vmem:[%s8252_s4 + $0xa8] sm:$0xf] %vm4432_vm1, %v5076_v41  ;;  %v5077_v18 = vpack.c.bf16 %v3919_v20, %v3919_v20  ;;  %v3693_v38 = vmul.f32 %v7301_v7, %v3379_v16  ;;  %v7681_v27 = vadd.f32 %v3029_v52, %v8345_v1  ;;  %v3382_v59 = vadd.f32 %v5260_v34, %v7200_v39  ;;  %v3031_v43 = vpop.f32.mrb[159].mxu0  ;;  %v3373_v5 = vpop.f32.mrb[215].mxu1  ;;  %v8347_v34 = vld [vmem:[#allocation28_spill] sm:$0xff] }
 0x2c0   :  { %4473 = vst.msk [vmem:[%s8252_s4 + $0xa0] sm:$0xf] %vm4432_vm1, %v5074_v6  ;;  %v5075_v51 = vpack.c.bf16 %v3917_v21, %v3917_v21  ;;  %v3691_v19 = vmul.f32 %v7301_v7, %v3371_v42  ;;  %v3374_v35 = vadd.f32 %v3373_v5, %v7176_v31 }
 0x2c1   :  { %4476 = vst.msk [vmem:[%s8252_s4 + $0xac] sm:$0xf] %vm4432_vm1, %v5077_v18  ;;  %v3811_v49 = vadd.f32 %v7313_v25, %v3693_v38  ;;  %v3694_v39 = vmul.f32 %v7301_v7, %v3382_v59 }
 0x2c2   :  { %4474 = vst.msk [vmem:[%s8252_s4 + $0xa4] sm:$0xf] %vm4432_vm1, %v5075_v51  ;;  %v3809_v37 = vadd.f32 %v7313_v25, %v3691_v19  ;;  %v3692_v9 = vmul.f32 %v7301_v7, %v3374_v35 }
 0x2c3   :  { %v3922_v23 = vmax.f32 %v3811_v49, 0.0  ;;  %v3812_v31 = vadd.f32 %v7313_v25, %v3694_v39 }
 0x2c4   :  { %v3920_v50 = vmax.f32 %v3809_v37, 0.0  ;;  %v3810_v0 = vadd.f32 %v7313_v25, %v3692_v9  ;;  %v3034_v22 = vpop.f32.mrb[160].mxu0  ;;  %v5263_v58 = vpop.f32.mrb[216].mxu1 }
 0x2c5   :  { %v5080_v48 = vpack.c.bf16 %v3922_v23, %v3922_v23  ;;  %v3923_v14 = vmax.f32 %v3812_v31, 0.0  ;;  %v7705_v46 = vadd.f32 %v3034_v22, %v8346_v57  ;;  %v3395_v41 = vadd.f32 %v5263_v58, %v7231_v12  ;;  %v3036_v20 = vpop.f32.mrb[161].mxu0  ;;  %v3386_v24 = vpop.f32.mrb[217].mxu1 }
 0x2c6   :  { %v5078_v16 = vpack.c.bf16 %v3920_v50, %v3920_v50  ;;  %v3921_v30 = vmax.f32 %v3810_v0, 0.0  ;;  %v3387_v32 = vadd.f32 %v3386_v24, %v7207_v4  ;;  %v3037_v6 = vpop.f32.mrb[162].mxu0  ;;  %v5264_v21 = vpop.f32.mrb[218].mxu1  ;;  %v8348_v50 = vld [vmem:[#allocation30_spill] sm:$0xff] }
 0x2c7   :  { %4479 = vst.msk [vmem:[%s8252_s4 + $0xb8] sm:$0xf] %vm4432_vm1, %v5080_v48  ;;  %v5081_v42 = vpack.c.bf16 %v3923_v14, %v3923_v14  ;;  %v3697_v52 = vmul.f32 %v7301_v7, %v3395_v41  ;;  %v7715_v18 = vadd.f32 %v3037_v6, %v8347_v34  ;;  %v3398_v12 = vadd.f32 %v5264_v21, %v7248_v55  ;;  %v3039_v38 = vpop.f32.mrb[163].mxu0  ;;  %v3389_v1 = vpop.f32.mrb[219].mxu1  ;;  %v8349_v41 = vld [vmem:[#allocation60_spill] sm:$0xff] }
 0x2c8   :  { %4477 = vst.msk [vmem:[%s8252_s4 + $0xb0] sm:$0xf] %vm4432_vm1, %v5078_v16  ;;  %v5079_v4 = vpack.c.bf16 %v3921_v30, %v3921_v30  ;;  %v3695_v59 = vmul.f32 %v7301_v7, %v3387_v32  ;;  %v3390_v43 = vadd.f32 %v3389_v1, %v7224_v47  ;;  %v8350_v6 = vld [vmem:[#allocation32_spill] sm:$0xff]  ;;  %v8352_v1 = vld [vmem:[#allocation62_spill] sm:$0xff] }
 0x2c9   :  { %4480 = vst.msk [vmem:[%s8252_s4 + $0xbc] sm:$0xf] %vm4432_vm1, %v5081_v42  ;;  %v3815_v5 = vadd.f32 %v7313_v25, %v3697_v52  ;;  %v3698_v55 = vmul.f32 %v7301_v7, %v3398_v12 }
 0x2ca   :  { %4478 = vst.msk [vmem:[%s8252_s4 + $0xb4] sm:$0xf] %vm4432_vm1, %v5079_v4  ;;  %v3813_v51 = vadd.f32 %v7313_v25, %v3695_v59  ;;  %v3696_v19 = vmul.f32 %v7301_v7, %v3390_v43 }
 0x2cb   :  { %v3926_v35 = vmax.f32 %v3815_v5, 0.0  ;;  %v3816_v47 = vadd.f32 %v7313_v25, %v3698_v55 }
 0x2cc   :  { %v3924_v49 = vmax.f32 %v3813_v51, 0.0  ;;  %v3814_v39 = vadd.f32 %v7313_v25, %v3696_v19  ;;  %v3042_v37 = vpop.f32.mrb[164].mxu0  ;;  %v5267_v9 = vpop.f32.mrb[220].mxu1 }
 0x2cd   :  { %v5084_v23 = vpack.c.bf16 %v3926_v35, %v3926_v35  ;;  %v3927_v31 = vmax.f32 %v3816_v47, 0.0  ;;  %v7739_v0 = vadd.f32 %v3042_v37, %v8348_v50  ;;  %v3411_v22 = vadd.f32 %v5267_v9, %v7282_v36  ;;  %v3044_v58 = vpop.f32.mrb[165].mxu0  ;;  %v3402_v48 = vpop.f32.mrb[221].mxu1  ;;  %v8351_v36 = vld [vmem:[#allocation64_spill] sm:$0xff] }
 0x2ce   :  { %v5082_v14 = vpack.c.bf16 %v3924_v49, %v3924_v49  ;;  %v3925_v57 = vmax.f32 %v3814_v39, 0.0  ;;  %v3403_v20 = vadd.f32 %v3402_v48, %v8349_v41  ;;  %v3045_v24 = vpop.f32.mrb[166].mxu0  ;;  %v5268_v16 = vpop.f32.mrb[222].mxu1 }
 0x2cf   :  { %4483 = vst.msk [vmem:[%s8252_s4 + $0xc8] sm:$0xf] %vm4432_vm1, %v5084_v23  ;;  %v5085_v30 = vpack.c.bf16 %v3927_v31, %v3927_v31  ;;  %v3701_v32 = vmul.f32 %v7301_v7, %v3411_v22  ;;  %v7749_v21 = vadd.f32 %v3045_v24, %v8350_v6  ;;  %v3414_v42 = vadd.f32 %v5268_v16, %v8351_v36  ;;  %v3047_v52 = vpop.f32.mrb[167].mxu0  ;;  %v3405_v34 = vpop.f32.mrb[223].mxu1  ;;  %v8353_v23 = vld [vmem:[#allocation34_spill] sm:$0xff] }
 0x2d0   :  { %4481 = vst.msk [vmem:[%s8252_s4 + $0xc0] sm:$0xf] %vm4432_vm1, %v5082_v14  ;;  %v5083_v12 = vpack.c.bf16 %v3925_v57, %v3925_v57  ;;  %v3699_v38 = vmul.f32 %v7301_v7, %v3403_v20  ;;  %v3406_v4 = vadd.f32 %v3405_v34, %v8352_v1  ;;  %v8354_v57 = vld [vmem:[#allocation65_spill] sm:$0xff] }
 0x2d1   :  { %4484 = vst.msk [vmem:[%s8252_s4 + $0xcc] sm:$0xf] %vm4432_vm1, %v5085_v30  ;;  %v3819_v59 = vadd.f32 %v7313_v25, %v3701_v32  ;;  %v3702_v43 = vmul.f32 %v7301_v7, %v3414_v42  ;;  %v8355_v32 = vld [vmem:[#allocation36_spill] sm:$0xff] }
 0x2d2   :  { %4482 = vst.msk [vmem:[%s8252_s4 + $0xc4] sm:$0xf] %vm4432_vm1, %v5083_v12  ;;  %v3817_v5 = vadd.f32 %v7313_v25, %v3699_v38  ;;  %v3700_v55 = vmul.f32 %v7301_v7, %v3406_v4 }
 0x2d3   :  { %v3930_v51 = vmax.f32 %v3819_v59, 0.0  ;;  %v3820_v19 = vadd.f32 %v7313_v25, %v3702_v43 }
 0x2d4   :  { %v3928_v35 = vmax.f32 %v3817_v5, 0.0  ;;  %v3818_v47 = vadd.f32 %v7313_v25, %v3700_v55  ;;  %v3050_v49 = vpop.f32.mrb[168].mxu0  ;;  %v5271_v39 = vpop.f32.mrb[224].mxu1 }
 0x2d5   :  { %v5088_v37 = vpack.c.bf16 %v3930_v51, %v3930_v51  ;;  %v3931_v9 = vmax.f32 %v3820_v19, 0.0  ;;  %v7773_v31 = vadd.f32 %v3050_v49, %v8353_v23  ;;  %v3427_v50 = vadd.f32 %v5271_v39, %v7331_v15  ;;  %v3052_v22 = vpop.f32.mrb[169].mxu0  ;;  %v3418_v58 = vpop.f32.mrb[225].mxu1 }
 0x2d6   :  { %v5086_v48 = vpack.c.bf16 %v3928_v35, %v3928_v35  ;;  %v3929_v14 = vmax.f32 %v3818_v47, 0.0  ;;  %v3419_v41 = vadd.f32 %v3418_v58, %v8354_v57  ;;  %v3053_v20 = vpop.f32.mrb[170].mxu0  ;;  %v5272_v24 = vpop.f32.mrb[226].mxu1  ;;  %v8356_v47 = vld [vmem:[#allocation37_spill] sm:$0xff] }
 0x2d7   :  { %4487 = vst.msk [vmem:[%s8252_s4 + $0xd8] sm:$0xf] %vm4432_vm1, %v5088_v37  ;;  %v5089_v16 = vpack.c.bf16 %v3931_v9, %v3931_v9  ;;  %v3705_v30 = vmul.f32 %v7301_v7, %v3427_v50  ;;  %v7783_v6 = vadd.f32 %v3053_v20, %v8355_v32  ;;  %v3430_v15 = vadd.f32 %v5272_v24, %v7341_v44  ;;  %v3055_v36 = vpop.f32.mrb[171].mxu0  ;;  %v3421_v42 = vpop.f32.mrb[227].mxu1 }
 0x2d8   :  { %4485 = vst.msk [vmem:[%s8252_s4 + $0xd0] sm:$0xf] %vm4432_vm1, %v5086_v48  ;;  %v5087_v52 = vpack.c.bf16 %v3929_v14, %v3929_v14  ;;  %v3703_v34 = vmul.f32 %v7301_v7, %v3419_v41  ;;  %v3422_v12 = vadd.f32 %v3421_v42, %v7318_v45  ;;  %v7818_v48 = vld [vmem:[%s8250_s2] ss:$0 sm:$0xff] }
 0x2d9   :  { %4488 = vst.msk [vmem:[%s8252_s4 + $0xdc] sm:$0xf] %vm4432_vm1, %v5089_v16  ;;  %v3823_v38 = vadd.f32 %v7313_v25, %v3705_v30  ;;  %v3706_v44 = vmul.f32 %v7301_v7, %v3430_v15  ;;  %v8357_v14 = vld [vmem:[#allocation38_spill] sm:$0xff] }
 0x2da   :  { %4486 = vst.msk [vmem:[%s8252_s4 + $0xd4] sm:$0xf] %vm4432_vm1, %v5087_v52  ;;  %v3821_v1 = vadd.f32 %v7313_v25, %v3703_v34  ;;  %v3704_v4 = vmul.f32 %v7301_v7, %v3422_v12 }
 0x2db   :  { %v3934_v59 = vmax.f32 %v3823_v38, 0.0  ;;  %v3824_v45 = vadd.f32 %v7313_v25, %v3706_v44 }
 0x2dc   :  { %v3932_v43 = vmax.f32 %v3821_v1, 0.0  ;;  %v3822_v5 = vadd.f32 %v7313_v25, %v3704_v4  ;;  %v3058_v55 = vpop.f32.mrb[172].mxu0  ;;  %v5275_v51 = vpop.f32.mrb[228].mxu1 }
 0x2dd   :  { %v5092_v19 = vpack.c.bf16 %v3934_v59, %v3934_v59  ;;  %v3935_v35 = vmax.f32 %v3824_v45, 0.0  ;;  %v7807_v49 = vadd.f32 %v3058_v55, %v8356_v47  ;;  %v3443_v39 = vadd.f32 %v5275_v51, %v7399_v62  ;;  %v3060_v37 = vpop.f32.mrb[173].mxu0  ;;  %v3434_v9 = vpop.f32.mrb[229].mxu1  ;;  %v8358_v59 = vld [vmem:[#allocation39_spill] sm:$0xff] }
 0x2de   :  { %v5090_v23 = vpack.c.bf16 %v3932_v43, %v3932_v43  ;;  %v3933_v50 = vmax.f32 %v3822_v5, 0.0  ;;  %v3435_v7 = vadd.f32 %v3434_v9, %v7365_v11  ;;  %v3061_v22 = vpop.f32.mrb[174].mxu0  ;;  %v5276_v58 = vpop.f32.mrb[230].mxu1 }
 0x2df   :  { %4491 = vst.msk [vmem:[%s8252_s4 + $0xe8] sm:$0xf] %vm4432_vm1, %v5092_v19  ;;  %v5093_v25 = vpack.c.bf16 %v3935_v35, %v3935_v35  ;;  %v3709_v62 = vmul.f32 %v7818_v48, %v3443_v39  ;;  %v7822_v57 = vadd.f32 %v3061_v22, %v8357_v14  ;;  %v3446_v11 = vadd.f32 %v5276_v58, %v7409_v26  ;;  %v3063_v41 = vpop.f32.mrb[175].mxu0  ;;  %v3437_v20 = vpop.f32.mrb[231].mxu1  ;;  %v7838_v26 = vld [vmem:[%s8251_s3] ss:$0 sm:$0xff] }
 0x2e0   :  { %4489 = vst.msk [vmem:[%s8252_s4 + $0xe0] sm:$0xf] %vm4432_vm1, %v5090_v23  ;;  %v5091_v24 = vpack.c.bf16 %v3933_v50, %v3933_v50  ;;  %v3707_v16 = vmul.f32 %v7818_v48, %v3435_v7  ;;  %v3438_v30 = vadd.f32 %v3437_v20, %v7375_v2  ;;  %v8359_v23 = vld [vmem:[#allocation40_spill] sm:$0xff] }
 0x2e1   :  { %4492 = vst.msk [vmem:[%s8252_s4 + $0xec] sm:$0xf] %vm4432_vm1, %v5093_v25  ;;  %v3827_v32 = vadd.f32 %v7838_v26, %v3709_v62  ;;  %v3710_v15 = vmul.f32 %v7818_v48, %v3446_v11 }
 0x2e2   :  { %4490 = vst.msk [vmem:[%s8252_s4 + $0xe4] sm:$0xf] %vm4432_vm1, %v5091_v24  ;;  %v3825_v2 = vadd.f32 %v7838_v26, %v3707_v16  ;;  %v3708_v36 = vmul.f32 %v7818_v48, %v3438_v30 }
 0x2e3   :  { %v3938_v42 = vmax.f32 %v3827_v32, 0.0  ;;  %v3828_v52 = vadd.f32 %v7838_v26, %v3710_v15 }
 0x2e4   :  { %v3936_v34 = vmax.f32 %v3825_v2, 0.0  ;;  %v3826_v12 = vadd.f32 %v7838_v26, %v3708_v36  ;;  %v3066_v38 = vpop.f32.mrb[176].mxu0  ;;  %v5279_v44 = vpop.f32.mrb[232].mxu1  ;;  %v8360_v2 = vld [vmem:[#allocation41_spill] sm:$0xff] }
 0x2e5   :  { %v5096_v1 = vpack.c.bf16 %v3938_v42, %v3938_v42  ;;  %v3939_v4 = vmax.f32 %v3828_v52, 0.0  ;;  %v7851_v45 = vadd.f32 %v3066_v38, %v8358_v59  ;;  %v3459_v43 = vadd.f32 %v5279_v44, %v7467_v56  ;;  %v3068_v5 = vpop.f32.mrb[177].mxu0  ;;  %v3450_v55 = vpop.f32.mrb[233].mxu1 }
 0x2e6   :  { %v5094_v51 = vpack.c.bf16 %v3936_v34, %v3936_v34  ;;  %v3937_v19 = vmax.f32 %v3826_v12, 0.0  ;;  %v3451_v35 = vadd.f32 %v3450_v55, %v7433_v8  ;;  %v3069_v47 = vpop.f32.mrb[178].mxu0  ;;  %v5280_v39 = vpop.f32.mrb[234].mxu1  ;;  %v8361_v5 = vld [vmem:[#allocation42_spill] sm:$0xff] }
 0x2e7   :  { %4495 = vst.msk [vmem:[%s8252_s4 + $0xf8] sm:$0xf] %vm4432_vm1, %v5096_v1  ;;  %v5097_v37 = vpack.c.bf16 %v3939_v4, %v3939_v4  ;;  %v3713_v9 = vmul.f32 %v7818_v48, %v3459_v43  ;;  %v7861_v50 = vadd.f32 %v3069_v47, %v8359_v23  ;;  %v3462_v56 = vadd.f32 %v5280_v39, %v7477_v53  ;;  %v3071_v7 = vpop.f32.mrb[179].mxu0  ;;  %v3453_v22 = vpop.f32.mrb[235].mxu1 }
 0x2e8   :  { %4493 = vst.msk [vmem:[%s8252_s4 + $0xf0] sm:$0xf] %vm4432_vm1, %v5094_v51  ;;  %v5095_v8 = vpack.c.bf16 %v3937_v19, %v3937_v19  ;;  %v3711_v58 = vmul.f32 %v7818_v48, %v3451_v35  ;;  %v3454_v25 = vadd.f32 %v3453_v22, %v7443_v60 }
 0x2e9   :  { %4496 = vst.msk [vmem:[%s8252_s4 + $0xfc] sm:$0xf] %vm4432_vm1, %v5097_v37  ;;  %v3831_v62 = vadd.f32 %v7838_v26, %v3713_v9  ;;  %v3714_v53 = vmul.f32 %v7818_v48, %v3462_v56 }
 0x2ea   :  { %4494 = vst.msk [vmem:[%s8252_s4 + $0xf4] sm:$0xf] %vm4432_vm1, %v5095_v8  ;;  %v3829_v14 = vadd.f32 %v7838_v26, %v3711_v58  ;;  %v3712_v11 = vmul.f32 %v7818_v48, %v3454_v25 }
 0x2eb   :  { %v3942_v41 = vmax.f32 %v3831_v62, 0.0  ;;  %v3832_v60 = vadd.f32 %v7838_v26, %v3714_v53  ;;  %v8362_v62 = vld [vmem:[#allocation43_spill] sm:$0xff] }
 0x2ec   :  { %v3940_v20 = vmax.f32 %v3829_v14, 0.0  ;;  %v3830_v24 = vadd.f32 %v7838_v26, %v3712_v11  ;;  %v3074_v16 = vpop.f32.mrb[180].mxu0  ;;  %v5283_v30 = vpop.f32.mrb[236].mxu1 }
 0x2ed   :  { %v5100_v32 = vpack.c.bf16 %v3942_v41, %v3942_v41  ;;  %v3943_v15 = vmax.f32 %v3832_v60, 0.0  ;;  %v7885_v36 = vadd.f32 %v3074_v16, %v8360_v2  ;;  %v3475_v42 = vadd.f32 %v5283_v30, %v7535_v10  ;;  %v3076_v52 = vpop.f32.mrb[181].mxu0  ;;  %v3466_v34 = vpop.f32.mrb[237].mxu1  ;;  %v8363_v2 = vld [vmem:[#allocation44_spill] sm:$0xff] }
 0x2ee   :  { %v5098_v12 = vpack.c.bf16 %v3940_v20, %v3940_v20  ;;  %v3941_v38 = vmax.f32 %v3830_v24, 0.0  ;;  %v3467_v44 = vadd.f32 %v3466_v34, %v7501_v17  ;;  %v3077_v1 = vpop.f32.mrb[182].mxu0  ;;  %v5284_v4 = vpop.f32.mrb[238].mxu1 }
 0x2ef   :  { %4499 = vst.msk [vmem:[%s8252_s4 + $0x108] sm:$0xf] %vm4432_vm1, %v5100_v32  ;;  %v5101_v59 = vpack.c.bf16 %v3943_v15, %v3943_v15  ;;  %v3717_v43 = vmul.f32 %v7818_v48, %v3475_v42  ;;  %v7895_v55 = vadd.f32 %v3077_v1, %v8361_v5  ;;  %v3478_v10 = vadd.f32 %v5284_v4, %v7545_v54  ;;  %v3079_v51 = vpop.f32.mrb[183].mxu0  ;;  %v3469_v19 = vpop.f32.mrb[239].mxu1 }
 0x2f0   :  { %4497 = vst.msk [vmem:[%s8252_s4 + $0x100] sm:$0xf] %vm4432_vm1, %v5098_v12  ;;  %v5099_v17 = vpack.c.bf16 %v3941_v38, %v3941_v38  ;;  %v3715_v35 = vmul.f32 %v7818_v48, %v3467_v44  ;;  %v3470_v47 = vadd.f32 %v3469_v19, %v7511_v61 }
 0x2f1   :  { %4500 = vst.msk [vmem:[%s8252_s4 + $0x10c] sm:$0xf] %vm4432_vm1, %v5101_v59  ;;  %v3835_v39 = vadd.f32 %v7838_v26, %v3717_v43  ;;  %v3718_v54 = vmul.f32 %v7818_v48, %v3478_v10 }
 0x2f2   :  { %4498 = vst.msk [vmem:[%s8252_s4 + $0x104] sm:$0xf] %vm4432_vm1, %v5099_v17  ;;  %v3833_v37 = vadd.f32 %v7838_v26, %v3715_v35  ;;  %v3716_v9 = vmul.f32 %v7818_v48, %v3470_v47  ;;  %v8364_v35 = vld [vmem:[#allocation45_spill] sm:$0xff] }
 0x2f3   :  { %v3946_v23 = vmax.f32 %v3835_v39, 0.0  ;;  %v3836_v61 = vadd.f32 %v7838_v26, %v3718_v54 }
 0x2f4   :  { %v3944_v56 = vmax.f32 %v3833_v37, 0.0  ;;  %v3834_v7 = vadd.f32 %v7838_v26, %v3716_v9  ;;  %v3082_v22 = vpop.f32.mrb[184].mxu0  ;;  %v5287_v8 = vpop.f32.mrb[240].mxu1 }
 0x2f5   :  { %v5104_v58 = vpack.c.bf16 %v3946_v23, %v3946_v23  ;;  %v3947_v25 = vmax.f32 %v3836_v61, 0.0  ;;  %v7919_v53 = vadd.f32 %v3082_v22, %v8362_v62  ;;  %v3491_v14 = vadd.f32 %v5287_v8, %v7603_v3  ;;  %v3084_v11 = vpop.f32.mrb[185].mxu0  ;;  %v3482_v41 = vpop.f32.mrb[241].mxu1 }
 0x2f6   :  { %v5102_v60 = vpack.c.bf16 %v3944_v56, %v3944_v56  ;;  %v3945_v20 = vmax.f32 %v3834_v7, 0.0  ;;  %v3483_v24 = vadd.f32 %v3482_v41, %v7569_v33  ;;  %v3085_v16 = vpop.f32.mrb[186].mxu0  ;;  %v5288_v30 = vpop.f32.mrb[242].mxu1 }
 0x2f7   :  { %4503 = vst.msk [vmem:[%s8252_s4 + $0x118] sm:$0xf] %vm4432_vm1, %v5104_v58  ;;  %v5105_v32 = vpack.c.bf16 %v3947_v25, %v3947_v25  ;;  %v3721_v15 = vmul.f32 %v7818_v48, %v3491_v14  ;;  %v7929_v42 = vadd.f32 %v3085_v16, %v8363_v2  ;;  %v3494_v3 = vadd.f32 %v5288_v30, %v7613_v29  ;;  %v3087_v52 = vpop.f32.mrb[187].mxu0  ;;  %v3485_v34 = vpop.f32.mrb[243].mxu1  ;;  %v8365_v58 = vld [vmem:[#allocation46_spill] sm:$0xff] }
 0x2f8   :  { %4501 = vst.msk [vmem:[%s8252_s4 + $0x110] sm:$0xf] %vm4432_vm1, %v5102_v60  ;;  %v5103_v33 = vpack.c.bf16 %v3945_v20, %v3945_v20  ;;  %v3719_v12 = vmul.f32 %v7818_v48, %v3483_v24  ;;  %v3486_v38 = vadd.f32 %v3485_v34, %v7579_v40  ;;  %v8366_v34 = vld [vmem:[#allocation47_spill] sm:$0xff] }
 0x2f9   :  { %4504 = vst.msk [vmem:[%s8252_s4 + $0x11c] sm:$0xf] %vm4432_vm1, %v5105_v32  ;;  %v3839_v44 = vadd.f32 %v7838_v26, %v3721_v15  ;;  %v3722_v29 = vmul.f32 %v7818_v48, %v3494_v3 }
 0x2fa   :  { %4502 = vst.msk [vmem:[%s8252_s4 + $0x114] sm:$0xf] %vm4432_vm1, %v5103_v33  ;;  %v3837_v1 = vadd.f32 %v7838_v26, %v3719_v12  ;;  %v3720_v4 = vmul.f32 %v7818_v48, %v3486_v38 }
 0x2fb   :  { %v3950_v59 = vmax.f32 %v3839_v44, 0.0  ;;  %v3840_v40 = vadd.f32 %v7838_v26, %v3722_v29 }
 0x2fc   :  { %v3948_v43 = vmax.f32 %v3837_v1, 0.0  ;;  %v3838_v5 = vadd.f32 %v7838_v26, %v3720_v4  ;;  %v3090_v10 = vpop.f32.mrb[188].mxu0  ;;  %v5291_v51 = vpop.f32.mrb[244].mxu1 }
 0x2fd   :  { %v5108_v19 = vpack.c.bf16 %v3950_v59, %v3950_v59  ;;  %v3951_v17 = vmax.f32 %v3840_v40, 0.0  ;;  %v7953_v47 = vadd.f32 %v3090_v10, %v8364_v35  ;;  %v3507_v39 = vadd.f32 %v5291_v51, %v7671_v28  ;;  %v3092_v54 = vpop.f32.mrb[189].mxu0  ;;  %v3498_v37 = vpop.f32.mrb[245].mxu1  ;;  %v8367_v10 = vld [vmem:[#allocation48_spill] sm:$0xff] }
 0x2fe   :  { %v5106_v9 = vpack.c.bf16 %v3948_v43, %v3948_v43  ;;  %v3949_v23 = vmax.f32 %v3838_v5, 0.0  ;;  %v3499_v61 = vadd.f32 %v3498_v37, %v7637_v63  ;;  %v3093_v56 = vpop.f32.mrb[190].mxu0  ;;  %v5292_v7 = vpop.f32.mrb[246].mxu1 }
 0x2ff   :  { %4507 = vst.msk [vmem:[%s8252_s4 + $0x128] sm:$0xf] %vm4432_vm1, %v5108_v19  ;;  %v5109_v22 = vpack.c.bf16 %v3951_v17, %v3951_v17  ;;  %v3725_v8 = vmul.f32 %v7818_v48, %v3507_v39  ;;  %v7963_v25 = vadd.f32 %v3093_v56, %v8365_v58  ;;  %v3510_v28 = vadd.f32 %v5292_v7, %v7681_v27  ;;  %v3095_v62 = vpop.f32.mrb[191].mxu0  ;;  %v3501_v14 = vpop.f32.mrb[247].mxu1 }
 0x300   :  { %4505 = vst.msk [vmem:[%s8252_s4 + $0x120] sm:$0xf] %vm4432_vm1, %v5106_v9  ;;  %v5107_v63 = vpack.c.bf16 %v3949_v23, %v3949_v23  ;;  %v3723_v11 = vmul.f32 %v7818_v48, %v3499_v61  ;;  %v3502_v41 = vadd.f32 %v3501_v14, %v7647_v13 }
 0x301   :  { %4508 = vst.msk [vmem:[%s8252_s4 + $0x12c] sm:$0xf] %vm4432_vm1, %v5109_v22  ;;  %v3843_v60 = vadd.f32 %v7838_v26, %v3725_v8  ;;  %v3726_v27 = vmul.f32 %v7818_v48, %v3510_v28  ;;  %v8368_v28 = vld [vmem:[#allocation49_spill] sm:$0xff] }
 0x302   :  { %4506 = vst.msk [vmem:[%s8252_s4 + $0x124] sm:$0xf] %vm4432_vm1, %v5107_v63  ;;  %v3841_v20 = vadd.f32 %v7838_v26, %v3723_v11  ;;  %v3724_v24 = vmul.f32 %v7818_v48, %v3502_v41 }
 0x303   :  { %v3954_v16 = vmax.f32 %v3843_v60, 0.0  ;;  %v3844_v13 = vadd.f32 %v7838_v26, %v3726_v27 }
 0x304   :  { %v3952_v30 = vmax.f32 %v3841_v20, 0.0  ;;  %v3842_v32 = vadd.f32 %v7838_v26, %v3724_v24  ;;  %v3098_v15 = vpop.f32.mrb[192].mxu0  ;;  %v5295_v2 = vpop.f32.mrb[248].mxu1 }
 0x305   :  { %v5112_v3 = vpack.c.bf16 %v3954_v16, %v3954_v16  ;;  %v3955_v52 = vmax.f32 %v3844_v13, 0.0  ;;  %v7987_v33 = vadd.f32 %v3098_v15, %v8366_v34  ;;  %v3523_v12 = vadd.f32 %v5295_v2, %v7739_v0  ;;  %v3100_v38 = vpop.f32.mrb[193].mxu0  ;;  %v3514_v44 = vpop.f32.mrb[249].mxu1 }
 0x306   :  { %v5110_v29 = vpack.c.bf16 %v3952_v30, %v3952_v30  ;;  %v3953_v1 = vmax.f32 %v3842_v32, 0.0  ;;  %v3515_v4 = vadd.f32 %v3514_v44, %v7705_v46  ;;  %v3101_v59 = vpop.f32.mrb[194].mxu0  ;;  %v5296_v40 = vpop.f32.mrb[250].mxu1  ;;  %v8369_v30 = vld [vmem:[#allocation50_spill] sm:$0xff] }
 0x307   :  { %4511 = vst.msk [vmem:[%s8252_s4 + $0x138] sm:$0xf] %vm4432_vm1, %v5112_v3  ;;  %v5113_v43 = vpack.c.bf16 %v3955_v52, %v3955_v52  ;;  %v3729_v5 = vmul.f32 %v7818_v48, %v3523_v12  ;;  %v7997_v51 = vadd.f32 %v3101_v59, %v8367_v10  ;;  %v3526_v0 = vadd.f32 %v5296_v40, %v7749_v21  ;;  %v3103_v19 = vpop.f32.mrb[195].mxu0  ;;  %v3517_v17 = vpop.f32.mrb[251].mxu1 }
 0x308   :  { %4509 = vst.msk [vmem:[%s8252_s4 + $0x130] sm:$0xf] %vm4432_vm1, %v5110_v29  ;;  %v5111_v46 = vpack.c.bf16 %v3953_v1, %v3953_v1  ;;  %v3727_v35 = vmul.f32 %v7818_v48, %v3515_v4  ;;  %v3518_v39 = vadd.f32 %v3517_v17, %v7715_v18 }
 0x309   :  { %4512 = vst.msk [vmem:[%s8252_s4 + $0x13c] sm:$0xf] %vm4432_vm1, %v5113_v43  ;;  %v3847_v54 = vadd.f32 %v7838_v26, %v3729_v5  ;;  %v3730_v21 = vmul.f32 %v7818_v48, %v3526_v0  ;;  %v8370_v5 = vld [vmem:[#allocation51_spill] sm:$0xff] }
 0x30a   :  { %4510 = vst.msk [vmem:[%s8252_s4 + $0x134] sm:$0xf] %vm4432_vm1, %v5111_v46  ;;  %v3845_v37 = vadd.f32 %v7838_v26, %v3727_v35  ;;  %v3728_v9 = vmul.f32 %v7818_v48, %v3518_v39 }
 0x30b   :  { %v3958_v23 = vmax.f32 %v3847_v54, 0.0  ;;  %v3848_v18 = vadd.f32 %v7838_v26, %v3730_v21 }
 0x30c   :  { %v3956_v61 = vmax.f32 %v3845_v37, 0.0  ;;  %v3846_v56 = vadd.f32 %v7838_v26, %v3728_v9  ;;  %v3106_v7 = vpop.f32.mrb[196].mxu0  ;;  %v5299_v22 = vpop.f32.mrb[252].mxu1 }
 0x30d   :  { %v5116_v8 = vpack.c.bf16 %v3958_v23, %v3958_v23  ;;  %v3959_v58 = vmax.f32 %v3848_v18, 0.0  ;;  %v8021_v62 = vadd.f32 %v3106_v7, %v8368_v28  ;;  %v3539_v14 = vadd.f32 %v5299_v22, %v7807_v49  ;;  %v3108_v63 = vpop.f32.mrb[197].mxu0  ;;  %v3530_v11 = vpop.f32.mrb[253].mxu1  ;;  %v8371_v23 = vld [vmem:[#allocation52_spill] sm:$0xff] }
 0x30e   :  { %v5114_v41 = vpack.c.bf16 %v3956_v61, %v3956_v61  ;;  %v3957_v60 = vmax.f32 %v3846_v56, 0.0  ;;  %v3531_v27 = vadd.f32 %v3530_v11, %v7773_v31  ;;  %v3109_v20 = vpop.f32.mrb[198].mxu0  ;;  %v5300_v24 = vpop.f32.mrb[254].mxu1 }
 0x30f   :  { %4515 = vst.msk [vmem:[%s8252_s4 + $0x148] sm:$0xf] %vm4432_vm1, %v5116_v8  ;;  %v5117_v16 = vpack.c.bf16 %v3959_v58, %v3959_v58  ;;  %v3733_v13 = vmul.f32 %v7818_v48, %v3539_v14  ;;  %v8031_v32 = vadd.f32 %v3109_v20, %v8369_v30  ;;  %v3542_v49 = vadd.f32 %v5300_v24, %v7822_v57  ;;  %v3111_v15 = vpop.f32.mrb[199].mxu0  ;;  %v3533_v2 = vpop.f32.mrb[255].mxu1  ;;  %v8372_v24 = vld [vmem:[#allocation53_spill] sm:$0xff] }
 0x310   :  { %4513 = vst.msk [vmem:[%s8252_s4 + $0x140] sm:$0xf] %vm4432_vm1, %v5114_v41  ;;  %v5115_v31 = vpack.c.bf16 %v3957_v60, %v3957_v60  ;;  %v3731_v3 = vmul.f32 %v7818_v48, %v3531_v27  ;;  %v3534_v52 = vadd.f32 %v3533_v2, %v7783_v6 }
 0x311   :  { %4516 = vst.msk [vmem:[%s8252_s4 + $0x14c] sm:$0xf] %vm4432_vm1, %v5117_v16  ;;  %v3851_v34 = vadd.f32 %v7838_v26, %v3733_v13  ;;  %v3734_v57 = vmul.f32 %v7818_v48, %v3542_v49 }
 0x312   :  { %4514 = vst.msk [vmem:[%s8252_s4 + $0x144] sm:$0xf] %vm4432_vm1, %v5115_v31  ;;  %v3849_v12 = vadd.f32 %v7838_v26, %v3731_v3  ;;  %v3732_v38 = vmul.f32 %v7818_v48, %v3534_v52 }
 0x313   :  { %v3962_v44 = vmax.f32 %v3851_v34, 0.0  ;;  %v3852_v6 = vadd.f32 %v7838_v26, %v3734_v57 }
 0x314   :  { %v3960_v29 = vmax.f32 %v3849_v12, 0.0  ;;  %v3850_v1 = vadd.f32 %v7838_v26, %v3732_v38  ;;  %v3114_v4 = vpop.f32.mrb[200].mxu0  ;;  %v5303_v59 = vpop.f32.mrb[0].mxu1  ;;  %v8373_v12 = vld [vmem:[#allocation54_spill] sm:$0xff] }
 0x315   :  { %v5120_v40 = vpack.c.bf16 %v3962_v44, %v3962_v44  ;;  %v3963_v43 = vmax.f32 %v3852_v6, 0.0  ;;  %v8055_v10 = vadd.f32 %v3114_v4, %v8370_v5  ;;  %v3555_v0 = vadd.f32 %v5303_v59, %v7885_v36  ;;  %v3116_v19 = vpop.f32.mrb[201].mxu0  ;;  %v3546_v17 = vpop.f32.mrb[1].mxu1 }
 0x316   :  { %v5118_v46 = vpack.c.bf16 %v3960_v29, %v3960_v29  ;;  %v3961_v35 = vmax.f32 %v3850_v1, 0.0  ;;  %v3547_v39 = vadd.f32 %v3546_v17, %v7851_v45  ;;  %v3117_v54 = vpop.f32.mrb[202].mxu0  ;;  %v5304_v21 = vpop.f32.mrb[2].mxu1 }
 0x317   :  { %4519 = vst.msk [vmem:[%s8252_s4 + $0x158] sm:$0xf] %vm4432_vm1, %v5120_v40  ;;  %v5121_v37 = vpack.c.bf16 %v3963_v43, %v3963_v43  ;;  %v3737_v9 = vmul.f32 %v7818_v48, %v3555_v0  ;;  %v8065_v18 = vadd.f32 %v3117_v54, %v8371_v23  ;;  %v3558_v36 = vadd.f32 %v5304_v21, %v7895_v55  ;;  %v3119_v61 = vpop.f32.mrb[203].mxu0  ;;  %v3549_v56 = vpop.f32.mrb[3].mxu1 }
 0x318   :  { %4517 = vst.msk [vmem:[%s8252_s4 + $0x150] sm:$0xf] %vm4432_vm1, %v5118_v46  ;;  %v5119_v45 = vpack.c.bf16 %v3961_v35, %v3961_v35  ;;  %v3735_v7 = vmul.f32 %v7818_v48, %v3547_v39  ;;  %v3550_v22 = vadd.f32 %v3549_v56, %v7861_v50  ;;  %v8374_v39 = vld [vmem:[#allocation55_spill] sm:$0xff] }
 0x319   :  { %4520 = vst.msk [vmem:[%s8252_s4 + $0x15c] sm:$0xf] %vm4432_vm1, %v5121_v37  ;;  %v3855_v8 = vadd.f32 %v7838_v26, %v3737_v9  ;;  %v3738_v55 = vmul.f32 %v7818_v48, %v3558_v36 }
 0x31a   :  { %4518 = vst.msk [vmem:[%s8252_s4 + $0x154] sm:$0xf] %vm4432_vm1, %v5119_v45  ;;  %v3853_v58 = vadd.f32 %v7838_v26, %v3735_v7  ;;  %v3736_v28 = vmul.f32 %v7818_v48, %v3550_v22 }
 0x31b   :  { %v3966_v14 = vmax.f32 %v3855_v8, 0.0  ;;  %v3856_v50 = vadd.f32 %v7838_v26, %v3738_v55  ;;  %v8375_v8 = vld [vmem:[#allocation56_spill] sm:$0xff] }
 0x31c   :  { %v3964_v63 = vmax.f32 %v3853_v58, 0.0  ;;  %v3854_v11 = vadd.f32 %v7838_v26, %v3736_v28  ;;  %v3122_v41 = vpop.f32.mrb[204].mxu0  ;;  %v5307_v60 = vpop.f32.mrb[4].mxu1 }
 0x31d   :  { %v5124_v27 = vpack.c.bf16 %v3966_v14, %v3966_v14  ;;  %v3967_v20 = vmax.f32 %v3856_v50, 0.0  ;;  %v8089_v16 = vadd.f32 %v3122_v41, %v8372_v24  ;;  %v3571_v13 = vadd.f32 %v5307_v60, %v7953_v47  ;;  %v3124_v30 = vpop.f32.mrb[205].mxu0  ;;  %v3562_v49 = vpop.f32.mrb[5].mxu1 }
 0x31e   :  { %v5122_v15 = vpack.c.bf16 %v3964_v63, %v3964_v63  ;;  %v3965_v2 = vmax.f32 %v3854_v11, 0.0  ;;  %v3563_v31 = vadd.f32 %v3562_v49, %v7919_v53  ;;  %v3125_v3 = vpop.f32.mrb[206].mxu0  ;;  %v5308_v52 = vpop.f32.mrb[6].mxu1 }
 0x31f   :  { %4523 = vst.msk [vmem:[%s8252_s4 + $0x168] sm:$0xf] %vm4432_vm1, %v5124_v27  ;;  %v5125_v34 = vpack.c.bf16 %v3967_v20, %v3967_v20  ;;  %v3741_v57 = vmul.f32 %v7818_v48, %v3571_v13  ;;  %v8099_v38 = vadd.f32 %v3125_v3, %v8373_v12  ;;  %v3574_v47 = vadd.f32 %v5308_v52, %v7963_v25  ;;  %v3127_v44 = vpop.f32.mrb[207].mxu0  ;;  %v3565_v6 = vpop.f32.mrb[7].mxu1 }
 0x320   :  { %4521 = vst.msk [vmem:[%s8252_s4 + $0x160] sm:$0xf] %vm4432_vm1, %v5122_v15  ;;  %v5123_v53 = vpack.c.bf16 %v3965_v2, %v3965_v2  ;;  %v3739_v29 = vmul.f32 %v7818_v48, %v3563_v31  ;;  %v3566_v1 = vadd.f32 %v3565_v6, %v7929_v42  ;;  %v8376_v15 = vld [vmem:[#allocation57_spill] sm:$0xff] }
 0x321   :  { %4524 = vst.msk [vmem:[%s8252_s4 + $0x16c] sm:$0xf] %vm4432_vm1, %v5125_v34  ;;  %v3859_v4 = vadd.f32 %v7838_v26, %v3741_v57  ;;  %v3742_v25 = vmul.f32 %v7818_v48, %v3574_v47 }
 0x322   :  { %4522 = vst.msk [vmem:[%s8252_s4 + $0x164] sm:$0xf] %vm4432_vm1, %v5123_v53  ;;  %v3857_v59 = vadd.f32 %v7838_v26, %v3739_v29  ;;  %v3740_v40 = vmul.f32 %v7818_v48, %v3566_v1  ;;  %v8377_v29 = vld [vmem:[#allocation58_spill] sm:$0xff] }
 0x323   :  { %v3970_v43 = vmax.f32 %v3859_v4, 0.0  ;;  %v3860_v42 = vadd.f32 %v7838_v26, %v3742_v25 }
 0x324   :  { %v3968_v5 = vmax.f32 %v3857_v59, 0.0  ;;  %v3858_v0 = vadd.f32 %v7838_v26, %v3740_v40  ;;  %v3130_v19 = vpop.f32.mrb[208].mxu0  ;;  %v5311_v17 = vpop.f32.mrb[8].mxu1 }
 0x325   :  { %v5128_v46 = vpack.c.bf16 %v3970_v43, %v3970_v43  ;;  %v3971_v35 = vmax.f32 %v3860_v42, 0.0  ;;  %v8123_v54 = vadd.f32 %v3130_v19, %v8374_v39  ;;  %v3587_v21 = vadd.f32 %v5311_v17, %v8021_v62  ;;  %v3132_v37 = vpop.f32.mrb[209].mxu0  ;;  %v3578_v9 = vpop.f32.mrb[9].mxu1 }
 0x326   :  { %v5126_v23 = vpack.c.bf16 %v3968_v5, %v3968_v5  ;;  %v3969_v36 = vmax.f32 %v3858_v0, 0.0  ;;  %v3579_v61 = vadd.f32 %v3578_v9, %v7987_v33  ;;  %v3133_v56 = vpop.f32.mrb[210].mxu0  ;;  %v5312_v45 = vpop.f32.mrb[10].mxu1  ;;  %v8378_v37 = vld [vmem:[#allocation59_spill] sm:$0xff] }
 0x327   :  { %4527 = vst.msk [vmem:[%s8252_s4 + $0x178] sm:$0xf] %vm4432_vm1, %v5128_v46  ;;  %v5129_v7 = vpack.c.bf16 %v3971_v35, %v3971_v35  ;;  %v3745_v22 = vmul.f32 %v7818_v48, %v3587_v21  ;;  %v8133_v55 = vadd.f32 %v3133_v56, %v8375_v8  ;;  %v3590_v62 = vadd.f32 %v5312_v45, %v8031_v32  ;;  %v3135_v58 = vpop.f32.mrb[211].mxu0  ;;  %v3581_v28 = vpop.f32.mrb[11].mxu1 }
 0x328   :  { %4525 = vst.msk [vmem:[%s8252_s4 + $0x170] sm:$0xf] %vm4432_vm1, %v5126_v23  ;;  %v5127_v33 = vpack.c.bf16 %v3969_v36, %v3969_v36  ;;  %v3743_v14 = vmul.f32 %v7818_v48, %v3579_v61  ;;  %v3582_v50 = vadd.f32 %v3581_v28, %v7997_v51  ;;  %v8379_v28 = vld [vmem:[#allocation61_spill] sm:$0xff] }
 0x329   :  { %4528 = vst.msk [vmem:[%s8252_s4 + $0x17c] sm:$0xf] %vm4432_vm1, %v5129_v7  ;;  %v3863_v63 = vadd.f32 %v7838_v26, %v3745_v22  ;;  %v3746_v32 = vmul.f32 %v7818_v48, %v3590_v62 }
 0x32a   :  { %4526 = vst.msk [vmem:[%s8252_s4 + $0x174] sm:$0xf] %vm4432_vm1, %v5127_v33  ;;  %v3861_v11 = vadd.f32 %v7838_v26, %v3743_v14  ;;  %v3744_v41 = vmul.f32 %v7818_v48, %v3582_v50 }
 0x32b   :  { %v3974_v60 = vmax.f32 %v3863_v63, 0.0  ;;  %v3864_v51 = vadd.f32 %v7838_v26, %v3746_v32 }
 0x32c   :  { %v3972_v27 = vmax.f32 %v3861_v11, 0.0  ;;  %v3862_v20 = vadd.f32 %v7838_v26, %v3744_v41  ;;  %v3138_v24 = vpop.f32.mrb[212].mxu0  ;;  %v5315_v13 = vpop.f32.mrb[12].mxu1 }
 0x32d   :  { %v5132_v30 = vpack.c.bf16 %v3974_v60, %v3974_v60  ;;  %v3975_v49 = vmax.f32 %v3864_v51, 0.0  ;;  %v3139_v2 = vadd.f32 %v3138_v24, %v8376_v15  ;;  %v3603_v31 = vadd.f32 %v5315_v13, %v8089_v16  ;;  %v3140_v3 = vpop.f32.mrb[213].mxu0  ;;  %v3594_v52 = vpop.f32.mrb[13].mxu1 }
 0x32e   :  { %v5130_v34 = vpack.c.bf16 %v3972_v27, %v3972_v27  ;;  %v3973_v57 = vmax.f32 %v3862_v20, 0.0  ;;  %v3595_v12 = vadd.f32 %v3594_v52, %v8055_v10  ;;  %v3141_v47 = vpop.f32.mrb[214].mxu0  ;;  %v5316_v44 = vpop.f32.mrb[14].mxu1 }
 0x32f   :  { %4531 = vst.msk [vmem:[%s8252_s4 + $0x188] sm:$0xf] %vm4432_vm1, %v5132_v30  ;;  %v5133_v6 = vpack.c.bf16 %v3975_v49, %v3975_v49  ;;  %v3749_v53 = vmul.f32 %v7818_v48, %v3603_v31  ;;  %v3142_v1 = vadd.f32 %v3141_v47, %v8377_v29  ;;  %v3606_v16 = vadd.f32 %v5316_v44, %v8099_v38  ;;  %v3143_v4 = vpop.f32.mrb[215].mxu0  ;;  %v3597_v25 = vpop.f32.mrb[15].mxu1  ;;  %v8380_v31 = vld [vmem:[#allocation63_spill] sm:$0xff] }
 0x330   :  { %4529 = vst.msk [vmem:[%s8252_s4 + $0x180] sm:$0xf] %vm4432_vm1, %v5130_v34  ;;  %v5131_v10 = vpack.c.bf16 %v3973_v57, %v3973_v57  ;;  %v3747_v59 = vmul.f32 %v7818_v48, %v3595_v12  ;;  %v3598_v40 = vadd.f32 %v3597_v25, %v8065_v18 }
 0x331   :  { %4532 = vst.msk [vmem:[%s8252_s4 + $0x18c] sm:$0xf] %vm4432_vm1, %v5133_v6  ;;  %v3867_v43 = vadd.f32 %v7838_v26, %v3749_v53  ;;  %v3750_v38 = vmul.f32 %v7818_v48, %v3606_v16 }
 0x332   :  { %4530 = vst.msk [vmem:[%s8252_s4 + $0x184] sm:$0xf] %vm4432_vm1, %v5131_v10  ;;  %v3865_v42 = vadd.f32 %v7838_v26, %v3747_v59  ;;  %v3748_v5 = vmul.f32 %v7818_v48, %v3598_v40 }
 0x333   :  { %v3978_v0 = vmax.f32 %v3867_v43, 0.0  ;;  %v3868_v18 = vadd.f32 %v7838_v26, %v3750_v38 }
 0x334   :  { %v3976_v19 = vmax.f32 %v3865_v42, 0.0  ;;  %v3866_v17 = vadd.f32 %v7838_v26, %v3748_v5  ;;  %v3146_v46 = vpop.f32.mrb[216].mxu0  ;;  %v5319_v35 = vpop.f32.mrb[164].mxu1 }
 0x335   :  { %v5136_v39 = vpack.c.bf16 %v3978_v0, %v3978_v0  ;;  %v3979_v21 = vmax.f32 %v3868_v18, 0.0  ;;  %v3147_v9 = vadd.f32 %v3146_v46, %v8378_v37  ;;  %v3619_v23 = vadd.f32 %v5319_v35, %v3139_v2  ;;  %v3148_v36 = vpop.f32.mrb[217].mxu0  ;;  %v3610_v61 = vpop.f32.mrb[165].mxu1 }
 0x336   :  { %v5134_v56 = vpack.c.bf16 %v3976_v19, %v3976_v19  ;;  %v3977_v45 = vmax.f32 %v3866_v17, 0.0  ;;  %v3611_v7 = vadd.f32 %v3610_v61, %v8123_v54  ;;  %v3149_v22 = vpop.f32.mrb[218].mxu0  ;;  %v5320_v8 = vpop.f32.mrb[166].mxu1 }
 0x337   :  { %4535 = vst.msk [vmem:[%s8252_s4 + $0x198] sm:$0xf] %vm4432_vm1, %v5136_v39  ;;  %v5137_v62 = vpack.c.bf16 %v3979_v21, %v3979_v21  ;;  %v3753_v58 = vmul.f32 %v7818_v48, %v3619_v23  ;;  %v3150_v33 = vadd.f32 %v3149_v22, %v8379_v28  ;;  %v3622_v14 = vadd.f32 %v5320_v8, %v3142_v1  ;;  %v3151_v50 = vpop.f32.mrb[219].mxu0  ;;  %v3613_v63 = vpop.f32.mrb[167].mxu1 }
 0x338   :  { %4533 = vst.msk [vmem:[%s8252_s4 + $0x190] sm:$0xf] %vm4432_vm1, %v5134_v56  ;;  %v5135_v54 = vpack.c.bf16 %v3977_v45, %v3977_v45  ;;  %v3751_v32 = vmul.f32 %v7818_v48, %v3611_v7  ;;  %v3614_v11 = vadd.f32 %v3613_v63, %v8133_v55 }
 0x339   :  { %4536 = vst.msk [vmem:[%s8252_s4 + $0x19c] sm:$0xf] %vm4432_vm1, %v5137_v62  ;;  %v3871_v41 = vadd.f32 %v7838_v26, %v3753_v58  ;;  %v3754_v60 = vmul.f32 %v7818_v48, %v3622_v14 }
 0x33a   :  { %4534 = vst.msk [vmem:[%s8252_s4 + $0x194] sm:$0xf] %vm4432_vm1, %v5135_v54  ;;  %v3869_v51 = vadd.f32 %v7838_v26, %v3751_v32  ;;  %v3752_v27 = vmul.f32 %v7818_v48, %v3614_v11 }
 0x33b   :  { %v3982_v20 = vmax.f32 %v3871_v41, 0.0  ;;  %v3872_v55 = vadd.f32 %v7838_v26, %v3754_v60 }
 0x33c   :  { %v3980_v24 = vmax.f32 %v3869_v51, 0.0  ;;  %v3870_v13 = vadd.f32 %v7838_v26, %v3752_v27  ;;  %v3154_v30 = vpop.f32.mrb[220].mxu0  ;;  %v5323_v49 = vpop.f32.mrb[16].mxu1 }
 0x33d   :  { %v5140_v15 = vpack.c.bf16 %v3982_v20, %v3982_v20  ;;  %v3983_v2 = vmax.f32 %v3872_v55, 0.0  ;;  %v3155_v3 = vadd.f32 %v3154_v30, %v8380_v31  ;;  %v3156_v52 = vpop.f32.mrb[221].mxu0  ;;  %v3626_v34 = vpop.f32.mrb[17].mxu1 }
 0x33e   :  { %v5138_v57 = vpack.c.bf16 %v3980_v24, %v3980_v24  ;;  %v3981_v12 = vmax.f32 %v3870_v13, 0.0  ;;  %v3627_v47 = vadd.f32 %v3626_v34, %v3147_v9  ;;  %v3157_v44 = vpop.f32.mrb[222].mxu0  ;;  %v5324_v6 = vpop.f32.mrb[18].mxu1 }
 0x33f   :  { %4539 = vst.msk [vmem:[%s8252_s4 + $0x1a8] sm:$0xf] %vm4432_vm1, %v5140_v15  ;;  %v5141_v53 = vpack.c.bf16 %v3983_v2, %v3983_v2  ;;  %v3635_v29 = vadd.f32 %v5323_v49, %v3155_v3  ;;  %v3158_v1 = vpop.f32.mrb[223].mxu0  ;;  %v3629_v16 = vpop.f32.mrb[19].mxu1 }
 0x340   :  { %4537 = vst.msk [vmem:[%s8252_s4 + $0x1a0] sm:$0xf] %vm4432_vm1, %v5138_v57  ;;  %v5139_v4 = vpack.c.bf16 %v3981_v12, %v3981_v12  ;;  %v3755_v25 = vmul.f32 %v7818_v48, %v3627_v47  ;;  %v3630_v10 = vadd.f32 %v3629_v16, %v3150_v33 }
 0x341   :  { %4540 = vst.msk [vmem:[%s8252_s4 + $0x1ac] sm:$0xf] %vm4432_vm1, %v5141_v53  ;;  %v3757_v59 = vmul.f32 %v7818_v48, %v3635_v29 }
 0x342   :  { %4538 = vst.msk [vmem:[%s8252_s4 + $0x1a4] sm:$0xf] %vm4432_vm1, %v5139_v4  ;;  %v3873_v40 = vadd.f32 %v7838_v26, %v3755_v25  ;;  %v3756_v43 = vmul.f32 %v7818_v48, %v3630_v10 }
 0x343   :  { %v3875_v38 = vadd.f32 %v7838_v26, %v3757_v59 }
 0x344   :  { %v3984_v42 = vmax.f32 %v3873_v40, 0.0  ;;  %v3874_v5 = vadd.f32 %v7838_v26, %v3756_v43 }
 0x345   :  { %v3986_v0 = vmax.f32 %v3875_v38, 0.0 }
 0x346   :  { %v5142_v18 = vpack.c.bf16 %v3984_v42, %v3984_v42  ;;  %v3985_v19 = vmax.f32 %v3874_v5, 0.0 }
 0x347   :  { %v5144_v17 = vpack.c.bf16 %v3986_v0, %v3986_v0 }
 0x348   :  { %4541 = vst.msk [vmem:[%s8252_s4 + $0x1b0] sm:$0xf] %vm4432_vm1, %v5142_v18  ;;  %v5143_v46 = vpack.c.bf16 %v3985_v19, %v3985_v19 }
 0x349   :  { %4544 = vst.msk [vmem:[%s8252_s4 + $0x1b8] sm:$0x1] %vm4543_vm2, %v5144_v17 }
 0x34a   :  { %4542 = vst.msk [vmem:[%s8252_s4 + $0x1b4] sm:$0xf] %vm4432_vm1, %v5143_v46 }

// kernel: cnn_forward.5
= control target key start
LH: loop header
LB: loop body
LE: loop exit
PB: predicated region body
PF: predicated region fallthrough
CT: control target
= control target key end

     0   :  { %10 = vsyncpa [#allocation4], 0  ;;  %s9924_s18 = smov 0   ;;  %s11244_s0 = inlined_call_operand.vmem [shape: bf16[2,14336], index: 0, kind: input, shape index: {}]   ;;  %s11245_s1 = inlined_call_operand.vmem [shape: bf16[14336,256], index: 1, kind: input, shape index: {}]   ;;  %s11246_s2 = inlined_call_operand.vmem [shape: f32[1,256], index: 2, kind: input, shape index: {}]   ;;  %s11247_s3 = inlined_call_operand.vmem [shape: f32[256,4], index: 3, kind: input, shape index: {}]   ;;  %s11248_s4 = inlined_call_operand.vmem [shape: f32[1,4], index: 4, kind: input, shape index: {}]   ;;  %s11249_s5 = inlined_call_operand.hbm [shape: f32[2,4], index: 5, kind: output, shape index: {}]  }
   0x1 LB: > { %s9930_s19 = sadd.s32 4294967295, %s9888_s18   ;;  %p7397_p0 = scmp.ge.s32.totalorder %s9888_s18, 1  ;;  %s9888_s18 = sphi %s9924_s18, %s16_s18  }
   0x2   : > { %p195_p1 = scmp.lt.s32.totalorder %s9888_s18, 3 }
   0x4   : > { %p196_p2 = pnand %p7397_p0, %p195_p1 }
   0x5   : > { %s223_s20 = smul.u32 (!%p196_p2), 56, %s9930_s19  ;;  %p7400_p5 = scmp.ne.s32.totalorder (!%p196_p2), %s9930_s19, 0 }
   0x6   : > { %199 = sbr.rel (%p196_p2) target bundleno = 1401 (0x579), region = 40 }
   0x7   : > { %s228_s21 = smul.u32 (!%p196_p2), 896, %s9930_s19  ;;  %p224_p3 = scmp.lt.s32.totalorder (!%p196_p2), %s223_s20, 111 }
   0x9   : > { %p229_p4 = scmp.lt.s32.totalorder (!%p196_p2), %s228_s21, 1791 }
   0xd   : > { %s11251_s20 = smov (!%p224_p3, %s223_s20), 111  ;;  %s11253_s21 = smov (!%p229_p4, %s228_s21), 1791 }
   0xe   : > { %s9939_s24 = scalar_lea.vmem %s11244_s0, %s11251_s20  ;;  %s8303_s25 = sshll.u32 %s11253_s21, 3  ;;  %v9890_v0 = vmov (!%p7400_p5), 0.0  }
   0xf   : > { %s9944_s28 = scalar_lea.vmem %s11245_s1, %s8303_s25  ;;  %238 = sbr.rel (%p7400_p5) target bundleno = 22 (0x16), region = 44  ;;  %239 = vst [vmem:[#allocation2] sm:$0xf] (!%p7400_p5), %v9890_v0 }
  0x16 PF: > { %v8495_v1 = vld [vmem:[%s9944_s28 + $0x4] ss:$8 sps:$4 sm:$0xff]   ;;  %v8499_v3 = vld [vmem:[%s9944_s28] ss:$8 sps:$4 sm:$0xff]   ;;  %v8501_v5 = vld [vmem:[%s9944_s28 + $0x14] ss:$8 sps:$4 sm:$0xff]   ;;  %v1155_v39 = vlaneseq }
  0x17   : > { %v8497_v2 = vld [vmem:[%s9944_s28 + $0xe04] ss:$8 sps:$4 sm:$0xff]   ;;  %6030 = vmatprep.subr.bf16.mxu1 %v8495_v1  ;;  %v8500_v4 = vld [vmem:[%s9944_s28 + $0xe00] ss:$8 sps:$4 sm:$0xff]   ;;  %v8503_v6 = vld [vmem:[%s9944_s28 + $0xe14] ss:$8 sps:$4 sm:$0xff]  }
  0x18   : > { %6604 = vmatprep.subr.bf16.mxu0 %v8497_v2  ;;  %6031 = vmatpush1.bf16.msra.mxu1 %v8499_v3  ;;  %v8505_v7 = vld [vmem:[%s9944_s28 + $0x10] ss:$8 sps:$4 sm:$0xff]   ;;  %v8507_v9 = vld [vmem:[%s9944_s28 + $0x24] ss:$8 sps:$4 sm:$0xff]   ;;  %v8511_v11 = vld [vmem:[%s9944_s28 + $0x20] ss:$8 sps:$4 sm:$0xff]  }
  0x19   : > { %6605 = vmatpush1.bf16.msra.mxu0 %v8500_v4  ;;  %6032 = vmatprep.subr.bf16.mxu1 %v8501_v5  ;;  %v8506_v8 = vld [vmem:[%s9944_s28 + $0xe10] ss:$8 sps:$4 sm:$0xff]   ;;  %v8509_v10 = vld [vmem:[%s9944_s28 + $0xe24] ss:$8 sps:$4 sm:$0xff]   ;;  %v8512_v12 = vld [vmem:[%s9944_s28 + $0xe20] ss:$8 sps:$4 sm:$0xff]  }
  0x1a   : > { %6606 = vmatprep.subr.bf16.mxu0 %v8503_v6  ;;  %v8513_v13 = vld [vmem:[%s9944_s28 + $0x34] ss:$8 sps:$4 sm:$0xff]   ;;  %v8517_v15 = vld [vmem:[%s9944_s28 + $0x30] ss:$8 sps:$4 sm:$0xff]   ;;  %v8519_v17 = vld [vmem:[%s9944_s28 + $0x44] ss:$8 sps:$4 sm:$0xff]  }
  0x1b   : > { %v8515_v14 = vld [vmem:[%s9944_s28 + $0xe34] ss:$8 sps:$4 sm:$0xff]   ;;  %v8518_v16 = vld [vmem:[%s9944_s28 + $0xe30] ss:$8 sps:$4 sm:$0xff]   ;;  %v8521_v18 = vld [vmem:[%s9944_s28 + $0xe44] ss:$8 sps:$4 sm:$0xff]  }
  0x1c   : > { %6033 = vmatpush1.bf16.msra.mxu1 %v8505_v7  ;;  %v8523_v19 = vld [vmem:[%s9944_s28 + $0x40] ss:$8 sps:$4 sm:$0xff]   ;;  %v8525_v21 = vld [vmem:[%s9944_s28 + $0x54] ss:$8 sps:$4 sm:$0xff]   ;;  %v8529_v23 = vld [vmem:[%s9944_s28 + $0x50] ss:$8 sps:$4 sm:$0xff]  }
  0x1d   : > { %6607 = vmatpush1.bf16.msra.mxu0 %v8506_v8  ;;  %6034 = vmatprep.subr.bf16.mxu1 %v8507_v9  ;;  %v8524_v20 = vld [vmem:[%s9944_s28 + $0xe40] ss:$8 sps:$4 sm:$0xff]   ;;  %v8527_v22 = vld [vmem:[%s9944_s28 + $0xe54] ss:$8 sps:$4 sm:$0xff]   ;;  %v8530_v24 = vld [vmem:[%s9944_s28 + $0xe50] ss:$8 sps:$4 sm:$0xff]  }
  0x1e   : > { %6608 = vmatprep.subr.bf16.mxu0 %v8509_v10  ;;  %v8531_v25 = vld [vmem:[%s9944_s28 + $0x64] ss:$8 sps:$4 sm:$0xff]   ;;  %v8535_v27 = vld [vmem:[%s9944_s28 + $0x60] ss:$8 sps:$4 sm:$0xff]   ;;  %v8537_v29 = vld [vmem:[%s9944_s28 + $0x74] ss:$8 sps:$4 sm:$0xff]  }
  0x1f   : > { %v8533_v26 = vld [vmem:[%s9944_s28 + $0xe64] ss:$8 sps:$4 sm:$0xff]   ;;  %v8536_v28 = vld [vmem:[%s9944_s28 + $0xe60] ss:$8 sps:$4 sm:$0xff]   ;;  %v8539_v30 = vld [vmem:[%s9944_s28 + $0xe74] ss:$8 sps:$4 sm:$0xff]  }
  0x20   : > { %6035 = vmatpush1.bf16.msra.mxu1 %v8511_v11  ;;  %v8541_v31 = vld [vmem:[%s9944_s28 + $0x70] ss:$8 sps:$4 sm:$0xff]   ;;  %v8543_v33 = vld [vmem:[%s9944_s28 + $0x84] ss:$8 sps:$4 sm:$0xff]   ;;  %v8547_v35 = vld [vmem:[%s9944_s28 + $0x80] ss:$8 sps:$4 sm:$0xff]  }
  0x21   : > { %6609 = vmatpush1.bf16.msra.mxu0 %v8512_v12  ;;  %6036 = vmatprep.subr.bf16.mxu1 %v8513_v13  ;;  %v8542_v32 = vld [vmem:[%s9944_s28 + $0xe70] ss:$8 sps:$4 sm:$0xff]   ;;  %v8545_v34 = vld [vmem:[%s9944_s28 + $0xe84] ss:$8 sps:$4 sm:$0xff]   ;;  %v8548_v36 = vld [vmem:[%s9944_s28 + $0xe80] ss:$8 sps:$4 sm:$0xff]  }
  0x22   : > { %6610 = vmatprep.subr.bf16.mxu0 %v8515_v14  ;;  %v9891_v37 = vmov 1966171168   ;;  %v8549_v40 = vld [vmem:[%s9944_s28 + $0x94] ss:$8 sps:$4 sm:$0xff]   ;;  %v8553_v42 = vld [vmem:[%s9944_s28 + $0x90] ss:$8 sps:$4 sm:$0xff]  }
  0x23   : > { %v1153_v38 = vunpack.c.l.s4 %v9891_v37  ;;  %v8551_v41 = vld [vmem:[%s9944_s28 + $0xe94] ss:$8 sps:$4 sm:$0xff]   ;;  %v9986_v44 = vshrl.u32 %v1155_v39, 7  ;;  %v8554_v45 = vld [vmem:[%s9944_s28 + $0xe90] ss:$8 sps:$4 sm:$0xff]   ;;  %v9999_v53 = vld [vmem:[%s9939_s24] sm:$0xff] }
  0x24   : > { %6037 = vmatpush1.bf16.msra.mxu1 %v8517_v15  ;;  %v8555_v46 = vld [vmem:[%s9944_s28 + $0xa4] ss:$8 sps:$4 sm:$0xff]   ;;  %v8559_v48 = vld [vmem:[%s9944_s28 + $0xa0] ss:$8 sps:$4 sm:$0xff]   ;;  %v8561_v51 = vld [vmem:[%s9944_s28 + $0xb4] ss:$8 sps:$4 sm:$0xff]  }
  0x25   : > { %6611 = vmatpush1.bf16.msra.mxu0 %v8518_v16  ;;  %6038 = vmatprep.subr.bf16.mxu1 %v8519_v17  ;;  %v1154_v43 = vunpack.c.0.s8 %v1153_v38  ;;  %v8557_v47 = vld [vmem:[%s9944_s28 + $0xea4] ss:$8 sps:$4 sm:$0xff]   ;;  %v8560_v49 = vld [vmem:[%s9944_s28 + $0xea0] ss:$8 sps:$4 sm:$0xff]   ;;  %v8563_v52 = vld [vmem:[%s9944_s28 + $0xeb4] ss:$8 sps:$4 sm:$0xff]  }
  0x26   : > { %6612 = vmatprep.subr.bf16.mxu0 %v8521_v18  ;;  %v8565_v54 = vld [vmem:[%s9944_s28 + $0xb0] ss:$8 sps:$4 sm:$0xff]   ;;  %v8567_v58 = vld [vmem:[%s9944_s28 + $0xc4] ss:$8 sps:$4 sm:$0xff]   ;;  %v8571_v0 = vld [vmem:[%s9944_s28 + $0xc0] ss:$8 sps:$4 sm:$0xff]  }
  0x27   : > { %v9994_v50 = vsub.s32 %v1154_v43, %v9986_v44  ;;  %v8566_v56 = vld [vmem:[%s9944_s28 + $0xeb0] ss:$8 sps:$4 sm:$0xff]   ;;  %v8569_v59 = vld [vmem:[%s9944_s28 + $0xec4] ss:$8 sps:$4 sm:$0xff]   ;;  %v8572_v1 = vld [vmem:[%s9944_s28 + $0xec0] ss:$8 sps:$4 sm:$0xff]  }
  0x28   : > { %6039 = vmatpush1.bf16.msra.mxu1 %v8523_v19  ;;  %v244_v57 = vld [vmem:[%s9939_s24 + $0x18] sm:$0xff]  ;;  %v8579_v8 = vld [vmem:[%s9944_s28 + $0xe4] ss:$8 sps:$4 sm:$0xff]   ;;  %v8583_v10 = vld [vmem:[%s9944_s28 + $0xe0] ss:$8 sps:$4 sm:$0xff]   ;;  %p8297_p6 = scmp.ne.s32.totalorder %s9930_s19, 1 }
  0x29   : > { %6613 = vmatpush1.bf16.msra.mxu0 %v8524_v20  ;;  %6040 = vmatprep.subr.bf16.mxu1 %v8525_v21  ;;  %v1158_v55 = vrot.slane %v9999_v53, %v9994_v50  ;;  %v1298_v61 = vcombine.high %v244_v57, %v244_v57  ;;  %v8573_v2 = vld [vmem:[%s9944_s28 + $0xd4] ss:$8 sps:$4 sm:$0xff]   ;;  %v8577_v6 = vld [vmem:[%s9944_s28 + $0xd0] ss:$8 sps:$4 sm:$0xff]   ;;  %v8581_v9 = vld [vmem:[%s9944_s28 + $0xee4] ss:$8 sps:$4 sm:$0xff]  }
  0x2a   : > { %6614 = vmatprep.subr.bf16.mxu0 %v8527_v22  ;;  %v8575_v3 = vld [vmem:[%s9944_s28 + $0xed4] ss:$8 sps:$4 sm:$0xff]   ;;  %v8578_v7 = vld [vmem:[%s9944_s28 + $0xed0] ss:$8 sps:$4 sm:$0xff]   ;;  %v8584_v11 = vld [vmem:[%s9944_s28 + $0xee0] ss:$8 sps:$4 sm:$0xff]  }
  0x2b   : > { %v1166_v60 = vcombine.high %v1158_v55, %v1158_v55  ;;  %v1312_v63 = vrot.slane %v1298_v61, %v9994_v50  ;;  %v8585_v12 = vld [vmem:[%s9944_s28 + $0xf4] ss:$8 sps:$4 sm:$0xff]   ;;  %v8589_v14 = vld [vmem:[%s9944_s28 + $0xf0] ss:$8 sps:$4 sm:$0xff]   ;;  %v8594_v16 = vld [vmem:[%s9944_s28 + $0x104] ss:$8 sps:$4 sm:$0xff]   ;;  %v10028_v18 = vrot.slane %v1158_v55, %v9994_v50 }
  0x2c   : > { %6041 = vmatpush1.bf16.msra.mxu1 %v8529_v23  ;;  %v8587_v13 = vld [vmem:[%s9944_s28 + $0xef4] ss:$8 sps:$4 sm:$0xff]   ;;  %v8590_v15 = vld [vmem:[%s9944_s28 + $0xef0] ss:$8 sps:$4 sm:$0xff]   ;;  %v8598_v17 = vld [vmem:[%s9944_s28 + $0xf04] ss:$8 sps:$4 sm:$0xff]  }
  0x2d   : > { %6615 = vmatpush1.bf16.msra.mxu0 %v8530_v24  ;;  %6042 = vmatprep.subr.bf16.mxu1 %v8531_v25  ;;  %v1188_v62 = vrot.slane %v1166_v60, %v9994_v50  ;;  %v1314_v4 = vcombine.high %v1312_v63, %v1312_v63  ;;  %v10031_v19 = vrot.slane %v1312_v63, %v9994_v50  ;;  %v8592_v20 = vld [vmem:[%s9944_s28 + $0x100] ss:$8 sps:$4 sm:$0xff]   ;;  %v8601_v22 = vld [vmem:[%s9944_s28 + $0x114] ss:$8 sps:$4 sm:$0xff]   ;;  %v8622_v37 = vld [vmem:[%s9944_s28 + $0xf44] ss:$8 sps:$4 sm:$0xff]  }
  0x2e   : > { %6616 = vmatprep.subr.bf16.mxu0 %v8533_v26  ;;  %v8596_v21 = vld [vmem:[%s9944_s28 + $0xf00] ss:$8 sps:$4 sm:$0xff]   ;;  %v8604_v23 = vld [vmem:[%s9944_s28 + $0xf14] ss:$8 sps:$4 sm:$0xff]   ;;  %v8599_v26 = vld [vmem:[%s9944_s28 + $0x110] ss:$8 sps:$4 sm:$0xff]  }
  0x2f   : > { %6062 = vmatprep.mubr.bf16.mxu1 %v1188_v62  ;;  %v1342_v5 = vrot.slane %v1314_v4, %v9994_v50  ;;  %v1198_v24 = vcombine.high %v1188_v62, %v1188_v62  ;;  %v8617_v38 = vld [vmem:[%s9944_s28 + $0x140] ss:$8 sps:$4 sm:$0xff]   ;;  %v8626_v43 = vld [vmem:[%s9944_s28 + $0xf50] ss:$8 sps:$4 sm:$0xff]   ;;  %v8643_v55 = vld [vmem:[%s9944_s28 + $0x184] ss:$8 sps:$4 sm:$0xff]  }
  0x30   : > { %6043 = vmatpush1.bf16.msra.mxu1 %v8535_v27  ;;  %v8602_v27 = vld [vmem:[%s9944_s28 + $0xf10] ss:$8 sps:$4 sm:$0xff]   ;;  %v8620_v39 = vld [vmem:[%s9944_s28 + $0xf40] ss:$8 sps:$4 sm:$0xff]   ;;  %v8652_v60 = vld [vmem:[%s9944_s28 + $0xf94] ss:$8 sps:$4 sm:$0xff]  }
  0x31   : > { %6617 = vmatpush1.bf16.msra.mxu0 %v8536_v28  ;;  %6044 = vmatprep.subr.bf16.mxu1 %v8537_v29  ;;  %v1346_v25 = vcombine.high %v1342_v5, %v1342_v5  ;;  %v8607_v28 = vld [vmem:[%s9944_s28 + $0x124] ss:$8 sps:$4 sm:$0xff]   ;;  %v8641_v57 = vld [vmem:[%s9944_s28 + $0x180] ss:$8 sps:$4 sm:$0xff]   ;;  %v8647_v61 = vld [vmem:[%s9944_s28 + $0x190] ss:$8 sps:$4 sm:$0xff]  }
  0x32   : > { %6618 = vmatprep.subr.bf16.mxu0 %v8539_v30  ;;  %6636 = vmatprep.mubr.bf16.mxu0 %v1342_v5  ;;  %v8610_v29 = vld [vmem:[%s9944_s28 + $0xf24] ss:$8 sps:$4 sm:$0xff]   ;;  %v8605_v30 = vld [vmem:[%s9944_s28 + $0x120] ss:$8 sps:$4 sm:$0xff]   ;;  %v8650_v62 = vld [vmem:[%s9944_s28 + $0xf90] ss:$8 sps:$4 sm:$0xff]  }
  0x33   : > { %v8655_v63 = vld [vmem:[%s9944_s28 + $0x1a4] ss:$8 sps:$4 sm:$0xff]   ;;  %v8664_v4 = vld [vmem:[%s9944_s28 + $0xfb4] ss:$8 sps:$4 sm:$0xff]   ;;  %v8659_v5 = vld [vmem:[%s9944_s28 + $0x1b0] ss:$8 sps:$4 sm:$0xff]  }
  0x34   : > { %6045 = vmatpush1.bf16.msra.mxu1 %v8541_v31  ;;  %v8608_v31 = vld [vmem:[%s9944_s28 + $0xf20] ss:$8 sps:$4 sm:$0xff]   ;;  %vm7337_vm0 = vcmask (!%p8297_p6), 25600  }
  0x35   : > { %6619 = vmatpush1.bf16.msra.mxu0 %v8542_v32  ;;  %6046 = vmatprep.subr.bf16.mxu1 %v8543_v33  ;;  %v8613_v32 = vld [vmem:[%s9944_s28 + $0x134] ss:$8 sps:$4 sm:$0xff]  }
  0x36   : > { %6620 = vmatprep.subr.bf16.mxu0 %v8545_v34  ;;  %v8616_v33 = vld [vmem:[%s9944_s28 + $0xf34] ss:$8 sps:$4 sm:$0xff]   ;;  %v8611_v34 = vld [vmem:[%s9944_s28 + $0x130] ss:$8 sps:$4 sm:$0xff]  }
  0x38   : > { %6047 = vmatpush1.bf16.msra.mxu1 %v8547_v35  ;;  %v8614_v35 = vld [vmem:[%s9944_s28 + $0xf30] ss:$8 sps:$4 sm:$0xff]  }
  0x39   : > { %6621 = vmatpush1.bf16.msra.mxu0 %v8548_v36  ;;  %6048 = vmatprep.subr.bf16.mxu1 %v8549_v40  ;;  %v8619_v36 = vld [vmem:[%s9944_s28 + $0x144] ss:$8 sps:$4 sm:$0xff]   ;;  %v8625_v40 = vld [vmem:[%s9944_s28 + $0x154] ss:$8 sps:$4 sm:$0xff]  }
  0x3a   : > { %6622 = vmatprep.subr.bf16.mxu0 %v8551_v41  ;;  %v8628_v41 = vld [vmem:[%s9944_s28 + $0xf54] ss:$8 sps:$4 sm:$0xff]  }
  0x3c   : > { %6049 = vmatpush1.bf16.msra.mxu1 %v8553_v42  ;;  %v8623_v42 = vld [vmem:[%s9944_s28 + $0x150] ss:$8 sps:$4 sm:$0xff]  }
  0x3d   : > { %6623 = vmatpush1.bf16.msra.mxu0 %v8554_v45  ;;  %6050 = vmatprep.subr.bf16.mxu1 %v8555_v46  ;;  %v8631_v45 = vld [vmem:[%s9944_s28 + $0x164] ss:$8 sps:$4 sm:$0xff]  }
  0x3e   : > { %6624 = vmatprep.subr.bf16.mxu0 %v8557_v47  ;;  %v8634_v46 = vld [vmem:[%s9944_s28 + $0xf64] ss:$8 sps:$4 sm:$0xff]   ;;  %v8629_v47 = vld [vmem:[%s9944_s28 + $0x160] ss:$8 sps:$4 sm:$0xff]  }
  0x40   : > { %6051 = vmatpush1.bf16.msra.mxu1 %v8559_v48  ;;  %v8632_v48 = vld [vmem:[%s9944_s28 + $0xf60] ss:$8 sps:$4 sm:$0xff]  }
  0x41   : > { %6625 = vmatpush1.bf16.msra.mxu0 %v8560_v49  ;;  %6052 = vmatprep.subr.bf16.mxu1 %v8561_v51  ;;  %v8637_v49 = vld [vmem:[%s9944_s28 + $0x174] ss:$8 sps:$4 sm:$0xff]  }
  0x42   : > { %6626 = vmatprep.subr.bf16.mxu0 %v8563_v52  ;;  %v8640_v51 = vld [vmem:[%s9944_s28 + $0xf74] ss:$8 sps:$4 sm:$0xff]   ;;  %v8635_v52 = vld [vmem:[%s9944_s28 + $0x170] ss:$8 sps:$4 sm:$0xff]  }
  0x44   : > { %6053 = vmatpush1.bf16.msra.mxu1 %v8565_v54  ;;  %v8638_v54 = vld [vmem:[%s9944_s28 + $0xf70] ss:$8 sps:$4 sm:$0xff]  }
  0x45   : > { %6627 = vmatpush1.bf16.msra.mxu0 %v8566_v56  ;;  %6054 = vmatprep.subr.bf16.mxu1 %v8567_v58  ;;  %v8646_v56 = vld [vmem:[%s9944_s28 + $0xf84] ss:$8 sps:$4 sm:$0xff]   ;;  %v8644_v58 = vld [vmem:[%s9944_s28 + $0xf80] ss:$8 sps:$4 sm:$0xff]  }
  0x46   : > { %6628 = vmatprep.subr.bf16.mxu0 %v8569_v59  ;;  %v8649_v59 = vld [vmem:[%s9944_s28 + $0x194] ss:$8 sps:$4 sm:$0xff]  }
  0x48   : > { %6055 = vmatpush1.bf16.msra.mxu1 %v8571_v0  ;;  %v8658_v0 = vld [vmem:[%s9944_s28 + $0xfa4] ss:$8 sps:$4 sm:$0xff]  }
  0x49   : > { %6629 = vmatpush1.bf16.msra.mxu0 %v8572_v1  ;;  %6056 = vmatprep.subr.bf16.mxu1 %v8573_v2  ;;  %v8653_v1 = vld [vmem:[%s9944_s28 + $0x1a0] ss:$8 sps:$4 sm:$0xff]  }
  0x4a   : > { %6630 = vmatprep.subr.bf16.mxu0 %v8575_v3  ;;  %v8656_v2 = vld [vmem:[%s9944_s28 + $0xfa0] ss:$8 sps:$4 sm:$0xff]   ;;  %v8661_v3 = vld [vmem:[%s9944_s28 + $0x1b4] ss:$8 sps:$4 sm:$0xff]  }
  0x4c   : > { %6057 = vmatpush1.bf16.msra.mxu1 %v8577_v6  ;;  %v8662_v6 = vld [vmem:[%s9944_s28 + $0xfb0] ss:$8 sps:$4 sm:$0xff]  }
  0x4d   : > { %6631 = vmatpush1.bf16.msra.mxu0 %v8578_v7  ;;  %6058 = vmatprep.subr.bf16.mxu1 %v8579_v8  ;;  %v8667_v7 = vld [vmem:[%s9944_s28 + $0x1c4] ss:$8 sps:$4 sm:$0xff]  }
  0x4e   : > { %6632 = vmatprep.subr.bf16.mxu0 %v8581_v9  ;;  %v8670_v8 = vld [vmem:[%s9944_s28 + $0xfc4] ss:$8 sps:$4 sm:$0xff]   ;;  %v8665_v9 = vld [vmem:[%s9944_s28 + $0x1c0] ss:$8 sps:$4 sm:$0xff]  }
  0x50   : > { %6059 = vmatpush1.bf16.msra.mxu1 %v8583_v10  ;;  %v8668_v10 = vld [vmem:[%s9944_s28 + $0xfc0] ss:$8 sps:$4 sm:$0xff]  }
  0x51   : > { %6633 = vmatpush1.bf16.msra.mxu0 %v8584_v11  ;;  %6060 = vmatprep.subr.bf16.mxu1 %v8585_v12  ;;  %v8673_v11 = vld [vmem:[%s9944_s28 + $0x1d4] ss:$8 sps:$4 sm:$0xff]  }
  0x52   : > { %6634 = vmatprep.subr.bf16.mxu0 %v8587_v13  ;;  %v8676_v12 = vld [vmem:[%s9944_s28 + $0xfd4] ss:$8 sps:$4 sm:$0xff]   ;;  %v8671_v13 = vld [vmem:[%s9944_s28 + $0x1d0] ss:$8 sps:$4 sm:$0xff]  }
  0x54   : > { %6061 = vmatpush1.bf16.msra.mxu1 %v8589_v14  ;;  %v8674_v14 = vld [vmem:[%s9944_s28 + $0xfd0] ss:$8 sps:$4 sm:$0xff]  }
  0x55   : > { %6635 = vmatpush1.bf16.msra.mxu0 %v8590_v15  ;;  %6071 = vmatprep.subr.bf16.mxu1 %v8594_v16  ;;  %v8679_v15 = vld [vmem:[%s9944_s28 + $0x1e4] ss:$8 sps:$4 sm:$0xff]  }
  0x56   : > { %6645 = vmatprep.subr.bf16.mxu0 %v8598_v17  ;;  %v8682_v16 = vld [vmem:[%s9944_s28 + $0xfe4] ss:$8 sps:$4 sm:$0xff]   ;;  %v1151_v17 = vcombine.high %v9999_v53, %v9999_v53  ;;  %v8686_v53 = vld [vmem:[%s9944_s28 + $0xff0] ss:$8 sps:$4 sm:$0xff]  }
  0x57   : > { %6063 = vmatmul.mubr.bf16.vlgmr.msra.gmra.mrb[0].mxu1 %v10028_v18 }
  0x58   : > { %6637 = vmatmul.mubr.bf16.vlgmr.msra.gmra.mrb[0].mxu0 %v10031_v19  ;;  %6072 = vmatpush1.bf16.msra.mxu1 %v8592_v20  ;;  %v8677_v20 = vld [vmem:[%s9944_s28 + $0x1e0] ss:$8 sps:$4 sm:$0xff]  }
  0x59   : > { %6646 = vmatpush1.bf16.msra.mxu0 %v8596_v21  ;;  %6073 = vmatprep.subr.bf16.mxu1 %v8601_v22  ;;  %v8680_v21 = vld [vmem:[%s9944_s28 + $0xfe0] ss:$8 sps:$4 sm:$0xff]   ;;  %v8685_v22 = vld [vmem:[%s9944_s28 + $0x1f4] ss:$8 sps:$4 sm:$0xff]  }
  0x5a   : > { %6647 = vmatprep.subr.bf16.mxu0 %v8604_v23  ;;  %6103 = vmatprep.mubr.bf16.mxu1 %v1198_v24  ;;  %v8688_v23 = vld [vmem:[%s9944_s28 + $0xff4] ss:$8 sps:$4 sm:$0xff]   ;;  %v10098_v24 = vrot.slane %v1151_v17, %v9994_v50  ;;  %v8755_v17 = vld [vmem:[%s9944_s28 + $0x2b0] ss:$8 sps:$4 sm:$0xff]  }
  0x5b   : > { %6677 = vmatprep.mubr.bf16.mxu0 %v1346_v25  ;;  %v8683_v25 = vld [vmem:[%s9944_s28 + $0x1f0] ss:$8 sps:$4 sm:$0xff]  }
  0x5c   : > { %6074 = vmatpush1.bf16.msra.mxu1 %v8599_v26  ;;  %v8691_v26 = vld [vmem:[%s9944_s28 + $0x204] ss:$8 sps:$4 sm:$0xff]  }
  0x5d   : > { %6648 = vmatpush1.bf16.msra.mxu0 %v8602_v27  ;;  %6075 = vmatprep.subr.bf16.mxu1 %v8607_v28  ;;  %v8694_v27 = vld [vmem:[%s9944_s28 + $0x1004] ss:$8 sps:$4 sm:$0xff]   ;;  %v1167_v28 = vcombine.high %v10098_v24, %v10098_v24 }
  0x5e   : > { %6649 = vmatprep.subr.bf16.mxu0 %v8610_v29  ;;  %v1196_v29 = vcombine.high %v10028_v18, %v10028_v18  ;;  %v8695_v18 = vld [vmem:[%s9944_s28 + $0x210] ss:$8 sps:$4 sm:$0xff]  }
  0x60   : > { %6076 = vmatpush1.bf16.msra.mxu1 %v8605_v30  ;;  %v1344_v30 = vcombine.high %v10031_v19, %v10031_v19 }
  0x61   : > { %6650 = vmatpush1.bf16.msra.mxu0 %v8608_v31  ;;  %6077 = vmatprep.subr.bf16.mxu1 %v8613_v32  ;;  %v8689_v31 = vld [vmem:[%s9944_s28 + $0x200] ss:$8 sps:$4 sm:$0xff]  }
  0x62   : > { %6651 = vmatprep.subr.bf16.mxu0 %v8616_v33  ;;  %v8692_v32 = vld [vmem:[%s9944_s28 + $0x1000] ss:$8 sps:$4 sm:$0xff]   ;;  %v8697_v33 = vld [vmem:[%s9944_s28 + $0x214] ss:$8 sps:$4 sm:$0xff]  }
  0x64   : > { %6078 = vmatpush1.bf16.msra.mxu1 %v8611_v34  ;;  %v8700_v34 = vld [vmem:[%s9944_s28 + $0x1014] ss:$8 sps:$4 sm:$0xff]  }
  0x65   : > { %6652 = vmatpush1.bf16.msra.mxu0 %v8614_v35  ;;  %6079 = vmatprep.subr.bf16.mxu1 %v8619_v36  ;;  %v10115_v35 = vrot.slane %v1167_v28, %v9994_v50  ;;  %v10118_v36 = vld [vmem:[%s9939_s24 + $0x20] sm:$0xff]  ;;  %v8770_v28 = vld [vmem:[%s9944_s28 + $0x10d0] ss:$8 sps:$4 sm:$0xff]  }
  0x66   : > { %6653 = vmatprep.subr.bf16.mxu0 %v8622_v37  ;;  %v10123_v19 = vrot.slane %v10118_v36, %v9994_v50  ;;  %v8698_v37 = vld [vmem:[%s9944_s28 + $0x1010] ss:$8 sps:$4 sm:$0xff]  }
  0x68   : > { %6080 = vmatpush1.bf16.msra.mxu1 %v8617_v38  ;;  %v8703_v38 = vld [vmem:[%s9944_s28 + $0x224] ss:$8 sps:$4 sm:$0xff]  }
  0x69   : > { %6654 = vmatpush1.bf16.msra.mxu0 %v8620_v39  ;;  %6081 = vmatprep.subr.bf16.mxu1 %v8625_v40  ;;  %v8706_v39 = vld [vmem:[%s9944_s28 + $0x1024] ss:$8 sps:$4 sm:$0xff]   ;;  %v1362_v40 = vcombine.high %v10123_v19, %v10123_v19 }
  0x6a   : > { %6655 = vmatprep.subr.bf16.mxu0 %v8628_v41  ;;  %v8701_v41 = vld [vmem:[%s9944_s28 + $0x220] ss:$8 sps:$4 sm:$0xff]  }
  0x6c   : > { %6082 = vmatpush1.bf16.msra.mxu1 %v8623_v42  ;;  %v10133_v42 = vrot.slane %v1362_v40, %v9994_v50  ;;  %v8785_v40 = vld [vmem:[%s9944_s28 + $0x300] ss:$8 sps:$4 sm:$0xff]  }
  0x6d   : > { %6656 = vmatpush1.bf16.msra.mxu0 %v8626_v43  ;;  %6083 = vmatprep.subr.bf16.mxu1 %v8631_v45  ;;  %v8704_v43 = vld [vmem:[%s9944_s28 + $0x1020] ss:$8 sps:$4 sm:$0xff]   ;;  %v8709_v45 = vld [vmem:[%s9944_s28 + $0x234] ss:$8 sps:$4 sm:$0xff]  }
  0x6e   : > { %6657 = vmatprep.subr.bf16.mxu0 %v8634_v46  ;;  %v8712_v46 = vld [vmem:[%s9944_s28 + $0x1034] ss:$8 sps:$4 sm:$0xff]  }
  0x70   : > { %6084 = vmatpush1.bf16.msra.mxu1 %v8629_v47  ;;  %v8707_v47 = vld [vmem:[%s9944_s28 + $0x230] ss:$8 sps:$4 sm:$0xff]  }
  0x71   : > { %6658 = vmatpush1.bf16.msra.mxu0 %v8632_v48  ;;  %6085 = vmatprep.subr.bf16.mxu1 %v8637_v49  ;;  %v8710_v48 = vld [vmem:[%s9944_s28 + $0x1030] ss:$8 sps:$4 sm:$0xff]   ;;  %v8715_v49 = vld [vmem:[%s9944_s28 + $0x244] ss:$8 sps:$4 sm:$0xff]  }
  0x72   : > { %6659 = vmatprep.subr.bf16.mxu0 %v8640_v51  ;;  %v8718_v51 = vld [vmem:[%s9944_s28 + $0x1044] ss:$8 sps:$4 sm:$0xff]  }
  0x74   : > { %6086 = vmatpush1.bf16.msra.mxu1 %v8635_v52  ;;  %v8713_v52 = vld [vmem:[%s9944_s28 + $0x240] ss:$8 sps:$4 sm:$0xff]  }
  0x75   : > { %6660 = vmatpush1.bf16.msra.mxu0 %v8638_v54  ;;  %6087 = vmatprep.subr.bf16.mxu1 %v8643_v55  ;;  %v8716_v54 = vld [vmem:[%s9944_s28 + $0x1040] ss:$8 sps:$4 sm:$0xff]   ;;  %v8721_v55 = vld [vmem:[%s9944_s28 + $0x254] ss:$8 sps:$4 sm:$0xff]  }
  0x76   : > { %6661 = vmatprep.subr.bf16.mxu0 %v8646_v56  ;;  %v8724_v56 = vld [vmem:[%s9944_s28 + $0x1054] ss:$8 sps:$4 sm:$0xff]  }
  0x78   : > { %6088 = vmatpush1.bf16.msra.mxu1 %v8641_v57  ;;  %v8719_v57 = vld [vmem:[%s9944_s28 + $0x250] ss:$8 sps:$4 sm:$0xff]  }
  0x79   : > { %6662 = vmatpush1.bf16.msra.mxu0 %v8644_v58  ;;  %6089 = vmatprep.subr.bf16.mxu1 %v8649_v59  ;;  %v8722_v58 = vld [vmem:[%s9944_s28 + $0x1050] ss:$8 sps:$4 sm:$0xff]   ;;  %v8727_v59 = vld [vmem:[%s9944_s28 + $0x264] ss:$8 sps:$4 sm:$0xff]  }
  0x7a   : > { %6663 = vmatprep.subr.bf16.mxu0 %v8652_v60  ;;  %v8730_v60 = vld [vmem:[%s9944_s28 + $0x1064] ss:$8 sps:$4 sm:$0xff]  }
  0x7c   : > { %6090 = vmatpush1.bf16.msra.mxu1 %v8647_v61  ;;  %v8725_v61 = vld [vmem:[%s9944_s28 + $0x260] ss:$8 sps:$4 sm:$0xff]  }
  0x7d   : > { %6664 = vmatpush1.bf16.msra.mxu0 %v8650_v62  ;;  %6091 = vmatprep.subr.bf16.mxu1 %v8655_v63  ;;  %v8728_v62 = vld [vmem:[%s9944_s28 + $0x1060] ss:$8 sps:$4 sm:$0xff]   ;;  %v8733_v63 = vld [vmem:[%s9944_s28 + $0x274] ss:$8 sps:$4 sm:$0xff]  }
  0x7e   : > { %6665 = vmatprep.subr.bf16.mxu0 %v8658_v0  ;;  %v8736_v0 = vld [vmem:[%s9944_s28 + $0x1074] ss:$8 sps:$4 sm:$0xff]  }
  0x80   : > { %6092 = vmatpush1.bf16.msra.mxu1 %v8653_v1  ;;  %v8731_v1 = vld [vmem:[%s9944_s28 + $0x270] ss:$8 sps:$4 sm:$0xff]  }
  0x81   : > { %6666 = vmatpush1.bf16.msra.mxu0 %v8656_v2  ;;  %6093 = vmatprep.subr.bf16.mxu1 %v8661_v3  ;;  %v8734_v2 = vld [vmem:[%s9944_s28 + $0x1070] ss:$8 sps:$4 sm:$0xff]   ;;  %v8739_v3 = vld [vmem:[%s9944_s28 + $0x284] ss:$8 sps:$4 sm:$0xff]  }
  0x82   : > { %6667 = vmatprep.subr.bf16.mxu0 %v8664_v4  ;;  %v8742_v4 = vld [vmem:[%s9944_s28 + $0x1084] ss:$8 sps:$4 sm:$0xff]  }
  0x84   : > { %6094 = vmatpush1.bf16.msra.mxu1 %v8659_v5  ;;  %v8737_v5 = vld [vmem:[%s9944_s28 + $0x280] ss:$8 sps:$4 sm:$0xff]  }
  0x85   : > { %6668 = vmatpush1.bf16.msra.mxu0 %v8662_v6  ;;  %6095 = vmatprep.subr.bf16.mxu1 %v8667_v7  ;;  %v8740_v6 = vld [vmem:[%s9944_s28 + $0x1080] ss:$8 sps:$4 sm:$0xff]   ;;  %v8745_v7 = vld [vmem:[%s9944_s28 + $0x294] ss:$8 sps:$4 sm:$0xff]  }
  0x86   : > { %6669 = vmatprep.subr.bf16.mxu0 %v8670_v8  ;;  %v8748_v8 = vld [vmem:[%s9944_s28 + $0x1094] ss:$8 sps:$4 sm:$0xff]  }
  0x88   : > { %6096 = vmatpush1.bf16.msra.mxu1 %v8665_v9  ;;  %v8743_v9 = vld [vmem:[%s9944_s28 + $0x290] ss:$8 sps:$4 sm:$0xff]  }
  0x89   : > { %6670 = vmatpush1.bf16.msra.mxu0 %v8668_v10  ;;  %6097 = vmatprep.subr.bf16.mxu1 %v8673_v11  ;;  %v8746_v10 = vld [vmem:[%s9944_s28 + $0x1090] ss:$8 sps:$4 sm:$0xff]   ;;  %v8751_v11 = vld [vmem:[%s9944_s28 + $0x2a4] ss:$8 sps:$4 sm:$0xff]  }
  0x8a   : > { %6671 = vmatprep.subr.bf16.mxu0 %v8676_v12  ;;  %v8754_v12 = vld [vmem:[%s9944_s28 + $0x10a4] ss:$8 sps:$4 sm:$0xff]  }
  0x8c   : > { %6098 = vmatpush1.bf16.msra.mxu1 %v8671_v13  ;;  %v8749_v13 = vld [vmem:[%s9944_s28 + $0x2a0] ss:$8 sps:$4 sm:$0xff]  }
  0x8d   : > { %6672 = vmatpush1.bf16.msra.mxu0 %v8674_v14  ;;  %6099 = vmatprep.subr.bf16.mxu1 %v8679_v15  ;;  %v8752_v14 = vld [vmem:[%s9944_s28 + $0x10a0] ss:$8 sps:$4 sm:$0xff]   ;;  %v8757_v15 = vld [vmem:[%s9944_s28 + $0x2b4] ss:$8 sps:$4 sm:$0xff]  }
  0x8e   : > { %6673 = vmatprep.subr.bf16.mxu0 %v8682_v16  ;;  %v8760_v16 = vld [vmem:[%s9944_s28 + $0x10b4] ss:$8 sps:$4 sm:$0xff]  }
  0x90   : > { %6100 = vmatpush1.bf16.msra.mxu1 %v8677_v20  ;;  %v8758_v20 = vld [vmem:[%s9944_s28 + $0x10b0] ss:$8 sps:$4 sm:$0xff]  }
  0x91   : > { %6674 = vmatpush1.bf16.msra.mxu0 %v8680_v21  ;;  %6101 = vmatprep.subr.bf16.mxu1 %v8685_v22  ;;  %v8763_v21 = vld [vmem:[%s9944_s28 + $0x2c4] ss:$8 sps:$4 sm:$0xff]  }
  0x92   : > { %6675 = vmatprep.subr.bf16.mxu0 %v8688_v23  ;;  %v8766_v22 = vld [vmem:[%s9944_s28 + $0x10c4] ss:$8 sps:$4 sm:$0xff]   ;;  %v8761_v23 = vld [vmem:[%s9944_s28 + $0x2c0] ss:$8 sps:$4 sm:$0xff]  }
  0x94   : > { %6102 = vmatpush1.bf16.msra.mxu1 %v8683_v25  ;;  %v8764_v25 = vld [vmem:[%s9944_s28 + $0x10c0] ss:$8 sps:$4 sm:$0xff]  }
  0x95   : > { %6676 = vmatpush1.bf16.msra.mxu0 %v8686_v53  ;;  %6112 = vmatprep.subr.bf16.mxu1 %v8691_v26  ;;  %v8769_v53 = vld [vmem:[%s9944_s28 + $0x2d4] ss:$8 sps:$4 sm:$0xff]  }
  0x96   : > { %6686 = vmatprep.subr.bf16.mxu0 %v8694_v27  ;;  %v8772_v26 = vld [vmem:[%s9944_s28 + $0x10d4] ss:$8 sps:$4 sm:$0xff]   ;;  %v8767_v27 = vld [vmem:[%s9944_s28 + $0x2d0] ss:$8 sps:$4 sm:$0xff]  }
  0x97   : > { %6104 = vmatmul.mubr.bf16.vlgmr.msra.gmra.mrb[0].mxu1 %v1196_v29  ;;  %v8775_v29 = vld [vmem:[%s9944_s28 + $0x2e4] ss:$8 sps:$4 sm:$0xff]  }
  0x98   : > { %6678 = vmatmul.mubr.bf16.vlgmr.msra.gmra.mrb[0].mxu0 %v1344_v30  ;;  %6113 = vmatpush1.bf16.msra.mxu1 %v8689_v31  ;;  %v8778_v30 = vld [vmem:[%s9944_s28 + $0x10e4] ss:$8 sps:$4 sm:$0xff]   ;;  %v8773_v31 = vld [vmem:[%s9944_s28 + $0x2e0] ss:$8 sps:$4 sm:$0xff]  }
  0x99   : > { %6687 = vmatpush1.bf16.msra.mxu0 %v8692_v32  ;;  %6114 = vmatprep.subr.bf16.mxu1 %v8697_v33  ;;  %v8776_v32 = vld [vmem:[%s9944_s28 + $0x10e0] ss:$8 sps:$4 sm:$0xff]   ;;  %v8781_v33 = vld [vmem:[%s9944_s28 + $0x2f4] ss:$8 sps:$4 sm:$0xff]  }
  0x9a   : > { %6688 = vmatprep.subr.bf16.mxu0 %v8700_v34  ;;  %6144 = vmatprep.mubr.bf16.mxu1 %v10115_v35  ;;  %v8784_v34 = vld [vmem:[%s9944_s28 + $0x10f4] ss:$8 sps:$4 sm:$0xff]  }
  0x9b   : > { %6718 = vmatprep.mubr.bf16.mxu0 %v10133_v42 }
  0x9c   : > { %6115 = vmatpush1.bf16.msra.mxu1 %v8695_v18  ;;  %v8779_v18 = vld [vmem:[%s9944_s28 + $0x2f0] ss:$8 sps:$4 sm:$0xff]  }
  0x9d   : > { %6689 = vmatpush1.bf16.msra.mxu0 %v8698_v37  ;;  %6116 = vmatprep.subr.bf16.mxu1 %v8703_v38  ;;  %v8782_v37 = vld [vmem:[%s9944_s28 + $0x10f0] ss:$8 sps:$4 sm:$0xff]   ;;  %v8787_v38 = vld [vmem:[%s9944_s28 + $0x304] ss:$8 sps:$4 sm:$0xff]  }
  0x9e   : > { %6690 = vmatprep.subr.bf16.mxu0 %v8706_v39  ;;  %v8790_v39 = vld [vmem:[%s9944_s28 + $0x1104] ss:$8 sps:$4 sm:$0xff]  }
  0xa0   : > { %6117 = vmatpush1.bf16.msra.mxu1 %v8701_v41  ;;  %v10194_v41 = vrot.slane %v10098_v24, %v9994_v50  ;;  %v1394_v24 = vcombine.high %v10133_v42, %v10133_v42  ;;  %v8797_v42 = vld [vmem:[%s9944_s28 + $0x320] ss:$8 sps:$4 sm:$0xff]  }
  0xa1   : > { %6691 = vmatpush1.bf16.msra.mxu0 %v8704_v43  ;;  %6118 = vmatprep.subr.bf16.mxu1 %v8709_v45  ;;  %v10198_v43 = vrot.slane %v10123_v19, %v9994_v50  ;;  %v8788_v45 = vld [vmem:[%s9944_s28 + $0x1100] ss:$8 sps:$4 sm:$0xff]   ;;  %v8791_v19 = vld [vmem:[%s9944_s28 + $0x310] ss:$8 sps:$4 sm:$0xff]  }
  0xa2   : > { %6692 = vmatprep.subr.bf16.mxu0 %v8712_v46  ;;  %v8793_v46 = vld [vmem:[%s9944_s28 + $0x314] ss:$8 sps:$4 sm:$0xff]  }
  0xa4   : > { %6119 = vmatpush1.bf16.msra.mxu1 %v8707_v47  ;;  %v8796_v47 = vld [vmem:[%s9944_s28 + $0x1114] ss:$8 sps:$4 sm:$0xff]  }
  0xa5   : > { %6693 = vmatpush1.bf16.msra.mxu0 %v8710_v48  ;;  %6120 = vmatprep.subr.bf16.mxu1 %v8715_v49  ;;  %v1199_v48 = vcombine.high %v10115_v35, %v10115_v35  ;;  %v8794_v49 = vld [vmem:[%s9944_s28 + $0x1110] ss:$8 sps:$4 sm:$0xff]   ;;  %v8802_v35 = vld [vmem:[%s9944_s28 + $0x1124] ss:$8 sps:$4 sm:$0xff]  }
  0xa6   : > { %6694 = vmatprep.subr.bf16.mxu0 %v8718_v51  ;;  %v8799_v51 = vld [vmem:[%s9944_s28 + $0x324] ss:$8 sps:$4 sm:$0xff]  }
  0xa8   : > { %6121 = vmatpush1.bf16.msra.mxu1 %v8713_v52  ;;  %v8800_v52 = vld [vmem:[%s9944_s28 + $0x1120] ss:$8 sps:$4 sm:$0xff]  }
  0xa9   : > { %6695 = vmatpush1.bf16.msra.mxu0 %v8716_v54  ;;  %6122 = vmatprep.subr.bf16.mxu1 %v8721_v55  ;;  %v8805_v54 = vld [vmem:[%s9944_s28 + $0x334] ss:$8 sps:$4 sm:$0xff]  }
  0xaa   : > { %6696 = vmatprep.subr.bf16.mxu0 %v8724_v56  ;;  %v8808_v55 = vld [vmem:[%s9944_s28 + $0x1134] ss:$8 sps:$4 sm:$0xff]   ;;  %v8803_v56 = vld [vmem:[%s9944_s28 + $0x330] ss:$8 sps:$4 sm:$0xff]  }
  0xac   : > { %6123 = vmatpush1.bf16.msra.mxu1 %v8719_v57  ;;  %v8806_v57 = vld [vmem:[%s9944_s28 + $0x1130] ss:$8 sps:$4 sm:$0xff]  }
  0xad   : > { %6697 = vmatpush1.bf16.msra.mxu0 %v8722_v58  ;;  %6124 = vmatprep.subr.bf16.mxu1 %v8727_v59  ;;  %v8811_v58 = vld [vmem:[%s9944_s28 + $0x344] ss:$8 sps:$4 sm:$0xff]  }
  0xae   : > { %6698 = vmatprep.subr.bf16.mxu0 %v8730_v60  ;;  %v8814_v59 = vld [vmem:[%s9944_s28 + $0x1144] ss:$8 sps:$4 sm:$0xff]   ;;  %v8809_v60 = vld [vmem:[%s9944_s28 + $0x340] ss:$8 sps:$4 sm:$0xff]  }
  0xb0   : > { %6125 = vmatpush1.bf16.msra.mxu1 %v8725_v61  ;;  %v8812_v61 = vld [vmem:[%s9944_s28 + $0x1140] ss:$8 sps:$4 sm:$0xff]  }
  0xb1   : > { %6699 = vmatpush1.bf16.msra.mxu0 %v8728_v62  ;;  %6126 = vmatprep.subr.bf16.mxu1 %v8733_v63  ;;  %v8817_v62 = vld [vmem:[%s9944_s28 + $0x354] ss:$8 sps:$4 sm:$0xff]  }
  0xb2   : > { %6700 = vmatprep.subr.bf16.mxu0 %v8736_v0  ;;  %v8820_v63 = vld [vmem:[%s9944_s28 + $0x1154] ss:$8 sps:$4 sm:$0xff]   ;;  %v8815_v0 = vld [vmem:[%s9944_s28 + $0x350] ss:$8 sps:$4 sm:$0xff]  }
  0xb4   : > { %6127 = vmatpush1.bf16.msra.mxu1 %v8731_v1  ;;  %v8818_v1 = vld [vmem:[%s9944_s28 + $0x1150] ss:$8 sps:$4 sm:$0xff]  }
  0xb5   : > { %6701 = vmatpush1.bf16.msra.mxu0 %v8734_v2  ;;  %6128 = vmatprep.subr.bf16.mxu1 %v8739_v3  ;;  %v8823_v2 = vld [vmem:[%s9944_s28 + $0x364] ss:$8 sps:$4 sm:$0xff]  }
  0xb6   : > { %6702 = vmatprep.subr.bf16.mxu0 %v8742_v4  ;;  %v8826_v3 = vld [vmem:[%s9944_s28 + $0x1164] ss:$8 sps:$4 sm:$0xff]   ;;  %v8821_v4 = vld [vmem:[%s9944_s28 + $0x360] ss:$8 sps:$4 sm:$0xff]  }
  0xb8   : > { %6129 = vmatpush1.bf16.msra.mxu1 %v8737_v5  ;;  %v8824_v5 = vld [vmem:[%s9944_s28 + $0x1160] ss:$8 sps:$4 sm:$0xff]  }
  0xb9   : > { %6703 = vmatpush1.bf16.msra.mxu0 %v8740_v6  ;;  %6130 = vmatprep.subr.bf16.mxu1 %v8745_v7  ;;  %v8829_v6 = vld [vmem:[%s9944_s28 + $0x374] ss:$8 sps:$4 sm:$0xff]  }
  0xba   : > { %6704 = vmatprep.subr.bf16.mxu0 %v8748_v8  ;;  %v8832_v7 = vld [vmem:[%s9944_s28 + $0x1174] ss:$8 sps:$4 sm:$0xff]   ;;  %v8827_v8 = vld [vmem:[%s9944_s28 + $0x370] ss:$8 sps:$4 sm:$0xff]  }
  0xbc   : > { %6131 = vmatpush1.bf16.msra.mxu1 %v8743_v9  ;;  %v8830_v9 = vld [vmem:[%s9944_s28 + $0x1170] ss:$8 sps:$4 sm:$0xff]  }
  0xbd   : > { %6705 = vmatpush1.bf16.msra.mxu0 %v8746_v10  ;;  %6132 = vmatprep.subr.bf16.mxu1 %v8751_v11  ;;  %v8835_v10 = vld [vmem:[%s9944_s28 + $0x384] ss:$8 sps:$4 sm:$0xff]  }
  0xbe   : > { %6706 = vmatprep.subr.bf16.mxu0 %v8754_v12  ;;  %v8838_v11 = vld [vmem:[%s9944_s28 + $0x1184] ss:$8 sps:$4 sm:$0xff]   ;;  %v8833_v12 = vld [vmem:[%s9944_s28 + $0x380] ss:$8 sps:$4 sm:$0xff]  }
  0xc0   : > { %6133 = vmatpush1.bf16.msra.mxu1 %v8749_v13  ;;  %v8836_v13 = vld [vmem:[%s9944_s28 + $0x1180] ss:$8 sps:$4 sm:$0xff]  }
  0xc1   : > { %6707 = vmatpush1.bf16.msra.mxu0 %v8752_v14  ;;  %6134 = vmatprep.subr.bf16.mxu1 %v8757_v15  ;;  %v8841_v14 = vld [vmem:[%s9944_s28 + $0x394] ss:$8 sps:$4 sm:$0xff]  }
  0xc2   : > { %6708 = vmatprep.subr.bf16.mxu0 %v8760_v16  ;;  %v8844_v15 = vld [vmem:[%s9944_s28 + $0x1194] ss:$8 sps:$4 sm:$0xff]   ;;  %v8839_v16 = vld [vmem:[%s9944_s28 + $0x390] ss:$8 sps:$4 sm:$0xff]  }
  0xc4   : > { %6135 = vmatpush1.bf16.msra.mxu1 %v8755_v17  ;;  %v8842_v17 = vld [vmem:[%s9944_s28 + $0x1190] ss:$8 sps:$4 sm:$0xff]  }
  0xc5   : > { %6709 = vmatpush1.bf16.msra.mxu0 %v8758_v20  ;;  %6136 = vmatprep.subr.bf16.mxu1 %v8763_v21  ;;  %v8847_v20 = vld [vmem:[%s9944_s28 + $0x3a4] ss:$8 sps:$4 sm:$0xff]  }
  0xc6   : > { %6710 = vmatprep.subr.bf16.mxu0 %v8766_v22  ;;  %v8850_v21 = vld [vmem:[%s9944_s28 + $0x11a4] ss:$8 sps:$4 sm:$0xff]   ;;  %v8845_v22 = vld [vmem:[%s9944_s28 + $0x3a0] ss:$8 sps:$4 sm:$0xff]  }
  0xc8   : > { %6137 = vmatpush1.bf16.msra.mxu1 %v8761_v23  ;;  %v8848_v23 = vld [vmem:[%s9944_s28 + $0x11a0] ss:$8 sps:$4 sm:$0xff]  }
  0xc9   : > { %6711 = vmatpush1.bf16.msra.mxu0 %v8764_v25  ;;  %6138 = vmatprep.subr.bf16.mxu1 %v8769_v53  ;;  %v8853_v25 = vld [vmem:[%s9944_s28 + $0x3b4] ss:$8 sps:$4 sm:$0xff]  }
  0xca   : > { %6712 = vmatprep.subr.bf16.mxu0 %v8772_v26  ;;  %v8856_v53 = vld [vmem:[%s9944_s28 + $0x11b4] ss:$8 sps:$4 sm:$0xff]   ;;  %v8851_v26 = vld [vmem:[%s9944_s28 + $0x3b0] ss:$8 sps:$4 sm:$0xff]  }
  0xcc   : > { %6139 = vmatpush1.bf16.msra.mxu1 %v8767_v27  ;;  %v8854_v27 = vld [vmem:[%s9944_s28 + $0x11b0] ss:$8 sps:$4 sm:$0xff]  }
  0xcd   : > { %6713 = vmatpush1.bf16.msra.mxu0 %v8770_v28  ;;  %6140 = vmatprep.subr.bf16.mxu1 %v8775_v29  ;;  %v8859_v28 = vld [vmem:[%s9944_s28 + $0x3c4] ss:$8 sps:$4 sm:$0xff]  }
  0xce   : > { %6714 = vmatprep.subr.bf16.mxu0 %v8778_v30  ;;  %v8862_v29 = vld [vmem:[%s9944_s28 + $0x11c4] ss:$8 sps:$4 sm:$0xff]   ;;  %v8857_v30 = vld [vmem:[%s9944_s28 + $0x3c0] ss:$8 sps:$4 sm:$0xff]  }
  0xd0   : > { %6141 = vmatpush1.bf16.msra.mxu1 %v8773_v31  ;;  %v8860_v31 = vld [vmem:[%s9944_s28 + $0x11c0] ss:$8 sps:$4 sm:$0xff]  }
  0xd1   : > { %6715 = vmatpush1.bf16.msra.mxu0 %v8776_v32  ;;  %6142 = vmatprep.subr.bf16.mxu1 %v8781_v33  ;;  %v8865_v32 = vld [vmem:[%s9944_s28 + $0x3d4] ss:$8 sps:$4 sm:$0xff]  }
  0xd2   : > { %6716 = vmatprep.subr.bf16.mxu0 %v8784_v34  ;;  %v8868_v33 = vld [vmem:[%s9944_s28 + $0x11d4] ss:$8 sps:$4 sm:$0xff]   ;;  %v8863_v34 = vld [vmem:[%s9944_s28 + $0x3d0] ss:$8 sps:$4 sm:$0xff]  }
  0xd4   : > { %6143 = vmatpush1.bf16.msra.mxu1 %v8779_v18  ;;  %v8866_v18 = vld [vmem:[%s9944_s28 + $0x11d0] ss:$8 sps:$4 sm:$0xff]  }
  0xd5   : > { %6717 = vmatpush1.bf16.msra.mxu0 %v8782_v37  ;;  %6153 = vmatprep.subr.bf16.mxu1 %v8787_v38  ;;  %v8871_v37 = vld [vmem:[%s9944_s28 + $0x3e4] ss:$8 sps:$4 sm:$0xff]  }
  0xd6   : > { %6727 = vmatprep.subr.bf16.mxu0 %v8790_v39  ;;  %v8874_v38 = vld [vmem:[%s9944_s28 + $0x11e4] ss:$8 sps:$4 sm:$0xff]   ;;  %v8869_v39 = vld [vmem:[%s9944_s28 + $0x3e0] ss:$8 sps:$4 sm:$0xff]  }
  0xd7   : > { %6145 = vmatmul.mubr.bf16.vlgmr.msra.gmra.mrb[0].mxu1 %v10194_v41 }
  0xd8   : > { %6719 = vmatmul.mubr.bf16.vlgmr.msra.gmra.mrb[0].mxu0 %v10198_v43  ;;  %6154 = vmatpush1.bf16.msra.mxu1 %v8785_v40  ;;  %v1347_v40 = vcombine.high %v10118_v36, %v10118_v36  ;;  %v8883_v36 = vld [vmem:[%s9944_s28 + $0x404] ss:$8 sps:$4 sm:$0xff]  }
  0xd9   : > { %6728 = vmatpush1.bf16.msra.mxu0 %v8788_v45  ;;  %6155 = vmatprep.subr.bf16.mxu1 %v8793_v46  ;;  %v8872_v45 = vld [vmem:[%s9944_s28 + $0x11e0] ss:$8 sps:$4 sm:$0xff]  }
  0xda   : > { %6729 = vmatprep.subr.bf16.mxu0 %v8796_v47  ;;  %6185 = vmatprep.mubr.bf16.mxu1 %v1199_v48  ;;  %v10266_v46 = vld.sshfl [vmem:[%s9939_s24 + $0x8] sm:$0xff pattern:$0x75316420]  ;;  %v8877_v47 = vld [vmem:[%s9944_s28 + $0x3f4] ss:$8 sps:$4 sm:$0xff]  }
  0xdb   : > { %6759 = vmatprep.mubr.bf16.mxu0 %v1394_v24  ;;  %v8880_v48 = vld [vmem:[%s9944_s28 + $0x11f4] ss:$8 sps:$4 sm:$0xff]   ;;  %v10271_v24 = vrot.slane %v1347_v40, %v9994_v50  ;;  %v8955_v40 = vld [vmem:[%s9944_s28 + $0x4c4] ss:$8 sps:$4 sm:$0xff]  }
  0xdc   : > { %6156 = vmatpush1.bf16.msra.mxu1 %v8791_v19  ;;  %v8875_v19 = vld [vmem:[%s9944_s28 + $0x3f0] ss:$8 sps:$4 sm:$0xff]  }
  0xdd   : > { %6730 = vmatpush1.bf16.msra.mxu0 %v8794_v49  ;;  %6157 = vmatprep.subr.bf16.mxu1 %v8799_v51  ;;  %v8878_v49 = vld [vmem:[%s9944_s28 + $0x11f0] ss:$8 sps:$4 sm:$0xff]   ;;  %v8886_v51 = vld [vmem:[%s9944_s28 + $0x1204] ss:$8 sps:$4 sm:$0xff]  }
  0xde   : > { %6731 = vmatprep.subr.bf16.mxu0 %v8802_v35  ;;  %v1215_v35 = vcombine.high %v10266_v46, %v10266_v46 }
  0xe0   : > { %6158 = vmatpush1.bf16.msra.mxu1 %v8797_v42  ;;  %v1363_v42 = vcombine.high %v10271_v24, %v10271_v24 }
  0xe1   : > { %6732 = vmatpush1.bf16.msra.mxu0 %v8800_v52  ;;  %6159 = vmatprep.subr.bf16.mxu1 %v8805_v54  ;;  %v8881_v52 = vld [vmem:[%s9944_s28 + $0x400] ss:$8 sps:$4 sm:$0xff]  }
  0xe2   : > { %6733 = vmatprep.subr.bf16.mxu0 %v8808_v55  ;;  %v8884_v54 = vld [vmem:[%s9944_s28 + $0x1200] ss:$8 sps:$4 sm:$0xff]   ;;  %v1197_v55 = vcombine.high %v10194_v41, %v10194_v41  ;;  %v8887_v41 = vld [vmem:[%s9944_s28 + $0x410] ss:$8 sps:$4 sm:$0xff]  }
  0xe4   : > { %6160 = vmatpush1.bf16.msra.mxu1 %v8803_v56  ;;  %v1392_v56 = vcombine.high %v10198_v43, %v10198_v43  ;;  %v8890_v43 = vld [vmem:[%s9944_s28 + $0x1210] ss:$8 sps:$4 sm:$0xff]  }
  0xe5   : > { %6734 = vmatpush1.bf16.msra.mxu0 %v8806_v57  ;;  %6161 = vmatprep.subr.bf16.mxu1 %v8811_v58  ;;  %v8889_v57 = vld [vmem:[%s9944_s28 + $0x414] ss:$8 sps:$4 sm:$0xff]  }
  0xe6   : > { %6735 = vmatprep.subr.bf16.mxu0 %v8814_v59  ;;  %v8892_v58 = vld [vmem:[%s9944_s28 + $0x1214] ss:$8 sps:$4 sm:$0xff]   ;;  %v10290_v59 = vrot.slane %v1215_v35, %v9994_v50  ;;  %v8967_v35 = vld [vmem:[%s9944_s28 + $0x4e4] ss:$8 sps:$4 sm:$0xff]  }
  0xe8   : > { %6162 = vmatpush1.bf16.msra.mxu1 %v8809_v60  ;;  %v10293_v60 = vrot.slane %v1363_v42, %v9994_v50  ;;  %v8970_v42 = vld [vmem:[%s9944_s28 + $0x12e4] ss:$8 sps:$4 sm:$0xff]  }
  0xe9   : > { %6736 = vmatpush1.bf16.msra.mxu0 %v8812_v61  ;;  %6163 = vmatprep.subr.bf16.mxu1 %v8817_v62  ;;  %v8895_v61 = vld [vmem:[%s9944_s28 + $0x424] ss:$8 sps:$4 sm:$0xff]  }
  0xea   : > { %6737 = vmatprep.subr.bf16.mxu0 %v8820_v63  ;;  %v8898_v62 = vld [vmem:[%s9944_s28 + $0x1224] ss:$8 sps:$4 sm:$0xff]   ;;  %v8893_v63 = vld [vmem:[%s9944_s28 + $0x420] ss:$8 sps:$4 sm:$0xff]  }
  0xec   : > { %6164 = vmatpush1.bf16.msra.mxu1 %v8815_v0  ;;  %v8896_v0 = vld [vmem:[%s9944_s28 + $0x1220] ss:$8 sps:$4 sm:$0xff]  }
  0xed   : > { %6738 = vmatpush1.bf16.msra.mxu0 %v8818_v1  ;;  %6165 = vmatprep.subr.bf16.mxu1 %v8823_v2  ;;  %v8901_v1 = vld [vmem:[%s9944_s28 + $0x434] ss:$8 sps:$4 sm:$0xff]  }
  0xee   : > { %6739 = vmatprep.subr.bf16.mxu0 %v8826_v3  ;;  %v8904_v2 = vld [vmem:[%s9944_s28 + $0x1234] ss:$8 sps:$4 sm:$0xff]   ;;  %v8899_v3 = vld [vmem:[%s9944_s28 + $0x430] ss:$8 sps:$4 sm:$0xff]  }
  0xf0   : > { %6166 = vmatpush1.bf16.msra.mxu1 %v8821_v4  ;;  %v8902_v4 = vld [vmem:[%s9944_s28 + $0x1230] ss:$8 sps:$4 sm:$0xff]  }
  0xf1   : > { %6740 = vmatpush1.bf16.msra.mxu0 %v8824_v5  ;;  %6167 = vmatprep.subr.bf16.mxu1 %v8829_v6  ;;  %v8907_v5 = vld [vmem:[%s9944_s28 + $0x444] ss:$8 sps:$4 sm:$0xff]  }
  0xf2   : > { %6741 = vmatprep.subr.bf16.mxu0 %v8832_v7  ;;  %v8910_v6 = vld [vmem:[%s9944_s28 + $0x1244] ss:$8 sps:$4 sm:$0xff]   ;;  %v8905_v7 = vld [vmem:[%s9944_s28 + $0x440] ss:$8 sps:$4 sm:$0xff]  }
  0xf4   : > { %6168 = vmatpush1.bf16.msra.mxu1 %v8827_v8  ;;  %v8908_v8 = vld [vmem:[%s9944_s28 + $0x1240] ss:$8 sps:$4 sm:$0xff]  }
  0xf5   : > { %6742 = vmatpush1.bf16.msra.mxu0 %v8830_v9  ;;  %6169 = vmatprep.subr.bf16.mxu1 %v8835_v10  ;;  %v8913_v9 = vld [vmem:[%s9944_s28 + $0x454] ss:$8 sps:$4 sm:$0xff]  }
  0xf6   : > { %6743 = vmatprep.subr.bf16.mxu0 %v8838_v11  ;;  %v8916_v10 = vld [vmem:[%s9944_s28 + $0x1254] ss:$8 sps:$4 sm:$0xff]   ;;  %v8911_v11 = vld [vmem:[%s9944_s28 + $0x450] ss:$8 sps:$4 sm:$0xff]  }
  0xf8   : > { %6170 = vmatpush1.bf16.msra.mxu1 %v8833_v12  ;;  %v8914_v12 = vld [vmem:[%s9944_s28 + $0x1250] ss:$8 sps:$4 sm:$0xff]  }
  0xf9   : > { %6744 = vmatpush1.bf16.msra.mxu0 %v8836_v13  ;;  %6171 = vmatprep.subr.bf16.mxu1 %v8841_v14  ;;  %v8919_v13 = vld [vmem:[%s9944_s28 + $0x464] ss:$8 sps:$4 sm:$0xff]  }
  0xfa   : > { %6745 = vmatprep.subr.bf16.mxu0 %v8844_v15  ;;  %v8922_v14 = vld [vmem:[%s9944_s28 + $0x1264] ss:$8 sps:$4 sm:$0xff]   ;;  %v8917_v15 = vld [vmem:[%s9944_s28 + $0x460] ss:$8 sps:$4 sm:$0xff]  }
  0xfc   : > { %6172 = vmatpush1.bf16.msra.mxu1 %v8839_v16  ;;  %v8920_v16 = vld [vmem:[%s9944_s28 + $0x1260] ss:$8 sps:$4 sm:$0xff]  }
  0xfd   : > { %6746 = vmatpush1.bf16.msra.mxu0 %v8842_v17  ;;  %6173 = vmatprep.subr.bf16.mxu1 %v8847_v20  ;;  %v8925_v17 = vld [vmem:[%s9944_s28 + $0x474] ss:$8 sps:$4 sm:$0xff]  }
  0xfe   : > { %6747 = vmatprep.subr.bf16.mxu0 %v8850_v21  ;;  %v8928_v20 = vld [vmem:[%s9944_s28 + $0x1274] ss:$8 sps:$4 sm:$0xff]   ;;  %v8923_v21 = vld [vmem:[%s9944_s28 + $0x470] ss:$8 sps:$4 sm:$0xff]  }
 0x100   : > { %6174 = vmatpush1.bf16.msra.mxu1 %v8845_v22  ;;  %v8926_v22 = vld [vmem:[%s9944_s28 + $0x1270] ss:$8 sps:$4 sm:$0xff]  }
 0x101   : > { %6748 = vmatpush1.bf16.msra.mxu0 %v8848_v23  ;;  %6175 = vmatprep.subr.bf16.mxu1 %v8853_v25  ;;  %v8931_v23 = vld [vmem:[%s9944_s28 + $0x484] ss:$8 sps:$4 sm:$0xff]  }
 0x102   : > { %6749 = vmatprep.subr.bf16.mxu0 %v8856_v53  ;;  %v8934_v25 = vld [vmem:[%s9944_s28 + $0x1284] ss:$8 sps:$4 sm:$0xff]   ;;  %v8929_v53 = vld [vmem:[%s9944_s28 + $0x480] ss:$8 sps:$4 sm:$0xff]  }
 0x104   : > { %6176 = vmatpush1.bf16.msra.mxu1 %v8851_v26  ;;  %v8932_v26 = vld [vmem:[%s9944_s28 + $0x1280] ss:$8 sps:$4 sm:$0xff]  }
 0x105   : > { %6750 = vmatpush1.bf16.msra.mxu0 %v8854_v27  ;;  %6177 = vmatprep.subr.bf16.mxu1 %v8859_v28  ;;  %v8937_v27 = vld [vmem:[%s9944_s28 + $0x494] ss:$8 sps:$4 sm:$0xff]  }
 0x106   : > { %6751 = vmatprep.subr.bf16.mxu0 %v8862_v29  ;;  %v8940_v28 = vld [vmem:[%s9944_s28 + $0x1294] ss:$8 sps:$4 sm:$0xff]   ;;  %v8935_v29 = vld [vmem:[%s9944_s28 + $0x490] ss:$8 sps:$4 sm:$0xff]  }
 0x108   : > { %6178 = vmatpush1.bf16.msra.mxu1 %v8857_v30  ;;  %v8938_v30 = vld [vmem:[%s9944_s28 + $0x1290] ss:$8 sps:$4 sm:$0xff]  }
 0x109   : > { %6752 = vmatpush1.bf16.msra.mxu0 %v8860_v31  ;;  %6179 = vmatprep.subr.bf16.mxu1 %v8865_v32  ;;  %v8943_v31 = vld [vmem:[%s9944_s28 + $0x4a4] ss:$8 sps:$4 sm:$0xff]  }
 0x10a   : > { %6753 = vmatprep.subr.bf16.mxu0 %v8868_v33  ;;  %v8946_v32 = vld [vmem:[%s9944_s28 + $0x12a4] ss:$8 sps:$4 sm:$0xff]   ;;  %v8941_v33 = vld [vmem:[%s9944_s28 + $0x4a0] ss:$8 sps:$4 sm:$0xff]  }
 0x10c   : > { %6180 = vmatpush1.bf16.msra.mxu1 %v8863_v34  ;;  %v8944_v34 = vld [vmem:[%s9944_s28 + $0x12a0] ss:$8 sps:$4 sm:$0xff]  }
 0x10d   : > { %6754 = vmatpush1.bf16.msra.mxu0 %v8866_v18  ;;  %6181 = vmatprep.subr.bf16.mxu1 %v8871_v37  ;;  %v8949_v18 = vld [vmem:[%s9944_s28 + $0x4b4] ss:$8 sps:$4 sm:$0xff]  }
 0x10e   : > { %6755 = vmatprep.subr.bf16.mxu0 %v8874_v38  ;;  %v8952_v37 = vld [vmem:[%s9944_s28 + $0x12b4] ss:$8 sps:$4 sm:$0xff]   ;;  %v8947_v38 = vld [vmem:[%s9944_s28 + $0x4b0] ss:$8 sps:$4 sm:$0xff]  }
 0x110   : > { %6182 = vmatpush1.bf16.msra.mxu1 %v8869_v39  ;;  %v8950_v39 = vld [vmem:[%s9944_s28 + $0x12b0] ss:$8 sps:$4 sm:$0xff]  }
 0x111   : > { %6756 = vmatpush1.bf16.msra.mxu0 %v8872_v45  ;;  %6183 = vmatprep.subr.bf16.mxu1 %v8877_v47  ;;  %v8958_v45 = vld [vmem:[%s9944_s28 + $0x12c4] ss:$8 sps:$4 sm:$0xff]   ;;  %v8953_v47 = vld [vmem:[%s9944_s28 + $0x4c0] ss:$8 sps:$4 sm:$0xff]  }
 0x112   : > { %6757 = vmatprep.subr.bf16.mxu0 %v8880_v48  ;;  %v8956_v48 = vld [vmem:[%s9944_s28 + $0x12c0] ss:$8 sps:$4 sm:$0xff]  }
 0x114   : > { %6184 = vmatpush1.bf16.msra.mxu1 %v8875_v19  ;;  %v8961_v19 = vld [vmem:[%s9944_s28 + $0x4d4] ss:$8 sps:$4 sm:$0xff]  }
 0x115   : > { %6758 = vmatpush1.bf16.msra.mxu0 %v8878_v49  ;;  %6194 = vmatprep.subr.bf16.mxu1 %v8883_v36  ;;  %v8964_v49 = vld [vmem:[%s9944_s28 + $0x12d4] ss:$8 sps:$4 sm:$0xff]   ;;  %v8959_v36 = vld [vmem:[%s9944_s28 + $0x4d0] ss:$8 sps:$4 sm:$0xff]  }
 0x116   : > { %6768 = vmatprep.subr.bf16.mxu0 %v8886_v51  ;;  %v8962_v51 = vld [vmem:[%s9944_s28 + $0x12d0] ss:$8 sps:$4 sm:$0xff]  }
 0x117   : > { %6186 = vmatmul.mubr.bf16.vlgmr.msra.gmra.mrb[0].mxu1 %v1197_v55  ;;  %v8973_v55 = vld [vmem:[%s9944_s28 + $0x4f4] ss:$8 sps:$4 sm:$0xff]  }
 0x118   : > { %6760 = vmatmul.mubr.bf16.vlgmr.msra.gmra.mrb[0].mxu0 %v1392_v56  ;;  %6195 = vmatpush1.bf16.msra.mxu1 %v8881_v52  ;;  %v8965_v52 = vld [vmem:[%s9944_s28 + $0x4e0] ss:$8 sps:$4 sm:$0xff]   ;;  %v8976_v56 = vld [vmem:[%s9944_s28 + $0x12f4] ss:$8 sps:$4 sm:$0xff]  }
 0x119   : > { %6769 = vmatpush1.bf16.msra.mxu0 %v8884_v54  ;;  %6196 = vmatprep.subr.bf16.mxu1 %v8889_v57  ;;  %v8968_v54 = vld [vmem:[%s9944_s28 + $0x12e0] ss:$8 sps:$4 sm:$0xff]   ;;  %v8971_v57 = vld [vmem:[%s9944_s28 + $0x4f0] ss:$8 sps:$4 sm:$0xff]  }
 0x11a   : > { %6770 = vmatprep.subr.bf16.mxu0 %v8892_v58  ;;  %6226 = vmatprep.mubr.bf16.mxu1 %v10290_v59  ;;  %v8974_v58 = vld [vmem:[%s9944_s28 + $0x12f0] ss:$8 sps:$4 sm:$0xff]  }
 0x11b   : > { %6800 = vmatprep.mubr.bf16.mxu0 %v10293_v60 }
 0x11c   : > { %6197 = vmatpush1.bf16.msra.mxu1 %v8887_v41  ;;  %v8979_v41 = vld [vmem:[%s9944_s28 + $0x504] ss:$8 sps:$4 sm:$0xff]  }
 0x11d   : > { %6771 = vmatpush1.bf16.msra.mxu0 %v8890_v43  ;;  %6198 = vmatprep.subr.bf16.mxu1 %v8895_v61  ;;  %v8983_v43 = vld [vmem:[%s9944_s28 + $0x1304] ss:$8 sps:$4 sm:$0xff]   ;;  %v10359_v61 = vrot.slane %v10266_v46, %v9994_v50  ;;  %v1247_v46 = vcombine.high %v10290_v59, %v10290_v59 }
 0x11e   : > { %6772 = vmatprep.subr.bf16.mxu0 %v8898_v62  ;;  %v10363_v62 = vrot.slane %v10271_v24, %v9994_v50  ;;  %v8984_v24 = vld [vmem:[%s9944_s28 + $0x510] ss:$8 sps:$4 sm:$0xff]   ;;  %v8992_v59 = vld [vmem:[%s9944_s28 + $0x524] ss:$8 sps:$4 sm:$0xff]  }
 0x120   : > { %6199 = vmatpush1.bf16.msra.mxu1 %v8893_v63  ;;  %v8977_v63 = vld [vmem:[%s9944_s28 + $0x500] ss:$8 sps:$4 sm:$0xff]  }
 0x121   : > { %6773 = vmatpush1.bf16.msra.mxu0 %v8896_v0  ;;  %6200 = vmatprep.subr.bf16.mxu1 %v8901_v1  ;;  %v8981_v0 = vld [vmem:[%s9944_s28 + $0x1300] ss:$8 sps:$4 sm:$0xff]   ;;  %v8986_v1 = vld [vmem:[%s9944_s28 + $0x514] ss:$8 sps:$4 sm:$0xff]  }
 0x122   : > { %6774 = vmatprep.subr.bf16.mxu0 %v8904_v2  ;;  %v8989_v2 = vld [vmem:[%s9944_s28 + $0x1314] ss:$8 sps:$4 sm:$0xff]  }
 0x124   : > { %6201 = vmatpush1.bf16.msra.mxu1 %v8899_v3  ;;  %v1395_v3 = vcombine.high %v10293_v60, %v10293_v60  ;;  %v8990_v60 = vld [vmem:[%s9944_s28 + $0x520] ss:$8 sps:$4 sm:$0xff]  }
 0x125   : > { %6775 = vmatpush1.bf16.msra.mxu0 %v8902_v4  ;;  %6202 = vmatprep.subr.bf16.mxu1 %v8907_v5  ;;  %v8987_v4 = vld [vmem:[%s9944_s28 + $0x1310] ss:$8 sps:$4 sm:$0xff]   ;;  %v8995_v5 = vld [vmem:[%s9944_s28 + $0x1324] ss:$8 sps:$4 sm:$0xff]  }
 0x126   : > { %6776 = vmatprep.subr.bf16.mxu0 %v8910_v6  ;;  %v8993_v6 = vld [vmem:[%s9944_s28 + $0x1320] ss:$8 sps:$4 sm:$0xff]  }
 0x128   : > { %6203 = vmatpush1.bf16.msra.mxu1 %v8905_v7  ;;  %v8998_v7 = vld [vmem:[%s9944_s28 + $0x534] ss:$8 sps:$4 sm:$0xff]  }
 0x129   : > { %6777 = vmatpush1.bf16.msra.mxu0 %v8908_v8  ;;  %6204 = vmatprep.subr.bf16.mxu1 %v8913_v9  ;;  %v9001_v8 = vld [vmem:[%s9944_s28 + $0x1334] ss:$8 sps:$4 sm:$0xff]   ;;  %v8996_v9 = vld [vmem:[%s9944_s28 + $0x530] ss:$8 sps:$4 sm:$0xff]  }
 0x12a   : > { %6778 = vmatprep.subr.bf16.mxu0 %v8916_v10  ;;  %v8999_v10 = vld [vmem:[%s9944_s28 + $0x1330] ss:$8 sps:$4 sm:$0xff]  }
 0x12c   : > { %6205 = vmatpush1.bf16.msra.mxu1 %v8911_v11  ;;  %v9004_v11 = vld [vmem:[%s9944_s28 + $0x544] ss:$8 sps:$4 sm:$0xff]  }
 0x12d   : > { %6779 = vmatpush1.bf16.msra.mxu0 %v8914_v12  ;;  %6206 = vmatprep.subr.bf16.mxu1 %v8919_v13  ;;  %v9007_v12 = vld [vmem:[%s9944_s28 + $0x1344] ss:$8 sps:$4 sm:$0xff]   ;;  %v9002_v13 = vld [vmem:[%s9944_s28 + $0x540] ss:$8 sps:$4 sm:$0xff]  }
 0x12e   : > { %6780 = vmatprep.subr.bf16.mxu0 %v8922_v14  ;;  %v9005_v14 = vld [vmem:[%s9944_s28 + $0x1340] ss:$8 sps:$4 sm:$0xff]  }
 0x130   : > { %6207 = vmatpush1.bf16.msra.mxu1 %v8917_v15  ;;  %v9010_v15 = vld [vmem:[%s9944_s28 + $0x554] ss:$8 sps:$4 sm:$0xff]  }
 0x131   : > { %6781 = vmatpush1.bf16.msra.mxu0 %v8920_v16  ;;  %6208 = vmatprep.subr.bf16.mxu1 %v8925_v17  ;;  %v9013_v16 = vld [vmem:[%s9944_s28 + $0x1354] ss:$8 sps:$4 sm:$0xff]   ;;  %v9008_v17 = vld [vmem:[%s9944_s28 + $0x550] ss:$8 sps:$4 sm:$0xff]  }
 0x132   : > { %6782 = vmatprep.subr.bf16.mxu0 %v8928_v20  ;;  %v9011_v20 = vld [vmem:[%s9944_s28 + $0x1350] ss:$8 sps:$4 sm:$0xff]  }
 0x134   : > { %6209 = vmatpush1.bf16.msra.mxu1 %v8923_v21  ;;  %v9016_v21 = vld [vmem:[%s9944_s28 + $0x564] ss:$8 sps:$4 sm:$0xff]  }
 0x135   : > { %6783 = vmatpush1.bf16.msra.mxu0 %v8926_v22  ;;  %6210 = vmatprep.subr.bf16.mxu1 %v8931_v23  ;;  %v9019_v22 = vld [vmem:[%s9944_s28 + $0x1364] ss:$8 sps:$4 sm:$0xff]   ;;  %v9014_v23 = vld [vmem:[%s9944_s28 + $0x560] ss:$8 sps:$4 sm:$0xff]  }
 0x136   : > { %6784 = vmatprep.subr.bf16.mxu0 %v8934_v25  ;;  %v9017_v25 = vld [vmem:[%s9944_s28 + $0x1360] ss:$8 sps:$4 sm:$0xff]  }
 0x138   : > { %6211 = vmatpush1.bf16.msra.mxu1 %v8929_v53  ;;  %v9022_v53 = vld [vmem:[%s9944_s28 + $0x574] ss:$8 sps:$4 sm:$0xff]  }
 0x139   : > { %6785 = vmatpush1.bf16.msra.mxu0 %v8932_v26  ;;  %6212 = vmatprep.subr.bf16.mxu1 %v8937_v27  ;;  %v9025_v26 = vld [vmem:[%s9944_s28 + $0x1374] ss:$8 sps:$4 sm:$0xff]   ;;  %v9020_v27 = vld [vmem:[%s9944_s28 + $0x570] ss:$8 sps:$4 sm:$0xff]  }
 0x13a   : > { %6786 = vmatprep.subr.bf16.mxu0 %v8940_v28  ;;  %v9023_v28 = vld [vmem:[%s9944_s28 + $0x1370] ss:$8 sps:$4 sm:$0xff]  }
 0x13c   : > { %6213 = vmatpush1.bf16.msra.mxu1 %v8935_v29  ;;  %v9028_v29 = vld [vmem:[%s9944_s28 + $0x584] ss:$8 sps:$4 sm:$0xff]  }
 0x13d   : > { %6787 = vmatpush1.bf16.msra.mxu0 %v8938_v30  ;;  %6214 = vmatprep.subr.bf16.mxu1 %v8943_v31  ;;  %v9031_v30 = vld [vmem:[%s9944_s28 + $0x1384] ss:$8 sps:$4 sm:$0xff]   ;;  %v9026_v31 = vld [vmem:[%s9944_s28 + $0x580] ss:$8 sps:$4 sm:$0xff]  }
 0x13e   : > { %6788 = vmatprep.subr.bf16.mxu0 %v8946_v32  ;;  %v9029_v32 = vld [vmem:[%s9944_s28 + $0x1380] ss:$8 sps:$4 sm:$0xff]  }
 0x140   : > { %6215 = vmatpush1.bf16.msra.mxu1 %v8941_v33  ;;  %v9034_v33 = vld [vmem:[%s9944_s28 + $0x594] ss:$8 sps:$4 sm:$0xff]  }
 0x141   : > { %6789 = vmatpush1.bf16.msra.mxu0 %v8944_v34  ;;  %6216 = vmatprep.subr.bf16.mxu1 %v8949_v18  ;;  %v9037_v34 = vld [vmem:[%s9944_s28 + $0x1394] ss:$8 sps:$4 sm:$0xff]   ;;  %v9032_v18 = vld [vmem:[%s9944_s28 + $0x590] ss:$8 sps:$4 sm:$0xff]  }
 0x142   : > { %6790 = vmatprep.subr.bf16.mxu0 %v8952_v37  ;;  %v9035_v37 = vld [vmem:[%s9944_s28 + $0x1390] ss:$8 sps:$4 sm:$0xff]  }
 0x144   : > { %6217 = vmatpush1.bf16.msra.mxu1 %v8947_v38  ;;  %v9040_v38 = vld [vmem:[%s9944_s28 + $0x5a4] ss:$8 sps:$4 sm:$0xff]  }
 0x145   : > { %6791 = vmatpush1.bf16.msra.mxu0 %v8950_v39  ;;  %6218 = vmatprep.subr.bf16.mxu1 %v8955_v40  ;;  %v9043_v39 = vld [vmem:[%s9944_s28 + $0x13a4] ss:$8 sps:$4 sm:$0xff]   ;;  %v9038_v40 = vld [vmem:[%s9944_s28 + $0x5a0] ss:$8 sps:$4 sm:$0xff]  }
 0x146   : > { %6792 = vmatprep.subr.bf16.mxu0 %v8958_v45  ;;  %v9041_v45 = vld [vmem:[%s9944_s28 + $0x13a0] ss:$8 sps:$4 sm:$0xff]  }
 0x148   : > { %6219 = vmatpush1.bf16.msra.mxu1 %v8953_v47  ;;  %v9046_v47 = vld [vmem:[%s9944_s28 + $0x5b4] ss:$8 sps:$4 sm:$0xff]  }
 0x149   : > { %6793 = vmatpush1.bf16.msra.mxu0 %v8956_v48  ;;  %6220 = vmatprep.subr.bf16.mxu1 %v8961_v19  ;;  %v9049_v48 = vld [vmem:[%s9944_s28 + $0x13b4] ss:$8 sps:$4 sm:$0xff]   ;;  %v9044_v19 = vld [vmem:[%s9944_s28 + $0x5b0] ss:$8 sps:$4 sm:$0xff]  }
 0x14a   : > { %6794 = vmatprep.subr.bf16.mxu0 %v8964_v49  ;;  %v9047_v49 = vld [vmem:[%s9944_s28 + $0x13b0] ss:$8 sps:$4 sm:$0xff]  }
 0x14c   : > { %6221 = vmatpush1.bf16.msra.mxu1 %v8959_v36  ;;  %v9052_v36 = vld [vmem:[%s9944_s28 + $0x5c4] ss:$8 sps:$4 sm:$0xff]  }
 0x14d   : > { %6795 = vmatpush1.bf16.msra.mxu0 %v8962_v51  ;;  %6222 = vmatprep.subr.bf16.mxu1 %v8967_v35  ;;  %v9055_v51 = vld [vmem:[%s9944_s28 + $0x13c4] ss:$8 sps:$4 sm:$0xff]   ;;  %v9050_v35 = vld [vmem:[%s9944_s28 + $0x5c0] ss:$8 sps:$4 sm:$0xff]  }
 0x14e   : > { %6796 = vmatprep.subr.bf16.mxu0 %v8970_v42  ;;  %v9053_v42 = vld [vmem:[%s9944_s28 + $0x13c0] ss:$8 sps:$4 sm:$0xff]  }
 0x150   : > { %6223 = vmatpush1.bf16.msra.mxu1 %v8965_v52  ;;  %v9058_v52 = vld [vmem:[%s9944_s28 + $0x5d4] ss:$8 sps:$4 sm:$0xff]  }
 0x151   : > { %6797 = vmatpush1.bf16.msra.mxu0 %v8968_v54  ;;  %6224 = vmatprep.subr.bf16.mxu1 %v8973_v55  ;;  %v9061_v54 = vld [vmem:[%s9944_s28 + $0x13d4] ss:$8 sps:$4 sm:$0xff]   ;;  %v9056_v55 = vld [vmem:[%s9944_s28 + $0x5d0] ss:$8 sps:$4 sm:$0xff]  }
 0x152   : > { %6798 = vmatprep.subr.bf16.mxu0 %v8976_v56  ;;  %v9059_v56 = vld [vmem:[%s9944_s28 + $0x13d0] ss:$8 sps:$4 sm:$0xff]  }
 0x154   : > { %6225 = vmatpush1.bf16.msra.mxu1 %v8971_v57  ;;  %v9064_v57 = vld [vmem:[%s9944_s28 + $0x5e4] ss:$8 sps:$4 sm:$0xff]  }
 0x155   : > { %6799 = vmatpush1.bf16.msra.mxu0 %v8974_v58  ;;  %6235 = vmatprep.subr.bf16.mxu1 %v8979_v41  ;;  %v9067_v58 = vld [vmem:[%s9944_s28 + $0x13e4] ss:$8 sps:$4 sm:$0xff]  }
 0x156   : > { %6809 = vmatprep.subr.bf16.mxu0 %v8983_v43  ;;  %v10428_v41 = vld.sshfl [vmem:[%s9939_s24 + $0x28] sm:$0xff pattern:$0x75316420] }
 0x157   : > { %6227 = vmatmul.mubr.bf16.vlgmr.msra.gmra.mrb[0].mxu1 %v10359_v61  ;;  %v9846_v43 = vld [vmem:[%s9939_s24 + $0x8] sm:$0xff] }
 0x158   : > { %6801 = vmatmul.mubr.bf16.vlgmr.msra.gmra.mrb[0].mxu0 %v10363_v62  ;;  %6236 = vmatpush1.bf16.msra.mxu1 %v8977_v63  ;;  %v1200_v63 = vcombine.high %v9846_v43, %v9846_v43  ;;  %v9140_v43 = vld [vmem:[%s9944_s28 + $0x6b0] ss:$8 sps:$4 sm:$0xff]  }
 0x159   : > { %6810 = vmatpush1.bf16.msra.mxu0 %v8981_v0  ;;  %6237 = vmatprep.subr.bf16.mxu1 %v8986_v1  ;;  %v9062_v0 = vld [vmem:[%s9944_s28 + $0x5e0] ss:$8 sps:$4 sm:$0xff]  }
 0x15a   : > { %6811 = vmatprep.subr.bf16.mxu0 %v8989_v2  ;;  %6267 = vmatprep.mubr.bf16.mxu1 %v1247_v46  ;;  %v9065_v1 = vld [vmem:[%s9944_s28 + $0x13e0] ss:$8 sps:$4 sm:$0xff]   ;;  %v9070_v2 = vld [vmem:[%s9944_s28 + $0x5f4] ss:$8 sps:$4 sm:$0xff]  }
 0x15b   : > { %6841 = vmatprep.mubr.bf16.mxu0 %v1395_v3  ;;  %v9073_v46 = vld [vmem:[%s9944_s28 + $0x13f4] ss:$8 sps:$4 sm:$0xff]   ;;  %v10436_v3 = vrot.slane %v1200_v63, %v9994_v50  ;;  %v9143_v63 = vld [vmem:[%s9944_s28 + $0x14b0] ss:$8 sps:$4 sm:$0xff]  }
 0x15c   : > { %6238 = vmatpush1.bf16.msra.mxu1 %v8984_v24  ;;  %v9068_v24 = vld [vmem:[%s9944_s28 + $0x5f0] ss:$8 sps:$4 sm:$0xff]  }
 0x15d   : > { %6812 = vmatpush1.bf16.msra.mxu0 %v8987_v4  ;;  %6239 = vmatprep.subr.bf16.mxu1 %v8992_v59  ;;  %v9071_v4 = vld [vmem:[%s9944_s28 + $0x13f0] ss:$8 sps:$4 sm:$0xff]   ;;  %v9076_v59 = vld [vmem:[%s9944_s28 + $0x604] ss:$8 sps:$4 sm:$0xff]  }
 0x15e   : > { %6813 = vmatprep.subr.bf16.mxu0 %v8995_v5  ;;  %v9079_v5 = vld [vmem:[%s9944_s28 + $0x1404] ss:$8 sps:$4 sm:$0xff]  }
 0x160   : > { %6240 = vmatpush1.bf16.msra.mxu1 %v8990_v60  ;;  %v1216_v60 = vcombine.high %v10436_v3, %v10436_v3 }
 0x161   : > { %6814 = vmatpush1.bf16.msra.mxu0 %v8993_v6  ;;  %6241 = vmatprep.subr.bf16.mxu1 %v8998_v7  ;;  %v1411_v6 = vcombine.high %v10428_v41, %v10428_v41  ;;  %v1245_v7 = vcombine.high %v10359_v61, %v10359_v61 }
 0x162   : > { %6815 = vmatprep.subr.bf16.mxu0 %v9001_v8  ;;  %v1393_v8 = vcombine.high %v10363_v62, %v10363_v62  ;;  %v9080_v62 = vld [vmem:[%s9944_s28 + $0x610] ss:$8 sps:$4 sm:$0xff]  }
 0x163   : > { %v10458_v61 = vrot.slane %v1411_v6, %v9994_v50  ;;  %v9163_v6 = vld [vmem:[%s9944_s28 + $0x14e4] ss:$8 sps:$4 sm:$0xff]  }
 0x164   : > { %6242 = vmatpush1.bf16.msra.mxu1 %v8996_v9  ;;  %v9074_v9 = vld [vmem:[%s9944_s28 + $0x600] ss:$8 sps:$4 sm:$0xff]  }
 0x165   : > { %6816 = vmatpush1.bf16.msra.mxu0 %v8999_v10  ;;  %6243 = vmatprep.subr.bf16.mxu1 %v9004_v11  ;;  %v9077_v10 = vld [vmem:[%s9944_s28 + $0x1400] ss:$8 sps:$4 sm:$0xff]   ;;  %v9082_v11 = vld [vmem:[%s9944_s28 + $0x614] ss:$8 sps:$4 sm:$0xff]  }
 0x166   : > { %6817 = vmatprep.subr.bf16.mxu0 %v9007_v12  ;;  %v9085_v12 = vld [vmem:[%s9944_s28 + $0x1414] ss:$8 sps:$4 sm:$0xff]  }
 0x168   : > { %6244 = vmatpush1.bf16.msra.mxu1 %v9002_v13  ;;  %v10455_v13 = vrot.slane %v1216_v60, %v9994_v50  ;;  %v9160_v60 = vld [vmem:[%s9944_s28 + $0x6e4] ss:$8 sps:$4 sm:$0xff]  }
 0x169   : > { %6818 = vmatpush1.bf16.msra.mxu0 %v9005_v14  ;;  %6245 = vmatprep.subr.bf16.mxu1 %v9010_v15  ;;  %v9083_v14 = vld [vmem:[%s9944_s28 + $0x1410] ss:$8 sps:$4 sm:$0xff]   ;;  %v9088_v15 = vld [vmem:[%s9944_s28 + $0x624] ss:$8 sps:$4 sm:$0xff]  }
 0x16a   : > { %6819 = vmatprep.subr.bf16.mxu0 %v9013_v16  ;;  %v9091_v16 = vld [vmem:[%s9944_s28 + $0x1424] ss:$8 sps:$4 sm:$0xff]  }
 0x16c   : > { %6246 = vmatpush1.bf16.msra.mxu1 %v9008_v17  ;;  %v9086_v17 = vld [vmem:[%s9944_s28 + $0x620] ss:$8 sps:$4 sm:$0xff]  }
 0x16d   : > { %6820 = vmatpush1.bf16.msra.mxu0 %v9011_v20  ;;  %6247 = vmatprep.subr.bf16.mxu1 %v9016_v21  ;;  %v9089_v20 = vld [vmem:[%s9944_s28 + $0x1420] ss:$8 sps:$4 sm:$0xff]   ;;  %v9094_v21 = vld [vmem:[%s9944_s28 + $0x634] ss:$8 sps:$4 sm:$0xff]  }
 0x16e   : > { %6821 = vmatprep.subr.bf16.mxu0 %v9019_v22  ;;  %v9097_v22 = vld [vmem:[%s9944_s28 + $0x1434] ss:$8 sps:$4 sm:$0xff]  }
 0x170   : > { %6248 = vmatpush1.bf16.msra.mxu1 %v9014_v23  ;;  %v9092_v23 = vld [vmem:[%s9944_s28 + $0x630] ss:$8 sps:$4 sm:$0xff]  }
 0x171   : > { %6822 = vmatpush1.bf16.msra.mxu0 %v9017_v25  ;;  %6249 = vmatprep.subr.bf16.mxu1 %v9022_v53  ;;  %v9095_v25 = vld [vmem:[%s9944_s28 + $0x1430] ss:$8 sps:$4 sm:$0xff]   ;;  %v9100_v53 = vld [vmem:[%s9944_s28 + $0x644] ss:$8 sps:$4 sm:$0xff]  }
 0x172   : > { %6823 = vmatprep.subr.bf16.mxu0 %v9025_v26  ;;  %v9103_v26 = vld [vmem:[%s9944_s28 + $0x1444] ss:$8 sps:$4 sm:$0xff]  }
 0x174   : > { %6250 = vmatpush1.bf16.msra.mxu1 %v9020_v27  ;;  %v9098_v27 = vld [vmem:[%s9944_s28 + $0x640] ss:$8 sps:$4 sm:$0xff]  }
 0x175   : > { %6824 = vmatpush1.bf16.msra.mxu0 %v9023_v28  ;;  %6251 = vmatprep.subr.bf16.mxu1 %v9028_v29  ;;  %v9101_v28 = vld [vmem:[%s9944_s28 + $0x1440] ss:$8 sps:$4 sm:$0xff]   ;;  %v9106_v29 = vld [vmem:[%s9944_s28 + $0x654] ss:$8 sps:$4 sm:$0xff]  }
 0x176   : > { %6825 = vmatprep.subr.bf16.mxu0 %v9031_v30  ;;  %v9109_v30 = vld [vmem:[%s9944_s28 + $0x1454] ss:$8 sps:$4 sm:$0xff]  }
 0x178   : > { %6252 = vmatpush1.bf16.msra.mxu1 %v9026_v31  ;;  %v9104_v31 = vld [vmem:[%s9944_s28 + $0x650] ss:$8 sps:$4 sm:$0xff]  }
 0x179   : > { %6826 = vmatpush1.bf16.msra.mxu0 %v9029_v32  ;;  %6253 = vmatprep.subr.bf16.mxu1 %v9034_v33  ;;  %v9107_v32 = vld [vmem:[%s9944_s28 + $0x1450] ss:$8 sps:$4 sm:$0xff]   ;;  %v9112_v33 = vld [vmem:[%s9944_s28 + $0x664] ss:$8 sps:$4 sm:$0xff]  }
 0x17a   : > { %6827 = vmatprep.subr.bf16.mxu0 %v9037_v34  ;;  %v9115_v34 = vld [vmem:[%s9944_s28 + $0x1464] ss:$8 sps:$4 sm:$0xff]  }
 0x17c   : > { %6254 = vmatpush1.bf16.msra.mxu1 %v9032_v18  ;;  %v9110_v18 = vld [vmem:[%s9944_s28 + $0x660] ss:$8 sps:$4 sm:$0xff]  }
 0x17d   : > { %6828 = vmatpush1.bf16.msra.mxu0 %v9035_v37  ;;  %6255 = vmatprep.subr.bf16.mxu1 %v9040_v38  ;;  %v9113_v37 = vld [vmem:[%s9944_s28 + $0x1460] ss:$8 sps:$4 sm:$0xff]   ;;  %v9118_v38 = vld [vmem:[%s9944_s28 + $0x674] ss:$8 sps:$4 sm:$0xff]  }
 0x17e   : > { %6829 = vmatprep.subr.bf16.mxu0 %v9043_v39  ;;  %v9121_v39 = vld [vmem:[%s9944_s28 + $0x1474] ss:$8 sps:$4 sm:$0xff]  }
 0x180   : > { %6256 = vmatpush1.bf16.msra.mxu1 %v9038_v40  ;;  %v9116_v40 = vld [vmem:[%s9944_s28 + $0x670] ss:$8 sps:$4 sm:$0xff]  }
 0x181   : > { %6830 = vmatpush1.bf16.msra.mxu0 %v9041_v45  ;;  %6257 = vmatprep.subr.bf16.mxu1 %v9046_v47  ;;  %v9119_v45 = vld [vmem:[%s9944_s28 + $0x1470] ss:$8 sps:$4 sm:$0xff]   ;;  %v9124_v47 = vld [vmem:[%s9944_s28 + $0x684] ss:$8 sps:$4 sm:$0xff]  }
 0x182   : > { %6831 = vmatprep.subr.bf16.mxu0 %v9049_v48  ;;  %v9127_v48 = vld [vmem:[%s9944_s28 + $0x1484] ss:$8 sps:$4 sm:$0xff]  }
 0x184   : > { %6258 = vmatpush1.bf16.msra.mxu1 %v9044_v19  ;;  %v9122_v19 = vld [vmem:[%s9944_s28 + $0x680] ss:$8 sps:$4 sm:$0xff]  }
 0x185   : > { %6832 = vmatpush1.bf16.msra.mxu0 %v9047_v49  ;;  %6259 = vmatprep.subr.bf16.mxu1 %v9052_v36  ;;  %v9125_v49 = vld [vmem:[%s9944_s28 + $0x1480] ss:$8 sps:$4 sm:$0xff]   ;;  %v9130_v36 = vld [vmem:[%s9944_s28 + $0x694] ss:$8 sps:$4 sm:$0xff]  }
 0x186   : > { %6833 = vmatprep.subr.bf16.mxu0 %v9055_v51  ;;  %v9133_v51 = vld [vmem:[%s9944_s28 + $0x1494] ss:$8 sps:$4 sm:$0xff]  }
 0x188   : > { %6260 = vmatpush1.bf16.msra.mxu1 %v9050_v35  ;;  %v9128_v35 = vld [vmem:[%s9944_s28 + $0x690] ss:$8 sps:$4 sm:$0xff]  }
 0x189   : > { %6834 = vmatpush1.bf16.msra.mxu0 %v9053_v42  ;;  %6261 = vmatprep.subr.bf16.mxu1 %v9058_v52  ;;  %v9131_v42 = vld [vmem:[%s9944_s28 + $0x1490] ss:$8 sps:$4 sm:$0xff]   ;;  %v9136_v52 = vld [vmem:[%s9944_s28 + $0x6a4] ss:$8 sps:$4 sm:$0xff]  }
 0x18a   : > { %6835 = vmatprep.subr.bf16.mxu0 %v9061_v54  ;;  %v9139_v54 = vld [vmem:[%s9944_s28 + $0x14a4] ss:$8 sps:$4 sm:$0xff]  }
 0x18c   : > { %6262 = vmatpush1.bf16.msra.mxu1 %v9056_v55  ;;  %v9134_v55 = vld [vmem:[%s9944_s28 + $0x6a0] ss:$8 sps:$4 sm:$0xff]  }
 0x18d   : > { %6836 = vmatpush1.bf16.msra.mxu0 %v9059_v56  ;;  %6263 = vmatprep.subr.bf16.mxu1 %v9064_v57  ;;  %v9137_v56 = vld [vmem:[%s9944_s28 + $0x14a0] ss:$8 sps:$4 sm:$0xff]   ;;  %v9142_v57 = vld [vmem:[%s9944_s28 + $0x6b4] ss:$8 sps:$4 sm:$0xff]  }
 0x18e   : > { %6837 = vmatprep.subr.bf16.mxu0 %v9067_v58  ;;  %v9145_v58 = vld [vmem:[%s9944_s28 + $0x14b4] ss:$8 sps:$4 sm:$0xff]  }
 0x190   : > { %6264 = vmatpush1.bf16.msra.mxu1 %v9062_v0  ;;  %v9148_v0 = vld [vmem:[%s9944_s28 + $0x6c4] ss:$8 sps:$4 sm:$0xff]  }
 0x191   : > { %6838 = vmatpush1.bf16.msra.mxu0 %v9065_v1  ;;  %6265 = vmatprep.subr.bf16.mxu1 %v9070_v2  ;;  %v9151_v1 = vld [vmem:[%s9944_s28 + $0x14c4] ss:$8 sps:$4 sm:$0xff]   ;;  %v9146_v2 = vld [vmem:[%s9944_s28 + $0x6c0] ss:$8 sps:$4 sm:$0xff]  }
 0x192   : > { %6839 = vmatprep.subr.bf16.mxu0 %v9073_v46  ;;  %v9149_v46 = vld [vmem:[%s9944_s28 + $0x14c0] ss:$8 sps:$4 sm:$0xff]  }
 0x194   : > { %6266 = vmatpush1.bf16.msra.mxu1 %v9068_v24  ;;  %v9154_v24 = vld [vmem:[%s9944_s28 + $0x6d4] ss:$8 sps:$4 sm:$0xff]  }
 0x195   : > { %6840 = vmatpush1.bf16.msra.mxu0 %v9071_v4  ;;  %6276 = vmatprep.subr.bf16.mxu1 %v9076_v59  ;;  %v9157_v4 = vld [vmem:[%s9944_s28 + $0x14d4] ss:$8 sps:$4 sm:$0xff]   ;;  %v9152_v59 = vld [vmem:[%s9944_s28 + $0x6d0] ss:$8 sps:$4 sm:$0xff]  }
 0x196   : > { %6850 = vmatprep.subr.bf16.mxu0 %v9079_v5  ;;  %v9155_v5 = vld [vmem:[%s9944_s28 + $0x14d0] ss:$8 sps:$4 sm:$0xff]  }
 0x197   : > { %6268 = vmatmul.mubr.bf16.vlgmr.msra.gmra.mrb[0].mxu1 %v1245_v7  ;;  %v9158_v7 = vld [vmem:[%s9944_s28 + $0x6e0] ss:$8 sps:$4 sm:$0xff]  }
 0x198   : > { %6842 = vmatmul.mubr.bf16.vlgmr.msra.gmra.mrb[0].mxu0 %v1393_v8  ;;  %6277 = vmatpush1.bf16.msra.mxu1 %v9074_v9  ;;  %v9161_v8 = vld [vmem:[%s9944_s28 + $0x14e0] ss:$8 sps:$4 sm:$0xff]   ;;  %v9166_v9 = vld [vmem:[%s9944_s28 + $0x6f4] ss:$8 sps:$4 sm:$0xff]  }
 0x199   : > { %6851 = vmatpush1.bf16.msra.mxu0 %v9077_v10  ;;  %6278 = vmatprep.subr.bf16.mxu1 %v9082_v11  ;;  %v9169_v10 = vld [vmem:[%s9944_s28 + $0x14f4] ss:$8 sps:$4 sm:$0xff]   ;;  %v9164_v11 = vld [vmem:[%s9944_s28 + $0x6f0] ss:$8 sps:$4 sm:$0xff]  }
 0x19a   : > { %6852 = vmatprep.subr.bf16.mxu0 %v9085_v12  ;;  %6308 = vmatprep.mubr.bf16.mxu1 %v10455_v13  ;;  %v9167_v12 = vld [vmem:[%s9944_s28 + $0x14f0] ss:$8 sps:$4 sm:$0xff]  }
 0x19b   : > { %6882 = vmatprep.mubr.bf16.mxu0 %v10458_v61 }
 0x19c   : > { %6279 = vmatpush1.bf16.msra.mxu1 %v9080_v62  ;;  %v9173_v62 = vld [vmem:[%s9944_s28 + $0x704] ss:$8 sps:$4 sm:$0xff]  }
 0x19d   : > { %6853 = vmatpush1.bf16.msra.mxu0 %v9083_v14  ;;  %6280 = vmatprep.subr.bf16.mxu1 %v9088_v15  ;;  %v9176_v14 = vld [vmem:[%s9944_s28 + $0x1504] ss:$8 sps:$4 sm:$0xff]   ;;  %v10524_v15 = vrot.slane %v10436_v3, %v9994_v50  ;;  %v1248_v3 = vcombine.high %v10455_v13, %v10455_v13 }
 0x19e   : > { %6854 = vmatprep.subr.bf16.mxu0 %v9091_v16  ;;  %v10528_v16 = vrot.slane %v10428_v41, %v9994_v50  ;;  %v9177_v41 = vld [vmem:[%s9944_s28 + $0x710] ss:$8 sps:$4 sm:$0xff]   ;;  %v9185_v13 = vld [vmem:[%s9944_s28 + $0x724] ss:$8 sps:$4 sm:$0xff]  }
 0x1a0   : > { %6281 = vmatpush1.bf16.msra.mxu1 %v9086_v17  ;;  %v9171_v17 = vld [vmem:[%s9944_s28 + $0x700] ss:$8 sps:$4 sm:$0xff]  }
 0x1a1   : > { %6855 = vmatpush1.bf16.msra.mxu0 %v9089_v20  ;;  %6282 = vmatprep.subr.bf16.mxu1 %v9094_v21  ;;  %v9174_v20 = vld [vmem:[%s9944_s28 + $0x1500] ss:$8 sps:$4 sm:$0xff]   ;;  %v9179_v21 = vld [vmem:[%s9944_s28 + $0x714] ss:$8 sps:$4 sm:$0xff]  }
 0x1a2   : > { %6856 = vmatprep.subr.bf16.mxu0 %v9097_v22  ;;  %v9182_v22 = vld [vmem:[%s9944_s28 + $0x1514] ss:$8 sps:$4 sm:$0xff]  }
 0x1a4   : > { %6283 = vmatpush1.bf16.msra.mxu1 %v9092_v23  ;;  %v1443_v23 = vcombine.high %v10458_v61, %v10458_v61  ;;  %v9183_v61 = vld [vmem:[%s9944_s28 + $0x720] ss:$8 sps:$4 sm:$0xff]  }
 0x1a5   : > { %6857 = vmatpush1.bf16.msra.mxu0 %v9095_v25  ;;  %6284 = vmatprep.subr.bf16.mxu1 %v9100_v53  ;;  %v9180_v25 = vld [vmem:[%s9944_s28 + $0x1510] ss:$8 sps:$4 sm:$0xff]   ;;  %v9188_v53 = vld [vmem:[%s9944_s28 + $0x1524] ss:$8 sps:$4 sm:$0xff]  }
 0x1a6   : > { %6858 = vmatprep.subr.bf16.mxu0 %v9103_v26  ;;  %v9186_v26 = vld [vmem:[%s9944_s28 + $0x1520] ss:$8 sps:$4 sm:$0xff]  }
 0x1a8   : > { %6285 = vmatpush1.bf16.msra.mxu1 %v9098_v27  ;;  %v9191_v27 = vld [vmem:[%s9944_s28 + $0x734] ss:$8 sps:$4 sm:$0xff]  }
 0x1a9   : > { %6859 = vmatpush1.bf16.msra.mxu0 %v9101_v28  ;;  %6286 = vmatprep.subr.bf16.mxu1 %v9106_v29  ;;  %v9194_v28 = vld [vmem:[%s9944_s28 + $0x1534] ss:$8 sps:$4 sm:$0xff]   ;;  %v9189_v29 = vld [vmem:[%s9944_s28 + $0x730] ss:$8 sps:$4 sm:$0xff]  }
 0x1aa   : > { %6860 = vmatprep.subr.bf16.mxu0 %v9109_v30  ;;  %v9192_v30 = vld [vmem:[%s9944_s28 + $0x1530] ss:$8 sps:$4 sm:$0xff]  }
 0x1ac   : > { %6287 = vmatpush1.bf16.msra.mxu1 %v9104_v31  ;;  %v9197_v31 = vld [vmem:[%s9944_s28 + $0x744] ss:$8 sps:$4 sm:$0xff]  }
 0x1ad   : > { %6861 = vmatpush1.bf16.msra.mxu0 %v9107_v32  ;;  %6288 = vmatprep.subr.bf16.mxu1 %v9112_v33  ;;  %v9200_v32 = vld [vmem:[%s9944_s28 + $0x1544] ss:$8 sps:$4 sm:$0xff]   ;;  %v9195_v33 = vld [vmem:[%s9944_s28 + $0x740] ss:$8 sps:$4 sm:$0xff]  }
 0x1ae   : > { %6862 = vmatprep.subr.bf16.mxu0 %v9115_v34  ;;  %v9198_v34 = vld [vmem:[%s9944_s28 + $0x1540] ss:$8 sps:$4 sm:$0xff]  }
 0x1b0   : > { %6289 = vmatpush1.bf16.msra.mxu1 %v9110_v18  ;;  %v9203_v18 = vld [vmem:[%s9944_s28 + $0x754] ss:$8 sps:$4 sm:$0xff]  }
 0x1b1   : > { %6863 = vmatpush1.bf16.msra.mxu0 %v9113_v37  ;;  %6290 = vmatprep.subr.bf16.mxu1 %v9118_v38  ;;  %v9206_v37 = vld [vmem:[%s9944_s28 + $0x1554] ss:$8 sps:$4 sm:$0xff]   ;;  %v9201_v38 = vld [vmem:[%s9944_s28 + $0x750] ss:$8 sps:$4 sm:$0xff]  }
 0x1b2   : > { %6864 = vmatprep.subr.bf16.mxu0 %v9121_v39  ;;  %v9204_v39 = vld [vmem:[%s9944_s28 + $0x1550] ss:$8 sps:$4 sm:$0xff]  }
 0x1b4   : > { %6291 = vmatpush1.bf16.msra.mxu1 %v9116_v40  ;;  %v9209_v40 = vld [vmem:[%s9944_s28 + $0x764] ss:$8 sps:$4 sm:$0xff]  }
 0x1b5   : > { %6865 = vmatpush1.bf16.msra.mxu0 %v9119_v45  ;;  %6292 = vmatprep.subr.bf16.mxu1 %v9124_v47  ;;  %v9212_v45 = vld [vmem:[%s9944_s28 + $0x1564] ss:$8 sps:$4 sm:$0xff]   ;;  %v9207_v47 = vld [vmem:[%s9944_s28 + $0x760] ss:$8 sps:$4 sm:$0xff]  }
 0x1b6   : > { %6866 = vmatprep.subr.bf16.mxu0 %v9127_v48  ;;  %v9210_v48 = vld [vmem:[%s9944_s28 + $0x1560] ss:$8 sps:$4 sm:$0xff]  }
 0x1b8   : > { %6293 = vmatpush1.bf16.msra.mxu1 %v9122_v19  ;;  %v9215_v19 = vld [vmem:[%s9944_s28 + $0x774] ss:$8 sps:$4 sm:$0xff]  }
 0x1b9   : > { %6867 = vmatpush1.bf16.msra.mxu0 %v9125_v49  ;;  %6294 = vmatprep.subr.bf16.mxu1 %v9130_v36  ;;  %v9218_v49 = vld [vmem:[%s9944_s28 + $0x1574] ss:$8 sps:$4 sm:$0xff]   ;;  %v9213_v36 = vld [vmem:[%s9944_s28 + $0x770] ss:$8 sps:$4 sm:$0xff]  }
 0x1ba   : > { %6868 = vmatprep.subr.bf16.mxu0 %v9133_v51  ;;  %v9216_v51 = vld [vmem:[%s9944_s28 + $0x1570] ss:$8 sps:$4 sm:$0xff]  }
 0x1bc   : > { %6295 = vmatpush1.bf16.msra.mxu1 %v9128_v35  ;;  %v9221_v35 = vld [vmem:[%s9944_s28 + $0x784] ss:$8 sps:$4 sm:$0xff]  }
 0x1bd   : > { %6869 = vmatpush1.bf16.msra.mxu0 %v9131_v42  ;;  %6296 = vmatprep.subr.bf16.mxu1 %v9136_v52  ;;  %v9224_v42 = vld [vmem:[%s9944_s28 + $0x1584] ss:$8 sps:$4 sm:$0xff]   ;;  %v9219_v52 = vld [vmem:[%s9944_s28 + $0x780] ss:$8 sps:$4 sm:$0xff]  }
 0x1be   : > { %6870 = vmatprep.subr.bf16.mxu0 %v9139_v54  ;;  %v9222_v54 = vld [vmem:[%s9944_s28 + $0x1580] ss:$8 sps:$4 sm:$0xff]  }
 0x1c0   : > { %6297 = vmatpush1.bf16.msra.mxu1 %v9134_v55  ;;  %v9227_v55 = vld [vmem:[%s9944_s28 + $0x794] ss:$8 sps:$4 sm:$0xff]  }
 0x1c1   : > { %6871 = vmatpush1.bf16.msra.mxu0 %v9137_v56  ;;  %6298 = vmatprep.subr.bf16.mxu1 %v9142_v57  ;;  %v9230_v56 = vld [vmem:[%s9944_s28 + $0x1594] ss:$8 sps:$4 sm:$0xff]   ;;  %v9225_v57 = vld [vmem:[%s9944_s28 + $0x790] ss:$8 sps:$4 sm:$0xff]  }
 0x1c2   : > { %6872 = vmatprep.subr.bf16.mxu0 %v9145_v58  ;;  %v9228_v58 = vld [vmem:[%s9944_s28 + $0x1590] ss:$8 sps:$4 sm:$0xff]  }
 0x1c4   : > { %6299 = vmatpush1.bf16.msra.mxu1 %v9140_v43  ;;  %v9233_v43 = vld [vmem:[%s9944_s28 + $0x7a4] ss:$8 sps:$4 sm:$0xff]  }
 0x1c5   : > { %6873 = vmatpush1.bf16.msra.mxu0 %v9143_v63  ;;  %6300 = vmatprep.subr.bf16.mxu1 %v9148_v0  ;;  %v9236_v63 = vld [vmem:[%s9944_s28 + $0x15a4] ss:$8 sps:$4 sm:$0xff]   ;;  %v9231_v0 = vld [vmem:[%s9944_s28 + $0x7a0] ss:$8 sps:$4 sm:$0xff]  }
 0x1c6   : > { %6874 = vmatprep.subr.bf16.mxu0 %v9151_v1  ;;  %v9234_v1 = vld [vmem:[%s9944_s28 + $0x15a0] ss:$8 sps:$4 sm:$0xff]  }
 0x1c8   : > { %6301 = vmatpush1.bf16.msra.mxu1 %v9146_v2  ;;  %v9239_v2 = vld [vmem:[%s9944_s28 + $0x7b4] ss:$8 sps:$4 sm:$0xff]  }
 0x1c9   : > { %6875 = vmatpush1.bf16.msra.mxu0 %v9149_v46  ;;  %6302 = vmatprep.subr.bf16.mxu1 %v9154_v24  ;;  %v9242_v46 = vld [vmem:[%s9944_s28 + $0x15b4] ss:$8 sps:$4 sm:$0xff]   ;;  %v9237_v24 = vld [vmem:[%s9944_s28 + $0x7b0] ss:$8 sps:$4 sm:$0xff]  }
 0x1ca   : > { %6876 = vmatprep.subr.bf16.mxu0 %v9157_v4  ;;  %v9240_v4 = vld [vmem:[%s9944_s28 + $0x15b0] ss:$8 sps:$4 sm:$0xff]  }
 0x1cc   : > { %6303 = vmatpush1.bf16.msra.mxu1 %v9152_v59  ;;  %v9245_v59 = vld [vmem:[%s9944_s28 + $0x7c4] ss:$8 sps:$4 sm:$0xff]  }
 0x1cd   : > { %6877 = vmatpush1.bf16.msra.mxu0 %v9155_v5  ;;  %6304 = vmatprep.subr.bf16.mxu1 %v9160_v60  ;;  %v9248_v5 = vld [vmem:[%s9944_s28 + $0x15c4] ss:$8 sps:$4 sm:$0xff]   ;;  %v9243_v60 = vld [vmem:[%s9944_s28 + $0x7c0] ss:$8 sps:$4 sm:$0xff]  }
 0x1ce   : > { %6878 = vmatprep.subr.bf16.mxu0 %v9163_v6  ;;  %v9246_v6 = vld [vmem:[%s9944_s28 + $0x15c0] ss:$8 sps:$4 sm:$0xff]  }
 0x1d0   : > { %6305 = vmatpush1.bf16.msra.mxu1 %v9158_v7  ;;  %v9251_v7 = vld [vmem:[%s9944_s28 + $0x7d4] ss:$8 sps:$4 sm:$0xff]  }
 0x1d1   : > { %6879 = vmatpush1.bf16.msra.mxu0 %v9161_v8  ;;  %6306 = vmatprep.subr.bf16.mxu1 %v9166_v9  ;;  %v9254_v8 = vld [vmem:[%s9944_s28 + $0x15d4] ss:$8 sps:$4 sm:$0xff]   ;;  %v9249_v9 = vld [vmem:[%s9944_s28 + $0x7d0] ss:$8 sps:$4 sm:$0xff]  }
 0x1d2   : > { %6880 = vmatprep.subr.bf16.mxu0 %v9169_v10  ;;  %v9252_v10 = vld [vmem:[%s9944_s28 + $0x15d0] ss:$8 sps:$4 sm:$0xff]  }
 0x1d4   : > { %6307 = vmatpush1.bf16.msra.mxu1 %v9164_v11  ;;  %v9257_v11 = vld [vmem:[%s9944_s28 + $0x7e4] ss:$8 sps:$4 sm:$0xff]  }
 0x1d5   : > { %6881 = vmatpush1.bf16.msra.mxu0 %v9167_v12  ;;  %6317 = vmatprep.subr.bf16.mxu1 %v9173_v62  ;;  %v9260_v12 = vld [vmem:[%s9944_s28 + $0x15e4] ss:$8 sps:$4 sm:$0xff]   ;;  %v10593_v62 = vld [vmem:[%s9939_s24 + $0x10] sm:$0xff] }
 0x1d6   : > { %6891 = vmatprep.subr.bf16.mxu0 %v9176_v14  ;;  %v9847_v14 = vld [vmem:[%s9939_s24 + $0x28] sm:$0xff] }
 0x1d7   : > { %6309 = vmatmul.mubr.bf16.vlgmr.msra.gmra.mrb[0].mxu1 %v10524_v15 }
 0x1d8   : > { %6883 = vmatmul.mubr.bf16.vlgmr.msra.gmra.mrb[0].mxu0 %v10528_v16  ;;  %6318 = vmatpush1.bf16.msra.mxu1 %v9171_v17  ;;  %v1396_v17 = vcombine.high %v9847_v14, %v9847_v14  ;;  %v9338_v14 = vld [vmem:[%s9944_s28 + $0x16b4] ss:$8 sps:$4 sm:$0xff]  }
 0x1d9   : > { %6892 = vmatpush1.bf16.msra.mxu0 %v9174_v20  ;;  %6319 = vmatprep.subr.bf16.mxu1 %v9179_v21  ;;  %v9255_v20 = vld [vmem:[%s9944_s28 + $0x7e0] ss:$8 sps:$4 sm:$0xff]  }
 0x1da   : > { %6893 = vmatprep.subr.bf16.mxu0 %v9182_v22  ;;  %6349 = vmatprep.mubr.bf16.mxu1 %v1248_v3  ;;  %v9258_v21 = vld [vmem:[%s9944_s28 + $0x15e0] ss:$8 sps:$4 sm:$0xff]   ;;  %v9263_v22 = vld [vmem:[%s9944_s28 + $0x7f4] ss:$8 sps:$4 sm:$0xff]  }
 0x1db   : > { %6923 = vmatprep.mubr.bf16.mxu0 %v1443_v23  ;;  %v9266_v3 = vld [vmem:[%s9944_s28 + $0x15f4] ss:$8 sps:$4 sm:$0xff]   ;;  %v10602_v23 = vrot.slane %v10593_v62, %v9994_v50 }
 0x1dc   : > { %6320 = vmatpush1.bf16.msra.mxu1 %v9177_v41  ;;  %v10605_v41 = vrot.slane %v1396_v17, %v9994_v50  ;;  %v9333_v17 = vld [vmem:[%s9944_s28 + $0x8b0] ss:$8 sps:$4 sm:$0xff]  }
 0x1dd   : > { %6894 = vmatpush1.bf16.msra.mxu0 %v9180_v25  ;;  %6321 = vmatprep.subr.bf16.mxu1 %v9185_v13  ;;  %v9261_v25 = vld [vmem:[%s9944_s28 + $0x7f0] ss:$8 sps:$4 sm:$0xff]  }
 0x1de   : > { %6895 = vmatprep.subr.bf16.mxu0 %v9188_v53  ;;  %v9264_v13 = vld [vmem:[%s9944_s28 + $0x15f0] ss:$8 sps:$4 sm:$0xff]   ;;  %v9269_v53 = vld [vmem:[%s9944_s28 + $0x804] ss:$8 sps:$4 sm:$0xff]  }
 0x1e0   : > { %6322 = vmatpush1.bf16.msra.mxu1 %v9183_v61  ;;  %v9272_v61 = vld [vmem:[%s9944_s28 + $0x1604] ss:$8 sps:$4 sm:$0xff]  }
 0x1e1   : > { %6896 = vmatpush1.bf16.msra.mxu0 %v9186_v26  ;;  %6323 = vmatprep.subr.bf16.mxu1 %v9191_v27  ;;  %v1264_v26 = vcombine.high %v10602_v23, %v10602_v23  ;;  %v1412_v27 = vcombine.high %v10605_v41, %v10605_v41 }
 0x1e2   : > { %6897 = vmatprep.subr.bf16.mxu0 %v9194_v28  ;;  %v1246_v28 = vcombine.high %v10524_v15, %v10524_v15 }
 0x1e3   : > { %v10627_v15 = vrot.slane %v1412_v27, %v9994_v50  ;;  %v9353_v27 = vld [vmem:[%s9944_s28 + $0x8e4] ss:$8 sps:$4 sm:$0xff]  }
 0x1e4   : > { %6324 = vmatpush1.bf16.msra.mxu1 %v9189_v29  ;;  %v1441_v29 = vcombine.high %v10528_v16, %v10528_v16  ;;  %v9273_v16 = vld [vmem:[%s9944_s28 + $0x810] ss:$8 sps:$4 sm:$0xff]  }
 0x1e5   : > { %6898 = vmatpush1.bf16.msra.mxu0 %v9192_v30  ;;  %6325 = vmatprep.subr.bf16.mxu1 %v9197_v31  ;;  %v9267_v30 = vld [vmem:[%s9944_s28 + $0x800] ss:$8 sps:$4 sm:$0xff]  }
 0x1e6   : > { %6899 = vmatprep.subr.bf16.mxu0 %v9200_v32  ;;  %v9270_v31 = vld [vmem:[%s9944_s28 + $0x1600] ss:$8 sps:$4 sm:$0xff]   ;;  %v9275_v32 = vld [vmem:[%s9944_s28 + $0x814] ss:$8 sps:$4 sm:$0xff]  }
 0x1e8   : > { %6326 = vmatpush1.bf16.msra.mxu1 %v9195_v33  ;;  %v9278_v33 = vld [vmem:[%s9944_s28 + $0x1614] ss:$8 sps:$4 sm:$0xff]  }
 0x1e9   : > { %6900 = vmatpush1.bf16.msra.mxu0 %v9198_v34  ;;  %6327 = vmatprep.subr.bf16.mxu1 %v9203_v18  ;;  %v10624_v34 = vrot.slane %v1264_v26, %v9994_v50  ;;  %v9276_v18 = vld [vmem:[%s9944_s28 + $0x1610] ss:$8 sps:$4 sm:$0xff]  }
 0x1ea   : > { %6901 = vmatprep.subr.bf16.mxu0 %v9206_v37  ;;  %v9281_v37 = vld [vmem:[%s9944_s28 + $0x824] ss:$8 sps:$4 sm:$0xff]   ;;  %v9348_v26 = vld [vmem:[%s9944_s28 + $0x16d0] ss:$8 sps:$4 sm:$0xff]  }
 0x1ec   : > { %6328 = vmatpush1.bf16.msra.mxu1 %v9201_v38  ;;  %v9284_v38 = vld [vmem:[%s9944_s28 + $0x1624] ss:$8 sps:$4 sm:$0xff]  }
 0x1ed   : > { %6902 = vmatpush1.bf16.msra.mxu0 %v9204_v39  ;;  %6329 = vmatprep.subr.bf16.mxu1 %v9209_v40  ;;  %v9279_v39 = vld [vmem:[%s9944_s28 + $0x820] ss:$8 sps:$4 sm:$0xff]  }
 0x1ee   : > { %6903 = vmatprep.subr.bf16.mxu0 %v9212_v45  ;;  %v9282_v40 = vld [vmem:[%s9944_s28 + $0x1620] ss:$8 sps:$4 sm:$0xff]   ;;  %v9287_v45 = vld [vmem:[%s9944_s28 + $0x834] ss:$8 sps:$4 sm:$0xff]  }
 0x1f0   : > { %6330 = vmatpush1.bf16.msra.mxu1 %v9207_v47  ;;  %v9290_v47 = vld [vmem:[%s9944_s28 + $0x1634] ss:$8 sps:$4 sm:$0xff]  }
 0x1f1   : > { %6904 = vmatpush1.bf16.msra.mxu0 %v9210_v48  ;;  %6331 = vmatprep.subr.bf16.mxu1 %v9215_v19  ;;  %v9285_v48 = vld [vmem:[%s9944_s28 + $0x830] ss:$8 sps:$4 sm:$0xff]  }
 0x1f2   : > { %6905 = vmatprep.subr.bf16.mxu0 %v9218_v49  ;;  %v9288_v19 = vld [vmem:[%s9944_s28 + $0x1630] ss:$8 sps:$4 sm:$0xff]   ;;  %v9293_v49 = vld [vmem:[%s9944_s28 + $0x844] ss:$8 sps:$4 sm:$0xff]  }
 0x1f4   : > { %6332 = vmatpush1.bf16.msra.mxu1 %v9213_v36  ;;  %v9296_v36 = vld [vmem:[%s9944_s28 + $0x1644] ss:$8 sps:$4 sm:$0xff]  }
 0x1f5   : > { %6906 = vmatpush1.bf16.msra.mxu0 %v9216_v51  ;;  %6333 = vmatprep.subr.bf16.mxu1 %v9221_v35  ;;  %v9291_v51 = vld [vmem:[%s9944_s28 + $0x840] ss:$8 sps:$4 sm:$0xff]  }
 0x1f6   : > { %6907 = vmatprep.subr.bf16.mxu0 %v9224_v42  ;;  %v9294_v35 = vld [vmem:[%s9944_s28 + $0x1640] ss:$8 sps:$4 sm:$0xff]   ;;  %v9299_v42 = vld [vmem:[%s9944_s28 + $0x854] ss:$8 sps:$4 sm:$0xff]  }
 0x1f8   : > { %6334 = vmatpush1.bf16.msra.mxu1 %v9219_v52  ;;  %v9302_v52 = vld [vmem:[%s9944_s28 + $0x1654] ss:$8 sps:$4 sm:$0xff]  }
 0x1f9   : > { %6908 = vmatpush1.bf16.msra.mxu0 %v9222_v54  ;;  %6335 = vmatprep.subr.bf16.mxu1 %v9227_v55  ;;  %v9297_v54 = vld [vmem:[%s9944_s28 + $0x850] ss:$8 sps:$4 sm:$0xff]  }
 0x1fa   : > { %6909 = vmatprep.subr.bf16.mxu0 %v9230_v56  ;;  %v9300_v55 = vld [vmem:[%s9944_s28 + $0x1650] ss:$8 sps:$4 sm:$0xff]   ;;  %v9305_v56 = vld [vmem:[%s9944_s28 + $0x864] ss:$8 sps:$4 sm:$0xff]  }
 0x1fc   : > { %6336 = vmatpush1.bf16.msra.mxu1 %v9225_v57  ;;  %v9308_v57 = vld [vmem:[%s9944_s28 + $0x1664] ss:$8 sps:$4 sm:$0xff]  }
 0x1fd   : > { %6910 = vmatpush1.bf16.msra.mxu0 %v9228_v58  ;;  %6337 = vmatprep.subr.bf16.mxu1 %v9233_v43  ;;  %v9303_v58 = vld [vmem:[%s9944_s28 + $0x860] ss:$8 sps:$4 sm:$0xff]  }
 0x1fe   : > { %6911 = vmatprep.subr.bf16.mxu0 %v9236_v63  ;;  %v9306_v43 = vld [vmem:[%s9944_s28 + $0x1660] ss:$8 sps:$4 sm:$0xff]   ;;  %v9311_v63 = vld [vmem:[%s9944_s28 + $0x874] ss:$8 sps:$4 sm:$0xff]  }
 0x200   : > { %6338 = vmatpush1.bf16.msra.mxu1 %v9231_v0  ;;  %v9314_v0 = vld [vmem:[%s9944_s28 + $0x1674] ss:$8 sps:$4 sm:$0xff]  }
 0x201   : > { %6912 = vmatpush1.bf16.msra.mxu0 %v9234_v1  ;;  %6339 = vmatprep.subr.bf16.mxu1 %v9239_v2  ;;  %v9309_v1 = vld [vmem:[%s9944_s28 + $0x870] ss:$8 sps:$4 sm:$0xff]  }
 0x202   : > { %6913 = vmatprep.subr.bf16.mxu0 %v9242_v46  ;;  %v9312_v2 = vld [vmem:[%s9944_s28 + $0x1670] ss:$8 sps:$4 sm:$0xff]   ;;  %v9317_v46 = vld [vmem:[%s9944_s28 + $0x884] ss:$8 sps:$4 sm:$0xff]  }
 0x204   : > { %6340 = vmatpush1.bf16.msra.mxu1 %v9237_v24  ;;  %v9320_v24 = vld [vmem:[%s9944_s28 + $0x1684] ss:$8 sps:$4 sm:$0xff]  }
 0x205   : > { %6914 = vmatpush1.bf16.msra.mxu0 %v9240_v4  ;;  %6341 = vmatprep.subr.bf16.mxu1 %v9245_v59  ;;  %v9315_v4 = vld [vmem:[%s9944_s28 + $0x880] ss:$8 sps:$4 sm:$0xff]  }
 0x206   : > { %6915 = vmatprep.subr.bf16.mxu0 %v9248_v5  ;;  %v9318_v59 = vld [vmem:[%s9944_s28 + $0x1680] ss:$8 sps:$4 sm:$0xff]   ;;  %v9323_v5 = vld [vmem:[%s9944_s28 + $0x894] ss:$8 sps:$4 sm:$0xff]  }
 0x208   : > { %6342 = vmatpush1.bf16.msra.mxu1 %v9243_v60  ;;  %v9326_v60 = vld [vmem:[%s9944_s28 + $0x1694] ss:$8 sps:$4 sm:$0xff]  }
 0x209   : > { %6916 = vmatpush1.bf16.msra.mxu0 %v9246_v6  ;;  %6343 = vmatprep.subr.bf16.mxu1 %v9251_v7  ;;  %v9321_v6 = vld [vmem:[%s9944_s28 + $0x890] ss:$8 sps:$4 sm:$0xff]  }
 0x20a   : > { %6917 = vmatprep.subr.bf16.mxu0 %v9254_v8  ;;  %v9324_v7 = vld [vmem:[%s9944_s28 + $0x1690] ss:$8 sps:$4 sm:$0xff]   ;;  %v9329_v8 = vld [vmem:[%s9944_s28 + $0x8a4] ss:$8 sps:$4 sm:$0xff]  }
 0x20c   : > { %6344 = vmatpush1.bf16.msra.mxu1 %v9249_v9  ;;  %v9332_v9 = vld [vmem:[%s9944_s28 + $0x16a4] ss:$8 sps:$4 sm:$0xff]  }
 0x20d   : > { %6918 = vmatpush1.bf16.msra.mxu0 %v9252_v10  ;;  %6345 = vmatprep.subr.bf16.mxu1 %v9257_v11  ;;  %v9327_v10 = vld [vmem:[%s9944_s28 + $0x8a0] ss:$8 sps:$4 sm:$0xff]  }
 0x20e   : > { %6919 = vmatprep.subr.bf16.mxu0 %v9260_v12  ;;  %v9330_v11 = vld [vmem:[%s9944_s28 + $0x16a0] ss:$8 sps:$4 sm:$0xff]   ;;  %v9335_v12 = vld [vmem:[%s9944_s28 + $0x8b4] ss:$8 sps:$4 sm:$0xff]  }
 0x210   : > { %6346 = vmatpush1.bf16.msra.mxu1 %v9255_v20  ;;  %v9336_v20 = vld [vmem:[%s9944_s28 + $0x16b0] ss:$8 sps:$4 sm:$0xff]  }
 0x211   : > { %6920 = vmatpush1.bf16.msra.mxu0 %v9258_v21  ;;  %6347 = vmatprep.subr.bf16.mxu1 %v9263_v22  ;;  %v9341_v21 = vld [vmem:[%s9944_s28 + $0x8c4] ss:$8 sps:$4 sm:$0xff]  }
 0x212   : > { %6921 = vmatprep.subr.bf16.mxu0 %v9266_v3  ;;  %v9344_v22 = vld [vmem:[%s9944_s28 + $0x16c4] ss:$8 sps:$4 sm:$0xff]   ;;  %v9339_v3 = vld [vmem:[%s9944_s28 + $0x8c0] ss:$8 sps:$4 sm:$0xff]  }
 0x214   : > { %6348 = vmatpush1.bf16.msra.mxu1 %v9261_v25  ;;  %v9342_v25 = vld [vmem:[%s9944_s28 + $0x16c0] ss:$8 sps:$4 sm:$0xff]  }
 0x215   : > { %6922 = vmatpush1.bf16.msra.mxu0 %v9264_v13  ;;  %6358 = vmatprep.subr.bf16.mxu1 %v9269_v53  ;;  %v9347_v13 = vld [vmem:[%s9944_s28 + $0x8d4] ss:$8 sps:$4 sm:$0xff]  }
 0x216   : > { %6932 = vmatprep.subr.bf16.mxu0 %v9272_v61  ;;  %v9350_v53 = vld [vmem:[%s9944_s28 + $0x16d4] ss:$8 sps:$4 sm:$0xff]   ;;  %v9345_v61 = vld [vmem:[%s9944_s28 + $0x8d0] ss:$8 sps:$4 sm:$0xff]  }
 0x217   : > { %6350 = vmatmul.mubr.bf16.vlgmr.msra.gmra.mrb[0].mxu1 %v1246_v28  ;;  %v9356_v28 = vld [vmem:[%s9944_s28 + $0x16e4] ss:$8 sps:$4 sm:$0xff]  }
 0x218   : > { %6924 = vmatmul.mubr.bf16.vlgmr.msra.gmra.mrb[0].mxu0 %v1441_v29  ;;  %6359 = vmatpush1.bf16.msra.mxu1 %v9267_v30  ;;  %v9351_v29 = vld [vmem:[%s9944_s28 + $0x8e0] ss:$8 sps:$4 sm:$0xff]  }
 0x219   : > { %6933 = vmatpush1.bf16.msra.mxu0 %v9270_v31  ;;  %6360 = vmatprep.subr.bf16.mxu1 %v9275_v32  ;;  %v9354_v30 = vld [vmem:[%s9944_s28 + $0x16e0] ss:$8 sps:$4 sm:$0xff]   ;;  %v9359_v31 = vld [vmem:[%s9944_s28 + $0x8f4] ss:$8 sps:$4 sm:$0xff]  }
 0x21a   : > { %6934 = vmatprep.subr.bf16.mxu0 %v9278_v33  ;;  %6390 = vmatprep.mubr.bf16.mxu1 %v10624_v34  ;;  %v9362_v32 = vld [vmem:[%s9944_s28 + $0x16f4] ss:$8 sps:$4 sm:$0xff]   ;;  %v9357_v33 = vld [vmem:[%s9944_s28 + $0x8f0] ss:$8 sps:$4 sm:$0xff]  }
 0x21b   : > { %6964 = vmatprep.mubr.bf16.mxu0 %v10627_v15 }
 0x21c   : > { %6361 = vmatpush1.bf16.msra.mxu1 %v9273_v16  ;;  %v9360_v16 = vld [vmem:[%s9944_s28 + $0x16f0] ss:$8 sps:$4 sm:$0xff]  }
 0x21d   : > { %6935 = vmatpush1.bf16.msra.mxu0 %v9276_v18  ;;  %6362 = vmatprep.subr.bf16.mxu1 %v9281_v37  ;;  %v9365_v18 = vld [vmem:[%s9944_s28 + $0x904] ss:$8 sps:$4 sm:$0xff]  }
 0x21e   : > { %6936 = vmatprep.subr.bf16.mxu0 %v9284_v38  ;;  %v9369_v37 = vld [vmem:[%s9944_s28 + $0x1704] ss:$8 sps:$4 sm:$0xff]   ;;  %v10693_v38 = vrot.slane %v10602_v23, %v9994_v50  ;;  %v1296_v23 = vcombine.high %v10624_v34, %v10624_v34 }
 0x21f   : > { %v9378_v34 = vld [vmem:[%s9944_s28 + $0x924] ss:$8 sps:$4 sm:$0xff]  }
 0x220   : > { %6363 = vmatpush1.bf16.msra.mxu1 %v9279_v39  ;;  %v10697_v39 = vrot.slane %v10605_v41, %v9994_v50  ;;  %v9370_v41 = vld [vmem:[%s9944_s28 + $0x910] ss:$8 sps:$4 sm:$0xff]  }
 0x221   : > { %6937 = vmatpush1.bf16.msra.mxu0 %v9282_v40  ;;  %6364 = vmatprep.subr.bf16.mxu1 %v9287_v45  ;;  %v9363_v40 = vld [vmem:[%s9944_s28 + $0x900] ss:$8 sps:$4 sm:$0xff]  }
 0x222   : > { %6938 = vmatprep.subr.bf16.mxu0 %v9290_v47  ;;  %v9367_v45 = vld [vmem:[%s9944_s28 + $0x1700] ss:$8 sps:$4 sm:$0xff]   ;;  %v9372_v47 = vld [vmem:[%s9944_s28 + $0x914] ss:$8 sps:$4 sm:$0xff]  }
 0x224   : > { %6365 = vmatpush1.bf16.msra.mxu1 %v9285_v48  ;;  %v9375_v48 = vld [vmem:[%s9944_s28 + $0x1714] ss:$8 sps:$4 sm:$0xff]  }
 0x225   : > { %6939 = vmatpush1.bf16.msra.mxu0 %v9288_v19  ;;  %6366 = vmatprep.subr.bf16.mxu1 %v9293_v49  ;;  %v1444_v19 = vcombine.high %v10627_v15, %v10627_v15  ;;  %v9373_v49 = vld [vmem:[%s9944_s28 + $0x1710] ss:$8 sps:$4 sm:$0xff]   ;;  %v9376_v15 = vld [vmem:[%s9944_s28 + $0x920] ss:$8 sps:$4 sm:$0xff]  }
 0x226   : > { %6940 = vmatprep.subr.bf16.mxu0 %v9296_v36  ;;  %v9381_v36 = vld [vmem:[%s9944_s28 + $0x1724] ss:$8 sps:$4 sm:$0xff]  }
 0x228   : > { %6367 = vmatpush1.bf16.msra.mxu1 %v9291_v51  ;;  %v9379_v51 = vld [vmem:[%s9944_s28 + $0x1720] ss:$8 sps:$4 sm:$0xff]  }
 0x229   : > { %6941 = vmatpush1.bf16.msra.mxu0 %v9294_v35  ;;  %6368 = vmatprep.subr.bf16.mxu1 %v9299_v42  ;;  %v9384_v35 = vld [vmem:[%s9944_s28 + $0x934] ss:$8 sps:$4 sm:$0xff]  }
 0x22a   : > { %6942 = vmatprep.subr.bf16.mxu0 %v9302_v52  ;;  %v9387_v42 = vld [vmem:[%s9944_s28 + $0x1734] ss:$8 sps:$4 sm:$0xff]   ;;  %v9382_v52 = vld [vmem:[%s9944_s28 + $0x930] ss:$8 sps:$4 sm:$0xff]  }
 0x22c   : > { %6369 = vmatpush1.bf16.msra.mxu1 %v9297_v54  ;;  %v9385_v54 = vld [vmem:[%s9944_s28 + $0x1730] ss:$8 sps:$4 sm:$0xff]  }
 0x22d   : > { %6943 = vmatpush1.bf16.msra.mxu0 %v9300_v55  ;;  %6370 = vmatprep.subr.bf16.mxu1 %v9305_v56  ;;  %v9390_v55 = vld [vmem:[%s9944_s28 + $0x944] ss:$8 sps:$4 sm:$0xff]  }
 0x22e   : > { %6944 = vmatprep.subr.bf16.mxu0 %v9308_v57  ;;  %v9393_v56 = vld [vmem:[%s9944_s28 + $0x1744] ss:$8 sps:$4 sm:$0xff]   ;;  %v9388_v57 = vld [vmem:[%s9944_s28 + $0x940] ss:$8 sps:$4 sm:$0xff]  }
 0x230   : > { %6371 = vmatpush1.bf16.msra.mxu1 %v9303_v58  ;;  %v9391_v58 = vld [vmem:[%s9944_s28 + $0x1740] ss:$8 sps:$4 sm:$0xff]  }
 0x231   : > { %6945 = vmatpush1.bf16.msra.mxu0 %v9306_v43  ;;  %6372 = vmatprep.subr.bf16.mxu1 %v9311_v63  ;;  %v9396_v43 = vld [vmem:[%s9944_s28 + $0x954] ss:$8 sps:$4 sm:$0xff]  }
 0x232   : > { %6946 = vmatprep.subr.bf16.mxu0 %v9314_v0  ;;  %v9399_v63 = vld [vmem:[%s9944_s28 + $0x1754] ss:$8 sps:$4 sm:$0xff]   ;;  %v9394_v0 = vld [vmem:[%s9944_s28 + $0x950] ss:$8 sps:$4 sm:$0xff]  }
 0x234   : > { %6373 = vmatpush1.bf16.msra.mxu1 %v9309_v1  ;;  %v9397_v1 = vld [vmem:[%s9944_s28 + $0x1750] ss:$8 sps:$4 sm:$0xff]  }
 0x235   : > { %6947 = vmatpush1.bf16.msra.mxu0 %v9312_v2  ;;  %6374 = vmatprep.subr.bf16.mxu1 %v9317_v46  ;;  %v9402_v2 = vld [vmem:[%s9944_s28 + $0x964] ss:$8 sps:$4 sm:$0xff]  }
 0x236   : > { %6948 = vmatprep.subr.bf16.mxu0 %v9320_v24  ;;  %v9405_v46 = vld [vmem:[%s9944_s28 + $0x1764] ss:$8 sps:$4 sm:$0xff]   ;;  %v9400_v24 = vld [vmem:[%s9944_s28 + $0x960] ss:$8 sps:$4 sm:$0xff]  }
 0x238   : > { %6375 = vmatpush1.bf16.msra.mxu1 %v9315_v4  ;;  %v9403_v4 = vld [vmem:[%s9944_s28 + $0x1760] ss:$8 sps:$4 sm:$0xff]  }
 0x239   : > { %6949 = vmatpush1.bf16.msra.mxu0 %v9318_v59  ;;  %6376 = vmatprep.subr.bf16.mxu1 %v9323_v5  ;;  %v9408_v59 = vld [vmem:[%s9944_s28 + $0x974] ss:$8 sps:$4 sm:$0xff]  }
 0x23a   : > { %6950 = vmatprep.subr.bf16.mxu0 %v9326_v60  ;;  %v9411_v5 = vld [vmem:[%s9944_s28 + $0x1774] ss:$8 sps:$4 sm:$0xff]   ;;  %v9406_v60 = vld [vmem:[%s9944_s28 + $0x970] ss:$8 sps:$4 sm:$0xff]  }
 0x23c   : > { %6377 = vmatpush1.bf16.msra.mxu1 %v9321_v6  ;;  %v9409_v6 = vld [vmem:[%s9944_s28 + $0x1770] ss:$8 sps:$4 sm:$0xff]  }
 0x23d   : > { %6951 = vmatpush1.bf16.msra.mxu0 %v9324_v7  ;;  %6378 = vmatprep.subr.bf16.mxu1 %v9329_v8  ;;  %v9414_v7 = vld [vmem:[%s9944_s28 + $0x984] ss:$8 sps:$4 sm:$0xff]  }
 0x23e   : > { %6952 = vmatprep.subr.bf16.mxu0 %v9332_v9  ;;  %v9417_v8 = vld [vmem:[%s9944_s28 + $0x1784] ss:$8 sps:$4 sm:$0xff]   ;;  %v9412_v9 = vld [vmem:[%s9944_s28 + $0x980] ss:$8 sps:$4 sm:$0xff]  }
 0x240   : > { %6379 = vmatpush1.bf16.msra.mxu1 %v9327_v10  ;;  %v9415_v10 = vld [vmem:[%s9944_s28 + $0x1780] ss:$8 sps:$4 sm:$0xff]  }
 0x241   : > { %6953 = vmatpush1.bf16.msra.mxu0 %v9330_v11  ;;  %6380 = vmatprep.subr.bf16.mxu1 %v9335_v12  ;;  %v9420_v11 = vld [vmem:[%s9944_s28 + $0x994] ss:$8 sps:$4 sm:$0xff]  }
 0x242   : > { %6954 = vmatprep.subr.bf16.mxu0 %v9338_v14  ;;  %v9423_v12 = vld [vmem:[%s9944_s28 + $0x1794] ss:$8 sps:$4 sm:$0xff]   ;;  %v9418_v14 = vld [vmem:[%s9944_s28 + $0x990] ss:$8 sps:$4 sm:$0xff]  }
 0x244   : > { %6381 = vmatpush1.bf16.msra.mxu1 %v9333_v17  ;;  %v9421_v17 = vld [vmem:[%s9944_s28 + $0x1790] ss:$8 sps:$4 sm:$0xff]  }
 0x245   : > { %6955 = vmatpush1.bf16.msra.mxu0 %v9336_v20  ;;  %6382 = vmatprep.subr.bf16.mxu1 %v9341_v21  ;;  %v9426_v20 = vld [vmem:[%s9944_s28 + $0x9a4] ss:$8 sps:$4 sm:$0xff]  }
 0x246   : > { %6956 = vmatprep.subr.bf16.mxu0 %v9344_v22  ;;  %v9429_v21 = vld [vmem:[%s9944_s28 + $0x17a4] ss:$8 sps:$4 sm:$0xff]   ;;  %v9424_v22 = vld [vmem:[%s9944_s28 + $0x9a0] ss:$8 sps:$4 sm:$0xff]  }
 0x248   : > { %6383 = vmatpush1.bf16.msra.mxu1 %v9339_v3  ;;  %v9427_v3 = vld [vmem:[%s9944_s28 + $0x17a0] ss:$8 sps:$4 sm:$0xff]  }
 0x249   : > { %6957 = vmatpush1.bf16.msra.mxu0 %v9342_v25  ;;  %6384 = vmatprep.subr.bf16.mxu1 %v9347_v13  ;;  %v9432_v25 = vld [vmem:[%s9944_s28 + $0x9b4] ss:$8 sps:$4 sm:$0xff]  }
 0x24a   : > { %6958 = vmatprep.subr.bf16.mxu0 %v9350_v53  ;;  %v9435_v13 = vld [vmem:[%s9944_s28 + $0x17b4] ss:$8 sps:$4 sm:$0xff]   ;;  %v9430_v53 = vld [vmem:[%s9944_s28 + $0x9b0] ss:$8 sps:$4 sm:$0xff]  }
 0x24c   : > { %6385 = vmatpush1.bf16.msra.mxu1 %v9345_v61  ;;  %v9433_v61 = vld [vmem:[%s9944_s28 + $0x17b0] ss:$8 sps:$4 sm:$0xff]  }
 0x24d   : > { %6959 = vmatpush1.bf16.msra.mxu0 %v9348_v26  ;;  %6386 = vmatprep.subr.bf16.mxu1 %v9353_v27  ;;  %v9438_v26 = vld [vmem:[%s9944_s28 + $0x9c4] ss:$8 sps:$4 sm:$0xff]  }
 0x24e   : > { %6960 = vmatprep.subr.bf16.mxu0 %v9356_v28  ;;  %v9441_v27 = vld [vmem:[%s9944_s28 + $0x17c4] ss:$8 sps:$4 sm:$0xff]   ;;  %v9436_v28 = vld [vmem:[%s9944_s28 + $0x9c0] ss:$8 sps:$4 sm:$0xff]  }
 0x250   : > { %6387 = vmatpush1.bf16.msra.mxu1 %v9351_v29  ;;  %v9439_v29 = vld [vmem:[%s9944_s28 + $0x17c0] ss:$8 sps:$4 sm:$0xff]  }
 0x251   : > { %6961 = vmatpush1.bf16.msra.mxu0 %v9354_v30  ;;  %6388 = vmatprep.subr.bf16.mxu1 %v9359_v31  ;;  %v9444_v30 = vld [vmem:[%s9944_s28 + $0x9d4] ss:$8 sps:$4 sm:$0xff]  }
 0x252   : > { %6962 = vmatprep.subr.bf16.mxu0 %v9362_v32  ;;  %v9447_v31 = vld [vmem:[%s9944_s28 + $0x17d4] ss:$8 sps:$4 sm:$0xff]   ;;  %v9442_v32 = vld [vmem:[%s9944_s28 + $0x9d0] ss:$8 sps:$4 sm:$0xff]  }
 0x254   : > { %6389 = vmatpush1.bf16.msra.mxu1 %v9357_v33  ;;  %v9445_v33 = vld [vmem:[%s9944_s28 + $0x17d0] ss:$8 sps:$4 sm:$0xff]  }
 0x255   : > { %6963 = vmatpush1.bf16.msra.mxu0 %v9360_v16  ;;  %6399 = vmatprep.subr.bf16.mxu1 %v9365_v18  ;;  %v9450_v16 = vld [vmem:[%s9944_s28 + $0x9e4] ss:$8 sps:$4 sm:$0xff]  }
 0x256   : > { %6973 = vmatprep.subr.bf16.mxu0 %v9369_v37  ;;  %v9453_v18 = vld [vmem:[%s9944_s28 + $0x17e4] ss:$8 sps:$4 sm:$0xff]   ;;  %v1249_v37 = vcombine.high %v10593_v62, %v10593_v62  ;;  %v9454_v62 = vld [vmem:[%s9944_s28 + $0x9f0] ss:$8 sps:$4 sm:$0xff]  }
 0x257   : > { %6391 = vmatmul.mubr.bf16.vlgmr.msra.gmra.mrb[0].mxu1 %v10693_v38 }
 0x258   : > { %6965 = vmatmul.mubr.bf16.vlgmr.msra.gmra.mrb[0].mxu0 %v10697_v39  ;;  %6400 = vmatpush1.bf16.msra.mxu1 %v9363_v40  ;;  %v10764_v40 = vld [vmem:[%s9939_s24 + $0x30] sm:$0xff] }
 0x259   : > { %6974 = vmatpush1.bf16.msra.mxu0 %v9367_v45  ;;  %6401 = vmatprep.subr.bf16.mxu1 %v9372_v47  ;;  %v9448_v45 = vld [vmem:[%s9944_s28 + $0x9e0] ss:$8 sps:$4 sm:$0xff]  }
 0x25a   : > { %6975 = vmatprep.subr.bf16.mxu0 %v9375_v48  ;;  %6431 = vmatprep.mubr.bf16.mxu1 %v1296_v23  ;;  %v9451_v47 = vld [vmem:[%s9944_s28 + $0x17e0] ss:$8 sps:$4 sm:$0xff]   ;;  %v9456_v48 = vld [vmem:[%s9944_s28 + $0x9f4] ss:$8 sps:$4 sm:$0xff]  }
 0x25b   : > { %7005 = vmatprep.mubr.bf16.mxu0 %v1444_v19  ;;  %v9459_v23 = vld [vmem:[%s9944_s28 + $0x17f4] ss:$8 sps:$4 sm:$0xff]   ;;  %v10771_v19 = vrot.slane %v1249_v37, %v9994_v50  ;;  %v9526_v37 = vld [vmem:[%s9944_s28 + $0xab0] ss:$8 sps:$4 sm:$0xff]  }
 0x25c   : > { %6402 = vmatpush1.bf16.msra.mxu1 %v9370_v41  ;;  %v10775_v41 = vrot.slane %v10764_v40, %v9994_v50 }
 0x25d   : > { %6976 = vmatpush1.bf16.msra.mxu0 %v9373_v49  ;;  %6403 = vmatprep.subr.bf16.mxu1 %v9378_v34  ;;  %v9457_v49 = vld [vmem:[%s9944_s28 + $0x17f0] ss:$8 sps:$4 sm:$0xff]   ;;  %v9462_v34 = vld [vmem:[%s9944_s28 + $0xa04] ss:$8 sps:$4 sm:$0xff]  }
 0x25e   : > { %6977 = vmatprep.subr.bf16.mxu0 %v9381_v36  ;;  %v9465_v36 = vld [vmem:[%s9944_s28 + $0x1804] ss:$8 sps:$4 sm:$0xff]  }
 0x260   : > { %6404 = vmatpush1.bf16.msra.mxu1 %v9376_v15  ;;  %v1265_v15 = vcombine.high %v10771_v19, %v10771_v19 }
 0x261   : > { %6978 = vmatpush1.bf16.msra.mxu0 %v9379_v51  ;;  %6405 = vmatprep.subr.bf16.mxu1 %v9384_v35  ;;  %v1460_v51 = vcombine.high %v10775_v41, %v10775_v41  ;;  %v1294_v35 = vcombine.high %v10693_v38, %v10693_v38 }
 0x262   : > { %6979 = vmatprep.subr.bf16.mxu0 %v9387_v42  ;;  %v1442_v42 = vcombine.high %v10697_v39, %v10697_v39  ;;  %v9466_v39 = vld [vmem:[%s9944_s28 + $0xa10] ss:$8 sps:$4 sm:$0xff]  }
 0x263   : > { %v10797_v38 = vrot.slane %v1460_v51, %v9994_v50  ;;  %v9546_v51 = vld [vmem:[%s9944_s28 + $0xae4] ss:$8 sps:$4 sm:$0xff]  }
 0x264   : > { %6406 = vmatpush1.bf16.msra.mxu1 %v9382_v52  ;;  %v9460_v52 = vld [vmem:[%s9944_s28 + $0xa00] ss:$8 sps:$4 sm:$0xff]  }
 0x265   : > { %6980 = vmatpush1.bf16.msra.mxu0 %v9385_v54  ;;  %6407 = vmatprep.subr.bf16.mxu1 %v9390_v55  ;;  %v9463_v54 = vld [vmem:[%s9944_s28 + $0x1800] ss:$8 sps:$4 sm:$0xff]   ;;  %v9468_v55 = vld [vmem:[%s9944_s28 + $0xa14] ss:$8 sps:$4 sm:$0xff]  }
 0x266   : > { %6981 = vmatprep.subr.bf16.mxu0 %v9393_v56  ;;  %v9471_v56 = vld [vmem:[%s9944_s28 + $0x1814] ss:$8 sps:$4 sm:$0xff]  }
 0x268   : > { %6408 = vmatpush1.bf16.msra.mxu1 %v9388_v57  ;;  %v10794_v57 = vrot.slane %v1265_v15, %v9994_v50  ;;  %v9541_v15 = vld [vmem:[%s9944_s28 + $0x18d0] ss:$8 sps:$4 sm:$0xff]  }
 0x269   : > { %6982 = vmatpush1.bf16.msra.mxu0 %v9391_v58  ;;  %6409 = vmatprep.subr.bf16.mxu1 %v9396_v43  ;;  %v9469_v58 = vld [vmem:[%s9944_s28 + $0x1810] ss:$8 sps:$4 sm:$0xff]   ;;  %v9474_v43 = vld [vmem:[%s9944_s28 + $0xa24] ss:$8 sps:$4 sm:$0xff]  }
 0x26a   : > { %6983 = vmatprep.subr.bf16.mxu0 %v9399_v63  ;;  %v9477_v63 = vld [vmem:[%s9944_s28 + $0x1824] ss:$8 sps:$4 sm:$0xff]  }
 0x26c   : > { %6410 = vmatpush1.bf16.msra.mxu1 %v9394_v0  ;;  %v9472_v0 = vld [vmem:[%s9944_s28 + $0xa20] ss:$8 sps:$4 sm:$0xff]  }
 0x26d   : > { %6984 = vmatpush1.bf16.msra.mxu0 %v9397_v1  ;;  %6411 = vmatprep.subr.bf16.mxu1 %v9402_v2  ;;  %v9475_v1 = vld [vmem:[%s9944_s28 + $0x1820] ss:$8 sps:$4 sm:$0xff]   ;;  %v9480_v2 = vld [vmem:[%s9944_s28 + $0xa34] ss:$8 sps:$4 sm:$0xff]  }
 0x26e   : > { %6985 = vmatprep.subr.bf16.mxu0 %v9405_v46  ;;  %v9483_v46 = vld [vmem:[%s9944_s28 + $0x1834] ss:$8 sps:$4 sm:$0xff]  }
 0x270   : > { %6412 = vmatpush1.bf16.msra.mxu1 %v9400_v24  ;;  %v9478_v24 = vld [vmem:[%s9944_s28 + $0xa30] ss:$8 sps:$4 sm:$0xff]  }
 0x271   : > { %6986 = vmatpush1.bf16.msra.mxu0 %v9403_v4  ;;  %6413 = vmatprep.subr.bf16.mxu1 %v9408_v59  ;;  %v9481_v4 = vld [vmem:[%s9944_s28 + $0x1830] ss:$8 sps:$4 sm:$0xff]   ;;  %v9486_v59 = vld [vmem:[%s9944_s28 + $0xa44] ss:$8 sps:$4 sm:$0xff]  }
 0x272   : > { %6987 = vmatprep.subr.bf16.mxu0 %v9411_v5  ;;  %v9489_v5 = vld [vmem:[%s9944_s28 + $0x1844] ss:$8 sps:$4 sm:$0xff]  }
 0x274   : > { %6414 = vmatpush1.bf16.msra.mxu1 %v9406_v60  ;;  %v9484_v60 = vld [vmem:[%s9944_s28 + $0xa40] ss:$8 sps:$4 sm:$0xff]  }
 0x275   : > { %6988 = vmatpush1.bf16.msra.mxu0 %v9409_v6  ;;  %6415 = vmatprep.subr.bf16.mxu1 %v9414_v7  ;;  %v9487_v6 = vld [vmem:[%s9944_s28 + $0x1840] ss:$8 sps:$4 sm:$0xff]   ;;  %v9492_v7 = vld [vmem:[%s9944_s28 + $0xa54] ss:$8 sps:$4 sm:$0xff]  }
 0x276   : > { %6989 = vmatprep.subr.bf16.mxu0 %v9417_v8  ;;  %v9495_v8 = vld [vmem:[%s9944_s28 + $0x1854] ss:$8 sps:$4 sm:$0xff]  }
 0x278   : > { %6416 = vmatpush1.bf16.msra.mxu1 %v9412_v9  ;;  %v9490_v9 = vld [vmem:[%s9944_s28 + $0xa50] ss:$8 sps:$4 sm:$0xff]  }
 0x279   : > { %6990 = vmatpush1.bf16.msra.mxu0 %v9415_v10  ;;  %6417 = vmatprep.subr.bf16.mxu1 %v9420_v11  ;;  %v9493_v10 = vld [vmem:[%s9944_s28 + $0x1850] ss:$8 sps:$4 sm:$0xff]   ;;  %v9498_v11 = vld [vmem:[%s9944_s28 + $0xa64] ss:$8 sps:$4 sm:$0xff]  }
 0x27a   : > { %6991 = vmatprep.subr.bf16.mxu0 %v9423_v12  ;;  %v9501_v12 = vld [vmem:[%s9944_s28 + $0x1864] ss:$8 sps:$4 sm:$0xff]  }
 0x27c   : > { %6418 = vmatpush1.bf16.msra.mxu1 %v9418_v14  ;;  %v9496_v14 = vld [vmem:[%s9944_s28 + $0xa60] ss:$8 sps:$4 sm:$0xff]  }
 0x27d   : > { %6992 = vmatpush1.bf16.msra.mxu0 %v9421_v17  ;;  %6419 = vmatprep.subr.bf16.mxu1 %v9426_v20  ;;  %v9499_v17 = vld [vmem:[%s9944_s28 + $0x1860] ss:$8 sps:$4 sm:$0xff]   ;;  %v9504_v20 = vld [vmem:[%s9944_s28 + $0xa74] ss:$8 sps:$4 sm:$0xff]  }
 0x27e   : > { %6993 = vmatprep.subr.bf16.mxu0 %v9429_v21  ;;  %v9507_v21 = vld [vmem:[%s9944_s28 + $0x1874] ss:$8 sps:$4 sm:$0xff]  }
 0x280   : > { %6420 = vmatpush1.bf16.msra.mxu1 %v9424_v22  ;;  %v9502_v22 = vld [vmem:[%s9944_s28 + $0xa70] ss:$8 sps:$4 sm:$0xff]  }
 0x281   : > { %6994 = vmatpush1.bf16.msra.mxu0 %v9427_v3  ;;  %6421 = vmatprep.subr.bf16.mxu1 %v9432_v25  ;;  %v9505_v3 = vld [vmem:[%s9944_s28 + $0x1870] ss:$8 sps:$4 sm:$0xff]   ;;  %v9510_v25 = vld [vmem:[%s9944_s28 + $0xa84] ss:$8 sps:$4 sm:$0xff]  }
 0x282   : > { %6995 = vmatprep.subr.bf16.mxu0 %v9435_v13  ;;  %v9513_v13 = vld [vmem:[%s9944_s28 + $0x1884] ss:$8 sps:$4 sm:$0xff]  }
 0x284   : > { %6422 = vmatpush1.bf16.msra.mxu1 %v9430_v53  ;;  %v9508_v53 = vld [vmem:[%s9944_s28 + $0xa80] ss:$8 sps:$4 sm:$0xff]  }
 0x285   : > { %6996 = vmatpush1.bf16.msra.mxu0 %v9433_v61  ;;  %6423 = vmatprep.subr.bf16.mxu1 %v9438_v26  ;;  %v9511_v61 = vld [vmem:[%s9944_s28 + $0x1880] ss:$8 sps:$4 sm:$0xff]   ;;  %v9516_v26 = vld [vmem:[%s9944_s28 + $0xa94] ss:$8 sps:$4 sm:$0xff]  }
 0x286   : > { %6997 = vmatprep.subr.bf16.mxu0 %v9441_v27  ;;  %v9519_v27 = vld [vmem:[%s9944_s28 + $0x1894] ss:$8 sps:$4 sm:$0xff]  }
 0x288   : > { %6424 = vmatpush1.bf16.msra.mxu1 %v9436_v28  ;;  %v9514_v28 = vld [vmem:[%s9944_s28 + $0xa90] ss:$8 sps:$4 sm:$0xff]  }
 0x289   : > { %6998 = vmatpush1.bf16.msra.mxu0 %v9439_v29  ;;  %6425 = vmatprep.subr.bf16.mxu1 %v9444_v30  ;;  %v9517_v29 = vld [vmem:[%s9944_s28 + $0x1890] ss:$8 sps:$4 sm:$0xff]   ;;  %v9522_v30 = vld [vmem:[%s9944_s28 + $0xaa4] ss:$8 sps:$4 sm:$0xff]  }
 0x28a   : > { %6999 = vmatprep.subr.bf16.mxu0 %v9447_v31  ;;  %v9525_v31 = vld [vmem:[%s9944_s28 + $0x18a4] ss:$8 sps:$4 sm:$0xff]  }
 0x28c   : > { %6426 = vmatpush1.bf16.msra.mxu1 %v9442_v32  ;;  %v9520_v32 = vld [vmem:[%s9944_s28 + $0xaa0] ss:$8 sps:$4 sm:$0xff]  }
 0x28d   : > { %7000 = vmatpush1.bf16.msra.mxu0 %v9445_v33  ;;  %6427 = vmatprep.subr.bf16.mxu1 %v9450_v16  ;;  %v9523_v33 = vld [vmem:[%s9944_s28 + $0x18a0] ss:$8 sps:$4 sm:$0xff]   ;;  %v9528_v16 = vld [vmem:[%s9944_s28 + $0xab4] ss:$8 sps:$4 sm:$0xff]  }
 0x28e   : > { %7001 = vmatprep.subr.bf16.mxu0 %v9453_v18  ;;  %v9531_v18 = vld [vmem:[%s9944_s28 + $0x18b4] ss:$8 sps:$4 sm:$0xff]  }
 0x290   : > { %6428 = vmatpush1.bf16.msra.mxu1 %v9448_v45  ;;  %v9529_v45 = vld [vmem:[%s9944_s28 + $0x18b0] ss:$8 sps:$4 sm:$0xff]  }
 0x291   : > { %7002 = vmatpush1.bf16.msra.mxu0 %v9451_v47  ;;  %6429 = vmatprep.subr.bf16.mxu1 %v9456_v48  ;;  %v9534_v47 = vld [vmem:[%s9944_s28 + $0xac4] ss:$8 sps:$4 sm:$0xff]  }
 0x292   : > { %7003 = vmatprep.subr.bf16.mxu0 %v9459_v23  ;;  %v9537_v48 = vld [vmem:[%s9944_s28 + $0x18c4] ss:$8 sps:$4 sm:$0xff]   ;;  %v9532_v23 = vld [vmem:[%s9944_s28 + $0xac0] ss:$8 sps:$4 sm:$0xff]  }
 0x294   : > { %6430 = vmatpush1.bf16.msra.mxu1 %v9454_v62  ;;  %v9535_v62 = vld [vmem:[%s9944_s28 + $0x18c0] ss:$8 sps:$4 sm:$0xff]  }
 0x295   : > { %7004 = vmatpush1.bf16.msra.mxu0 %v9457_v49  ;;  %6440 = vmatprep.subr.bf16.mxu1 %v9462_v34  ;;  %v9540_v49 = vld [vmem:[%s9944_s28 + $0xad4] ss:$8 sps:$4 sm:$0xff]  }
 0x296   : > { %7014 = vmatprep.subr.bf16.mxu0 %v9465_v36  ;;  %v9543_v34 = vld [vmem:[%s9944_s28 + $0x18d4] ss:$8 sps:$4 sm:$0xff]   ;;  %v9538_v36 = vld [vmem:[%s9944_s28 + $0xad0] ss:$8 sps:$4 sm:$0xff]  }
 0x297   : > { %6432 = vmatmul.mubr.bf16.vlgmr.msra.gmra.mrb[0].mxu1 %v1294_v35  ;;  %v9549_v35 = vld [vmem:[%s9944_s28 + $0x18e4] ss:$8 sps:$4 sm:$0xff]  }
 0x298   : > { %7006 = vmatmul.mubr.bf16.vlgmr.msra.gmra.mrb[0].mxu0 %v1442_v42  ;;  %6441 = vmatpush1.bf16.msra.mxu1 %v9460_v52  ;;  %v9544_v42 = vld [vmem:[%s9944_s28 + $0xae0] ss:$8 sps:$4 sm:$0xff]  }
 0x299   : > { %7015 = vmatpush1.bf16.msra.mxu0 %v9463_v54  ;;  %6442 = vmatprep.subr.bf16.mxu1 %v9468_v55  ;;  %v9547_v52 = vld [vmem:[%s9944_s28 + $0x18e0] ss:$8 sps:$4 sm:$0xff]   ;;  %v9552_v54 = vld [vmem:[%s9944_s28 + $0xaf4] ss:$8 sps:$4 sm:$0xff]  }
 0x29a   : > { %7016 = vmatprep.subr.bf16.mxu0 %v9471_v56  ;;  %6472 = vmatprep.mubr.bf16.mxu1 %v10794_v57  ;;  %v9555_v55 = vld [vmem:[%s9944_s28 + $0x18f4] ss:$8 sps:$4 sm:$0xff]   ;;  %v9550_v56 = vld [vmem:[%s9944_s28 + $0xaf0] ss:$8 sps:$4 sm:$0xff]  }
 0x29b   : > { %7046 = vmatprep.mubr.bf16.mxu0 %v10797_v38 }
 0x29c   : > { %6443 = vmatpush1.bf16.msra.mxu1 %v9466_v39  ;;  %v9553_v39 = vld [vmem:[%s9944_s28 + $0x18f0] ss:$8 sps:$4 sm:$0xff]  }
 0x29d   : > { %7017 = vmatpush1.bf16.msra.mxu0 %v9469_v58  ;;  %6444 = vmatprep.subr.bf16.mxu1 %v9474_v43  ;;  %v9559_v58 = vld [vmem:[%s9944_s28 + $0xb04] ss:$8 sps:$4 sm:$0xff]  }
 0x29e   : > { %7018 = vmatprep.subr.bf16.mxu0 %v9477_v63  ;;  %v9562_v43 = vld [vmem:[%s9944_s28 + $0x1904] ss:$8 sps:$4 sm:$0xff]   ;;  %v10863_v63 = vrot.slane %v10771_v19, %v9994_v50  ;;  %v1297_v19 = vcombine.high %v10794_v57, %v10794_v57 }
 0x29f   : > { %v9571_v57 = vld [vmem:[%s9944_s28 + $0xb24] ss:$8 sps:$4 sm:$0xff]  }
 0x2a0   : > { %6445 = vmatpush1.bf16.msra.mxu1 %v9472_v0  ;;  %v10867_v0 = vrot.slane %v10775_v41, %v9994_v50  ;;  %v9563_v41 = vld [vmem:[%s9944_s28 + $0xb10] ss:$8 sps:$4 sm:$0xff]  }
 0x2a1   : > { %7019 = vmatpush1.bf16.msra.mxu0 %v9475_v1  ;;  %6446 = vmatprep.subr.bf16.mxu1 %v9480_v2  ;;  %v9557_v1 = vld [vmem:[%s9944_s28 + $0xb00] ss:$8 sps:$4 sm:$0xff]  }
 0x2a2   : > { %7020 = vmatprep.subr.bf16.mxu0 %v9483_v46  ;;  %v9560_v2 = vld [vmem:[%s9944_s28 + $0x1900] ss:$8 sps:$4 sm:$0xff]   ;;  %v9565_v46 = vld [vmem:[%s9944_s28 + $0xb14] ss:$8 sps:$4 sm:$0xff]  }
 0x2a4   : > { %6447 = vmatpush1.bf16.msra.mxu1 %v9478_v24  ;;  %v9568_v24 = vld [vmem:[%s9944_s28 + $0x1914] ss:$8 sps:$4 sm:$0xff]  }
 0x2a5   : > { %7021 = vmatpush1.bf16.msra.mxu0 %v9481_v4  ;;  %6448 = vmatprep.subr.bf16.mxu1 %v9486_v59  ;;  %v1492_v4 = vcombine.high %v10797_v38, %v10797_v38  ;;  %v9566_v59 = vld [vmem:[%s9944_s28 + $0x1910] ss:$8 sps:$4 sm:$0xff]   ;;  %v9569_v38 = vld [vmem:[%s9944_s28 + $0xb20] ss:$8 sps:$4 sm:$0xff]  }
 0x2a6   : > { %7022 = vmatprep.subr.bf16.mxu0 %v9489_v5  ;;  %v9574_v5 = vld [vmem:[%s9944_s28 + $0x1924] ss:$8 sps:$4 sm:$0xff]  }
 0x2a8   : > { %6449 = vmatpush1.bf16.msra.mxu1 %v9484_v60  ;;  %v9572_v60 = vld [vmem:[%s9944_s28 + $0x1920] ss:$8 sps:$4 sm:$0xff]  }
 0x2a9   : > { %7023 = vmatpush1.bf16.msra.mxu0 %v9487_v6  ;;  %6450 = vmatprep.subr.bf16.mxu1 %v9492_v7  ;;  %v9577_v6 = vld [vmem:[%s9944_s28 + $0xb34] ss:$8 sps:$4 sm:$0xff]  }
 0x2aa   : > { %7024 = vmatprep.subr.bf16.mxu0 %v9495_v8  ;;  %v9580_v7 = vld [vmem:[%s9944_s28 + $0x1934] ss:$8 sps:$4 sm:$0xff]   ;;  %v9575_v8 = vld [vmem:[%s9944_s28 + $0xb30] ss:$8 sps:$4 sm:$0xff]  }
 0x2ac   : > { %6451 = vmatpush1.bf16.msra.mxu1 %v9490_v9  ;;  %v9578_v9 = vld [vmem:[%s9944_s28 + $0x1930] ss:$8 sps:$4 sm:$0xff]  }
 0x2ad   : > { %7025 = vmatpush1.bf16.msra.mxu0 %v9493_v10  ;;  %6452 = vmatprep.subr.bf16.mxu1 %v9498_v11  ;;  %v9583_v10 = vld [vmem:[%s9944_s28 + $0xb44] ss:$8 sps:$4 sm:$0xff]  }
 0x2ae   : > { %7026 = vmatprep.subr.bf16.mxu0 %v9501_v12  ;;  %v9586_v11 = vld [vmem:[%s9944_s28 + $0x1944] ss:$8 sps:$4 sm:$0xff]   ;;  %v9581_v12 = vld [vmem:[%s9944_s28 + $0xb40] ss:$8 sps:$4 sm:$0xff]  }
 0x2b0   : > { %6453 = vmatpush1.bf16.msra.mxu1 %v9496_v14  ;;  %v9584_v14 = vld [vmem:[%s9944_s28 + $0x1940] ss:$8 sps:$4 sm:$0xff]  }
 0x2b1   : > { %7027 = vmatpush1.bf16.msra.mxu0 %v9499_v17  ;;  %6454 = vmatprep.subr.bf16.mxu1 %v9504_v20  ;;  %v9589_v17 = vld [vmem:[%s9944_s28 + $0xb54] ss:$8 sps:$4 sm:$0xff]  }
 0x2b2   : > { %7028 = vmatprep.subr.bf16.mxu0 %v9507_v21  ;;  %v9592_v20 = vld [vmem:[%s9944_s28 + $0x1954] ss:$8 sps:$4 sm:$0xff]   ;;  %v9587_v21 = vld [vmem:[%s9944_s28 + $0xb50] ss:$8 sps:$4 sm:$0xff]  }
 0x2b4   : > { %6455 = vmatpush1.bf16.msra.mxu1 %v9502_v22  ;;  %v9590_v22 = vld [vmem:[%s9944_s28 + $0x1950] ss:$8 sps:$4 sm:$0xff]  }
 0x2b5   : > { %7029 = vmatpush1.bf16.msra.mxu0 %v9505_v3  ;;  %6456 = vmatprep.subr.bf16.mxu1 %v9510_v25  ;;  %v9595_v3 = vld [vmem:[%s9944_s28 + $0xb64] ss:$8 sps:$4 sm:$0xff]  }
 0x2b6   : > { %7030 = vmatprep.subr.bf16.mxu0 %v9513_v13  ;;  %v9598_v25 = vld [vmem:[%s9944_s28 + $0x1964] ss:$8 sps:$4 sm:$0xff]   ;;  %v9593_v13 = vld [vmem:[%s9944_s28 + $0xb60] ss:$8 sps:$4 sm:$0xff]  }
 0x2b8   : > { %6457 = vmatpush1.bf16.msra.mxu1 %v9508_v53  ;;  %v9596_v53 = vld [vmem:[%s9944_s28 + $0x1960] ss:$8 sps:$4 sm:$0xff]  }
 0x2b9   : > { %7031 = vmatpush1.bf16.msra.mxu0 %v9511_v61  ;;  %6458 = vmatprep.subr.bf16.mxu1 %v9516_v26  ;;  %v9601_v61 = vld [vmem:[%s9944_s28 + $0xb74] ss:$8 sps:$4 sm:$0xff]  }
 0x2ba   : > { %7032 = vmatprep.subr.bf16.mxu0 %v9519_v27  ;;  %v9604_v26 = vld [vmem:[%s9944_s28 + $0x1974] ss:$8 sps:$4 sm:$0xff]   ;;  %v9599_v27 = vld [vmem:[%s9944_s28 + $0xb70] ss:$8 sps:$4 sm:$0xff]  }
 0x2bc   : > { %6459 = vmatpush1.bf16.msra.mxu1 %v9514_v28  ;;  %v9602_v28 = vld [vmem:[%s9944_s28 + $0x1970] ss:$8 sps:$4 sm:$0xff]  }
 0x2bd   : > { %7033 = vmatpush1.bf16.msra.mxu0 %v9517_v29  ;;  %6460 = vmatprep.subr.bf16.mxu1 %v9522_v30  ;;  %v9607_v29 = vld [vmem:[%s9944_s28 + $0xb84] ss:$8 sps:$4 sm:$0xff]  }
 0x2be   : > { %7034 = vmatprep.subr.bf16.mxu0 %v9525_v31  ;;  %v9610_v30 = vld [vmem:[%s9944_s28 + $0x1984] ss:$8 sps:$4 sm:$0xff]   ;;  %v9605_v31 = vld [vmem:[%s9944_s28 + $0xb80] ss:$8 sps:$4 sm:$0xff]  }
 0x2c0   : > { %6461 = vmatpush1.bf16.msra.mxu1 %v9520_v32  ;;  %v9608_v32 = vld [vmem:[%s9944_s28 + $0x1980] ss:$8 sps:$4 sm:$0xff]  }
 0x2c1   : > { %7035 = vmatpush1.bf16.msra.mxu0 %v9523_v33  ;;  %6462 = vmatprep.subr.bf16.mxu1 %v9528_v16  ;;  %v9613_v33 = vld [vmem:[%s9944_s28 + $0xb94] ss:$8 sps:$4 sm:$0xff]  }
 0x2c2   : > { %7036 = vmatprep.subr.bf16.mxu0 %v9531_v18  ;;  %v9616_v16 = vld [vmem:[%s9944_s28 + $0x1994] ss:$8 sps:$4 sm:$0xff]   ;;  %v9611_v18 = vld [vmem:[%s9944_s28 + $0xb90] ss:$8 sps:$4 sm:$0xff]  }
 0x2c4   : > { %6463 = vmatpush1.bf16.msra.mxu1 %v9526_v37  ;;  %v9614_v37 = vld [vmem:[%s9944_s28 + $0x1990] ss:$8 sps:$4 sm:$0xff]  }
 0x2c5   : > { %7037 = vmatpush1.bf16.msra.mxu0 %v9529_v45  ;;  %6464 = vmatprep.subr.bf16.mxu1 %v9534_v47  ;;  %v9619_v45 = vld [vmem:[%s9944_s28 + $0xba4] ss:$8 sps:$4 sm:$0xff]  }
 0x2c6   : > { %7038 = vmatprep.subr.bf16.mxu0 %v9537_v48  ;;  %v9622_v47 = vld [vmem:[%s9944_s28 + $0x19a4] ss:$8 sps:$4 sm:$0xff]   ;;  %v9617_v48 = vld [vmem:[%s9944_s28 + $0xba0] ss:$8 sps:$4 sm:$0xff]  }
 0x2c8   : > { %6465 = vmatpush1.bf16.msra.mxu1 %v9532_v23  ;;  %v9620_v23 = vld [vmem:[%s9944_s28 + $0x19a0] ss:$8 sps:$4 sm:$0xff]  }
 0x2c9   : > { %7039 = vmatpush1.bf16.msra.mxu0 %v9535_v62  ;;  %6466 = vmatprep.subr.bf16.mxu1 %v9540_v49  ;;  %v9625_v62 = vld [vmem:[%s9944_s28 + $0xbb4] ss:$8 sps:$4 sm:$0xff]  }
 0x2ca   : > { %7040 = vmatprep.subr.bf16.mxu0 %v9543_v34  ;;  %v9628_v49 = vld [vmem:[%s9944_s28 + $0x19b4] ss:$8 sps:$4 sm:$0xff]   ;;  %v9623_v34 = vld [vmem:[%s9944_s28 + $0xbb0] ss:$8 sps:$4 sm:$0xff]  }
 0x2cc   : > { %6467 = vmatpush1.bf16.msra.mxu1 %v9538_v36  ;;  %v9626_v36 = vld [vmem:[%s9944_s28 + $0x19b0] ss:$8 sps:$4 sm:$0xff]  }
 0x2cd   : > { %7041 = vmatpush1.bf16.msra.mxu0 %v9541_v15  ;;  %6468 = vmatprep.subr.bf16.mxu1 %v9546_v51  ;;  %v9631_v15 = vld [vmem:[%s9944_s28 + $0xbc4] ss:$8 sps:$4 sm:$0xff]  }
 0x2ce   : > { %7042 = vmatprep.subr.bf16.mxu0 %v9549_v35  ;;  %v9634_v51 = vld [vmem:[%s9944_s28 + $0x19c4] ss:$8 sps:$4 sm:$0xff]   ;;  %v9629_v35 = vld [vmem:[%s9944_s28 + $0xbc0] ss:$8 sps:$4 sm:$0xff]  }
 0x2d0   : > { %6469 = vmatpush1.bf16.msra.mxu1 %v9544_v42  ;;  %v9632_v42 = vld [vmem:[%s9944_s28 + $0x19c0] ss:$8 sps:$4 sm:$0xff]  }
 0x2d1   : > { %7043 = vmatpush1.bf16.msra.mxu0 %v9547_v52  ;;  %6470 = vmatprep.subr.bf16.mxu1 %v9552_v54  ;;  %v9637_v52 = vld [vmem:[%s9944_s28 + $0xbd4] ss:$8 sps:$4 sm:$0xff]  }
 0x2d2   : > { %7044 = vmatprep.subr.bf16.mxu0 %v9555_v55  ;;  %v9640_v54 = vld [vmem:[%s9944_s28 + $0x19d4] ss:$8 sps:$4 sm:$0xff]   ;;  %v9635_v55 = vld [vmem:[%s9944_s28 + $0xbd0] ss:$8 sps:$4 sm:$0xff]  }
 0x2d4   : > { %6471 = vmatpush1.bf16.msra.mxu1 %v9550_v56  ;;  %v9638_v56 = vld [vmem:[%s9944_s28 + $0x19d0] ss:$8 sps:$4 sm:$0xff]  }
 0x2d5   : > { %7045 = vmatpush1.bf16.msra.mxu0 %v9553_v39  ;;  %6481 = vmatprep.subr.bf16.mxu1 %v9559_v58  ;;  %v9643_v39 = vld [vmem:[%s9944_s28 + $0xbe4] ss:$8 sps:$4 sm:$0xff]  }
 0x2d6   : > { %7055 = vmatprep.subr.bf16.mxu0 %v9562_v43  ;;  %v9646_v58 = vld [vmem:[%s9944_s28 + $0x19e4] ss:$8 sps:$4 sm:$0xff]   ;;  %v1445_v43 = vcombine.high %v10764_v40, %v10764_v40  ;;  %v9647_v40 = vld [vmem:[%s9944_s28 + $0xbf0] ss:$8 sps:$4 sm:$0xff]  }
 0x2d7   : > { %6473 = vmatmul.mubr.bf16.vlgmr.msra.gmra.mrb[0].mxu1 %v10863_v63 }
 0x2d8   : > { %7047 = vmatmul.mubr.bf16.vlgmr.msra.gmra.mrb[0].mxu0 %v10867_v0  ;;  %6482 = vmatpush1.bf16.msra.mxu1 %v9557_v1  ;;  %v9641_v1 = vld [vmem:[%s9944_s28 + $0xbe0] ss:$8 sps:$4 sm:$0xff]  }
 0x2d9   : > { %7056 = vmatpush1.bf16.msra.mxu0 %v9560_v2  ;;  %6483 = vmatprep.subr.bf16.mxu1 %v9565_v46  ;;  %v9644_v2 = vld [vmem:[%s9944_s28 + $0x19e0] ss:$8 sps:$4 sm:$0xff]   ;;  %v9649_v46 = vld [vmem:[%s9944_s28 + $0xbf4] ss:$8 sps:$4 sm:$0xff]  }
 0x2da   : > { %7057 = vmatprep.subr.bf16.mxu0 %v9568_v24  ;;  %6513 = vmatprep.mubr.bf16.mxu1 %v1297_v19  ;;  %v9652_v24 = vld [vmem:[%s9944_s28 + $0x19f4] ss:$8 sps:$4 sm:$0xff]  }
 0x2db   : > { %7087 = vmatprep.mubr.bf16.mxu0 %v1492_v4  ;;  %v10938_v19 = vld.sshfl [vmem:[%s9939_s24 + $0x18] sm:$0xff pattern:$0x75316420]  ;;  %v10941_v4 = vrot.slane %v1445_v43, %v9994_v50 }
 0x2dc   : > { %6484 = vmatpush1.bf16.msra.mxu1 %v9563_v41  ;;  %v9650_v41 = vld [vmem:[%s9944_s28 + $0x19f0] ss:$8 sps:$4 sm:$0xff]  }
 0x2dd   : > { %7058 = vmatpush1.bf16.msra.mxu0 %v9566_v59  ;;  %6485 = vmatprep.subr.bf16.mxu1 %v9571_v57  ;;  %v9655_v59 = vld [vmem:[%s9944_s28 + $0xc04] ss:$8 sps:$4 sm:$0xff]   ;;  %v9722_v43 = vld [vmem:[%s9944_s28 + $0x1ab0] ss:$8 sps:$4 sm:$0xff]  }
 0x2de   : > { %7059 = vmatprep.subr.bf16.mxu0 %v9574_v5  ;;  %v9658_v57 = vld [vmem:[%s9944_s28 + $0x1a04] ss:$8 sps:$4 sm:$0xff]   ;;  %v1313_v5 = vcombine.high %v10938_v19, %v10938_v19 }
 0x2e0   : > { %6486 = vmatpush1.bf16.msra.mxu1 %v9569_v38  ;;  %v1461_v38 = vcombine.high %v10941_v4, %v10941_v4 }
 0x2e1   : > { %7060 = vmatpush1.bf16.msra.mxu0 %v9572_v60  ;;  %6487 = vmatprep.subr.bf16.mxu1 %v9577_v6  ;;  %v1295_v60 = vcombine.high %v10863_v63, %v10863_v63  ;;  %v1490_v6 = vcombine.high %v10867_v0, %v10867_v0  ;;  %v9659_v0 = vld [vmem:[%s9944_s28 + $0xc10] ss:$8 sps:$4 sm:$0xff]  }
 0x2e2   : > { %7061 = vmatprep.subr.bf16.mxu0 %v9580_v7  ;;  %v9653_v7 = vld [vmem:[%s9944_s28 + $0xc00] ss:$8 sps:$4 sm:$0xff]   ;;  %v10963_v63 = vrot.slane %v1461_v38, %v9994_v50  ;;  %v9742_v38 = vld [vmem:[%s9944_s28 + $0x1ae4] ss:$8 sps:$4 sm:$0xff]  }
 0x2e4   : > { %6488 = vmatpush1.bf16.msra.mxu1 %v9575_v8  ;;  %v9656_v8 = vld [vmem:[%s9944_s28 + $0x1a00] ss:$8 sps:$4 sm:$0xff]  }
 0x2e5   : > { %7062 = vmatpush1.bf16.msra.mxu0 %v9578_v9  ;;  %6489 = vmatprep.subr.bf16.mxu1 %v9583_v10  ;;  %v9661_v9 = vld [vmem:[%s9944_s28 + $0xc14] ss:$8 sps:$4 sm:$0xff]  }
 0x2e6   : > { %7063 = vmatprep.subr.bf16.mxu0 %v9586_v11  ;;  %v9664_v10 = vld [vmem:[%s9944_s28 + $0x1a14] ss:$8 sps:$4 sm:$0xff]   ;;  %v10960_v11 = vrot.slane %v1313_v5, %v9994_v50  ;;  %v9739_v5 = vld [vmem:[%s9944_s28 + $0xce4] ss:$8 sps:$4 sm:$0xff]  }
 0x2e8   : > { %6490 = vmatpush1.bf16.msra.mxu1 %v9581_v12  ;;  %v9662_v12 = vld [vmem:[%s9944_s28 + $0x1a10] ss:$8 sps:$4 sm:$0xff]  }
 0x2e9   : > { %7064 = vmatpush1.bf16.msra.mxu0 %v9584_v14  ;;  %6491 = vmatprep.subr.bf16.mxu1 %v9589_v17  ;;  %v9667_v14 = vld [vmem:[%s9944_s28 + $0xc24] ss:$8 sps:$4 sm:$0xff]  }
 0x2ea   : > { %7065 = vmatprep.subr.bf16.mxu0 %v9592_v20  ;;  %v9670_v17 = vld [vmem:[%s9944_s28 + $0x1a24] ss:$8 sps:$4 sm:$0xff]   ;;  %v9665_v20 = vld [vmem:[%s9944_s28 + $0xc20] ss:$8 sps:$4 sm:$0xff]  }
 0x2ec   : > { %6492 = vmatpush1.bf16.msra.mxu1 %v9587_v21  ;;  %v9668_v21 = vld [vmem:[%s9944_s28 + $0x1a20] ss:$8 sps:$4 sm:$0xff]  }
 0x2ed   : > { %7066 = vmatpush1.bf16.msra.mxu0 %v9590_v22  ;;  %6493 = vmatprep.subr.bf16.mxu1 %v9595_v3  ;;  %v9673_v22 = vld [vmem:[%s9944_s28 + $0xc34] ss:$8 sps:$4 sm:$0xff]  }
 0x2ee   : > { %7067 = vmatprep.subr.bf16.mxu0 %v9598_v25  ;;  %v9676_v3 = vld [vmem:[%s9944_s28 + $0x1a34] ss:$8 sps:$4 sm:$0xff]   ;;  %v9671_v25 = vld [vmem:[%s9944_s28 + $0xc30] ss:$8 sps:$4 sm:$0xff]  }
 0x2f0   : > { %6494 = vmatpush1.bf16.msra.mxu1 %v9593_v13  ;;  %v9674_v13 = vld [vmem:[%s9944_s28 + $0x1a30] ss:$8 sps:$4 sm:$0xff]  }
 0x2f1   : > { %7068 = vmatpush1.bf16.msra.mxu0 %v9596_v53  ;;  %6495 = vmatprep.subr.bf16.mxu1 %v9601_v61  ;;  %v9679_v53 = vld [vmem:[%s9944_s28 + $0xc44] ss:$8 sps:$4 sm:$0xff]  }
 0x2f2   : > { %7069 = vmatprep.subr.bf16.mxu0 %v9604_v26  ;;  %v9682_v61 = vld [vmem:[%s9944_s28 + $0x1a44] ss:$8 sps:$4 sm:$0xff]   ;;  %v9677_v26 = vld [vmem:[%s9944_s28 + $0xc40] ss:$8 sps:$4 sm:$0xff]  }
 0x2f4   : > { %6496 = vmatpush1.bf16.msra.mxu1 %v9599_v27  ;;  %v9680_v27 = vld [vmem:[%s9944_s28 + $0x1a40] ss:$8 sps:$4 sm:$0xff]  }
 0x2f5   : > { %7070 = vmatpush1.bf16.msra.mxu0 %v9602_v28  ;;  %6497 = vmatprep.subr.bf16.mxu1 %v9607_v29  ;;  %v9685_v28 = vld [vmem:[%s9944_s28 + $0xc54] ss:$8 sps:$4 sm:$0xff]  }
 0x2f6   : > { %7071 = vmatprep.subr.bf16.mxu0 %v9610_v30  ;;  %v9688_v29 = vld [vmem:[%s9944_s28 + $0x1a54] ss:$8 sps:$4 sm:$0xff]   ;;  %v9683_v30 = vld [vmem:[%s9944_s28 + $0xc50] ss:$8 sps:$4 sm:$0xff]  }
 0x2f8   : > { %6498 = vmatpush1.bf16.msra.mxu1 %v9605_v31  ;;  %v9686_v31 = vld [vmem:[%s9944_s28 + $0x1a50] ss:$8 sps:$4 sm:$0xff]  }
 0x2f9   : > { %7072 = vmatpush1.bf16.msra.mxu0 %v9608_v32  ;;  %6499 = vmatprep.subr.bf16.mxu1 %v9613_v33  ;;  %v9691_v32 = vld [vmem:[%s9944_s28 + $0xc64] ss:$8 sps:$4 sm:$0xff]  }
 0x2fa   : > { %7073 = vmatprep.subr.bf16.mxu0 %v9616_v16  ;;  %v9694_v33 = vld [vmem:[%s9944_s28 + $0x1a64] ss:$8 sps:$4 sm:$0xff]   ;;  %v9689_v16 = vld [vmem:[%s9944_s28 + $0xc60] ss:$8 sps:$4 sm:$0xff]  }
 0x2fc   : > { %6500 = vmatpush1.bf16.msra.mxu1 %v9611_v18  ;;  %v9692_v18 = vld [vmem:[%s9944_s28 + $0x1a60] ss:$8 sps:$4 sm:$0xff]  }
 0x2fd   : > { %7074 = vmatpush1.bf16.msra.mxu0 %v9614_v37  ;;  %6501 = vmatprep.subr.bf16.mxu1 %v9619_v45  ;;  %v9697_v37 = vld [vmem:[%s9944_s28 + $0xc74] ss:$8 sps:$4 sm:$0xff]  }
 0x2fe   : > { %7075 = vmatprep.subr.bf16.mxu0 %v9622_v47  ;;  %v9700_v45 = vld [vmem:[%s9944_s28 + $0x1a74] ss:$8 sps:$4 sm:$0xff]   ;;  %v9695_v47 = vld [vmem:[%s9944_s28 + $0xc70] ss:$8 sps:$4 sm:$0xff]  }
 0x300   : > { %6502 = vmatpush1.bf16.msra.mxu1 %v9617_v48  ;;  %v9698_v48 = vld [vmem:[%s9944_s28 + $0x1a70] ss:$8 sps:$4 sm:$0xff]  }
 0x301   : > { %7076 = vmatpush1.bf16.msra.mxu0 %v9620_v23  ;;  %6503 = vmatprep.subr.bf16.mxu1 %v9625_v62  ;;  %v9703_v23 = vld [vmem:[%s9944_s28 + $0xc84] ss:$8 sps:$4 sm:$0xff]  }
 0x302   : > { %7077 = vmatprep.subr.bf16.mxu0 %v9628_v49  ;;  %v9706_v62 = vld [vmem:[%s9944_s28 + $0x1a84] ss:$8 sps:$4 sm:$0xff]   ;;  %v9701_v49 = vld [vmem:[%s9944_s28 + $0xc80] ss:$8 sps:$4 sm:$0xff]  }
 0x304   : > { %6504 = vmatpush1.bf16.msra.mxu1 %v9623_v34  ;;  %v9704_v34 = vld [vmem:[%s9944_s28 + $0x1a80] ss:$8 sps:$4 sm:$0xff]  }
 0x305   : > { %7078 = vmatpush1.bf16.msra.mxu0 %v9626_v36  ;;  %6505 = vmatprep.subr.bf16.mxu1 %v9631_v15  ;;  %v9709_v36 = vld [vmem:[%s9944_s28 + $0xc94] ss:$8 sps:$4 sm:$0xff]  }
 0x306   : > { %7079 = vmatprep.subr.bf16.mxu0 %v9634_v51  ;;  %v9712_v15 = vld [vmem:[%s9944_s28 + $0x1a94] ss:$8 sps:$4 sm:$0xff]   ;;  %v9707_v51 = vld [vmem:[%s9944_s28 + $0xc90] ss:$8 sps:$4 sm:$0xff]  }
 0x308   : > { %6506 = vmatpush1.bf16.msra.mxu1 %v9629_v35  ;;  %v9710_v35 = vld [vmem:[%s9944_s28 + $0x1a90] ss:$8 sps:$4 sm:$0xff]  }
 0x309   : > { %7080 = vmatpush1.bf16.msra.mxu0 %v9632_v42  ;;  %6507 = vmatprep.subr.bf16.mxu1 %v9637_v52  ;;  %v9715_v42 = vld [vmem:[%s9944_s28 + $0xca4] ss:$8 sps:$4 sm:$0xff]  }
 0x30a   : > { %7081 = vmatprep.subr.bf16.mxu0 %v9640_v54  ;;  %v9718_v52 = vld [vmem:[%s9944_s28 + $0x1aa4] ss:$8 sps:$4 sm:$0xff]   ;;  %v9713_v54 = vld [vmem:[%s9944_s28 + $0xca0] ss:$8 sps:$4 sm:$0xff]  }
 0x30c   : > { %6508 = vmatpush1.bf16.msra.mxu1 %v9635_v55  ;;  %v9716_v55 = vld [vmem:[%s9944_s28 + $0x1aa0] ss:$8 sps:$4 sm:$0xff]  }
 0x30d   : > { %7082 = vmatpush1.bf16.msra.mxu0 %v9638_v56  ;;  %6509 = vmatprep.subr.bf16.mxu1 %v9643_v39  ;;  %v9721_v56 = vld [vmem:[%s9944_s28 + $0xcb4] ss:$8 sps:$4 sm:$0xff]  }
 0x30e   : > { %7083 = vmatprep.subr.bf16.mxu0 %v9646_v58  ;;  %v9724_v39 = vld [vmem:[%s9944_s28 + $0x1ab4] ss:$8 sps:$4 sm:$0xff]   ;;  %v9719_v58 = vld [vmem:[%s9944_s28 + $0xcb0] ss:$8 sps:$4 sm:$0xff]  }
 0x310   : > { %6510 = vmatpush1.bf16.msra.mxu1 %v9641_v1  ;;  %v9727_v1 = vld [vmem:[%s9944_s28 + $0xcc4] ss:$8 sps:$4 sm:$0xff]  }
 0x311   : > { %7084 = vmatpush1.bf16.msra.mxu0 %v9644_v2  ;;  %6511 = vmatprep.subr.bf16.mxu1 %v9649_v46  ;;  %v9730_v2 = vld [vmem:[%s9944_s28 + $0x1ac4] ss:$8 sps:$4 sm:$0xff]   ;;  %v9725_v46 = vld [vmem:[%s9944_s28 + $0xcc0] ss:$8 sps:$4 sm:$0xff]  }
 0x312   : > { %7085 = vmatprep.subr.bf16.mxu0 %v9652_v24  ;;  %v9728_v24 = vld [vmem:[%s9944_s28 + $0x1ac0] ss:$8 sps:$4 sm:$0xff]  }
 0x314   : > { %6512 = vmatpush1.bf16.msra.mxu1 %v9647_v40  ;;  %v9733_v40 = vld [vmem:[%s9944_s28 + $0xcd4] ss:$8 sps:$4 sm:$0xff]  }
 0x315   : > { %7086 = vmatpush1.bf16.msra.mxu0 %v9650_v41  ;;  %6522 = vmatprep.subr.bf16.mxu1 %v9655_v59  ;;  %v9736_v41 = vld [vmem:[%s9944_s28 + $0x1ad4] ss:$8 sps:$4 sm:$0xff]   ;;  %v9731_v59 = vld [vmem:[%s9944_s28 + $0xcd0] ss:$8 sps:$4 sm:$0xff]  }
 0x316   : > { %7096 = vmatprep.subr.bf16.mxu0 %v9658_v57  ;;  %v9734_v57 = vld [vmem:[%s9944_s28 + $0x1ad0] ss:$8 sps:$4 sm:$0xff]  }
 0x317   : > { %6514 = vmatmul.mubr.bf16.vlgmr.msra.gmra.mrb[0].mxu1 %v1295_v60  ;;  %v9737_v60 = vld [vmem:[%s9944_s28 + $0xce0] ss:$8 sps:$4 sm:$0xff]  }
 0x318   : > { %7088 = vmatmul.mubr.bf16.vlgmr.msra.gmra.mrb[0].mxu0 %v1490_v6  ;;  %6523 = vmatpush1.bf16.msra.mxu1 %v9653_v7  ;;  %v9740_v6 = vld [vmem:[%s9944_s28 + $0x1ae0] ss:$8 sps:$4 sm:$0xff]   ;;  %v9745_v7 = vld [vmem:[%s9944_s28 + $0xcf4] ss:$8 sps:$4 sm:$0xff]  }
 0x319   : > { %7097 = vmatpush1.bf16.msra.mxu0 %v9656_v8  ;;  %6524 = vmatprep.subr.bf16.mxu1 %v9661_v9  ;;  %v9748_v8 = vld [vmem:[%s9944_s28 + $0x1af4] ss:$8 sps:$4 sm:$0xff]   ;;  %v9743_v9 = vld [vmem:[%s9944_s28 + $0xcf0] ss:$8 sps:$4 sm:$0xff]  }
 0x31a   : > { %7098 = vmatprep.subr.bf16.mxu0 %v9664_v10  ;;  %6554 = vmatprep.mubr.bf16.mxu1 %v10960_v11  ;;  %v9746_v10 = vld [vmem:[%s9944_s28 + $0x1af0] ss:$8 sps:$4 sm:$0xff]  }
 0x31b   : > { %7128 = vmatprep.mubr.bf16.mxu0 %v10963_v63 }
 0x31c   : > { %6525 = vmatpush1.bf16.msra.mxu1 %v9659_v0  ;;  %v9751_v0 = vld [vmem:[%s9944_s28 + $0xd04] ss:$8 sps:$4 sm:$0xff]  }
 0x31d   : > { %7099 = vmatpush1.bf16.msra.mxu0 %v9662_v12  ;;  %6526 = vmatprep.subr.bf16.mxu1 %v9667_v14  ;;  %v9755_v12 = vld [vmem:[%s9944_s28 + $0x1b04] ss:$8 sps:$4 sm:$0xff]   ;;  %v11029_v14 = vrot.slane %v10938_v19, %v9994_v50  ;;  %v1345_v19 = vcombine.high %v10960_v11, %v10960_v11 }
 0x31e   : > { %7100 = vmatprep.subr.bf16.mxu0 %v9670_v17  ;;  %v11033_v17 = vrot.slane %v10941_v4, %v9994_v50  ;;  %v9756_v50 = vld [vmem:[%s9944_s28 + $0xd10] ss:$8 sps:$4 sm:$0xff]   ;;  %v9764_v11 = vld [vmem:[%s9944_s28 + $0xd24] ss:$8 sps:$4 sm:$0xff]  }
 0x31f   : > { %v9759_v4 = vld [vmem:[%s9944_s28 + $0x1b10] ss:$8 sps:$4 sm:$0xff]  }
 0x320   : > { %6527 = vmatpush1.bf16.msra.mxu1 %v9665_v20  ;;  %v9749_v20 = vld [vmem:[%s9944_s28 + $0xd00] ss:$8 sps:$4 sm:$0xff]  }
 0x321   : > { %7101 = vmatpush1.bf16.msra.mxu0 %v9668_v21  ;;  %6528 = vmatprep.subr.bf16.mxu1 %v9673_v22  ;;  %v9753_v21 = vld [vmem:[%s9944_s28 + $0x1b00] ss:$8 sps:$4 sm:$0xff]   ;;  %v9758_v22 = vld [vmem:[%s9944_s28 + $0xd14] ss:$8 sps:$4 sm:$0xff]  }
 0x322   : > { %7102 = vmatprep.subr.bf16.mxu0 %v9676_v3  ;;  %v9761_v3 = vld [vmem:[%s9944_s28 + $0x1b14] ss:$8 sps:$4 sm:$0xff]  }
 0x324   : > { %6529 = vmatpush1.bf16.msra.mxu1 %v9671_v25  ;;  %v1493_v25 = vcombine.high %v10963_v63, %v10963_v63  ;;  %v9762_v63 = vld [vmem:[%s9944_s28 + $0xd20] ss:$8 sps:$4 sm:$0xff]  }
 0x325   : > { %7103 = vmatpush1.bf16.msra.mxu0 %v9674_v13  ;;  %6530 = vmatprep.subr.bf16.mxu1 %v9679_v53  ;;  %v9767_v13 = vld [vmem:[%s9944_s28 + $0x1b24] ss:$8 sps:$4 sm:$0xff]   ;;  %v9765_v53 = vld [vmem:[%s9944_s28 + $0x1b20] ss:$8 sps:$4 sm:$0xff]  }
 0x326   : > { %7104 = vmatprep.subr.bf16.mxu0 %v9682_v61  ;;  %v9770_v61 = vld [vmem:[%s9944_s28 + $0xd34] ss:$8 sps:$4 sm:$0xff]  }
 0x328   : > { %6531 = vmatpush1.bf16.msra.mxu1 %v9677_v26  ;;  %v9773_v26 = vld [vmem:[%s9944_s28 + $0x1b34] ss:$8 sps:$4 sm:$0xff]  }
 0x329   : > { %7105 = vmatpush1.bf16.msra.mxu0 %v9680_v27  ;;  %6532 = vmatprep.subr.bf16.mxu1 %v9685_v28  ;;  %v9768_v27 = vld [vmem:[%s9944_s28 + $0xd30] ss:$8 sps:$4 sm:$0xff]  }
 0x32a   : > { %7106 = vmatprep.subr.bf16.mxu0 %v9688_v29  ;;  %v9771_v28 = vld [vmem:[%s9944_s28 + $0x1b30] ss:$8 sps:$4 sm:$0xff]   ;;  %v9776_v29 = vld [vmem:[%s9944_s28 + $0xd44] ss:$8 sps:$4 sm:$0xff]  }
 0x32c   : > { %6533 = vmatpush1.bf16.msra.mxu1 %v9683_v30  ;;  %v9779_v30 = vld [vmem:[%s9944_s28 + $0x1b44] ss:$8 sps:$4 sm:$0xff]  }
 0x32d   : > { %7107 = vmatpush1.bf16.msra.mxu0 %v9686_v31  ;;  %6534 = vmatprep.subr.bf16.mxu1 %v9691_v32  ;;  %v9774_v31 = vld [vmem:[%s9944_s28 + $0xd40] ss:$8 sps:$4 sm:$0xff]  }
 0x32e   : > { %7108 = vmatprep.subr.bf16.mxu0 %v9694_v33  ;;  %v9777_v32 = vld [vmem:[%s9944_s28 + $0x1b40] ss:$8 sps:$4 sm:$0xff]   ;;  %v9782_v33 = vld [vmem:[%s9944_s28 + $0xd54] ss:$8 sps:$4 sm:$0xff]  }
 0x330   : > { %6535 = vmatpush1.bf16.msra.mxu1 %v9689_v16  ;;  %v9785_v16 = vld [vmem:[%s9944_s28 + $0x1b54] ss:$8 sps:$4 sm:$0xff]  }
 0x331   : > { %7109 = vmatpush1.bf16.msra.mxu0 %v9692_v18  ;;  %6536 = vmatprep.subr.bf16.mxu1 %v9697_v37  ;;  %v9780_v18 = vld [vmem:[%s9944_s28 + $0xd50] ss:$8 sps:$4 sm:$0xff]  }
 0x332   : > { %7110 = vmatprep.subr.bf16.mxu0 %v9700_v45  ;;  %v9783_v37 = vld [vmem:[%s9944_s28 + $0x1b50] ss:$8 sps:$4 sm:$0xff]   ;;  %v9788_v45 = vld [vmem:[%s9944_s28 + $0xd64] ss:$8 sps:$4 sm:$0xff]  }
 0x334   : > { %6537 = vmatpush1.bf16.msra.mxu1 %v9695_v47  ;;  %v9791_v47 = vld [vmem:[%s9944_s28 + $0x1b64] ss:$8 sps:$4 sm:$0xff]  }
 0x335   : > { %7111 = vmatpush1.bf16.msra.mxu0 %v9698_v48  ;;  %6538 = vmatprep.subr.bf16.mxu1 %v9703_v23  ;;  %v9786_v48 = vld [vmem:[%s9944_s28 + $0xd60] ss:$8 sps:$4 sm:$0xff]  }
 0x336   : > { %7112 = vmatprep.subr.bf16.mxu0 %v9706_v62  ;;  %v9789_v23 = vld [vmem:[%s9944_s28 + $0x1b60] ss:$8 sps:$4 sm:$0xff]   ;;  %v9794_v62 = vld [vmem:[%s9944_s28 + $0xd74] ss:$8 sps:$4 sm:$0xff]  }
 0x338   : > { %6539 = vmatpush1.bf16.msra.mxu1 %v9701_v49  ;;  %v9797_v49 = vld [vmem:[%s9944_s28 + $0x1b74] ss:$8 sps:$4 sm:$0xff]  }
 0x339   : > { %7113 = vmatpush1.bf16.msra.mxu0 %v9704_v34  ;;  %6540 = vmatprep.subr.bf16.mxu1 %v9709_v36  ;;  %v9792_v34 = vld [vmem:[%s9944_s28 + $0xd70] ss:$8 sps:$4 sm:$0xff]  }
 0x33a   : > { %7114 = vmatprep.subr.bf16.mxu0 %v9712_v15  ;;  %v9795_v36 = vld [vmem:[%s9944_s28 + $0x1b70] ss:$8 sps:$4 sm:$0xff]   ;;  %v9800_v15 = vld [vmem:[%s9944_s28 + $0xd84] ss:$8 sps:$4 sm:$0xff]  }
 0x33c   : > { %6541 = vmatpush1.bf16.msra.mxu1 %v9707_v51  ;;  %v9803_v51 = vld [vmem:[%s9944_s28 + $0x1b84] ss:$8 sps:$4 sm:$0xff]  }
 0x33d   : > { %7115 = vmatpush1.bf16.msra.mxu0 %v9710_v35  ;;  %6542 = vmatprep.subr.bf16.mxu1 %v9715_v42  ;;  %v9798_v35 = vld [vmem:[%s9944_s28 + $0xd80] ss:$8 sps:$4 sm:$0xff]  }
 0x33e   : > { %7116 = vmatprep.subr.bf16.mxu0 %v9718_v52  ;;  %v9801_v42 = vld [vmem:[%s9944_s28 + $0x1b80] ss:$8 sps:$4 sm:$0xff]   ;;  %v9806_v52 = vld [vmem:[%s9944_s28 + $0xd94] ss:$8 sps:$4 sm:$0xff]  }
 0x340   : > { %6543 = vmatpush1.bf16.msra.mxu1 %v9713_v54  ;;  %v9809_v54 = vld [vmem:[%s9944_s28 + $0x1b94] ss:$8 sps:$4 sm:$0xff]  }
 0x341   : > { %7117 = vmatpush1.bf16.msra.mxu0 %v9716_v55  ;;  %6544 = vmatprep.subr.bf16.mxu1 %v9721_v56  ;;  %v9804_v55 = vld [vmem:[%s9944_s28 + $0xd90] ss:$8 sps:$4 sm:$0xff]  }
 0x342   : > { %7118 = vmatprep.subr.bf16.mxu0 %v9724_v39  ;;  %v9807_v56 = vld [vmem:[%s9944_s28 + $0x1b90] ss:$8 sps:$4 sm:$0xff]   ;;  %v9812_v39 = vld [vmem:[%s9944_s28 + $0xda4] ss:$8 sps:$4 sm:$0xff]  }
 0x344   : > { %6545 = vmatpush1.bf16.msra.mxu1 %v9719_v58  ;;  %v9815_v58 = vld [vmem:[%s9944_s28 + $0x1ba4] ss:$8 sps:$4 sm:$0xff]  }
 0x345   : > { %7119 = vmatpush1.bf16.msra.mxu0 %v9722_v43  ;;  %6546 = vmatprep.subr.bf16.mxu1 %v9727_v1  ;;  %v9810_v43 = vld [vmem:[%s9944_s28 + $0xda0] ss:$8 sps:$4 sm:$0xff]  }
 0x346   : > { %7120 = vmatprep.subr.bf16.mxu0 %v9730_v2  ;;  %v9813_v1 = vld [vmem:[%s9944_s28 + $0x1ba0] ss:$8 sps:$4 sm:$0xff]   ;;  %v9818_v2 = vld [vmem:[%s9944_s28 + $0xdb4] ss:$8 sps:$4 sm:$0xff]  }
 0x348   : > { %6547 = vmatpush1.bf16.msra.mxu1 %v9725_v46  ;;  %v9821_v46 = vld [vmem:[%s9944_s28 + $0x1bb4] ss:$8 sps:$4 sm:$0xff]  }
 0x349   : > { %7121 = vmatpush1.bf16.msra.mxu0 %v9728_v24  ;;  %6548 = vmatprep.subr.bf16.mxu1 %v9733_v40  ;;  %v9816_v24 = vld [vmem:[%s9944_s28 + $0xdb0] ss:$8 sps:$4 sm:$0xff]  }
 0x34a   : > { %7122 = vmatprep.subr.bf16.mxu0 %v9736_v41  ;;  %v9819_v40 = vld [vmem:[%s9944_s28 + $0x1bb0] ss:$8 sps:$4 sm:$0xff]   ;;  %v9824_v41 = vld [vmem:[%s9944_s28 + $0xdc4] ss:$8 sps:$4 sm:$0xff]  }
 0x34c   : > { %6549 = vmatpush1.bf16.msra.mxu1 %v9731_v59  ;;  %v9827_v59 = vld [vmem:[%s9944_s28 + $0x1bc4] ss:$8 sps:$4 sm:$0xff]  }
 0x34d   : > { %7123 = vmatpush1.bf16.msra.mxu0 %v9734_v57  ;;  %6550 = vmatprep.subr.bf16.mxu1 %v9739_v5  ;;  %v9822_v57 = vld [vmem:[%s9944_s28 + $0xdc0] ss:$8 sps:$4 sm:$0xff]  }
 0x34e   : > { %7124 = vmatprep.subr.bf16.mxu0 %v9742_v38  ;;  %v9825_v5 = vld [vmem:[%s9944_s28 + $0x1bc0] ss:$8 sps:$4 sm:$0xff]   ;;  %v9830_v38 = vld [vmem:[%s9944_s28 + $0xdd4] ss:$8 sps:$4 sm:$0xff]  }
 0x350   : > { %6551 = vmatpush1.bf16.msra.mxu1 %v9737_v60  ;;  %v9833_v60 = vld [vmem:[%s9944_s28 + $0x1bd4] ss:$8 sps:$4 sm:$0xff]  }
 0x351   : > { %7125 = vmatpush1.bf16.msra.mxu0 %v9740_v6  ;;  %6552 = vmatprep.subr.bf16.mxu1 %v9745_v7  ;;  %v9828_v6 = vld [vmem:[%s9944_s28 + $0xdd0] ss:$8 sps:$4 sm:$0xff]  }
 0x352   : > { %7126 = vmatprep.subr.bf16.mxu0 %v9748_v8  ;;  %v9831_v7 = vld [vmem:[%s9944_s28 + $0x1bd0] ss:$8 sps:$4 sm:$0xff]   ;;  %v9836_v8 = vld [vmem:[%s9944_s28 + $0xde4] ss:$8 sps:$4 sm:$0xff]  }
 0x354   : > { %6553 = vmatpush1.bf16.msra.mxu1 %v9743_v9  ;;  %v9839_v9 = vld [vmem:[%s9944_s28 + $0x1be4] ss:$8 sps:$4 sm:$0xff]  }
 0x355   : > { %7127 = vmatpush1.bf16.msra.mxu0 %v9746_v10  ;;  %6563 = vmatprep.subr.bf16.mxu1 %v9751_v0  ;;  %v9834_v10 = vld [vmem:[%s9944_s28 + $0xde0] ss:$8 sps:$4 sm:$0xff]  }
 0x356   : > { %7137 = vmatprep.subr.bf16.mxu0 %v9755_v12  ;;  %v9837_v0 = vld [vmem:[%s9944_s28 + $0x1be0] ss:$8 sps:$4 sm:$0xff]   ;;  %v9842_v12 = vld [vmem:[%s9944_s28 + $0xdf4] ss:$8 sps:$4 sm:$0xff]  }
 0x357   : > { %6555 = vmatmul.mubr.bf16.vlgmr.msra.gmra.mrb[0].mxu1 %v11029_v14 }
 0x358   : > { %7129 = vmatmul.mubr.bf16.vlgmr.msra.gmra.mrb[0].mxu0 %v11033_v17  ;;  %6564 = vmatpush1.bf16.msra.mxu1 %v9749_v20  ;;  %v9845_v20 = vld [vmem:[%s9944_s28 + $0x1bf4] ss:$8 sps:$4 sm:$0xff]  }
 0x359   : > { %7138 = vmatpush1.bf16.msra.mxu0 %v9753_v21  ;;  %6565 = vmatprep.subr.bf16.mxu1 %v9758_v22  ;;  %v9840_v21 = vld [vmem:[%s9944_s28 + $0xdf0] ss:$8 sps:$4 sm:$0xff]  }
 0x35a   : > { %7139 = vmatprep.subr.bf16.mxu0 %v9761_v3  ;;  %6595 = vmatprep.mubr.bf16.mxu1 %v1345_v19  ;;  %v9843_v22 = vld [vmem:[%s9944_s28 + $0x1bf0] ss:$8 sps:$4 sm:$0xff]   ;;  %v1343_v3 = vcombine.high %v11029_v14, %v11029_v14  ;;  %v1491_v19 = vcombine.high %v11033_v17, %v11033_v17 }
 0x35b   : > { %7169 = vmatprep.mubr.bf16.mxu0 %v1493_v25  ;;  %v9892_v25 = vmov 1983009808  }
 0x35c   : > { %6566 = vmatpush1.bf16.msra.mxu1 %v9756_v50  ;;  %v7182_v50 = vunpack.c.l.s4 %v9892_v25 }
 0x35d   : > { %7140 = vmatpush1.bf16.msra.mxu0 %v9759_v4  ;;  %6567 = vmatprep.subr.bf16.mxu1 %v9764_v11 }
 0x35e   : > { %7141 = vmatprep.subr.bf16.mxu0 %v9767_v13  ;;  %v7183_v4 = vunpack.c.0.s8 %v7182_v50 }
 0x360   : > { %6568 = vmatpush1.bf16.msra.mxu1 %v9762_v63 }
 0x361   : > { %7142 = vmatpush1.bf16.msra.mxu0 %v9765_v53  ;;  %6569 = vmatprep.subr.bf16.mxu1 %v9770_v61 }
 0x362   : > { %7143 = vmatprep.subr.bf16.mxu0 %v9773_v26 }
 0x364   : > { %6570 = vmatpush1.bf16.msra.mxu1 %v9768_v27  ;;  %v11108_v27 = vsub.s32 %v7183_v4, %v9986_v44 }
 0x365   : > { %7144 = vmatpush1.bf16.msra.mxu0 %v9771_v28  ;;  %6571 = vmatprep.subr.bf16.mxu1 %v9776_v29 }
 0x366   : > { %7145 = vmatprep.subr.bf16.mxu0 %v9779_v30 }
 0x368   : > { %6572 = vmatpush1.bf16.msra.mxu1 %v9774_v31  ;;  %v240_v31 = vld [vmem:[#allocation2] sm:$0xf] }
 0x369   : > { %7146 = vmatpush1.bf16.msra.mxu0 %v9777_v32  ;;  %6573 = vmatprep.subr.bf16.mxu1 %v9782_v33 }
 0x36a   : > { %7147 = vmatprep.subr.bf16.mxu0 %v9785_v16  ;;  %v7233_v16 = vld [vmem:[%s11247_s3 + $0x80] sm:$0xff] (!%p8297_p6) }
 0x36c   : > { %6574 = vmatpush1.bf16.msra.mxu1 %v9780_v18  ;;  %v7234_v18 = vld [vmem:[%s11247_s3 + $0x88] sm:$0xff] (!%p8297_p6) }
 0x36d   : > { %7148 = vmatpush1.bf16.msra.mxu0 %v9783_v37  ;;  %6575 = vmatprep.subr.bf16.mxu1 %v9788_v45  ;;  %v7217_v37 = vld [vmem:[%s11247_s3] sm:$0xff] (!%p8297_p6)  ;;  %v8339_v45 = vpack.c.bf16 (!%p8297_p6), %v7234_v18, %v7233_v16 }
 0x36e   : > { %7149 = vmatprep.subr.bf16.mxu0 %v9791_v47  ;;  %v7218_v47 = vld [vmem:[%s11247_s3 + $0x8] sm:$0xff] (!%p8297_p6) }
 0x370   : > { %6576 = vmatpush1.bf16.msra.mxu1 %v9786_v48  ;;  %v7235_v48 = vld [vmem:[%s11247_s3 + $0x90] sm:$0xff] (!%p8297_p6) }
 0x371   : > { %7150 = vmatpush1.bf16.msra.mxu0 %v9789_v23  ;;  %6577 = vmatprep.subr.bf16.mxu1 %v9794_v62  ;;  %v7236_v23 = vld [vmem:[%s11247_s3 + $0x98] sm:$0xff] (!%p8297_p6)  ;;  %v8341_v62 = vpack.c.bf16 (!%p8297_p6), %v7218_v47, %v7217_v37 }
 0x372   : > { %7151 = vmatprep.subr.bf16.mxu0 %v9797_v49  ;;  %v8343_v49 = vpack.c.bf16 (!%p8297_p6), %v7236_v23, %v7235_v48 }
 0x374   : > { %6578 = vmatpush1.bf16.msra.mxu1 %v9792_v34  ;;  %v7219_v34 = vld [vmem:[%s11247_s3 + $0x10] sm:$0xff] (!%p8297_p6) }
 0x375   : > { %7152 = vmatpush1.bf16.msra.mxu0 %v9795_v36  ;;  %6579 = vmatprep.subr.bf16.mxu1 %v9800_v15  ;;  %v7220_v36 = vld [vmem:[%s11247_s3 + $0x18] sm:$0xff] (!%p8297_p6)  ;;  %v7237_v15 = vld [vmem:[%s11247_s3 + $0xa0] sm:$0xff] (!%p8297_p6) }
 0x376   : > { %7153 = vmatprep.subr.bf16.mxu0 %v9803_v51  ;;  %v7238_v51 = vld [vmem:[%s11247_s3 + $0xa8] sm:$0xff] (!%p8297_p6) }
 0x378   : > { %6580 = vmatpush1.bf16.msra.mxu1 %v9798_v35  ;;  %v8345_v35 = vpack.c.bf16 (!%p8297_p6), %v7220_v36, %v7219_v34 }
 0x379   : > { %7154 = vmatpush1.bf16.msra.mxu0 %v9801_v42  ;;  %6581 = vmatprep.subr.bf16.mxu1 %v9806_v52  ;;  %v8347_v42 = vpack.c.bf16 (!%p8297_p6), %v7238_v51, %v7237_v15  ;;  %v7221_v52 = vld [vmem:[%s11247_s3 + $0x20] sm:$0xff] (!%p8297_p6) }
 0x37a   : > { %7155 = vmatprep.subr.bf16.mxu0 %v9809_v54  ;;  %v7222_v54 = vld [vmem:[%s11247_s3 + $0x28] sm:$0xff] (!%p8297_p6) }
 0x37c   : > { %6582 = vmatpush1.bf16.msra.mxu1 %v9804_v55  ;;  %v7239_v55 = vld [vmem:[%s11247_s3 + $0xb0] sm:$0xff] (!%p8297_p6) }
 0x37d   : > { %7156 = vmatpush1.bf16.msra.mxu0 %v9807_v56  ;;  %6583 = vmatprep.subr.bf16.mxu1 %v9812_v39  ;;  %v7240_v56 = vld [vmem:[%s11247_s3 + $0xb8] sm:$0xff] (!%p8297_p6)  ;;  %v8349_v39 = vpack.c.bf16 (!%p8297_p6), %v7222_v54, %v7221_v52 }
 0x37e   : > { %7157 = vmatprep.subr.bf16.mxu0 %v9815_v58  ;;  %v7200_v58 = vsub.s32 (!%p8297_p6), 0, %v9986_v44 }
 0x380   : > { %6584 = vmatpush1.bf16.msra.mxu1 %v9810_v43  ;;  %v7204_v43 = vsub.s32 (!%p8297_p6), 1, %v9986_v44  ;;  %v7196_v44 = vld [vmem:[%s11246_s2] sm:$0x3] (!%p8297_p6) }
 0x381   : > { %7158 = vmatpush1.bf16.msra.mxu0 %v9813_v1  ;;  %6585 = vmatprep.subr.bf16.mxu1 %v9818_v2  ;;  %v8351_v1 = vpack.c.bf16 (!%p8297_p6), %v7240_v56, %v7239_v55  ;;  %v7223_v2 = vld [vmem:[%s11247_s3 + $0x30] sm:$0xff] (!%p8297_p6) }
 0x382   : > { %7159 = vmatprep.subr.bf16.mxu0 %v9821_v46  ;;  %v7224_v46 = vld [vmem:[%s11247_s3 + $0x38] sm:$0xff] (!%p8297_p6) }
 0x384   : > { %6586 = vmatpush1.bf16.msra.mxu1 %v9816_v24  ;;  %v7241_v24 = vld [vmem:[%s11247_s3 + $0xc0] sm:$0xff] (!%p8297_p6) }
 0x385   : > { %7160 = vmatpush1.bf16.msra.mxu0 %v9819_v40  ;;  %6587 = vmatprep.subr.bf16.mxu1 %v9824_v41  ;;  %v7242_v40 = vld [vmem:[%s11247_s3 + $0xc8] sm:$0xff] (!%p8297_p6)  ;;  %v8353_v41 = vpack.c.bf16 (!%p8297_p6), %v7224_v46, %v7223_v2 }
 0x386   : > { %7161 = vmatprep.subr.bf16.mxu0 %v9827_v59  ;;  %v7201_v59 = vrot.slane (!%p8297_p6), %v7196_v44, %v7200_v58 }
 0x388   : > { %6588 = vmatpush1.bf16.msra.mxu1 %v9822_v57  ;;  %v7205_v57 = vrot.slane (!%p8297_p6), %v7196_v44, %v7204_v43 }
 0x389   : > { %7162 = vmatpush1.bf16.msra.mxu0 %v9825_v5  ;;  %6589 = vmatprep.subr.bf16.mxu1 %v9830_v38  ;;  %v8355_v5 = vpack.c.bf16 (!%p8297_p6), %v7242_v40, %v7241_v24  ;;  %v7225_v38 = vld [vmem:[%s11247_s3 + $0x40] sm:$0xff] (!%p8297_p6) }
 0x38a   : > { %7163 = vmatprep.subr.bf16.mxu0 %v9833_v60  ;;  %v7226_v60 = vld [vmem:[%s11247_s3 + $0x48] sm:$0xff] (!%p8297_p6) }
 0x38c   : > { %6590 = vmatpush1.bf16.msra.mxu1 %v9828_v6  ;;  %v7243_v6 = vld [vmem:[%s11247_s3 + $0xd0] sm:$0xff] (!%p8297_p6) }
 0x38d   : > { %7164 = vmatpush1.bf16.msra.mxu0 %v9831_v7  ;;  %6591 = vmatprep.subr.bf16.mxu1 %v9836_v8  ;;  %v7244_v7 = vld [vmem:[%s11247_s3 + $0xd8] sm:$0xff] (!%p8297_p6)  ;;  %v7206_v8 = vcombine.low (!%p8297_p6), %v7201_v59, %v7205_v57 }
 0x38e   : > { %7165 = vmatprep.subr.bf16.mxu0 %v9839_v9 }
 0x390   : > { %6592 = vmatpush1.bf16.msra.mxu1 %v9834_v10  ;;  %v8357_v10 = vpack.c.bf16 (!%p8297_p6), %v7226_v60, %v7225_v38 }
 0x391   : > { %7166 = vmatpush1.bf16.msra.mxu0 %v9837_v0  ;;  %6593 = vmatprep.subr.bf16.mxu1 %v9842_v12  ;;  %v7213_v0 = vrot.slane (!%p8297_p6), %v7206_v8, %v11108_v27  ;;  %v8359_v12 = vpack.c.bf16 (!%p8297_p6), %v7244_v7, %v7243_v6 }
 0x392   : > { %7167 = vmatprep.subr.bf16.mxu0 %v9845_v20  ;;  %v7227_v20 = vld [vmem:[%s11247_s3 + $0x50] sm:$0xff] (!%p8297_p6) }
 0x394   : > { %6594 = vmatpush1.bf16.msra.mxu1 %v9840_v21  ;;  %v7228_v21 = vld [vmem:[%s11247_s3 + $0x58] sm:$0xff] (!%p8297_p6) }
 0x395   : > { %7168 = vmatpush1.bf16.msra.mxu0 %v9843_v22  ;;  %v7245_v22 = vld [vmem:[%s11247_s3 + $0xe0] sm:$0xff] (!%p8297_p6)  ;;  %v8361_v25 = vpack.c.bf16 (!%p8297_p6), %v7228_v21, %v7227_v20 }
 0x396   : > { %8340 = vmatprep.subr.bf16.mxu0 (!%p8297_p6), %v8339_v45 }
 0x397   : > { %6596 = vmatmul.mubr.bf16.vlgmr.msra.gmra.mrb[0].mxu1 %v1343_v3  ;;  %v7246_v3 = vld [vmem:[%s11247_s3 + $0xe8] sm:$0xff] (!%p8297_p6) }
 0x398   : > { %7170 = vmatmul.mubr.bf16.vlgmr.msra.gmra.mrb[0].mxu0 %v1491_v19  ;;  %v8363_v4 = vpack.c.bf16 (!%p8297_p6), %v7246_v3, %v7245_v22 }
 0x399   : > { %8342 = vmatpush3.bf16.msra.mxu0 (!%p8297_p6), %v8341_v62 }
 0x39a   : > { %8344 = vmatprep.subr.bf16.mxu0 (!%p8297_p6), %v8343_v49 }
 0x39d   : > { %8346 = vmatpush3.bf16.msra.mxu0 (!%p8297_p6), %v8345_v35 }
 0x39e   : > { %8348 = vmatprep.subr.bf16.mxu0 (!%p8297_p6), %v8347_v42 }
 0x3a1   : > { %8350 = vmatpush3.bf16.msra.mxu0 (!%p8297_p6), %v8349_v39 }
 0x3a2   : > { %8352 = vmatprep.subr.bf16.mxu0 (!%p8297_p6), %v8351_v1 }
 0x3a5   : > { %8354 = vmatpush3.bf16.msra.mxu0 (!%p8297_p6), %v8353_v41 }
 0x3a6   : > { %8356 = vmatprep.subr.bf16.mxu0 (!%p8297_p6), %v8355_v5 }
 0x3a9   : > { %8358 = vmatpush3.bf16.msra.mxu0 (!%p8297_p6), %v8357_v10 }
 0x3aa   : > { %8360 = vmatprep.subr.bf16.mxu0 (!%p8297_p6), %v8359_v12 }
 0x3ad   : > { %8362 = vmatpush3.bf16.msra.mxu0 (!%p8297_p6), %v8361_v25 }
 0x3ae   : > { %8364 = vmatprep.subr.bf16.mxu0 (!%p8297_p6), %v8363_v4 }
 0x46a   : > { %v6597_v11 = vpop.f32.mrb[0].mxu1 }
 0x46b   : > { %v7171_v13 = vpop.f32.mrb[0].mxu0  ;;  %v6599_v53 = vpop.f32.mrb[1].mxu1 }
 0x46c   : > { %v8371_v63 = vadd.f32 %v7171_v13, %v6597_v11  ;;  %v7173_v61 = vpop.f32.mrb[1].mxu0  ;;  %v6601_v14 = vpop.f32.mrb[2].mxu1  ;;  %v7229_v11 = vld [vmem:[%s11247_s3 + $0x60] sm:$0xff] (!%p8297_p6)  ;;  %v7230_v13 = vld [vmem:[%s11247_s3 + $0x68] sm:$0xff] (!%p8297_p6) }
 0x46d   : > { %v8372_v26 = vadd.f32 %v7173_v61, %v6599_v53  ;;  %v7175_v28 = vpop.f32.mrb[2].mxu0  ;;  %v6602_v29 = vpop.f32.mrb[3].mxu1  ;;  %v7248_v53 = vld [vmem:[%s11247_s3 + $0xf8] sm:$0xff] (!%p8297_p6) }
 0x46e   : > { %v7176_v17 = vpop.f32.mrb[3].mxu0  ;;  %v7231_v29 = vld [vmem:[%s11247_s3 + $0x70] sm:$0xff] (!%p8297_p6) }
 0x46f   : > { %v7180_v30 = vcombine.low %v8371_v63, %v8372_v26  ;;  %7194 = sbr.rel (%p8297_p6) target bundleno = 1376 (0x560), region = 48  ;;  %v7247_v63 = vld [vmem:[%s11247_s3 + $0xf0] sm:$0xff] (!%p8297_p6)  ;;  %v8365_v26 = vpack.c.bf16 (!%p8297_p6), %v7230_v13, %v7229_v11  ;;  %v7232_v17 = vld [vmem:[%s11247_s3 + $0x78] sm:$0xff] (!%p8297_p6) }
 0x470   : > { %v8367_v28 = vpack.c.bf16 (!%p8297_p6), %v7248_v53, %v7247_v63 }
 0x471   : > { %v7187_v32 = vrot.slane %v7180_v30, %v11108_v27  ;;  %8366 = vmatpush3.bf16.msra.mxu0 (!%p8297_p6), %v8365_v26  ;;  %v8369_v30 = vpack.c.bf16 (!%p8297_p6), %v7232_v17, %v7231_v29 }
 0x472   : > { %8368 = vmatprep.subr.bf16.mxu0 (!%p8297_p6), %v8367_v28 }
 0x473   : > { %v7189_v33 = vadd.f32 %v7187_v32, %v240_v31  ;;  %v8298_v31 = vld [vmem:[%s11248_s4] ss:$0 sm:$0xff] (!%p8297_p6) }
 0x475   : > { %7190 = vst [vmem:[#allocation2] sm:$0xf] %v7189_v33  ;;  %8370 = vmatpush3.bf16.msra.mxu0 (!%p8297_p6), %v8369_v30 }
 0x47c   : > { %v7195_v9 = vld [vmem:[#allocation2] sm:$0xf] }
 0x47d   : > { %v7215_v19 = vadd.f32 %v7213_v0, %v7195_v9 }
 0x47f   : > { %v7216_v50 = vmax.f32 %v7215_v19, 0.0 }
 0x481   : > { %v7263_v61 = vrot.slane %v7216_v50, %v11108_v27 }
 0x483   : > { %v7264_v14 = vcombine.high %v7263_v61, %v7263_v61 }
 0x485   : > { %7331 = vmatprep.mubr.f32.mxu0 %v7264_v14 }
 0x486   : > { %7332 = vmatmul.mubr.f32.vlgmr.msra.gmra.mrb[0].mxu0 %v7263_v61 }
 0x559   : > { %v8336_v27 = vpop.f32.mrb[0].mxu0 }
 0x55a   : > { %v8337_v32 = vpop.f32.mrb[1].mxu0 }
 0x55b   : > { %v8338_v33 = vadd.f32 %v8337_v32, %v8336_v27 }
 0x55d   : > { %v7334_v16 = vadd.f32 %v8338_v33, %v8298_v31 }
 0x55f   : > { %7338 = vst.msk [vmem:[#allocation3] sm:$0x3] %vm7337_vm0, %v7334_v16 }
 0x560 PF: > { %p8481_p7 = scmp.eq.s32.totalorder %s9930_s19, 1  ;;  %s9893_s28 = smov [#allocation3]  }
 0x561   : > { %s7346_s29 = sshll.u32 %s9893_s28, 4  ;;  %s7347_s29 = int_to_ptr.vmem [resolvable:$true] %s7346_s29 }
 0x562   : > { %s9852_s30 = scalar_lea.vmem %s7347_s29, 32  ;;  %p9859_p11 = scmp.lt.s32.totalorder %s7347_s29, %s7347_s29 }
 0x563   : > { %p9853_p8 = scmp.ne.s32.totalorder %s7347_s29, %s9852_s30  ;;  %p9860_p12 = scmp.lt.s32.totalorder %s9852_s30, %s9852_s30 }
 0x565   : > { %p9854_p9 = pnand %p9853_p8, %p8481_p7  ;;  %p9861_p13 = por %p9860_p12, %p9859_p11 }
 0x567   : > { %p9855_p10 = pneg %p9854_p9 }
 0x569   : > { %p9862_p0 = pnand %p9861_p13, %p9855_p10 }
 0x56b   : > { %9865 = shalt.err (!%p9862_p0)
}
 0x56c   : > { %s9866_s8 = scalar_lea.hbm %s11249_s5, 32 }
 0x56d   : > { %p9867_p1 = scmp.ne.s32.totalorder %s11249_s5, %s9866_s8  ;;  %p9872_p4 = scmp.lt.u32.totalorder %s9866_s8, %s11249_s5 }
 0x56f   : > { %p9868_p2 = pnand %p9867_p1, %p8481_p7 }
 0x571   : > { %p9869_p3 = pneg %p9868_p2 }
 0x573   : > { %p9874_p5 = pnand %p9872_p4, %p9869_p3 }
 0x575   : > { %9877 = shalt.err (!%p9874_p5)
}
 0x576   : > { %8478 = dma.vmem_to_hbm [thread:$0]  (%p8481_p7), %s7347_s29, 32, %s11249_s5, [#allocation4]  }
 0x577   : > { %9883 = dma.done.wait (%p8481_p7), [#allocation4], 32  }
 0x578   : > { %9885 = vsyncadd (%p8481_p7), [#allocation4], 4294967264 }
 0x579 PF: > { %s16_s18 = sadd.s32 1, %s9888_s18  }
 0x57a   : > { %p13_p6 = scmp.ge.s32.totalorder %s16_s18, 4  }
 0x57c   :  { %15 = sbr.rel (!%p13_p6) target bundleno = 1 (0x1), region = 78 }
 0x583   :  { %7359 = vsyncpa [#allocation4], 1 }
 0x584   :  { %7361 = vsyncpa [#allocation4 + $0x1], 1 }

</bundles_post_ra>
